<compile_context>
chip_gen: v5e
topology: v5e:2x2
jax: 0.10.0
libtpu: 0.0.40
codegen_flags: <defaults>
</compile_context>

<pallas_src>
import jax
import jax.numpy as jnp
import numpy as np
from jax.experimental import pallas as pl
from jax.experimental.pallas import tpu as pltpu


def _vmem():
    return pl.BlockSpec(memory_space=pltpu.MemorySpace.VMEM)


# ----------------------------------------------------------------------------
# The fused kernel.
#   p1  : (B*196, 9)  bf16   im2col patches of the input (conv1)
#   w1  : (9, 6)      bf16   conv1 weight, tap-major
#   g1/bt1 : (1, 6)   f32    BN1 gamma/beta
#   gat : (9, B*49, B*196) bf16  0/1 row-gather matrices (conv2 im2col, per tap)
#   w2  : (9, 6, 16)  bf16   conv2 weight per tap
#   g2/bt2 : (1, 16)  f32    BN2 gamma/beta
#   sel : (49, B, B*49) f32  0/1 row-select matrices (flatten, per spatial pos)
#   wb  : (49, 16, 32) f32   bottleneck weight per spatial pos (PyTorch order)
#   bb  : (1, 32) f32 ; wf : (32, 10) f32 ; bf : (1, 10) f32
#   out : (B, 10) f32        log-probabilities
# ----------------------------------------------------------------------------
def _lenet_kernel(p1_ref, w1_ref, g1_ref, bt1_ref,
                  gat_ref, w2_ref, g2_ref, bt2_ref,
                  sel_ref, wb_ref, bb_ref, wf_ref, bf_ref,
                  out_ref):
    f32 = jnp.float32
    bf16 = jnp.bfloat16

    def bn_relu(y, gamma, beta, eps=1e-5):
        # train-mode BatchNorm folded into one scale/shift, stats in f32
        inv_n = 1.0 / y.shape[0]
        mean = jnp.sum(y, axis=0, keepdims=True) * inv_n
        var = jnp.sum(y * y, axis=0, keepdims=True) * inv_n - mean * mean
        s = gamma * jax.lax.rsqrt(var + eps)
        t = beta - mean * s
        return jnp.maximum(y * s + t, 0.0)

    # ---- conv1 (single im2col matmul) + BN1 + ReLU -------------------------
    y1 = jnp.dot(p1_ref[...], w1_ref[...], preferred_element_type=f32)  # (B*196, 6)
    a1 = bn_relu(y1, g1_ref[...], bt1_ref[...]).astype(bf16)

    # ---- conv2: 9 taps, each = (row-gather matmul) @ (tap weight) ----------
    n_taps = gat_ref.shape[0]
    y2 = jnp.zeros((gat_ref.shape[1], w2_ref.shape[2]), f32)            # (B*49, 16)
    for t in range(n_taps):
        pt = jnp.dot(gat_ref[t], a1, preferred_element_type=f32)        # (B*49, 6)
        y2 = y2 + jnp.dot(pt.astype(bf16), w2_ref[t], preferred_element_type=f32)
    a2 = bn_relu(y2, g2_ref[...], bt2_ref[...])                         # (B*49, 16) f32

    # ---- flatten + bottleneck:  h[b,:] = sum_s a2[b*49+s, :] @ wb[s] -------
    n_pos = sel_ref.shape[0]
    h = jnp.zeros((sel_ref.shape[1], wb_ref.shape[2]), f32)             # (B, 32)
    for s in range(n_pos):
        rows = jnp.dot(sel_ref[s], a2, preferred_element_type=f32)      # (B, 16)
        h = h + jnp.dot(rows, wb_ref[s], preferred_element_type=f32)
    h = h + bb_ref[...]

    # ---- fc + log_softmax(dim=1) -------------------------------------------
    logits = jnp.dot(h, wf_ref[...], preferred_element_type=f32) + bf_ref[...]
    m = jnp.max(logits, axis=1, keepdims=True)
    lse = jnp.log(jnp.sum(jnp.exp(logits - m), axis=1, keepdims=True)) + m
    out_ref[...] = logits - lse


# ----------------------------------------------------------------------------
# Host-side constants / glue (computed once per shape, or trivially per call).
# ----------------------------------------------------------------------------
def _im2col_conv1(x):
    """x: (B, 1, 28, 28) f32 -> (B*196, 9) bf16, row = b*196 + i*14 + j,
    tap order t = ky*3 + kx (matches weight.reshape(6, 9))."""
    b = x.shape[0]
    xp = jnp.pad(x[:, 0], ((0, 0), (1, 1), (1, 1)))                     # (B, 30, 30)
    taps = [xp[:, ky:ky + 28:2, kx:kx + 28:2]
            for ky in range(3) for kx in range(3)]                      # 9 x (B,14,14)
    p = jnp.stack(taps, axis=-1)                                        # (B,14,14,9)
    return p.reshape(b * 196, 9).astype(jnp.bfloat16)


def _build_conv2_gather(batch):
    """0/1 matrices: for tap t=(ky,kx), G[t] @ a1 gathers the conv2 patch rows
    (with zero padding), a1 rows ordered (b, i1*14 + j1)."""
    g = np.zeros((9, batch * 49, batch * 196), np.float32)
    for b in range(batch):
        for i in range(7):
            for j in range(7):
                r2 = b * 49 + i * 7 + j
                for ky in range(3):
                    for kx in range(3):
                        yy = 2 * i + ky - 1
                        xx = 2 * j + kx - 1
                        if 0 <= yy < 14 and 0 <= xx < 14:
                            g[ky * 3 + kx, r2, b * 196 + yy * 14 + xx] = 1.0
    return jnp.asarray(g, jnp.bfloat16)


def _build_row_select(batch):
    """E[s] @ a2 picks, for spatial position s, the rows of every batch elem."""
    e = np.zeros((49, batch, batch * 49), np.float32)
    for s in range(49):
        for b in range(batch):
            e[s, b, b * 49 + s] = 1.0
    return jnp.asarray(e, jnp.float32)


def init_params(key, batch):
    ks = jax.random.split(key, 7)
    # Conv weights (PyTorch default-ish: U(+-1/sqrt(fan_in))). Conv biases are
    # omitted on purpose: they cancel exactly under train-mode BatchNorm.
    c1 = jax.random.uniform(ks[0], (6, 1, 3, 3), jnp.float32, -1.0 / 3.0, 1.0 / 3.0)
    b2lim = 1.0 / (54.0 ** 0.5)
    c2 = jax.random.uniform(ks[1], (16, 6, 3, 3), jnp.float32, -b2lim, b2lim)
    g1 = 1.0 + 0.02 * jax.random.normal(ks[2], (1, 6), jnp.float32)
    g2 = 1.0 + 0.02 * jax.random.normal(ks[3], (1, 16), jnp.float32)
    bt1 = jnp.zeros((1, 6), jnp.float32)
    bt2 = jnp.zeros((1, 16), jnp.float32)
    # bottleneck / fc (xavier-normal-ish; fc bias zero per init_weights)
    wb_pt = jax.random.normal(ks[4], (32, 784), jnp.float32) * (2.0 / (784 + 32)) ** 0.5
    bb = jax.random.normal(ks[5], (1, 32), jnp.float32) * (1.0 / 784.0) ** 0.5
    wf_pt = jax.random.normal(ks[6], (10, 32), jnp.float32) * (2.0 / (32 + 10)) ** 0.5
    bf = jnp.zeros((1, 10), jnp.float32)

    kparams = dict(
        w1=c1.reshape(6, 9).T.astype(jnp.bfloat16),                      # (9, 6)
        g1=g1, bt1=bt1,
        G=_build_conv2_gather(batch),                                    # (9, B*49, B*196)
        w2=c2.transpose(2, 3, 1, 0).reshape(9, 6, 16).astype(jnp.bfloat16),
        g2=g2, bt2=bt2,
        E=_build_row_select(batch),                                      # (49, B, B*49)
        # PyTorch flatten order is (c, i, j): wb[s, c, k] = Wb_pt[k, c*49 + s]
        wb=wb_pt.reshape(32, 16, 49).transpose(2, 1, 0),                 # (49, 16, 32) f32
        bb=bb,
        wf=wf_pt.T,                                                      # (32, 10) f32
        bf=bf,
    )
    ref_params = dict(c1=c1, c2=c2, g1=g1, bt1=bt1, g2=g2, bt2=bt2,
                      wb=wb_pt, bb=bb, wf=wf_pt, bf=bf)
    return kparams, ref_params


def _lenet_pallas(p1, params, batch):
    return pl.pallas_call(
        _lenet_kernel,
        out_shape=jax.ShapeDtypeStruct((batch, 10), jnp.float32),
        in_specs=[_vmem()] * 13,
        out_specs=_vmem(),
        compiler_params=pltpu.CompilerParams(vmem_limit_bytes=32 * 1024 * 1024),
    )(p1, params["w1"], params["g1"], params["bt1"],
      params["G"], params["w2"], params["g2"], params["bt2"],
      params["E"], params["wb"], params["bb"], params["wf"], params["bf"])


@jax.jit
def lenet_forward(x, params):
    batch = x.shape[0]
    p1 = _im2col_conv1(x)          # only per-call host glue; everything else is one kernel
    return _lenet_pallas(p1, params, batch)


# ----------------------------------------------------------------------------
# Pure-JAX reference (independent code path) for a numerical sanity check.
# ----------------------------------------------------------------------------
def reference_forward(x, rp):
    def conv(a, w):
        return jax.lax.conv_general_dilated(
            a, w, (2, 2), ((1, 1), (1, 1)),
            dimension_numbers=("NCHW", "OIHW", "NCHW"))

    def bn_relu(y, gamma, beta, eps=1e-5):
        mean = jnp.mean(y, axis=(0, 2, 3), keepdims=True)
        var = jnp.mean((y - mean) ** 2, axis=(0, 2, 3), keepdims=True)
        yn = (y - mean) / jnp.sqrt(var + eps)
        return jax.nn.relu(yn * gamma.reshape(1, -1, 1, 1) + beta.reshape(1, -1, 1, 1))

    a1 = bn_relu(conv(x, rp["c1"]), rp["g1"], rp["bt1"])
    a2 = bn_relu(conv(a1, rp["c2"]), rp["g2"], rp["bt2"])
    flat = a2.reshape(x.shape[0], -1)
    h = flat @ rp["wb"].T + rp["bb"]
    logits = h @ rp["wf"].T + rp["bf"]
    return jax.nn.log_softmax(logits, axis=1)


if __name__ == "__main__":
    key = jax.random.PRNGKey(0)
    kx, kp = jax.random.split(key)
    batch = 2
    # MNIST-shaped input (forced by Linear(784, 32) after two stride-2 convs)
    x = jax.random.normal(kx, (batch, 1, 28, 28), jnp.float32)
    kparams, refparams = init_params(kp, batch)

    out = jax.block_until_ready(lenet_forward(x, kparams))
    ref = jax.block_until_ready(reference_forward(x, refparams))

    assert out.shape == (batch, 10)
    assert bool(jnp.all(jnp.isfinite(out)))
    # log_softmax rows must exponentiate-sum to 1
    assert bool(jnp.allclose(jnp.sum(jnp.exp(out), axis=1), 1.0, atol=1e-4))
    # matches the f32 reference up to bf16 matmul noise
    assert float(jnp.max(jnp.abs(out - ref))) < 0.15
    print("KERNEL_OK")
</pallas_src>

<mosaic_0001>
module attributes {stable_mosaic.version = 11 : i64} {
  func.func @_lenet_kernel(%arg0: memref<392x9xbf16, #tpu.memory_space<vmem>>, %arg1: memref<9x6xbf16, #tpu.memory_space<vmem>>, %arg2: memref<1x6xf32, #tpu.memory_space<vmem>>, %arg3: memref<1x6xf32, #tpu.memory_space<vmem>>, %arg4: memref<9x98x392xbf16, #tpu.memory_space<vmem>>, %arg5: memref<9x6x16xbf16, #tpu.memory_space<vmem>>, %arg6: memref<1x16xf32, #tpu.memory_space<vmem>>, %arg7: memref<1x16xf32, #tpu.memory_space<vmem>>, %arg8: memref<49x2x98xf32, #tpu.memory_space<vmem>>, %arg9: memref<49x16x32xf32, #tpu.memory_space<vmem>>, %arg10: memref<1x32xf32, #tpu.memory_space<vmem>>, %arg11: memref<32x10xf32, #tpu.memory_space<vmem>>, %arg12: memref<1x10xf32, #tpu.memory_space<vmem>>, %arg13: memref<2x10xf32, #tpu.memory_space<vmem>>) attributes {dimension_semantics = [], scalar_prefetch = 0 : i64, scratch_operands = 0 : i64, tpu.core_type = #tpu.core_type<tc>} {
    %c0 = arith.constant 0 : index
    %c0_0 = arith.constant 0 : index
    %0 = vector.load %arg0[%c0, %c0_0] : memref<392x9xbf16, #tpu.memory_space<vmem>>, vector<392x9xbf16>
    %c0_1 = arith.constant 0 : index
    %c0_2 = arith.constant 0 : index
    %1 = vector.load %arg1[%c0_1, %c0_2] : memref<9x6xbf16, #tpu.memory_space<vmem>>, vector<9x6xbf16>
    %cst = arith.constant dense<0.000000e+00> : vector<392x6xf32>
    %2 = tpu.matmul %0, %1, %cst {dimension_numbers = #tpu.dot_dimension_numbers<[1], [0], [0], [1], [0, 0, 1, 1], [], []>} : vector<392x9xbf16>, vector<9x6xbf16>, vector<392x6xf32> -> vector<392x6xf32>
    %c0_3 = arith.constant 0 : index
    %c0_4 = arith.constant 0 : index
    %3 = vector.load %arg2[%c0_3, %c0_4] : memref<1x6xf32, #tpu.memory_space<vmem>>, vector<1x6xf32>
    %c0_5 = arith.constant 0 : index
    %c0_6 = arith.constant 0 : index
    %4 = vector.load %arg3[%c0_5, %c0_6] : memref<1x6xf32, #tpu.memory_space<vmem>>, vector<1x6xf32>
    %cst_7 = arith.constant dense<0.000000e+00> : vector<6xf32>
    %5 = vector.multi_reduction <add>, %2, %cst_7 [0] : vector<392x6xf32> to vector<6xf32>
    %6 = vector.shape_cast %5 : vector<6xf32> to vector<1x6xf32>
    %cst_8 = arith.constant 0.00255102036 : f32
    %7 = vector.broadcast %cst_8 : f32 to vector<1x6xf32>
    %8 = arith.mulf %6, %7 : vector<1x6xf32>
    %9 = arith.mulf %2, %2 : vector<392x6xf32>
    %cst_9 = arith.constant dense<0.000000e+00> : vector<6xf32>
    %10 = vector.multi_reduction <add>, %9, %cst_9 [0] : vector<392x6xf32> to vector<6xf32>
    %11 = vector.shape_cast %10 : vector<6xf32> to vector<1x6xf32>
    %cst_10 = arith.constant 0.00255102036 : f32
    %12 = vector.broadcast %cst_10 : f32 to vector<1x6xf32>
    %13 = arith.mulf %11, %12 : vector<1x6xf32>
    %14 = arith.mulf %8, %8 : vector<1x6xf32>
    %15 = arith.subf %13, %14 : vector<1x6xf32>
    %cst_11 = arith.constant 9.99999974E-6 : f32
    %16 = vector.broadcast %cst_11 : f32 to vector<1x6xf32>
    %17 = arith.addf %15, %16 : vector<1x6xf32>
    %18 = math.rsqrt %17 : vector<1x6xf32>
    %19 = arith.mulf %3, %18 : vector<1x6xf32>
    %20 = arith.mulf %8, %19 : vector<1x6xf32>
    %21 = arith.subf %4, %20 : vector<1x6xf32>
    %22 = vector.broadcast %19 : vector<1x6xf32> to vector<392x6xf32>
    %23 = arith.mulf %2, %22 : vector<392x6xf32>
    %24 = vector.broadcast %21 : vector<1x6xf32> to vector<392x6xf32>
    %25 = arith.addf %23, %24 : vector<392x6xf32>
    %cst_12 = arith.constant 0.000000e+00 : f32
    %26 = vector.broadcast %cst_12 : f32 to vector<392x6xf32>
    %27 = arith.maximumf %25, %26 : vector<392x6xf32>
    %28 = arith.truncf %27 : vector<392x6xf32> to vector<392x6xbf16>
    %cst_13 = arith.constant 0.000000e+00 : f32
    %29 = vector.broadcast %cst_13 : f32 to vector<98x16xf32>
    %c0_14 = arith.constant 0 : index
    %c0_15 = arith.constant 0 : index
    %c0_16 = arith.constant 0 : index
    %30 = vector.load %arg4[%c0_14, %c0_15, %c0_16] : memref<9x98x392xbf16, #tpu.memory_space<vmem>>, vector<1x98x392xbf16>
    %31 = vector.shape_cast %30 : vector<1x98x392xbf16> to vector<98x392xbf16>
    %cst_17 = arith.constant dense<0.000000e+00> : vector<98x6xf32>
    %32 = tpu.matmul %31, %28, %cst_17 {dimension_numbers = #tpu.dot_dimension_numbers<[1], [0], [0], [1], [0, 0, 1, 1], [], []>} : vector<98x392xbf16>, vector<392x6xbf16>, vector<98x6xf32> -> vector<98x6xf32>
    %33 = arith.truncf %32 : vector<98x6xf32> to vector<98x6xbf16>
    %c0_18 = arith.constant 0 : index
    %c0_19 = arith.constant 0 : index
    %c0_20 = arith.constant 0 : index
    %34 = vector.load %arg5[%c0_18, %c0_19, %c0_20] : memref<9x6x16xbf16, #tpu.memory_space<vmem>>, vector<1x6x16xbf16>
    %35 = vector.shape_cast %34 : vector<1x6x16xbf16> to vector<6x16xbf16>
    %cst_21 = arith.constant dense<0.000000e+00> : vector<98x16xf32>
    %36 = tpu.matmul %33, %35, %cst_21 {dimension_numbers = #tpu.dot_dimension_numbers<[1], [0], [0], [1], [0, 0, 1, 1], [], []>} : vector<98x6xbf16>, vector<6x16xbf16>, vector<98x16xf32> -> vector<98x16xf32>
    %37 = arith.addf %29, %36 : vector<98x16xf32>
    %c1 = arith.constant 1 : index
    %c0_22 = arith.constant 0 : index
    %c0_23 = arith.constant 0 : index
    %38 = vector.load %arg4[%c1, %c0_22, %c0_23] : memref<9x98x392xbf16, #tpu.memory_space<vmem>>, vector<1x98x392xbf16>
    %39 = vector.shape_cast %38 : vector<1x98x392xbf16> to vector<98x392xbf16>
    %cst_24 = arith.constant dense<0.000000e+00> : vector<98x6xf32>
    %40 = tpu.matmul %39, %28, %cst_24 {dimension_numbers = #tpu.dot_dimension_numbers<[1], [0], [0], [1], [0, 0, 1, 1], [], []>} : vector<98x392xbf16>, vector<392x6xbf16>, vector<98x6xf32> -> vector<98x6xf32>
    %41 = arith.truncf %40 : vector<98x6xf32> to vector<98x6xbf16>
    %c1_25 = arith.constant 1 : index
    %c0_26 = arith.constant 0 : index
    %c0_27 = arith.constant 0 : index
    %42 = vector.load %arg5[%c1_25, %c0_26, %c0_27] : memref<9x6x16xbf16, #tpu.memory_space<vmem>>, vector<1x6x16xbf16>
    %43 = vector.shape_cast %42 : vector<1x6x16xbf16> to vector<6x16xbf16>
    %cst_28 = arith.constant dense<0.000000e+00> : vector<98x16xf32>
    %44 = tpu.matmul %41, %43, %cst_28 {dimension_numbers = #tpu.dot_dimension_numbers<[1], [0], [0], [1], [0, 0, 1, 1], [], []>} : vector<98x6xbf16>, vector<6x16xbf16>, vector<98x16xf32> -> vector<98x16xf32>
    %45 = arith.addf %37, %44 : vector<98x16xf32>
    %c2 = arith.constant 2 : index
    %c0_29 = arith.constant 0 : index
    %c0_30 = arith.constant 0 : index
    %46 = vector.load %arg4[%c2, %c0_29, %c0_30] : memref<9x98x392xbf16, #tpu.memory_space<vmem>>, vector<1x98x392xbf16>
    %47 = vector.shape_cast %46 : vector<1x98x392xbf16> to vector<98x392xbf16>
    %cst_31 = arith.constant dense<0.000000e+00> : vector<98x6xf32>
    %48 = tpu.matmul %47, %28, %cst_31 {dimension_numbers = #tpu.dot_dimension_numbers<[1], [0], [0], [1], [0, 0, 1, 1], [], []>} : vector<98x392xbf16>, vector<392x6xbf16>, vector<98x6xf32> -> vector<98x6xf32>
    %49 = arith.truncf %48 : vector<98x6xf32> to vector<98x6xbf16>
    %c2_32 = arith.constant 2 : index
    %c0_33 = arith.constant 0 : index
    %c0_34 = arith.constant 0 : index
    %50 = vector.load %arg5[%c2_32, %c0_33, %c0_34] : memref<9x6x16xbf16, #tpu.memory_space<vmem>>, vector<1x6x16xbf16>
    %51 = vector.shape_cast %50 : vector<1x6x16xbf16> to vector<6x16xbf16>
    %cst_35 = arith.constant dense<0.000000e+00> : vector<98x16xf32>
    %52 = tpu.matmul %49, %51, %cst_35 {dimension_numbers = #tpu.dot_dimension_numbers<[1], [0], [0], [1], [0, 0, 1, 1], [], []>} : vector<98x6xbf16>, vector<6x16xbf16>, vector<98x16xf32> -> vector<98x16xf32>
    %53 = arith.addf %45, %52 : vector<98x16xf32>
    %c3 = arith.constant 3 : index
    %c0_36 = arith.constant 0 : index
    %c0_37 = arith.constant 0 : index
    %54 = vector.load %arg4[%c3, %c0_36, %c0_37] : memref<9x98x392xbf16, #tpu.memory_space<vmem>>, vector<1x98x392xbf16>
    %55 = vector.shape_cast %54 : vector<1x98x392xbf16> to vector<98x392xbf16>
    %cst_38 = arith.constant dense<0.000000e+00> : vector<98x6xf32>
    %56 = tpu.matmul %55, %28, %cst_38 {dimension_numbers = #tpu.dot_dimension_numbers<[1], [0], [0], [1], [0, 0, 1, 1], [], []>} : vector<98x392xbf16>, vector<392x6xbf16>, vector<98x6xf32> -> vector<98x6xf32>
    %57 = arith.truncf %56 : vector<98x6xf32> to vector<98x6xbf16>
    %c3_39 = arith.constant 3 : index
    %c0_40 = arith.constant 0 : index
    %c0_41 = arith.constant 0 : index
    %58 = vector.load %arg5[%c3_39, %c0_40, %c0_41] : memref<9x6x16xbf16, #tpu.memory_space<vmem>>, vector<1x6x16xbf16>
    %59 = vector.shape_cast %58 : vector<1x6x16xbf16> to vector<6x16xbf16>
    %cst_42 = arith.constant dense<0.000000e+00> : vector<98x16xf32>
    %60 = tpu.matmul %57, %59, %cst_42 {dimension_numbers = #tpu.dot_dimension_numbers<[1], [0], [0], [1], [0, 0, 1, 1], [], []>} : vector<98x6xbf16>, vector<6x16xbf16>, vector<98x16xf32> -> vector<98x16xf32>
    %61 = arith.addf %53, %60 : vector<98x16xf32>
    %c4 = arith.constant 4 : index
    %c0_43 = arith.constant 0 : index
    %c0_44 = arith.constant 0 : index
    %62 = vector.load %arg4[%c4, %c0_43, %c0_44] : memref<9x98x392xbf16, #tpu.memory_space<vmem>>, vector<1x98x392xbf16>
    %63 = vector.shape_cast %62 : vector<1x98x392xbf16> to vector<98x392xbf16>
    %cst_45 = arith.constant dense<0.000000e+00> : vector<98x6xf32>
    %64 = tpu.matmul %63, %28, %cst_45 {dimension_numbers = #tpu.dot_dimension_numbers<[1], [0], [0], [1], [0, 0, 1, 1], [], []>} : vector<98x392xbf16>, vector<392x6xbf16>, vector<98x6xf32> -> vector<98x6xf32>
    %65 = arith.truncf %64 : vector<98x6xf32> to vector<98x6xbf16>
    %c4_46 = arith.constant 4 : index
    %c0_47 = arith.constant 0 : index
    %c0_48 = arith.constant 0 : index
    %66 = vector.load %arg5[%c4_46, %c0_47, %c0_48] : memref<9x6x16xbf16, #tpu.memory_space<vmem>>, vector<1x6x16xbf16>
    %67 = vector.shape_cast %66 : vector<1x6x16xbf16> to vector<6x16xbf16>
    %cst_49 = arith.constant dense<0.000000e+00> : vector<98x16xf32>
    %68 = tpu.matmul %65, %67, %cst_49 {dimension_numbers = #tpu.dot_dimension_numbers<[1], [0], [0], [1], [0, 0, 1, 1], [], []>} : vector<98x6xbf16>, vector<6x16xbf16>, vector<98x16xf32> -> vector<98x16xf32>
    %69 = arith.addf %61, %68 : vector<98x16xf32>
    %c5 = arith.constant 5 : index
    %c0_50 = arith.constant 0 : index
    %c0_51 = arith.constant 0 : index
    %70 = vector.load %arg4[%c5, %c0_50, %c0_51] : memref<9x98x392xbf16, #tpu.memory_space<vmem>>, vector<1x98x392xbf16>
    %71 = vector.shape_cast %70 : vector<1x98x392xbf16> to vector<98x392xbf16>
    %cst_52 = arith.constant dense<0.000000e+00> : vector<98x6xf32>
    %72 = tpu.matmul %71, %28, %cst_52 {dimension_numbers = #tpu.dot_dimension_numbers<[1], [0], [0], [1], [0, 0, 1, 1], [], []>} : vector<98x392xbf16>, vector<392x6xbf16>, vector<98x6xf32> -> vector<98x6xf32>
    %73 = arith.truncf %72 : vector<98x6xf32> to vector<98x6xbf16>
    %c5_53 = arith.constant 5 : index
    %c0_54 = arith.constant 0 : index
    %c0_55 = arith.constant 0 : index
    %74 = vector.load %arg5[%c5_53, %c0_54, %c0_55] : memref<9x6x16xbf16, #tpu.memory_space<vmem>>, vector<1x6x16xbf16>
    %75 = vector.shape_cast %74 : vector<1x6x16xbf16> to vector<6x16xbf16>
    %cst_56 = arith.constant dense<0.000000e+00> : vector<98x16xf32>
    %76 = tpu.matmul %73, %75, %cst_56 {dimension_numbers = #tpu.dot_dimension_numbers<[1], [0], [0], [1], [0, 0, 1, 1], [], []>} : vector<98x6xbf16>, vector<6x16xbf16>, vector<98x16xf32> -> vector<98x16xf32>
    %77 = arith.addf %69, %76 : vector<98x16xf32>
    %c6 = arith.constant 6 : index
    %c0_57 = arith.constant 0 : index
    %c0_58 = arith.constant 0 : index
    %78 = vector.load %arg4[%c6, %c0_57, %c0_58] : memref<9x98x392xbf16, #tpu.memory_space<vmem>>, vector<1x98x392xbf16>
    %79 = vector.shape_cast %78 : vector<1x98x392xbf16> to vector<98x392xbf16>
    %cst_59 = arith.constant dense<0.000000e+00> : vector<98x6xf32>
    %80 = tpu.matmul %79, %28, %cst_59 {dimension_numbers = #tpu.dot_dimension_numbers<[1], [0], [0], [1], [0, 0, 1, 1], [], []>} : vector<98x392xbf16>, vector<392x6xbf16>, vector<98x6xf32> -> vector<98x6xf32>
    %81 = arith.truncf %80 : vector<98x6xf32> to vector<98x6xbf16>
    %c6_60 = arith.constant 6 : index
    %c0_61 = arith.constant 0 : index
    %c0_62 = arith.constant 0 : index
    %82 = vector.load %arg5[%c6_60, %c0_61, %c0_62] : memref<9x6x16xbf16, #tpu.memory_space<vmem>>, vector<1x6x16xbf16>
    %83 = vector.shape_cast %82 : vector<1x6x16xbf16> to vector<6x16xbf16>
    %cst_63 = arith.constant dense<0.000000e+00> : vector<98x16xf32>
    %84 = tpu.matmul %81, %83, %cst_63 {dimension_numbers = #tpu.dot_dimension_numbers<[1], [0], [0], [1], [0, 0, 1, 1], [], []>} : vector<98x6xbf16>, vector<6x16xbf16>, vector<98x16xf32> -> vector<98x16xf32>
    %85 = arith.addf %77, %84 : vector<98x16xf32>
    %c7 = arith.constant 7 : index
    %c0_64 = arith.constant 0 : index
    %c0_65 = arith.constant 0 : index
    %86 = vector.load %arg4[%c7, %c0_64, %c0_65] : memref<9x98x392xbf16, #tpu.memory_space<vmem>>, vector<1x98x392xbf16>
    %87 = vector.shape_cast %86 : vector<1x98x392xbf16> to vector<98x392xbf16>
    %cst_66 = arith.constant dense<0.000000e+00> : vector<98x6xf32>
    %88 = tpu.matmul %87, %28, %cst_66 {dimension_numbers = #tpu.dot_dimension_numbers<[1], [0], [0], [1], [0, 0, 1, 1], [], []>} : vector<98x392xbf16>, vector<392x6xbf16>, vector<98x6xf32> -> vector<98x6xf32>
    %89 = arith.truncf %88 : vector<98x6xf32> to vector<98x6xbf16>
    %c7_67 = arith.constant 7 : index
    %c0_68 = arith.constant 0 : index
    %c0_69 = arith.constant 0 : index
    %90 = vector.load %arg5[%c7_67, %c0_68, %c0_69] : memref<9x6x16xbf16, #tpu.memory_space<vmem>>, vector<1x6x16xbf16>
    %91 = vector.shape_cast %90 : vector<1x6x16xbf16> to vector<6x16xbf16>
    %cst_70 = arith.constant dense<0.000000e+00> : vector<98x16xf32>
    %92 = tpu.matmul %89, %91, %cst_70 {dimension_numbers = #tpu.dot_dimension_numbers<[1], [0], [0], [1], [0, 0, 1, 1], [], []>} : vector<98x6xbf16>, vector<6x16xbf16>, vector<98x16xf32> -> vector<98x16xf32>
    %93 = arith.addf %85, %92 : vector<98x16xf32>
    %c8 = arith.constant 8 : index
    %c0_71 = arith.constant 0 : index
    %c0_72 = arith.constant 0 : index
    %94 = vector.load %arg4[%c8, %c0_71, %c0_72] : memref<9x98x392xbf16, #tpu.memory_space<vmem>>, vector<1x98x392xbf16>
    %95 = vector.shape_cast %94 : vector<1x98x392xbf16> to vector<98x392xbf16>
    %cst_73 = arith.constant dense<0.000000e+00> : vector<98x6xf32>
    %96 = tpu.matmul %95, %28, %cst_73 {dimension_numbers = #tpu.dot_dimension_numbers<[1], [0], [0], [1], [0, 0, 1, 1], [], []>} : vector<98x392xbf16>, vector<392x6xbf16>, vector<98x6xf32> -> vector<98x6xf32>
    %97 = arith.truncf %96 : vector<98x6xf32> to vector<98x6xbf16>
    %c8_74 = arith.constant 8 : index
    %c0_75 = arith.constant 0 : index
    %c0_76 = arith.constant 0 : index
    %98 = vector.load %arg5[%c8_74, %c0_75, %c0_76] : memref<9x6x16xbf16, #tpu.memory_space<vmem>>, vector<1x6x16xbf16>
    %99 = vector.shape_cast %98 : vector<1x6x16xbf16> to vector<6x16xbf16>
    %cst_77 = arith.constant dense<0.000000e+00> : vector<98x16xf32>
    %100 = tpu.matmul %97, %99, %cst_77 {dimension_numbers = #tpu.dot_dimension_numbers<[1], [0], [0], [1], [0, 0, 1, 1], [], []>} : vector<98x6xbf16>, vector<6x16xbf16>, vector<98x16xf32> -> vector<98x16xf32>
    %101 = arith.addf %93, %100 : vector<98x16xf32>
    %c0_78 = arith.constant 0 : index
    %c0_79 = arith.constant 0 : index
    %102 = vector.load %arg6[%c0_78, %c0_79] : memref<1x16xf32, #tpu.memory_space<vmem>>, vector<1x16xf32>
    %c0_80 = arith.constant 0 : index
    %c0_81 = arith.constant 0 : index
    %103 = vector.load %arg7[%c0_80, %c0_81] : memref<1x16xf32, #tpu.memory_space<vmem>>, vector<1x16xf32>
    %cst_82 = arith.constant dense<0.000000e+00> : vector<16xf32>
    %104 = vector.multi_reduction <add>, %101, %cst_82 [0] : vector<98x16xf32> to vector<16xf32>
    %105 = vector.shape_cast %104 : vector<16xf32> to vector<1x16xf32>
    %cst_83 = arith.constant 0.0102040814 : f32
    %106 = vector.broadcast %cst_83 : f32 to vector<1x16xf32>
    %107 = arith.mulf %105, %106 : vector<1x16xf32>
    %108 = arith.mulf %101, %101 : vector<98x16xf32>
    %cst_84 = arith.constant dense<0.000000e+00> : vector<16xf32>
    %109 = vector.multi_reduction <add>, %108, %cst_84 [0] : vector<98x16xf32> to vector<16xf32>
    %110 = vector.shape_cast %109 : vector<16xf32> to vector<1x16xf32>
    %cst_85 = arith.constant 0.0102040814 : f32
    %111 = vector.broadcast %cst_85 : f32 to vector<1x16xf32>
    %112 = arith.mulf %110, %111 : vector<1x16xf32>
    %113 = arith.mulf %107, %107 : vector<1x16xf32>
    %114 = arith.subf %112, %113 : vector<1x16xf32>
    %cst_86 = arith.constant 9.99999974E-6 : f32
    %115 = vector.broadcast %cst_86 : f32 to vector<1x16xf32>
    %116 = arith.addf %114, %115 : vector<1x16xf32>
    %117 = math.rsqrt %116 : vector<1x16xf32>
    %118 = arith.mulf %102, %117 : vector<1x16xf32>
    %119 = arith.mulf %107, %118 : vector<1x16xf32>
    %120 = arith.subf %103, %119 : vector<1x16xf32>
    %121 = vector.broadcast %118 : vector<1x16xf32> to vector<98x16xf32>
    %122 = arith.mulf %101, %121 : vector<98x16xf32>
    %123 = vector.broadcast %120 : vector<1x16xf32> to vector<98x16xf32>
    %124 = arith.addf %122, %123 : vector<98x16xf32>
    %cst_87 = arith.constant 0.000000e+00 : f32
    %125 = vector.broadcast %cst_87 : f32 to vector<98x16xf32>
    %126 = arith.maximumf %124, %125 : vector<98x16xf32>
    %cst_88 = arith.constant 0.000000e+00 : f32
    %127 = vector.broadcast %cst_88 : f32 to vector<2x32xf32>
    %c0_89 = arith.constant 0 : index
    %c0_90 = arith.constant 0 : index
    %c0_91 = arith.constant 0 : index
    %128 = vector.load %arg8[%c0_89, %c0_90, %c0_91] : memref<49x2x98xf32, #tpu.memory_space<vmem>>, vector<1x2x98xf32>
    %129 = vector.shape_cast %128 : vector<1x2x98xf32> to vector<2x98xf32>
    %cst_92 = arith.constant dense<0.000000e+00> : vector<2x16xf32>
    %130 = tpu.matmul %129, %126, %cst_92 {dimension_numbers = #tpu.dot_dimension_numbers<[1], [0], [0], [1], [0, 0, 1, 1], [], []>} : vector<2x98xf32>, vector<98x16xf32>, vector<2x16xf32> -> vector<2x16xf32>
    %c0_93 = arith.constant 0 : index
    %c0_94 = arith.constant 0 : index
    %c0_95 = arith.constant 0 : index
    %131 = vector.load %arg9[%c0_93, %c0_94, %c0_95] : memref<49x16x32xf32, #tpu.memory_space<vmem>>, vector<1x16x32xf32>
    %132 = vector.shape_cast %131 : vector<1x16x32xf32> to vector<16x32xf32>
    %cst_96 = arith.constant dense<0.000000e+00> : vector<2x32xf32>
    %133 = tpu.matmul %130, %132, %cst_96 {dimension_numbers = #tpu.dot_dimension_numbers<[1], [0], [0], [1], [0, 0, 1, 1], [], []>} : vector<2x16xf32>, vector<16x32xf32>, vector<2x32xf32> -> vector<2x32xf32>
    %134 = arith.addf %127, %133 : vector<2x32xf32>
    %c1_97 = arith.constant 1 : index
    %c0_98 = arith.constant 0 : index
    %c0_99 = arith.constant 0 : index
    %135 = vector.load %arg8[%c1_97, %c0_98, %c0_99] : memref<49x2x98xf32, #tpu.memory_space<vmem>>, vector<1x2x98xf32>
    %136 = vector.shape_cast %135 : vector<1x2x98xf32> to vector<2x98xf32>
    %cst_100 = arith.constant dense<0.000000e+00> : vector<2x16xf32>
    %137 = tpu.matmul %136, %126, %cst_100 {dimension_numbers = #tpu.dot_dimension_numbers<[1], [0], [0], [1], [0, 0, 1, 1], [], []>} : vector<2x98xf32>, vector<98x16xf32>, vector<2x16xf32> -> vector<2x16xf32>
    %c1_101 = arith.constant 1 : index
    %c0_102 = arith.constant 0 : index
    %c0_103 = arith.constant 0 : index
    %138 = vector.load %arg9[%c1_101, %c0_102, %c0_103] : memref<49x16x32xf32, #tpu.memory_space<vmem>>, vector<1x16x32xf32>
    %139 = vector.shape_cast %138 : vector<1x16x32xf32> to vector<16x32xf32>
    %cst_104 = arith.constant dense<0.000000e+00> : vector<2x32xf32>
    %140 = tpu.matmul %137, %139, %cst_104 {dimension_numbers = #tpu.dot_dimension_numbers<[1], [0], [0], [1], [0, 0, 1, 1], [], []>} : vector<2x16xf32>, vector<16x32xf32>, vector<2x32xf32> -> vector<2x32xf32>
    %141 = arith.addf %134, %140 : vector<2x32xf32>
    %c2_105 = arith.constant 2 : index
    %c0_106 = arith.constant 0 : index
    %c0_107 = arith.constant 0 : index
    %142 = vector.load %arg8[%c2_105, %c0_106, %c0_107] : memref<49x2x98xf32, #tpu.memory_space<vmem>>, vector<1x2x98xf32>
    %143 = vector.shape_cast %142 : vector<1x2x98xf32> to vector<2x98xf32>
    %cst_108 = arith.constant dense<0.000000e+00> : vector<2x16xf32>
    %144 = tpu.matmul %143, %126, %cst_108 {dimension_numbers = #tpu.dot_dimension_numbers<[1], [0], [0], [1], [0, 0, 1, 1], [], []>} : vector<2x98xf32>, vector<98x16xf32>, vector<2x16xf32> -> vector<2x16xf32>
    %c2_109 = arith.constant 2 : index
    %c0_110 = arith.constant 0 : index
    %c0_111 = arith.constant 0 : index
    %145 = vector.load %arg9[%c2_109, %c0_110, %c0_111] : memref<49x16x32xf32, #tpu.memory_space<vmem>>, vector<1x16x32xf32>
    %146 = vector.shape_cast %145 : vector<1x16x32xf32> to vector<16x32xf32>
    %cst_112 = arith.constant dense<0.000000e+00> : vector<2x32xf32>
    %147 = tpu.matmul %144, %146, %cst_112 {dimension_numbers = #tpu.dot_dimension_numbers<[1], [0], [0], [1], [0, 0, 1, 1], [], []>} : vector<2x16xf32>, vector<16x32xf32>, vector<2x32xf32> -> vector<2x32xf32>
    %148 = arith.addf %141, %147 : vector<2x32xf32>
    %c3_113 = arith.constant 3 : index
    %c0_114 = arith.constant 0 : index
    %c0_115 = arith.constant 0 : index
    %149 = vector.load %arg8[%c3_113, %c0_114, %c0_115] : memref<49x2x98xf32, #tpu.memory_space<vmem>>, vector<1x2x98xf32>
    %150 = vector.shape_cast %149 : vector<1x2x98xf32> to vector<2x98xf32>
    %cst_116 = arith.constant dense<0.000000e+00> : vector<2x16xf32>
    %151 = tpu.matmul %150, %126, %cst_116 {dimension_numbers = #tpu.dot_dimension_numbers<[1], [0], [0], [1], [0, 0, 1, 1], [], []>} : vector<2x98xf32>, vector<98x16xf32>, vector<2x16xf32> -> vector<2x16xf32>
    %c3_117 = arith.constant 3 : index
    %c0_118 = arith.constant 0 : index
    %c0_119 = arith.constant 0 : index
    %152 = vector.load %arg9[%c3_117, %c0_118, %c0_119] : memref<49x16x32xf32, #tpu.memory_space<vmem>>, vector<1x16x32xf32>
    %153 = vector.shape_cast %152 : vector<1x16x32xf32> to vector<16x32xf32>
    %cst_120 = arith.constant dense<0.000000e+00> : vector<2x32xf32>
    %154 = tpu.matmul %151, %153, %cst_120 {dimension_numbers = #tpu.dot_dimension_numbers<[1], [0], [0], [1], [0, 0, 1, 1], [], []>} : vector<2x16xf32>, vector<16x32xf32>, vector<2x32xf32> -> vector<2x32xf32>
    %155 = arith.addf %148, %154 : vector<2x32xf32>
    %c4_121 = arith.constant 4 : index
    %c0_122 = arith.constant 0 : index
    %c0_123 = arith.constant 0 : index
    %156 = vector.load %arg8[%c4_121, %c0_122, %c0_123] : memref<49x2x98xf32, #tpu.memory_space<vmem>>, vector<1x2x98xf32>
    %157 = vector.shape_cast %156 : vector<1x2x98xf32> to vector<2x98xf32>
    %cst_124 = arith.constant dense<0.000000e+00> : vector<2x16xf32>
    %158 = tpu.matmul %157, %126, %cst_124 {dimension_numbers = #tpu.dot_dimension_numbers<[1], [0], [0], [1], [0, 0, 1, 1], [], []>} : vector<2x98xf32>, vector<98x16xf32>, vector<2x16xf32> -> vector<2x16xf32>
    %c4_125 = arith.constant 4 : index
    %c0_126 = arith.constant 0 : index
    %c0_127 = arith.constant 0 : index
    %159 = vector.load %arg9[%c4_125, %c0_126, %c0_127] : memref<49x16x32xf32, #tpu.memory_space<vmem>>, vector<1x16x32xf32>
    %160 = vector.shape_cast %159 : vector<1x16x32xf32> to vector<16x32xf32>
    %cst_128 = arith.constant dense<0.000000e+00> : vector<2x32xf32>
    %161 = tpu.matmul %158, %160, %cst_128 {dimension_numbers = #tpu.dot_dimension_numbers<[1], [0], [0], [1], [0, 0, 1, 1], [], []>} : vector<2x16xf32>, vector<16x32xf32>, vector<2x32xf32> -> vector<2x32xf32>
    %162 = arith.addf %155, %161 : vector<2x32xf32>
    %c5_129 = arith.constant 5 : index
    %c0_130 = arith.constant 0 : index
    %c0_131 = arith.constant 0 : index
    %163 = vector.load %arg8[%c5_129, %c0_130, %c0_131] : memref<49x2x98xf32, #tpu.memory_space<vmem>>, vector<1x2x98xf32>
    %164 = vector.shape_cast %163 : vector<1x2x98xf32> to vector<2x98xf32>
    %cst_132 = arith.constant dense<0.000000e+00> : vector<2x16xf32>
    %165 = tpu.matmul %164, %126, %cst_132 {dimension_numbers = #tpu.dot_dimension_numbers<[1], [0], [0], [1], [0, 0, 1, 1], [], []>} : vector<2x98xf32>, vector<98x16xf32>, vector<2x16xf32> -> vector<2x16xf32>
    %c5_133 = arith.constant 5 : index
    %c0_134 = arith.constant 0 : index
    %c0_135 = arith.constant 0 : index
    %166 = vector.load %arg9[%c5_133, %c0_134, %c0_135] : memref<49x16x32xf32, #tpu.memory_space<vmem>>, vector<1x16x32xf32>
    %167 = vector.shape_cast %166 : vector<1x16x32xf32> to vector<16x32xf32>
    %cst_136 = arith.constant dense<0.000000e+00> : vector<2x32xf32>
    %168 = tpu.matmul %165, %167, %cst_136 {dimension_numbers = #tpu.dot_dimension_numbers<[1], [0], [0], [1], [0, 0, 1, 1], [], []>} : vector<2x16xf32>, vector<16x32xf32>, vector<2x32xf32> -> vector<2x32xf32>
    %169 = arith.addf %162, %168 : vector<2x32xf32>
    %c6_137 = arith.constant 6 : index
    %c0_138 = arith.constant 0 : index
    %c0_139 = arith.constant 0 : index
    %170 = vector.load %arg8[%c6_137, %c0_138, %c0_139] : memref<49x2x98xf32, #tpu.memory_space<vmem>>, vector<1x2x98xf32>
    %171 = vector.shape_cast %170 : vector<1x2x98xf32> to vector<2x98xf32>
    %cst_140 = arith.constant dense<0.000000e+00> : vector<2x16xf32>
    %172 = tpu.matmul %171, %126, %cst_140 {dimension_numbers = #tpu.dot_dimension_numbers<[1], [0], [0], [1], [0, 0, 1, 1], [], []>} : vector<2x98xf32>, vector<98x16xf32>, vector<2x16xf32> -> vector<2x16xf32>
    %c6_141 = arith.constant 6 : index
    %c0_142 = arith.constant 0 : index
    %c0_143 = arith.constant 0 : index
    %173 = vector.load %arg9[%c6_141, %c0_142, %c0_143] : memref<49x16x32xf32, #tpu.memory_space<vmem>>, vector<1x16x32xf32>
    %174 = vector.shape_cast %173 : vector<1x16x32xf32> to vector<16x32xf32>
    %cst_144 = arith.constant dense<0.000000e+00> : vector<2x32xf32>
    %175 = tpu.matmul %172, %174, %cst_144 {dimension_numbers = #tpu.dot_dimension_numbers<[1], [0], [0], [1], [0, 0, 1, 1], [], []>} : vector<2x16xf32>, vector<16x32xf32>, vector<2x32xf32> -> vector<2x32xf32>
    %176 = arith.addf %169, %175 : vector<2x32xf32>
    %c7_145 = arith.constant 7 : index
    %c0_146 = arith.constant 0 : index
    %c0_147 = arith.constant 0 : index
    %177 = vector.load %arg8[%c7_145, %c0_146, %c0_147] : memref<49x2x98xf32, #tpu.memory_space<vmem>>, vector<1x2x98xf32>
    %178 = vector.shape_cast %177 : vector<1x2x98xf32> to vector<2x98xf32>
    %cst_148 = arith.constant dense<0.000000e+00> : vector<2x16xf32>
    %179 = tpu.matmul %178, %126, %cst_148 {dimension_numbers = #tpu.dot_dimension_numbers<[1], [0], [0], [1], [0, 0, 1, 1], [], []>} : vector<2x98xf32>, vector<98x16xf32>, vector<2x16xf32> -> vector<2x16xf32>
    %c7_149 = arith.constant 7 : index
    %c0_150 = arith.constant 0 : index
    %c0_151 = arith.constant 0 : index
    %180 = vector.load %arg9[%c7_149, %c0_150, %c0_151] : memref<49x16x32xf32, #tpu.memory_space<vmem>>, vector<1x16x32xf32>
    %181 = vector.shape_cast %180 : vector<1x16x32xf32> to vector<16x32xf32>
    %cst_152 = arith.constant dense<0.000000e+00> : vector<2x32xf32>
    %182 = tpu.matmul %179, %181, %cst_152 {dimension_numbers = #tpu.dot_dimension_numbers<[1], [0], [0], [1], [0, 0, 1, 1], [], []>} : vector<2x16xf32>, vector<16x32xf32>, vector<2x32xf32> -> vector<2x32xf32>
    %183 = arith.addf %176, %182 : vector<2x32xf32>
    %c8_153 = arith.constant 8 : index
    %c0_154 = arith.constant 0 : index
    %c0_155 = arith.constant 0 : index
    %184 = vector.load %arg8[%c8_153, %c0_154, %c0_155] : memref<49x2x98xf32, #tpu.memory_space<vmem>>, vector<1x2x98xf32>
    %185 = vector.shape_cast %184 : vector<1x2x98xf32> to vector<2x98xf32>
    %cst_156 = arith.constant dense<0.000000e+00> : vector<2x16xf32>
    %186 = tpu.matmul %185, %126, %cst_156 {dimension_numbers = #tpu.dot_dimension_numbers<[1], [0], [0], [1], [0, 0, 1, 1], [], []>} : vector<2x98xf32>, vector<98x16xf32>, vector<2x16xf32> -> vector<2x16xf32>
    %c8_157 = arith.constant 8 : index
    %c0_158 = arith.constant 0 : index
    %c0_159 = arith.constant 0 : index
    %187 = vector.load %arg9[%c8_157, %c0_158, %c0_159] : memref<49x16x32xf32, #tpu.memory_space<vmem>>, vector<1x16x32xf32>
    %188 = vector.shape_cast %187 : vector<1x16x32xf32> to vector<16x32xf32>
    %cst_160 = arith.constant dense<0.000000e+00> : vector<2x32xf32>
    %189 = tpu.matmul %186, %188, %cst_160 {dimension_numbers = #tpu.dot_dimension_numbers<[1], [0], [0], [1], [0, 0, 1, 1], [], []>} : vector<2x16xf32>, vector<16x32xf32>, vector<2x32xf32> -> vector<2x32xf32>
    %190 = arith.addf %183, %189 : vector<2x32xf32>
    %c9 = arith.constant 9 : index
    %c0_161 = arith.constant 0 : index
    %c0_162 = arith.constant 0 : index
    %191 = vector.load %arg8[%c9, %c0_161, %c0_162] : memref<49x2x98xf32, #tpu.memory_space<vmem>>, vector<1x2x98xf32>
    %192 = vector.shape_cast %191 : vector<1x2x98xf32> to vector<2x98xf32>
    %cst_163 = arith.constant dense<0.000000e+00> : vector<2x16xf32>
    %193 = tpu.matmul %192, %126, %cst_163 {dimension_numbers = #tpu.dot_dimension_numbers<[1], [0], [0], [1], [0, 0, 1, 1], [], []>} : vector<2x98xf32>, vector<98x16xf32>, vector<2x16xf32> -> vector<2x16xf32>
    %c9_164 = arith.constant 9 : index
    %c0_165 = arith.constant 0 : index
    %c0_166 = arith.constant 0 : index
    %194 = vector.load %arg9[%c9_164, %c0_165, %c0_166] : memref<49x16x32xf32, #tpu.memory_space<vmem>>, vector<1x16x32xf32>
    %195 = vector.shape_cast %194 : vector<1x16x32xf32> to vector<16x32xf32>
    %cst_167 = arith.constant dense<0.000000e+00> : vector<2x32xf32>
    %196 = tpu.matmul %193, %195, %cst_167 {dimension_numbers = #tpu.dot_dimension_numbers<[1], [0], [0], [1], [0, 0, 1, 1], [], []>} : vector<2x16xf32>, vector<16x32xf32>, vector<2x32xf32> -> vector<2x32xf32>
    %197 = arith.addf %190, %196 : vector<2x32xf32>
    %c10 = arith.constant 10 : index
    %c0_168 = arith.constant 0 : index
    %c0_169 = arith.constant 0 : index
    %198 = vector.load %arg8[%c10, %c0_168, %c0_169] : memref<49x2x98xf32, #tpu.memory_space<vmem>>, vector<1x2x98xf32>
    %199 = vector.shape_cast %198 : vector<1x2x98xf32> to vector<2x98xf32>
    %cst_170 = arith.constant dense<0.000000e+00> : vector<2x16xf32>
    %200 = tpu.matmul %199, %126, %cst_170 {dimension_numbers = #tpu.dot_dimension_numbers<[1], [0], [0], [1], [0, 0, 1, 1], [], []>} : vector<2x98xf32>, vector<98x16xf32>, vector<2x16xf32> -> vector<2x16xf32>
    %c10_171 = arith.constant 10 : index
    %c0_172 = arith.constant 0 : index
    %c0_173 = arith.constant 0 : index
    %201 = vector.load %arg9[%c10_171, %c0_172, %c0_173] : memref<49x16x32xf32, #tpu.memory_space<vmem>>, vector<1x16x32xf32>
    %202 = vector.shape_cast %201 : vector<1x16x32xf32> to vector<16x32xf32>
    %cst_174 = arith.constant dense<0.000000e+00> : vector<2x32xf32>
    %203 = tpu.matmul %200, %202, %cst_174 {dimension_numbers = #tpu.dot_dimension_numbers<[1], [0], [0], [1], [0, 0, 1, 1], [], []>} : vector<2x16xf32>, vector<16x32xf32>, vector<2x32xf32> -> vector<2x32xf32>
    %204 = arith.addf %197, %203 : vector<2x32xf32>
    %c11 = arith.constant 11 : index
    %c0_175 = arith.constant 0 : index
    %c0_176 = arith.constant 0 : index
    %205 = vector.load %arg8[%c11, %c0_175, %c0_176] : memref<49x2x98xf32, #tpu.memory_space<vmem>>, vector<1x2x98xf32>
    %206 = vector.shape_cast %205 : vector<1x2x98xf32> to vector<2x98xf32>
    %cst_177 = arith.constant dense<0.000000e+00> : vector<2x16xf32>
    %207 = tpu.matmul %206, %126, %cst_177 {dimension_numbers = #tpu.dot_dimension_numbers<[1], [0], [0], [1], [0, 0, 1, 1], [], []>} : vector<2x98xf32>, vector<98x16xf32>, vector<2x16xf32> -> vector<2x16xf32>
    %c11_178 = arith.constant 11 : index
    %c0_179 = arith.constant 0 : index
    %c0_180 = arith.constant 0 : index
    %208 = vector.load %arg9[%c11_178, %c0_179, %c0_180] : memref<49x16x32xf32, #tpu.memory_space<vmem>>, vector<1x16x32xf32>
    %209 = vector.shape_cast %208 : vector<1x16x32xf32> to vector<16x32xf32>
    %cst_181 = arith.constant dense<0.000000e+00> : vector<2x32xf32>
    %210 = tpu.matmul %207, %209, %cst_181 {dimension_numbers = #tpu.dot_dimension_numbers<[1], [0], [0], [1], [0, 0, 1, 1], [], []>} : vector<2x16xf32>, vector<16x32xf32>, vector<2x32xf32> -> vector<2x32xf32>
    %211 = arith.addf %204, %210 : vector<2x32xf32>
    %c12 = arith.constant 12 : index
    %c0_182 = arith.constant 0 : index
    %c0_183 = arith.constant 0 : index
    %212 = vector.load %arg8[%c12, %c0_182, %c0_183] : memref<49x2x98xf32, #tpu.memory_space<vmem>>, vector<1x2x98xf32>
    %213 = vector.shape_cast %212 : vector<1x2x98xf32> to vector<2x98xf32>
    %cst_184 = arith.constant dense<0.000000e+00> : vector<2x16xf32>
    %214 = tpu.matmul %213, %126, %cst_184 {dimension_numbers = #tpu.dot_dimension_numbers<[1], [0], [0], [1], [0, 0, 1, 1], [], []>} : vector<2x98xf32>, vector<98x16xf32>, vector<2x16xf32> -> vector<2x16xf32>
    %c12_185 = arith.constant 12 : index
    %c0_186 = arith.constant 0 : index
    %c0_187 = arith.constant 0 : index
    %215 = vector.load %arg9[%c12_185, %c0_186, %c0_187] : memref<49x16x32xf32, #tpu.memory_space<vmem>>, vector<1x16x32xf32>
    %216 = vector.shape_cast %215 : vector<1x16x32xf32> to vector<16x32xf32>
    %cst_188 = arith.constant dense<0.000000e+00> : vector<2x32xf32>
    %217 = tpu.matmul %214, %216, %cst_188 {dimension_numbers = #tpu.dot_dimension_numbers<[1], [0], [0], [1], [0, 0, 1, 1], [], []>} : vector<2x16xf32>, vector<16x32xf32>, vector<2x32xf32> -> vector<2x32xf32>
    %218 = arith.addf %211, %217 : vector<2x32xf32>
    %c13 = arith.constant 13 : index
    %c0_189 = arith.constant 0 : index
    %c0_190 = arith.constant 0 : index
    %219 = vector.load %arg8[%c13, %c0_189, %c0_190] : memref<49x2x98xf32, #tpu.memory_space<vmem>>, vector<1x2x98xf32>
    %220 = vector.shape_cast %219 : vector<1x2x98xf32> to vector<2x98xf32>
    %cst_191 = arith.constant dense<0.000000e+00> : vector<2x16xf32>
    %221 = tpu.matmul %220, %126, %cst_191 {dimension_numbers = #tpu.dot_dimension_numbers<[1], [0], [0], [1], [0, 0, 1, 1], [], []>} : vector<2x98xf32>, vector<98x16xf32>, vector<2x16xf32> -> vector<2x16xf32>
    %c13_192 = arith.constant 13 : index
    %c0_193 = arith.constant 0 : index
    %c0_194 = arith.constant 0 : index
    %222 = vector.load %arg9[%c13_192, %c0_193, %c0_194] : memref<49x16x32xf32, #tpu.memory_space<vmem>>, vector<1x16x32xf32>
    %223 = vector.shape_cast %222 : vector<1x16x32xf32> to vector<16x32xf32>
    %cst_195 = arith.constant dense<0.000000e+00> : vector<2x32xf32>
    %224 = tpu.matmul %221, %223, %cst_195 {dimension_numbers = #tpu.dot_dimension_numbers<[1], [0], [0], [1], [0, 0, 1, 1], [], []>} : vector<2x16xf32>, vector<16x32xf32>, vector<2x32xf32> -> vector<2x32xf32>
    %225 = arith.addf %218, %224 : vector<2x32xf32>
    %c14 = arith.constant 14 : index
    %c0_196 = arith.constant 0 : index
    %c0_197 = arith.constant 0 : index
    %226 = vector.load %arg8[%c14, %c0_196, %c0_197] : memref<49x2x98xf32, #tpu.memory_space<vmem>>, vector<1x2x98xf32>
    %227 = vector.shape_cast %226 : vector<1x2x98xf32> to vector<2x98xf32>
    %cst_198 = arith.constant dense<0.000000e+00> : vector<2x16xf32>
    %228 = tpu.matmul %227, %126, %cst_198 {dimension_numbers = #tpu.dot_dimension_numbers<[1], [0], [0], [1], [0, 0, 1, 1], [], []>} : vector<2x98xf32>, vector<98x16xf32>, vector<2x16xf32> -> vector<2x16xf32>
    %c14_199 = arith.constant 14 : index
    %c0_200 = arith.constant 0 : index
    %c0_201 = arith.constant 0 : index
    %229 = vector.load %arg9[%c14_199, %c0_200, %c0_201] : memref<49x16x32xf32, #tpu.memory_space<vmem>>, vector<1x16x32xf32>
    %230 = vector.shape_cast %229 : vector<1x16x32xf32> to vector<16x32xf32>
    %cst_202 = arith.constant dense<0.000000e+00> : vector<2x32xf32>
    %231 = tpu.matmul %228, %230, %cst_202 {dimension_numbers = #tpu.dot_dimension_numbers<[1], [0], [0], [1], [0, 0, 1, 1], [], []>} : vector<2x16xf32>, vector<16x32xf32>, vector<2x32xf32> -> vector<2x32xf32>
    %232 = arith.addf %225, %231 : vector<2x32xf32>
    %c15 = arith.constant 15 : index
    %c0_203 = arith.constant 0 : index
    %c0_204 = arith.constant 0 : index
    %233 = vector.load %arg8[%c15, %c0_203, %c0_204] : memref<49x2x98xf32, #tpu.memory_space<vmem>>, vector<1x2x98xf32>
    %234 = vector.shape_cast %233 : vector<1x2x98xf32> to vector<2x98xf32>
    %cst_205 = arith.constant dense<0.000000e+00> : vector<2x16xf32>
    %235 = tpu.matmul %234, %126, %cst_205 {dimension_numbers = #tpu.dot_dimension_numbers<[1], [0], [0], [1], [0, 0, 1, 1], [], []>} : vector<2x98xf32>, vector<98x16xf32>, vector<2x16xf32> -> vector<2x16xf32>
    %c15_206 = arith.constant 15 : index
    %c0_207 = arith.constant 0 : index
    %c0_208 = arith.constant 0 : index
    %236 = vector.load %arg9[%c15_206, %c0_207, %c0_208] : memref<49x16x32xf32, #tpu.memory_space<vmem>>, vector<1x16x32xf32>
    %237 = vector.shape_cast %236 : vector<1x16x32xf32> to vector<16x32xf32>
    %cst_209 = arith.constant dense<0.000000e+00> : vector<2x32xf32>
    %238 = tpu.matmul %235, %237, %cst_209 {dimension_numbers = #tpu.dot_dimension_numbers<[1], [0], [0], [1], [0, 0, 1, 1], [], []>} : vector<2x16xf32>, vector<16x32xf32>, vector<2x32xf32> -> vector<2x32xf32>
    %239 = arith.addf %232, %238 : vector<2x32xf32>
    %c16 = arith.constant 16 : index
    %c0_210 = arith.constant 0 : index
    %c0_211 = arith.constant 0 : index
    %240 = vector.load %arg8[%c16, %c0_210, %c0_211] : memref<49x2x98xf32, #tpu.memory_space<vmem>>, vector<1x2x98xf32>
    %241 = vector.shape_cast %240 : vector<1x2x98xf32> to vector<2x98xf32>
    %cst_212 = arith.constant dense<0.000000e+00> : vector<2x16xf32>
    %242 = tpu.matmul %241, %126, %cst_212 {dimension_numbers = #tpu.dot_dimension_numbers<[1], [0], [0], [1], [0, 0, 1, 1], [], []>} : vector<2x98xf32>, vector<98x16xf32>, vector<2x16xf32> -> vector<2x16xf32>
    %c16_213 = arith.constant 16 : index
    %c0_214 = arith.constant 0 : index
    %c0_215 = arith.constant 0 : index
    %243 = vector.load %arg9[%c16_213, %c0_214, %c0_215] : memref<49x16x32xf32, #tpu.memory_space<vmem>>, vector<1x16x32xf32>
    %244 = vector.shape_cast %243 : vector<1x16x32xf32> to vector<16x32xf32>
    %cst_216 = arith.constant dense<0.000000e+00> : vector<2x32xf32>
    %245 = tpu.matmul %242, %244, %cst_216 {dimension_numbers = #tpu.dot_dimension_numbers<[1], [0], [0], [1], [0, 0, 1, 1], [], []>} : vector<2x16xf32>, vector<16x32xf32>, vector<2x32xf32> -> vector<2x32xf32>
    %246 = arith.addf %239, %245 : vector<2x32xf32>
    %c17 = arith.constant 17 : index
    %c0_217 = arith.constant 0 : index
    %c0_218 = arith.constant 0 : index
    %247 = vector.load %arg8[%c17, %c0_217, %c0_218] : memref<49x2x98xf32, #tpu.memory_space<vmem>>, vector<1x2x98xf32>
    %248 = vector.shape_cast %247 : vector<1x2x98xf32> to vector<2x98xf32>
    %cst_219 = arith.constant dense<0.000000e+00> : vector<2x16xf32>
    %249 = tpu.matmul %248, %126, %cst_219 {dimension_numbers = #tpu.dot_dimension_numbers<[1], [0], [0], [1], [0, 0, 1, 1], [], []>} : vector<2x98xf32>, vector<98x16xf32>, vector<2x16xf32> -> vector<2x16xf32>
    %c17_220 = arith.constant 17 : index
    %c0_221 = arith.constant 0 : index
    %c0_222 = arith.constant 0 : index
    %250 = vector.load %arg9[%c17_220, %c0_221, %c0_222] : memref<49x16x32xf32, #tpu.memory_space<vmem>>, vector<1x16x32xf32>
    %251 = vector.shape_cast %250 : vector<1x16x32xf32> to vector<16x32xf32>
    %cst_223 = arith.constant dense<0.000000e+00> : vector<2x32xf32>
    %252 = tpu.matmul %249, %251, %cst_223 {dimension_numbers = #tpu.dot_dimension_numbers<[1], [0], [0], [1], [0, 0, 1, 1], [], []>} : vector<2x16xf32>, vector<16x32xf32>, vector<2x32xf32> -> vector<2x32xf32>
    %253 = arith.addf %246, %252 : vector<2x32xf32>
    %c18 = arith.constant 18 : index
    %c0_224 = arith.constant 0 : index
    %c0_225 = arith.constant 0 : index
    %254 = vector.load %arg8[%c18, %c0_224, %c0_225] : memref<49x2x98xf32, #tpu.memory_space<vmem>>, vector<1x2x98xf32>
    %255 = vector.shape_cast %254 : vector<1x2x98xf32> to vector<2x98xf32>
    %cst_226 = arith.constant dense<0.000000e+00> : vector<2x16xf32>
    %256 = tpu.matmul %255, %126, %cst_226 {dimension_numbers = #tpu.dot_dimension_numbers<[1], [0], [0], [1], [0, 0, 1, 1], [], []>} : vector<2x98xf32>, vector<98x16xf32>, vector<2x16xf32> -> vector<2x16xf32>
    %c18_227 = arith.constant 18 : index
    %c0_228 = arith.constant 0 : index
    %c0_229 = arith.constant 0 : index
    %257 = vector.load %arg9[%c18_227, %c0_228, %c0_229] : memref<49x16x32xf32, #tpu.memory_space<vmem>>, vector<1x16x32xf32>
    %258 = vector.shape_cast %257 : vector<1x16x32xf32> to vector<16x32xf32>
    %cst_230 = arith.constant dense<0.000000e+00> : vector<2x32xf32>
    %259 = tpu.matmul %256, %258, %cst_230 {dimension_numbers = #tpu.dot_dimension_numbers<[1], [0], [0], [1], [0, 0, 1, 1], [], []>} : vector<2x16xf32>, vector<16x32xf32>, vector<2x32xf32> -> vector<2x32xf32>
    %260 = arith.addf %253, %259 : vector<2x32xf32>
    %c19 = arith.constant 19 : index
    %c0_231 = arith.constant 0 : index
    %c0_232 = arith.constant 0 : index
    %261 = vector.load %arg8[%c19, %c0_231, %c0_232] : memref<49x2x98xf32, #tpu.memory_space<vmem>>, vector<1x2x98xf32>
    %262 = vector.shape_cast %261 : vector<1x2x98xf32> to vector<2x98xf32>
    %cst_233 = arith.constant dense<0.000000e+00> : vector<2x16xf32>
    %263 = tpu.matmul %262, %126, %cst_233 {dimension_numbers = #tpu.dot_dimension_numbers<[1], [0], [0], [1], [0, 0, 1, 1], [], []>} : vector<2x98xf32>, vector<98x16xf32>, vector<2x16xf32> -> vector<2x16xf32>
    %c19_234 = arith.constant 19 : index
    %c0_235 = arith.constant 0 : index
    %c0_236 = arith.constant 0 : index
    %264 = vector.load %arg9[%c19_234, %c0_235, %c0_236] : memref<49x16x32xf32, #tpu.memory_space<vmem>>, vector<1x16x32xf32>
    %265 = vector.shape_cast %264 : vector<1x16x32xf32> to vector<16x32xf32>
    %cst_237 = arith.constant dense<0.000000e+00> : vector<2x32xf32>
    %266 = tpu.matmul %263, %265, %cst_237 {dimension_numbers = #tpu.dot_dimension_numbers<[1], [0], [0], [1], [0, 0, 1, 1], [], []>} : vector<2x16xf32>, vector<16x32xf32>, vector<2x32xf32> -> vector<2x32xf32>
    %267 = arith.addf %260, %266 : vector<2x32xf32>
    %c20 = arith.constant 20 : index
    %c0_238 = arith.constant 0 : index
    %c0_239 = arith.constant 0 : index
    %268 = vector.load %arg8[%c20, %c0_238, %c0_239] : memref<49x2x98xf32, #tpu.memory_space<vmem>>, vector<1x2x98xf32>
    %269 = vector.shape_cast %268 : vector<1x2x98xf32> to vector<2x98xf32>
    %cst_240 = arith.constant dense<0.000000e+00> : vector<2x16xf32>
    %270 = tpu.matmul %269, %126, %cst_240 {dimension_numbers = #tpu.dot_dimension_numbers<[1], [0], [0], [1], [0, 0, 1, 1], [], []>} : vector<2x98xf32>, vector<98x16xf32>, vector<2x16xf32> -> vector<2x16xf32>
    %c20_241 = arith.constant 20 : index
    %c0_242 = arith.constant 0 : index
    %c0_243 = arith.constant 0 : index
    %271 = vector.load %arg9[%c20_241, %c0_242, %c0_243] : memref<49x16x32xf32, #tpu.memory_space<vmem>>, vector<1x16x32xf32>
    %272 = vector.shape_cast %271 : vector<1x16x32xf32> to vector<16x32xf32>
    %cst_244 = arith.constant dense<0.000000e+00> : vector<2x32xf32>
    %273 = tpu.matmul %270, %272, %cst_244 {dimension_numbers = #tpu.dot_dimension_numbers<[1], [0], [0], [1], [0, 0, 1, 1], [], []>} : vector<2x16xf32>, vector<16x32xf32>, vector<2x32xf32> -> vector<2x32xf32>
    %274 = arith.addf %267, %273 : vector<2x32xf32>
    %c21 = arith.constant 21 : index
    %c0_245 = arith.constant 0 : index
    %c0_246 = arith.constant 0 : index
    %275 = vector.load %arg8[%c21, %c0_245, %c0_246] : memref<49x2x98xf32, #tpu.memory_space<vmem>>, vector<1x2x98xf32>
    %276 = vector.shape_cast %275 : vector<1x2x98xf32> to vector<2x98xf32>
    %cst_247 = arith.constant dense<0.000000e+00> : vector<2x16xf32>
    %277 = tpu.matmul %276, %126, %cst_247 {dimension_numbers = #tpu.dot_dimension_numbers<[1], [0], [0], [1], [0, 0, 1, 1], [], []>} : vector<2x98xf32>, vector<98x16xf32>, vector<2x16xf32> -> vector<2x16xf32>
    %c21_248 = arith.constant 21 : index
    %c0_249 = arith.constant 0 : index
    %c0_250 = arith.constant 0 : index
    %278 = vector.load %arg9[%c21_248, %c0_249, %c0_250] : memref<49x16x32xf32, #tpu.memory_space<vmem>>, vector<1x16x32xf32>
    %279 = vector.shape_cast %278 : vector<1x16x32xf32> to vector<16x32xf32>
    %cst_251 = arith.constant dense<0.000000e+00> : vector<2x32xf32>
    %280 = tpu.matmul %277, %279, %cst_251 {dimension_numbers = #tpu.dot_dimension_numbers<[1], [0], [0], [1], [0, 0, 1, 1], [], []>} : vector<2x16xf32>, vector<16x32xf32>, vector<2x32xf32> -> vector<2x32xf32>
    %281 = arith.addf %274, %280 : vector<2x32xf32>
    %c22 = arith.constant 22 : index
    %c0_252 = arith.constant 0 : index
    %c0_253 = arith.constant 0 : index
    %282 = vector.load %arg8[%c22, %c0_252, %c0_253] : memref<49x2x98xf32, #tpu.memory_space<vmem>>, vector<1x2x98xf32>
    %283 = vector.shape_cast %282 : vector<1x2x98xf32> to vector<2x98xf32>
    %cst_254 = arith.constant dense<0.000000e+00> : vector<2x16xf32>
    %284 = tpu.matmul %283, %126, %cst_254 {dimension_numbers = #tpu.dot_dimension_numbers<[1], [0], [0], [1], [0, 0, 1, 1], [], []>} : vector<2x98xf32>, vector<98x16xf32>, vector<2x16xf32> -> vector<2x16xf32>
    %c22_255 = arith.constant 22 : index
    %c0_256 = arith.constant 0 : index
    %c0_257 = arith.constant 0 : index
    %285 = vector.load %arg9[%c22_255, %c0_256, %c0_257] : memref<49x16x32xf32, #tpu.memory_space<vmem>>, vector<1x16x32xf32>
    %286 = vector.shape_cast %285 : vector<1x16x32xf32> to vector<16x32xf32>
    %cst_258 = arith.constant dense<0.000000e+00> : vector<2x32xf32>
    %287 = tpu.matmul %284, %286, %cst_258 {dimension_numbers = #tpu.dot_dimension_numbers<[1], [0], [0], [1], [0, 0, 1, 1], [], []>} : vector<2x16xf32>, vector<16x32xf32>, vector<2x32xf32> -> vector<2x32xf32>
    %288 = arith.addf %281, %287 : vector<2x32xf32>
    %c23 = arith.constant 23 : index
    %c0_259 = arith.constant 0 : index
    %c0_260 = arith.constant 0 : index
    %289 = vector.load %arg8[%c23, %c0_259, %c0_260] : memref<49x2x98xf32, #tpu.memory_space<vmem>>, vector<1x2x98xf32>
    %290 = vector.shape_cast %289 : vector<1x2x98xf32> to vector<2x98xf32>
    %cst_261 = arith.constant dense<0.000000e+00> : vector<2x16xf32>
    %291 = tpu.matmul %290, %126, %cst_261 {dimension_numbers = #tpu.dot_dimension_numbers<[1], [0], [0], [1], [0, 0, 1, 1], [], []>} : vector<2x98xf32>, vector<98x16xf32>, vector<2x16xf32> -> vector<2x16xf32>
    %c23_262 = arith.constant 23 : index
    %c0_263 = arith.constant 0 : index
    %c0_264 = arith.constant 0 : index
    %292 = vector.load %arg9[%c23_262, %c0_263, %c0_264] : memref<49x16x32xf32, #tpu.memory_space<vmem>>, vector<1x16x32xf32>
    %293 = vector.shape_cast %292 : vector<1x16x32xf32> to vector<16x32xf32>
    %cst_265 = arith.constant dense<0.000000e+00> : vector<2x32xf32>
    %294 = tpu.matmul %291, %293, %cst_265 {dimension_numbers = #tpu.dot_dimension_numbers<[1], [0], [0], [1], [0, 0, 1, 1], [], []>} : vector<2x16xf32>, vector<16x32xf32>, vector<2x32xf32> -> vector<2x32xf32>
    %295 = arith.addf %288, %294 : vector<2x32xf32>
    %c24 = arith.constant 24 : index
    %c0_266 = arith.constant 0 : index
    %c0_267 = arith.constant 0 : index
    %296 = vector.load %arg8[%c24, %c0_266, %c0_267] : memref<49x2x98xf32, #tpu.memory_space<vmem>>, vector<1x2x98xf32>
    %297 = vector.shape_cast %296 : vector<1x2x98xf32> to vector<2x98xf32>
    %cst_268 = arith.constant dense<0.000000e+00> : vector<2x16xf32>
    %298 = tpu.matmul %297, %126, %cst_268 {dimension_numbers = #tpu.dot_dimension_numbers<[1], [0], [0], [1], [0, 0, 1, 1], [], []>} : vector<2x98xf32>, vector<98x16xf32>, vector<2x16xf32> -> vector<2x16xf32>
    %c24_269 = arith.constant 24 : index
    %c0_270 = arith.constant 0 : index
    %c0_271 = arith.constant 0 : index
    %299 = vector.load %arg9[%c24_269, %c0_270, %c0_271] : memref<49x16x32xf32, #tpu.memory_space<vmem>>, vector<1x16x32xf32>
    %300 = vector.shape_cast %299 : vector<1x16x32xf32> to vector<16x32xf32>
    %cst_272 = arith.constant dense<0.000000e+00> : vector<2x32xf32>
    %301 = tpu.matmul %298, %300, %cst_272 {dimension_numbers = #tpu.dot_dimension_numbers<[1], [0], [0], [1], [0, 0, 1, 1], [], []>} : vector<2x16xf32>, vector<16x32xf32>, vector<2x32xf32> -> vector<2x32xf32>
    %302 = arith.addf %295, %301 : vector<2x32xf32>
    %c25 = arith.constant 25 : index
    %c0_273 = arith.constant 0 : index
    %c0_274 = arith.constant 0 : index
    %303 = vector.load %arg8[%c25, %c0_273, %c0_274] : memref<49x2x98xf32, #tpu.memory_space<vmem>>, vector<1x2x98xf32>
    %304 = vector.shape_cast %303 : vector<1x2x98xf32> to vector<2x98xf32>
    %cst_275 = arith.constant dense<0.000000e+00> : vector<2x16xf32>
    %305 = tpu.matmul %304, %126, %cst_275 {dimension_numbers = #tpu.dot_dimension_numbers<[1], [0], [0], [1], [0, 0, 1, 1], [], []>} : vector<2x98xf32>, vector<98x16xf32>, vector<2x16xf32> -> vector<2x16xf32>
    %c25_276 = arith.constant 25 : index
    %c0_277 = arith.constant 0 : index
    %c0_278 = arith.constant 0 : index
    %306 = vector.load %arg9[%c25_276, %c0_277, %c0_278] : memref<49x16x32xf32, #tpu.memory_space<vmem>>, vector<1x16x32xf32>
    %307 = vector.shape_cast %306 : vector<1x16x32xf32> to vector<16x32xf32>
    %cst_279 = arith.constant dense<0.000000e+00> : vector<2x32xf32>
    %308 = tpu.matmul %305, %307, %cst_279 {dimension_numbers = #tpu.dot_dimension_numbers<[1], [0], [0], [1], [0, 0, 1, 1], [], []>} : vector<2x16xf32>, vector<16x32xf32>, vector<2x32xf32> -> vector<2x32xf32>
    %309 = arith.addf %302, %308 : vector<2x32xf32>
    %c26 = arith.constant 26 : index
    %c0_280 = arith.constant 0 : index
    %c0_281 = arith.constant 0 : index
    %310 = vector.load %arg8[%c26, %c0_280, %c0_281] : memref<49x2x98xf32, #tpu.memory_space<vmem>>, vector<1x2x98xf32>
    %311 = vector.shape_cast %310 : vector<1x2x98xf32> to vector<2x98xf32>
    %cst_282 = arith.constant dense<0.000000e+00> : vector<2x16xf32>
    %312 = tpu.matmul %311, %126, %cst_282 {dimension_numbers = #tpu.dot_dimension_numbers<[1], [0], [0], [1], [0, 0, 1, 1], [], []>} : vector<2x98xf32>, vector<98x16xf32>, vector<2x16xf32> -> vector<2x16xf32>
    %c26_283 = arith.constant 26 : index
    %c0_284 = arith.constant 0 : index
    %c0_285 = arith.constant 0 : index
    %313 = vector.load %arg9[%c26_283, %c0_284, %c0_285] : memref<49x16x32xf32, #tpu.memory_space<vmem>>, vector<1x16x32xf32>
    %314 = vector.shape_cast %313 : vector<1x16x32xf32> to vector<16x32xf32>
    %cst_286 = arith.constant dense<0.000000e+00> : vector<2x32xf32>
    %315 = tpu.matmul %312, %314, %cst_286 {dimension_numbers = #tpu.dot_dimension_numbers<[1], [0], [0], [1], [0, 0, 1, 1], [], []>} : vector<2x16xf32>, vector<16x32xf32>, vector<2x32xf32> -> vector<2x32xf32>
    %316 = arith.addf %309, %315 : vector<2x32xf32>
    %c27 = arith.constant 27 : index
    %c0_287 = arith.constant 0 : index
    %c0_288 = arith.constant 0 : index
    %317 = vector.load %arg8[%c27, %c0_287, %c0_288] : memref<49x2x98xf32, #tpu.memory_space<vmem>>, vector<1x2x98xf32>
    %318 = vector.shape_cast %317 : vector<1x2x98xf32> to vector<2x98xf32>
    %cst_289 = arith.constant dense<0.000000e+00> : vector<2x16xf32>
    %319 = tpu.matmul %318, %126, %cst_289 {dimension_numbers = #tpu.dot_dimension_numbers<[1], [0], [0], [1], [0, 0, 1, 1], [], []>} : vector<2x98xf32>, vector<98x16xf32>, vector<2x16xf32> -> vector<2x16xf32>
    %c27_290 = arith.constant 27 : index
    %c0_291 = arith.constant 0 : index
    %c0_292 = arith.constant 0 : index
    %320 = vector.load %arg9[%c27_290, %c0_291, %c0_292] : memref<49x16x32xf32, #tpu.memory_space<vmem>>, vector<1x16x32xf32>
    %321 = vector.shape_cast %320 : vector<1x16x32xf32> to vector<16x32xf32>
    %cst_293 = arith.constant dense<0.000000e+00> : vector<2x32xf32>
    %322 = tpu.matmul %319, %321, %cst_293 {dimension_numbers = #tpu.dot_dimension_numbers<[1], [0], [0], [1], [0, 0, 1, 1], [], []>} : vector<2x16xf32>, vector<16x32xf32>, vector<2x32xf32> -> vector<2x32xf32>
    %323 = arith.addf %316, %322 : vector<2x32xf32>
    %c28 = arith.constant 28 : index
    %c0_294 = arith.constant 0 : index
    %c0_295 = arith.constant 0 : index
    %324 = vector.load %arg8[%c28, %c0_294, %c0_295] : memref<49x2x98xf32, #tpu.memory_space<vmem>>, vector<1x2x98xf32>
    %325 = vector.shape_cast %324 : vector<1x2x98xf32> to vector<2x98xf32>
    %cst_296 = arith.constant dense<0.000000e+00> : vector<2x16xf32>
    %326 = tpu.matmul %325, %126, %cst_296 {dimension_numbers = #tpu.dot_dimension_numbers<[1], [0], [0], [1], [0, 0, 1, 1], [], []>} : vector<2x98xf32>, vector<98x16xf32>, vector<2x16xf32> -> vector<2x16xf32>
    %c28_297 = arith.constant 28 : index
    %c0_298 = arith.constant 0 : index
    %c0_299 = arith.constant 0 : index
    %327 = vector.load %arg9[%c28_297, %c0_298, %c0_299] : memref<49x16x32xf32, #tpu.memory_space<vmem>>, vector<1x16x32xf32>
    %328 = vector.shape_cast %327 : vector<1x16x32xf32> to vector<16x32xf32>
    %cst_300 = arith.constant dense<0.000000e+00> : vector<2x32xf32>
    %329 = tpu.matmul %326, %328, %cst_300 {dimension_numbers = #tpu.dot_dimension_numbers<[1], [0], [0], [1], [0, 0, 1, 1], [], []>} : vector<2x16xf32>, vector<16x32xf32>, vector<2x32xf32> -> vector<2x32xf32>
    %330 = arith.addf %323, %329 : vector<2x32xf32>
    %c29 = arith.constant 29 : index
    %c0_301 = arith.constant 0 : index
    %c0_302 = arith.constant 0 : index
    %331 = vector.load %arg8[%c29, %c0_301, %c0_302] : memref<49x2x98xf32, #tpu.memory_space<vmem>>, vector<1x2x98xf32>
    %332 = vector.shape_cast %331 : vector<1x2x98xf32> to vector<2x98xf32>
    %cst_303 = arith.constant dense<0.000000e+00> : vector<2x16xf32>
    %333 = tpu.matmul %332, %126, %cst_303 {dimension_numbers = #tpu.dot_dimension_numbers<[1], [0], [0], [1], [0, 0, 1, 1], [], []>} : vector<2x98xf32>, vector<98x16xf32>, vector<2x16xf32> -> vector<2x16xf32>
    %c29_304 = arith.constant 29 : index
    %c0_305 = arith.constant 0 : index
    %c0_306 = arith.constant 0 : index
    %334 = vector.load %arg9[%c29_304, %c0_305, %c0_306] : memref<49x16x32xf32, #tpu.memory_space<vmem>>, vector<1x16x32xf32>
    %335 = vector.shape_cast %334 : vector<1x16x32xf32> to vector<16x32xf32>
    %cst_307 = arith.constant dense<0.000000e+00> : vector<2x32xf32>
    %336 = tpu.matmul %333, %335, %cst_307 {dimension_numbers = #tpu.dot_dimension_numbers<[1], [0], [0], [1], [0, 0, 1, 1], [], []>} : vector<2x16xf32>, vector<16x32xf32>, vector<2x32xf32> -> vector<2x32xf32>
    %337 = arith.addf %330, %336 : vector<2x32xf32>
    %c30 = arith.constant 30 : index
    %c0_308 = arith.constant 0 : index
    %c0_309 = arith.constant 0 : index
    %338 = vector.load %arg8[%c30, %c0_308, %c0_309] : memref<49x2x98xf32, #tpu.memory_space<vmem>>, vector<1x2x98xf32>
    %339 = vector.shape_cast %338 : vector<1x2x98xf32> to vector<2x98xf32>
    %cst_310 = arith.constant dense<0.000000e+00> : vector<2x16xf32>
    %340 = tpu.matmul %339, %126, %cst_310 {dimension_numbers = #tpu.dot_dimension_numbers<[1], [0], [0], [1], [0, 0, 1, 1], [], []>} : vector<2x98xf32>, vector<98x16xf32>, vector<2x16xf32> -> vector<2x16xf32>
    %c30_311 = arith.constant 30 : index
    %c0_312 = arith.constant 0 : index
    %c0_313 = arith.constant 0 : index
    %341 = vector.load %arg9[%c30_311, %c0_312, %c0_313] : memref<49x16x32xf32, #tpu.memory_space<vmem>>, vector<1x16x32xf32>
    %342 = vector.shape_cast %341 : vector<1x16x32xf32> to vector<16x32xf32>
    %cst_314 = arith.constant dense<0.000000e+00> : vector<2x32xf32>
    %343 = tpu.matmul %340, %342, %cst_314 {dimension_numbers = #tpu.dot_dimension_numbers<[1], [0], [0], [1], [0, 0, 1, 1], [], []>} : vector<2x16xf32>, vector<16x32xf32>, vector<2x32xf32> -> vector<2x32xf32>
    %344 = arith.addf %337, %343 : vector<2x32xf32>
    %c31 = arith.constant 31 : index
    %c0_315 = arith.constant 0 : index
    %c0_316 = arith.constant 0 : index
    %345 = vector.load %arg8[%c31, %c0_315, %c0_316] : memref<49x2x98xf32, #tpu.memory_space<vmem>>, vector<1x2x98xf32>
    %346 = vector.shape_cast %345 : vector<1x2x98xf32> to vector<2x98xf32>
    %cst_317 = arith.constant dense<0.000000e+00> : vector<2x16xf32>
    %347 = tpu.matmul %346, %126, %cst_317 {dimension_numbers = #tpu.dot_dimension_numbers<[1], [0], [0], [1], [0, 0, 1, 1], [], []>} : vector<2x98xf32>, vector<98x16xf32>, vector<2x16xf32> -> vector<2x16xf32>
    %c31_318 = arith.constant 31 : index
    %c0_319 = arith.constant 0 : index
    %c0_320 = arith.constant 0 : index
    %348 = vector.load %arg9[%c31_318, %c0_319, %c0_320] : memref<49x16x32xf32, #tpu.memory_space<vmem>>, vector<1x16x32xf32>
    %349 = vector.shape_cast %348 : vector<1x16x32xf32> to vector<16x32xf32>
    %cst_321 = arith.constant dense<0.000000e+00> : vector<2x32xf32>
    %350 = tpu.matmul %347, %349, %cst_321 {dimension_numbers = #tpu.dot_dimension_numbers<[1], [0], [0], [1], [0, 0, 1, 1], [], []>} : vector<2x16xf32>, vector<16x32xf32>, vector<2x32xf32> -> vector<2x32xf32>
    %351 = arith.addf %344, %350 : vector<2x32xf32>
    %c32 = arith.constant 32 : index
    %c0_322 = arith.constant 0 : index
    %c0_323 = arith.constant 0 : index
    %352 = vector.load %arg8[%c32, %c0_322, %c0_323] : memref<49x2x98xf32, #tpu.memory_space<vmem>>, vector<1x2x98xf32>
    %353 = vector.shape_cast %352 : vector<1x2x98xf32> to vector<2x98xf32>
    %cst_324 = arith.constant dense<0.000000e+00> : vector<2x16xf32>
    %354 = tpu.matmul %353, %126, %cst_324 {dimension_numbers = #tpu.dot_dimension_numbers<[1], [0], [0], [1], [0, 0, 1, 1], [], []>} : vector<2x98xf32>, vector<98x16xf32>, vector<2x16xf32> -> vector<2x16xf32>
    %c32_325 = arith.constant 32 : index
    %c0_326 = arith.constant 0 : index
    %c0_327 = arith.constant 0 : index
    %355 = vector.load %arg9[%c32_325, %c0_326, %c0_327] : memref<49x16x32xf32, #tpu.memory_space<vmem>>, vector<1x16x32xf32>
    %356 = vector.shape_cast %355 : vector<1x16x32xf32> to vector<16x32xf32>
    %cst_328 = arith.constant dense<0.000000e+00> : vector<2x32xf32>
    %357 = tpu.matmul %354, %356, %cst_328 {dimension_numbers = #tpu.dot_dimension_numbers<[1], [0], [0], [1], [0, 0, 1, 1], [], []>} : vector<2x16xf32>, vector<16x32xf32>, vector<2x32xf32> -> vector<2x32xf32>
    %358 = arith.addf %351, %357 : vector<2x32xf32>
    %c33 = arith.constant 33 : index
    %c0_329 = arith.constant 0 : index
    %c0_330 = arith.constant 0 : index
    %359 = vector.load %arg8[%c33, %c0_329, %c0_330] : memref<49x2x98xf32, #tpu.memory_space<vmem>>, vector<1x2x98xf32>
    %360 = vector.shape_cast %359 : vector<1x2x98xf32> to vector<2x98xf32>
    %cst_331 = arith.constant dense<0.000000e+00> : vector<2x16xf32>
    %361 = tpu.matmul %360, %126, %cst_331 {dimension_numbers = #tpu.dot_dimension_numbers<[1], [0], [0], [1], [0, 0, 1, 1], [], []>} : vector<2x98xf32>, vector<98x16xf32>, vector<2x16xf32> -> vector<2x16xf32>
    %c33_332 = arith.constant 33 : index
    %c0_333 = arith.constant 0 : index
    %c0_334 = arith.constant 0 : index
    %362 = vector.load %arg9[%c33_332, %c0_333, %c0_334] : memref<49x16x32xf32, #tpu.memory_space<vmem>>, vector<1x16x32xf32>
    %363 = vector.shape_cast %362 : vector<1x16x32xf32> to vector<16x32xf32>
    %cst_335 = arith.constant dense<0.000000e+00> : vector<2x32xf32>
    %364 = tpu.matmul %361, %363, %cst_335 {dimension_numbers = #tpu.dot_dimension_numbers<[1], [0], [0], [1], [0, 0, 1, 1], [], []>} : vector<2x16xf32>, vector<16x32xf32>, vector<2x32xf32> -> vector<2x32xf32>
    %365 = arith.addf %358, %364 : vector<2x32xf32>
    %c34 = arith.constant 34 : index
    %c0_336 = arith.constant 0 : index
    %c0_337 = arith.constant 0 : index
    %366 = vector.load %arg8[%c34, %c0_336, %c0_337] : memref<49x2x98xf32, #tpu.memory_space<vmem>>, vector<1x2x98xf32>
    %367 = vector.shape_cast %366 : vector<1x2x98xf32> to vector<2x98xf32>
    %cst_338 = arith.constant dense<0.000000e+00> : vector<2x16xf32>
    %368 = tpu.matmul %367, %126, %cst_338 {dimension_numbers = #tpu.dot_dimension_numbers<[1], [0], [0], [1], [0, 0, 1, 1], [], []>} : vector<2x98xf32>, vector<98x16xf32>, vector<2x16xf32> -> vector<2x16xf32>
    %c34_339 = arith.constant 34 : index
    %c0_340 = arith.constant 0 : index
    %c0_341 = arith.constant 0 : index
    %369 = vector.load %arg9[%c34_339, %c0_340, %c0_341] : memref<49x16x32xf32, #tpu.memory_space<vmem>>, vector<1x16x32xf32>
    %370 = vector.shape_cast %369 : vector<1x16x32xf32> to vector<16x32xf32>
    %cst_342 = arith.constant dense<0.000000e+00> : vector<2x32xf32>
    %371 = tpu.matmul %368, %370, %cst_342 {dimension_numbers = #tpu.dot_dimension_numbers<[1], [0], [0], [1], [0, 0, 1, 1], [], []>} : vector<2x16xf32>, vector<16x32xf32>, vector<2x32xf32> -> vector<2x32xf32>
    %372 = arith.addf %365, %371 : vector<2x32xf32>
    %c35 = arith.constant 35 : index
    %c0_343 = arith.constant 0 : index
    %c0_344 = arith.constant 0 : index
    %373 = vector.load %arg8[%c35, %c0_343, %c0_344] : memref<49x2x98xf32, #tpu.memory_space<vmem>>, vector<1x2x98xf32>
    %374 = vector.shape_cast %373 : vector<1x2x98xf32> to vector<2x98xf32>
    %cst_345 = arith.constant dense<0.000000e+00> : vector<2x16xf32>
    %375 = tpu.matmul %374, %126, %cst_345 {dimension_numbers = #tpu.dot_dimension_numbers<[1], [0], [0], [1], [0, 0, 1, 1], [], []>} : vector<2x98xf32>, vector<98x16xf32>, vector<2x16xf32> -> vector<2x16xf32>
    %c35_346 = arith.constant 35 : index
    %c0_347 = arith.constant 0 : index
    %c0_348 = arith.constant 0 : index
    %376 = vector.load %arg9[%c35_346, %c0_347, %c0_348] : memref<49x16x32xf32, #tpu.memory_space<vmem>>, vector<1x16x32xf32>
    %377 = vector.shape_cast %376 : vector<1x16x32xf32> to vector<16x32xf32>
    %cst_349 = arith.constant dense<0.000000e+00> : vector<2x32xf32>
    %378 = tpu.matmul %375, %377, %cst_349 {dimension_numbers = #tpu.dot_dimension_numbers<[1], [0], [0], [1], [0, 0, 1, 1], [], []>} : vector<2x16xf32>, vector<16x32xf32>, vector<2x32xf32> -> vector<2x32xf32>
    %379 = arith.addf %372, %378 : vector<2x32xf32>
    %c36 = arith.constant 36 : index
    %c0_350 = arith.constant 0 : index
    %c0_351 = arith.constant 0 : index
    %380 = vector.load %arg8[%c36, %c0_350, %c0_351] : memref<49x2x98xf32, #tpu.memory_space<vmem>>, vector<1x2x98xf32>
    %381 = vector.shape_cast %380 : vector<1x2x98xf32> to vector<2x98xf32>
    %cst_352 = arith.constant dense<0.000000e+00> : vector<2x16xf32>
    %382 = tpu.matmul %381, %126, %cst_352 {dimension_numbers = #tpu.dot_dimension_numbers<[1], [0], [0], [1], [0, 0, 1, 1], [], []>} : vector<2x98xf32>, vector<98x16xf32>, vector<2x16xf32> -> vector<2x16xf32>
    %c36_353 = arith.constant 36 : index
    %c0_354 = arith.constant 0 : index
    %c0_355 = arith.constant 0 : index
    %383 = vector.load %arg9[%c36_353, %c0_354, %c0_355] : memref<49x16x32xf32, #tpu.memory_space<vmem>>, vector<1x16x32xf32>
    %384 = vector.shape_cast %383 : vector<1x16x32xf32> to vector<16x32xf32>
    %cst_356 = arith.constant dense<0.000000e+00> : vector<2x32xf32>
    %385 = tpu.matmul %382, %384, %cst_356 {dimension_numbers = #tpu.dot_dimension_numbers<[1], [0], [0], [1], [0, 0, 1, 1], [], []>} : vector<2x16xf32>, vector<16x32xf32>, vector<2x32xf32> -> vector<2x32xf32>
    %386 = arith.addf %379, %385 : vector<2x32xf32>
    %c37 = arith.constant 37 : index
    %c0_357 = arith.constant 0 : index
    %c0_358 = arith.constant 0 : index
    %387 = vector.load %arg8[%c37, %c0_357, %c0_358] : memref<49x2x98xf32, #tpu.memory_space<vmem>>, vector<1x2x98xf32>
    %388 = vector.shape_cast %387 : vector<1x2x98xf32> to vector<2x98xf32>
    %cst_359 = arith.constant dense<0.000000e+00> : vector<2x16xf32>
    %389 = tpu.matmul %388, %126, %cst_359 {dimension_numbers = #tpu.dot_dimension_numbers<[1], [0], [0], [1], [0, 0, 1, 1], [], []>} : vector<2x98xf32>, vector<98x16xf32>, vector<2x16xf32> -> vector<2x16xf32>
    %c37_360 = arith.constant 37 : index
    %c0_361 = arith.constant 0 : index
    %c0_362 = arith.constant 0 : index
    %390 = vector.load %arg9[%c37_360, %c0_361, %c0_362] : memref<49x16x32xf32, #tpu.memory_space<vmem>>, vector<1x16x32xf32>
    %391 = vector.shape_cast %390 : vector<1x16x32xf32> to vector<16x32xf32>
    %cst_363 = arith.constant dense<0.000000e+00> : vector<2x32xf32>
    %392 = tpu.matmul %389, %391, %cst_363 {dimension_numbers = #tpu.dot_dimension_numbers<[1], [0], [0], [1], [0, 0, 1, 1], [], []>} : vector<2x16xf32>, vector<16x32xf32>, vector<2x32xf32> -> vector<2x32xf32>
    %393 = arith.addf %386, %392 : vector<2x32xf32>
    %c38 = arith.constant 38 : index
    %c0_364 = arith.constant 0 : index
    %c0_365 = arith.constant 0 : index
    %394 = vector.load %arg8[%c38, %c0_364, %c0_365] : memref<49x2x98xf32, #tpu.memory_space<vmem>>, vector<1x2x98xf32>
    %395 = vector.shape_cast %394 : vector<1x2x98xf32> to vector<2x98xf32>
    %cst_366 = arith.constant dense<0.000000e+00> : vector<2x16xf32>
    %396 = tpu.matmul %395, %126, %cst_366 {dimension_numbers = #tpu.dot_dimension_numbers<[1], [0], [0], [1], [0, 0, 1, 1], [], []>} : vector<2x98xf32>, vector<98x16xf32>, vector<2x16xf32> -> vector<2x16xf32>
    %c38_367 = arith.constant 38 : index
    %c0_368 = arith.constant 0 : index
    %c0_369 = arith.constant 0 : index
    %397 = vector.load %arg9[%c38_367, %c0_368, %c0_369] : memref<49x16x32xf32, #tpu.memory_space<vmem>>, vector<1x16x32xf32>
    %398 = vector.shape_cast %397 : vector<1x16x32xf32> to vector<16x32xf32>
    %cst_370 = arith.constant dense<0.000000e+00> : vector<2x32xf32>
    %399 = tpu.matmul %396, %398, %cst_370 {dimension_numbers = #tpu.dot_dimension_numbers<[1], [0], [0], [1], [0, 0, 1, 1], [], []>} : vector<2x16xf32>, vector<16x32xf32>, vector<2x32xf32> -> vector<2x32xf32>
    %400 = arith.addf %393, %399 : vector<2x32xf32>
    %c39 = arith.constant 39 : index
    %c0_371 = arith.constant 0 : index
    %c0_372 = arith.constant 0 : index
    %401 = vector.load %arg8[%c39, %c0_371, %c0_372] : memref<49x2x98xf32, #tpu.memory_space<vmem>>, vector<1x2x98xf32>
    %402 = vector.shape_cast %401 : vector<1x2x98xf32> to vector<2x98xf32>
    %cst_373 = arith.constant dense<0.000000e+00> : vector<2x16xf32>
    %403 = tpu.matmul %402, %126, %cst_373 {dimension_numbers = #tpu.dot_dimension_numbers<[1], [0], [0], [1], [0, 0, 1, 1], [], []>} : vector<2x98xf32>, vector<98x16xf32>, vector<2x16xf32> -> vector<2x16xf32>
    %c39_374 = arith.constant 39 : index
    %c0_375 = arith.constant 0 : index
    %c0_376 = arith.constant 0 : index
    %404 = vector.load %arg9[%c39_374, %c0_375, %c0_376] : memref<49x16x32xf32, #tpu.memory_space<vmem>>, vector<1x16x32xf32>
    %405 = vector.shape_cast %404 : vector<1x16x32xf32> to vector<16x32xf32>
    %cst_377 = arith.constant dense<0.000000e+00> : vector<2x32xf32>
    %406 = tpu.matmul %403, %405, %cst_377 {dimension_numbers = #tpu.dot_dimension_numbers<[1], [0], [0], [1], [0, 0, 1, 1], [], []>} : vector<2x16xf32>, vector<16x32xf32>, vector<2x32xf32> -> vector<2x32xf32>
    %407 = arith.addf %400, %406 : vector<2x32xf32>
    %c40 = arith.constant 40 : index
    %c0_378 = arith.constant 0 : index
    %c0_379 = arith.constant 0 : index
    %408 = vector.load %arg8[%c40, %c0_378, %c0_379] : memref<49x2x98xf32, #tpu.memory_space<vmem>>, vector<1x2x98xf32>
    %409 = vector.shape_cast %408 : vector<1x2x98xf32> to vector<2x98xf32>
    %cst_380 = arith.constant dense<0.000000e+00> : vector<2x16xf32>
    %410 = tpu.matmul %409, %126, %cst_380 {dimension_numbers = #tpu.dot_dimension_numbers<[1], [0], [0], [1], [0, 0, 1, 1], [], []>} : vector<2x98xf32>, vector<98x16xf32>, vector<2x16xf32> -> vector<2x16xf32>
    %c40_381 = arith.constant 40 : index
    %c0_382 = arith.constant 0 : index
    %c0_383 = arith.constant 0 : index
    %411 = vector.load %arg9[%c40_381, %c0_382, %c0_383] : memref<49x16x32xf32, #tpu.memory_space<vmem>>, vector<1x16x32xf32>
    %412 = vector.shape_cast %411 : vector<1x16x32xf32> to vector<16x32xf32>
    %cst_384 = arith.constant dense<0.000000e+00> : vector<2x32xf32>
    %413 = tpu.matmul %410, %412, %cst_384 {dimension_numbers = #tpu.dot_dimension_numbers<[1], [0], [0], [1], [0, 0, 1, 1], [], []>} : vector<2x16xf32>, vector<16x32xf32>, vector<2x32xf32> -> vector<2x32xf32>
    %414 = arith.addf %407, %413 : vector<2x32xf32>
    %c41 = arith.constant 41 : index
    %c0_385 = arith.constant 0 : index
    %c0_386 = arith.constant 0 : index
    %415 = vector.load %arg8[%c41, %c0_385, %c0_386] : memref<49x2x98xf32, #tpu.memory_space<vmem>>, vector<1x2x98xf32>
    %416 = vector.shape_cast %415 : vector<1x2x98xf32> to vector<2x98xf32>
    %cst_387 = arith.constant dense<0.000000e+00> : vector<2x16xf32>
    %417 = tpu.matmul %416, %126, %cst_387 {dimension_numbers = #tpu.dot_dimension_numbers<[1], [0], [0], [1], [0, 0, 1, 1], [], []>} : vector<2x98xf32>, vector<98x16xf32>, vector<2x16xf32> -> vector<2x16xf32>
    %c41_388 = arith.constant 41 : index
    %c0_389 = arith.constant 0 : index
    %c0_390 = arith.constant 0 : index
    %418 = vector.load %arg9[%c41_388, %c0_389, %c0_390] : memref<49x16x32xf32, #tpu.memory_space<vmem>>, vector<1x16x32xf32>
    %419 = vector.shape_cast %418 : vector<1x16x32xf32> to vector<16x32xf32>
    %cst_391 = arith.constant dense<0.000000e+00> : vector<2x32xf32>
    %420 = tpu.matmul %417, %419, %cst_391 {dimension_numbers = #tpu.dot_dimension_numbers<[1], [0], [0], [1], [0, 0, 1, 1], [], []>} : vector<2x16xf32>, vector<16x32xf32>, vector<2x32xf32> -> vector<2x32xf32>
    %421 = arith.addf %414, %420 : vector<2x32xf32>
    %c42 = arith.constant 42 : index
    %c0_392 = arith.constant 0 : index
    %c0_393 = arith.constant 0 : index
    %422 = vector.load %arg8[%c42, %c0_392, %c0_393] : memref<49x2x98xf32, #tpu.memory_space<vmem>>, vector<1x2x98xf32>
    %423 = vector.shape_cast %422 : vector<1x2x98xf32> to vector<2x98xf32>
    %cst_394 = arith.constant dense<0.000000e+00> : vector<2x16xf32>
    %424 = tpu.matmul %423, %126, %cst_394 {dimension_numbers = #tpu.dot_dimension_numbers<[1], [0], [0], [1], [0, 0, 1, 1], [], []>} : vector<2x98xf32>, vector<98x16xf32>, vector<2x16xf32> -> vector<2x16xf32>
    %c42_395 = arith.constant 42 : index
    %c0_396 = arith.constant 0 : index
    %c0_397 = arith.constant 0 : index
    %425 = vector.load %arg9[%c42_395, %c0_396, %c0_397] : memref<49x16x32xf32, #tpu.memory_space<vmem>>, vector<1x16x32xf32>
    %426 = vector.shape_cast %425 : vector<1x16x32xf32> to vector<16x32xf32>
    %cst_398 = arith.constant dense<0.000000e+00> : vector<2x32xf32>
    %427 = tpu.matmul %424, %426, %cst_398 {dimension_numbers = #tpu.dot_dimension_numbers<[1], [0], [0], [1], [0, 0, 1, 1], [], []>} : vector<2x16xf32>, vector<16x32xf32>, vector<2x32xf32> -> vector<2x32xf32>
    %428 = arith.addf %421, %427 : vector<2x32xf32>
    %c43 = arith.constant 43 : index
    %c0_399 = arith.constant 0 : index
    %c0_400 = arith.constant 0 : index
    %429 = vector.load %arg8[%c43, %c0_399, %c0_400] : memref<49x2x98xf32, #tpu.memory_space<vmem>>, vector<1x2x98xf32>
    %430 = vector.shape_cast %429 : vector<1x2x98xf32> to vector<2x98xf32>
    %cst_401 = arith.constant dense<0.000000e+00> : vector<2x16xf32>
    %431 = tpu.matmul %430, %126, %cst_401 {dimension_numbers = #tpu.dot_dimension_numbers<[1], [0], [0], [1], [0, 0, 1, 1], [], []>} : vector<2x98xf32>, vector<98x16xf32>, vector<2x16xf32> -> vector<2x16xf32>
    %c43_402 = arith.constant 43 : index
    %c0_403 = arith.constant 0 : index
    %c0_404 = arith.constant 0 : index
    %432 = vector.load %arg9[%c43_402, %c0_403, %c0_404] : memref<49x16x32xf32, #tpu.memory_space<vmem>>, vector<1x16x32xf32>
    %433 = vector.shape_cast %432 : vector<1x16x32xf32> to vector<16x32xf32>
    %cst_405 = arith.constant dense<0.000000e+00> : vector<2x32xf32>
    %434 = tpu.matmul %431, %433, %cst_405 {dimension_numbers = #tpu.dot_dimension_numbers<[1], [0], [0], [1], [0, 0, 1, 1], [], []>} : vector<2x16xf32>, vector<16x32xf32>, vector<2x32xf32> -> vector<2x32xf32>
    %435 = arith.addf %428, %434 : vector<2x32xf32>
    %c44 = arith.constant 44 : index
    %c0_406 = arith.constant 0 : index
    %c0_407 = arith.constant 0 : index
    %436 = vector.load %arg8[%c44, %c0_406, %c0_407] : memref<49x2x98xf32, #tpu.memory_space<vmem>>, vector<1x2x98xf32>
    %437 = vector.shape_cast %436 : vector<1x2x98xf32> to vector<2x98xf32>
    %cst_408 = arith.constant dense<0.000000e+00> : vector<2x16xf32>
    %438 = tpu.matmul %437, %126, %cst_408 {dimension_numbers = #tpu.dot_dimension_numbers<[1], [0], [0], [1], [0, 0, 1, 1], [], []>} : vector<2x98xf32>, vector<98x16xf32>, vector<2x16xf32> -> vector<2x16xf32>
    %c44_409 = arith.constant 44 : index
    %c0_410 = arith.constant 0 : index
    %c0_411 = arith.constant 0 : index
    %439 = vector.load %arg9[%c44_409, %c0_410, %c0_411] : memref<49x16x32xf32, #tpu.memory_space<vmem>>, vector<1x16x32xf32>
    %440 = vector.shape_cast %439 : vector<1x16x32xf32> to vector<16x32xf32>
    %cst_412 = arith.constant dense<0.000000e+00> : vector<2x32xf32>
    %441 = tpu.matmul %438, %440, %cst_412 {dimension_numbers = #tpu.dot_dimension_numbers<[1], [0], [0], [1], [0, 0, 1, 1], [], []>} : vector<2x16xf32>, vector<16x32xf32>, vector<2x32xf32> -> vector<2x32xf32>
    %442 = arith.addf %435, %441 : vector<2x32xf32>
    %c45 = arith.constant 45 : index
    %c0_413 = arith.constant 0 : index
    %c0_414 = arith.constant 0 : index
    %443 = vector.load %arg8[%c45, %c0_413, %c0_414] : memref<49x2x98xf32, #tpu.memory_space<vmem>>, vector<1x2x98xf32>
    %444 = vector.shape_cast %443 : vector<1x2x98xf32> to vector<2x98xf32>
    %cst_415 = arith.constant dense<0.000000e+00> : vector<2x16xf32>
    %445 = tpu.matmul %444, %126, %cst_415 {dimension_numbers = #tpu.dot_dimension_numbers<[1], [0], [0], [1], [0, 0, 1, 1], [], []>} : vector<2x98xf32>, vector<98x16xf32>, vector<2x16xf32> -> vector<2x16xf32>
    %c45_416 = arith.constant 45 : index
    %c0_417 = arith.constant 0 : index
    %c0_418 = arith.constant 0 : index
    %446 = vector.load %arg9[%c45_416, %c0_417, %c0_418] : memref<49x16x32xf32, #tpu.memory_space<vmem>>, vector<1x16x32xf32>
    %447 = vector.shape_cast %446 : vector<1x16x32xf32> to vector<16x32xf32>
    %cst_419 = arith.constant dense<0.000000e+00> : vector<2x32xf32>
    %448 = tpu.matmul %445, %447, %cst_419 {dimension_numbers = #tpu.dot_dimension_numbers<[1], [0], [0], [1], [0, 0, 1, 1], [], []>} : vector<2x16xf32>, vector<16x32xf32>, vector<2x32xf32> -> vector<2x32xf32>
    %449 = arith.addf %442, %448 : vector<2x32xf32>
    %c46 = arith.constant 46 : index
    %c0_420 = arith.constant 0 : index
    %c0_421 = arith.constant 0 : index
    %450 = vector.load %arg8[%c46, %c0_420, %c0_421] : memref<49x2x98xf32, #tpu.memory_space<vmem>>, vector<1x2x98xf32>
    %451 = vector.shape_cast %450 : vector<1x2x98xf32> to vector<2x98xf32>
    %cst_422 = arith.constant dense<0.000000e+00> : vector<2x16xf32>
    %452 = tpu.matmul %451, %126, %cst_422 {dimension_numbers = #tpu.dot_dimension_numbers<[1], [0], [0], [1], [0, 0, 1, 1], [], []>} : vector<2x98xf32>, vector<98x16xf32>, vector<2x16xf32> -> vector<2x16xf32>
    %c46_423 = arith.constant 46 : index
    %c0_424 = arith.constant 0 : index
    %c0_425 = arith.constant 0 : index
    %453 = vector.load %arg9[%c46_423, %c0_424, %c0_425] : memref<49x16x32xf32, #tpu.memory_space<vmem>>, vector<1x16x32xf32>
    %454 = vector.shape_cast %453 : vector<1x16x32xf32> to vector<16x32xf32>
    %cst_426 = arith.constant dense<0.000000e+00> : vector<2x32xf32>
    %455 = tpu.matmul %452, %454, %cst_426 {dimension_numbers = #tpu.dot_dimension_numbers<[1], [0], [0], [1], [0, 0, 1, 1], [], []>} : vector<2x16xf32>, vector<16x32xf32>, vector<2x32xf32> -> vector<2x32xf32>
    %456 = arith.addf %449, %455 : vector<2x32xf32>
    %c47 = arith.constant 47 : index
    %c0_427 = arith.constant 0 : index
    %c0_428 = arith.constant 0 : index
    %457 = vector.load %arg8[%c47, %c0_427, %c0_428] : memref<49x2x98xf32, #tpu.memory_space<vmem>>, vector<1x2x98xf32>
    %458 = vector.shape_cast %457 : vector<1x2x98xf32> to vector<2x98xf32>
    %cst_429 = arith.constant dense<0.000000e+00> : vector<2x16xf32>
    %459 = tpu.matmul %458, %126, %cst_429 {dimension_numbers = #tpu.dot_dimension_numbers<[1], [0], [0], [1], [0, 0, 1, 1], [], []>} : vector<2x98xf32>, vector<98x16xf32>, vector<2x16xf32> -> vector<2x16xf32>
    %c47_430 = arith.constant 47 : index
    %c0_431 = arith.constant 0 : index
    %c0_432 = arith.constant 0 : index
    %460 = vector.load %arg9[%c47_430, %c0_431, %c0_432] : memref<49x16x32xf32, #tpu.memory_space<vmem>>, vector<1x16x32xf32>
    %461 = vector.shape_cast %460 : vector<1x16x32xf32> to vector<16x32xf32>
    %cst_433 = arith.constant dense<0.000000e+00> : vector<2x32xf32>
    %462 = tpu.matmul %459, %461, %cst_433 {dimension_numbers = #tpu.dot_dimension_numbers<[1], [0], [0], [1], [0, 0, 1, 1], [], []>} : vector<2x16xf32>, vector<16x32xf32>, vector<2x32xf32> -> vector<2x32xf32>
    %463 = arith.addf %456, %462 : vector<2x32xf32>
    %c48 = arith.constant 48 : index
    %c0_434 = arith.constant 0 : index
    %c0_435 = arith.constant 0 : index
    %464 = vector.load %arg8[%c48, %c0_434, %c0_435] : memref<49x2x98xf32, #tpu.memory_space<vmem>>, vector<1x2x98xf32>
    %465 = vector.shape_cast %464 : vector<1x2x98xf32> to vector<2x98xf32>
    %cst_436 = arith.constant dense<0.000000e+00> : vector<2x16xf32>
    %466 = tpu.matmul %465, %126, %cst_436 {dimension_numbers = #tpu.dot_dimension_numbers<[1], [0], [0], [1], [0, 0, 1, 1], [], []>} : vector<2x98xf32>, vector<98x16xf32>, vector<2x16xf32> -> vector<2x16xf32>
    %c48_437 = arith.constant 48 : index
    %c0_438 = arith.constant 0 : index
    %c0_439 = arith.constant 0 : index
    %467 = vector.load %arg9[%c48_437, %c0_438, %c0_439] : memref<49x16x32xf32, #tpu.memory_space<vmem>>, vector<1x16x32xf32>
    %468 = vector.shape_cast %467 : vector<1x16x32xf32> to vector<16x32xf32>
    %cst_440 = arith.constant dense<0.000000e+00> : vector<2x32xf32>
    %469 = tpu.matmul %466, %468, %cst_440 {dimension_numbers = #tpu.dot_dimension_numbers<[1], [0], [0], [1], [0, 0, 1, 1], [], []>} : vector<2x16xf32>, vector<16x32xf32>, vector<2x32xf32> -> vector<2x32xf32>
    %470 = arith.addf %463, %469 : vector<2x32xf32>
    %c0_441 = arith.constant 0 : index
    %c0_442 = arith.constant 0 : index
    %471 = vector.load %arg10[%c0_441, %c0_442] : memref<1x32xf32, #tpu.memory_space<vmem>>, vector<1x32xf32>
    %472 = vector.broadcast %471 : vector<1x32xf32> to vector<2x32xf32>
    %473 = arith.addf %470, %472 : vector<2x32xf32>
    %c0_443 = arith.constant 0 : index
    %c0_444 = arith.constant 0 : index
    %474 = vector.load %arg11[%c0_443, %c0_444] : memref<32x10xf32, #tpu.memory_space<vmem>>, vector<32x10xf32>
    %cst_445 = arith.constant dense<0.000000e+00> : vector<2x10xf32>
    %475 = tpu.matmul %473, %474, %cst_445 {dimension_numbers = #tpu.dot_dimension_numbers<[1], [0], [0], [1], [0, 0, 1, 1], [], []>} : vector<2x32xf32>, vector<32x10xf32>, vector<2x10xf32> -> vector<2x10xf32>
    %c0_446 = arith.constant 0 : index
    %c0_447 = arith.constant 0 : index
    %476 = vector.load %arg12[%c0_446, %c0_447] : memref<1x10xf32, #tpu.memory_space<vmem>>, vector<1x10xf32>
    %477 = vector.broadcast %476 : vector<1x10xf32> to vector<2x10xf32>
    %478 = arith.addf %475, %477 : vector<2x10xf32>
    %cst_448 = arith.constant dense<0xFF800000> : vector<2xf32>
    %479 = vector.multi_reduction <maximumf>, %478, %cst_448 [1] : vector<2x10xf32> to vector<2xf32>
    %480 = vector.shape_cast %479 : vector<2xf32> to vector<2x1xf32>
    %481 = vector.broadcast %480 : vector<2x1xf32> to vector<2x10xf32>
    %482 = arith.subf %478, %481 : vector<2x10xf32>
    %483 = math.exp %482 : vector<2x10xf32>
    %cst_449 = arith.constant dense<0.000000e+00> : vector<2xf32>
    %484 = vector.multi_reduction <add>, %483, %cst_449 [1] : vector<2x10xf32> to vector<2xf32>
    %485 = vector.shape_cast %484 : vector<2xf32> to vector<2x1xf32>
    %486 = math.log %485 : vector<2x1xf32>
    %487 = arith.addf %486, %480 : vector<2x1xf32>
    %488 = vector.broadcast %487 : vector<2x1xf32> to vector<2x10xf32>
    %489 = arith.subf %478, %488 : vector<2x10xf32>
    %c0_450 = arith.constant 0 : index
    %c0_451 = arith.constant 0 : index
    %490 = vector.load %arg13[%c0_450, %c0_451] : memref<2x10xf32, #tpu.memory_space<vmem>>, vector<2x10xf32>
    tpu.vector_store %arg13[%c0_450, %c0_451], %489 {strides = array<i32>} : memref<2x10xf32, #tpu.memory_space<vmem>>, vector<2x10xf32>,
    return
  }
}

</mosaic_0001>

<bundles_post_ra>
// kernel: lenet_forward.1
= control target key start
LH: loop header
LB: loop body
LE: loop exit
PB: predicated region body
PF: predicated region fallthrough
CT: control target
= control target key end

     0   :  { %vm301_vm0 = vcmask 1043456   ;;  %vm302_vm1 = vcmask 1044480   ;;  %v9459_v3 = vmov 65535   ;;  %s13932_s0 = inlined_call_operand.vmem [shape: bf16[392,9], index: 0, kind: input, shape index: {}]   ;;  %s13933_s1 = inlined_call_operand.vmem [shape: bf16[9,6], index: 1, kind: input, shape index: {}]   ;;  %s13934_s2 = inlined_call_operand.vmem [shape: f32[1,6], index: 2, kind: input, shape index: {}]   ;;  %s13935_s3 = inlined_call_operand.vmem [shape: f32[1,6], index: 3, kind: input, shape index: {}]   ;;  %s13936_s4 = inlined_call_operand.vmem [shape: bf16[9,98,392], index: 4, kind: input, shape index: {}]   ;;  %s13937_s5 = inlined_call_operand.vmem [shape: bf16[9,6,16], index: 5, kind: input, shape index: {}]   ;;  %s13938_s6 = inlined_call_operand.vmem [shape: f32[1,16], index: 6, kind: input, shape index: {}]   ;;  %s13939_s7 = inlined_call_operand.vmem [shape: f32[1,16], index: 7, kind: input, shape index: {}]   ;;  %s13940_s8 = inlined_call_operand.vmem [shape: f32[49,2,98], index: 8, kind: input, shape index: {}]   ;;  %s13941_s9 = inlined_call_operand.vmem [shape: f32[49,16,32], index: 9, kind: input, shape index: {}]   ;;  %s13942_s10 = inlined_call_operand.vmem [shape: f32[1,32], index: 10, kind: input, shape index: {}]   ;;  %s13943_s11 = inlined_call_operand.vmem [shape: f32[32,10], index: 11, kind: input, shape index: {}]   ;;  %s13944_s12 = inlined_call_operand.vmem [shape: f32[1,10], index: 12, kind: input, shape index: {}]   ;;  %s13945_s13 = inlined_call_operand.hbm [shape: f32[2,10], index: 13, kind: output, shape index: {}]  }
   0x1   :  { %v7653_v0 = vld [vmem:[%s13933_s1] sm:$0xf]  ;;  %v9202_v1 = vld [vmem:[%s13933_s1] sm:$0x10]  ;;  %v303_v4 = vsel %vm301_vm0, 4294967295, %v9459_v3 }
   0x2   :  { %v7654_v2 = vor.u32 %v9202_v1, %v7653_v0  ;;  %v304_v5 = vsel %vm302_vm1, %v303_v4, 0 }
   0x3   :  { %18 = vsyncpa [#allocation3], 0  ;;  %v9178_v7 = vld [vmem:[%s13932_s0] sm:$0xff]  ;;  %vm225_vm2 = vcmask 72704   ;;  %v9179_v8 = vld [vmem:[%s13932_s0 + $0x8] sm:$0xff]  ;;  %vm443_vm3 = vcmask 48128  }
   0x4   :  { %v306_v6 = vand.u32 %v7654_v2, %v304_v5  ;;  %v9180_v9 = vld [vmem:[%s13932_s0 + $0x10] sm:$0xff]  ;;  %v9181_v10 = vld [vmem:[%s13932_s0 + $0x18] sm:$0xff]  ;;  %v9182_v11 = vld [vmem:[%s13932_s0 + $0x20] sm:$0xff]  ;;  %vm1630_vm7 = vcmask 1042432   ;;  %vm1048_vm8 = vcmask 64512   ;;  %vm4798_vm9 = vcmask 130048  }
   0x5   :  { %v9183_v12 = vld [vmem:[%s13932_s0 + $0x28] sm:$0xff]  ;;  %v9184_v13 = vld [vmem:[%s13932_s0 + $0x30] sm:$0xff]  ;;  %v9185_v14 = vld [vmem:[%s13932_s0 + $0x38] sm:$0xff]  ;;  %vm4822_vm10 = vcmask 123904   ;;  %vm4943_vm14 = vcmask 1041408   ;;  %vm4939_vm15 = vcmask 801792  }
   0x6   :  { %315 = vmatpush.bf16.msra.mxu0 %v306_v6  ;;  %v9186_v15 = vld [vmem:[%s13932_s0 + $0x40] sm:$0xff]  ;;  %v9187_v18 = vld [vmem:[%s13932_s0 + $0x48] sm:$0xff]  ;;  %v9188_v21 = vld [vmem:[%s13932_s0 + $0x50] sm:$0xff]  ;;  %vm7524_vm1 = vcmask 74752   ;;  %s7546_s29 = sshll.u32 %s13945_s13, 4  ;;  %s7547_s29 = int_to_ptr.hbm [resolvable:$true] %s7546_s29 }
   0x7   :  { %v9189_v24 = vld [vmem:[%s13932_s0 + $0x58] sm:$0xff]  ;;  %v9190_v27 = vld [vmem:[%s13932_s0 + $0x60] sm:$0xff]  ;;  %v9191_v30 = vld [vmem:[%s13932_s0 + $0x68] sm:$0xff] }
   0x8   :  { %v9192_v33 = vld [vmem:[%s13932_s0 + $0x70] sm:$0xff]  ;;  %v9193_v36 = vld [vmem:[%s13932_s0 + $0x78] sm:$0xff]  ;;  %v9194_v39 = vld [vmem:[%s13932_s0 + $0x80] sm:$0xff] }
   0x9   :  { %7655 = vmatmul.msk.bf16.vlgmr.msra.gmra.mxu0 %vm225_vm2, %v9178_v7  ;;  %v9195_v42 = vld [vmem:[%s13932_s0 + $0x88] sm:$0xff]  ;;  %v9196_v45 = vld [vmem:[%s13932_s0 + $0x90] sm:$0xff]  ;;  %v9197_v48 = vld [vmem:[%s13932_s0 + $0x98] sm:$0xff] }
   0xa   :  { %v9198_v51 = vld [vmem:[%s13932_s0 + $0xa0] sm:$0xff]  ;;  %v9199_v54 = vld [vmem:[%s13932_s0 + $0xa8] sm:$0xff]  ;;  %v9200_v57 = vld [vmem:[%s13932_s0 + $0xb0] sm:$0xff] }
   0xb   :  { %v9201_v60 = vld [vmem:[%s13932_s0 + $0xb8] sm:$0xff]  ;;  %v94_v63 = vld [vmem:[%s13932_s0 + $0xc0] sm:$0xf] }
   0xc   :  { %v194_v0 = vunpack.c.l.b16 %v94_v63 }
   0xe   :  { %v219_v1 = vpack.c.b16 %v194_v0, %v194_v0 }
  0x19   :  { %7656 = vmatmul.msk.bf16.gmra.mxu0 %vm225_vm2, %v9179_v8 }
  0x29   :  { %7657 = vmatmul.msk.bf16.gmra.mxu0 %vm225_vm2, %v9180_v9 }
  0x39   :  { %7658 = vmatmul.msk.bf16.gmra.mxu0 %vm225_vm2, %v9181_v10 }
  0x49   :  { %7659 = vmatmul.msk.bf16.gmra.mxu0 %vm225_vm2, %v9182_v11 }
  0x59   :  { %7660 = vmatmul.msk.bf16.gmra.mxu0 %vm225_vm2, %v9183_v12 }
  0x69   :  { %7661 = vmatmul.msk.bf16.gmra.mxu0 %vm225_vm2, %v9184_v13 }
  0x79   :  { %7662 = vmatmul.msk.bf16.gmra.mxu0 %vm225_vm2, %v9185_v14 }
  0x86   :  { %v9573_v16 = vpop.f32.mrf.mxu0 }
  0x87   :  { %v548_v8 = vmul.f32 %v9573_v16, %v9573_v16  ;;  %v444_v11 = vsel %vm443_vm3, %v9573_v16, 0.0 }
  0x89   :  { %7663 = vmatmul.msk.bf16.gmra.mxu0 %vm225_vm2, %v9186_v15 }
  0x8e   :  { %v9576_v17 = vpop.f32.mrf.mxu0 }
  0x8f   :  { %v549_v6 = vmul.f32 %v9576_v17, %v9576_v17  ;;  %v445_v9 = vsel %vm443_vm3, %v9576_v17, 0.0 }
  0x90   :  { %v446_v15 = vadd.f32 %v445_v9, %v444_v11 }
  0x91   :  { %v598_v12 = vsel %vm443_vm3, %v549_v6, 0.0 }
  0x96   :  { %v9581_v19 = vpop.f32.mrf.mxu0 }
  0x97   :  { %v550_v10 = vmul.f32 %v9581_v19, %v9581_v19  ;;  %v447_v13 = vsel %vm443_vm3, %v9581_v19, 0.0 }
  0x99   :  { %7664 = vmatmul.msk.bf16.gmra.mxu0 %vm225_vm2, %v9187_v18  ;;  %v597_v18 = vsel %vm443_vm3, %v548_v8, 0.0 }
  0x9e   :  { %v9584_v20 = vpop.f32.mrf.mxu0 }
  0x9f   :  { %v551_v14 = vmul.f32 %v9584_v20, %v9584_v20 }
  0xa6   :  { %v9589_v22 = vpop.f32.mrf.mxu0 }
  0xa9   :  { %7665 = vmatmul.msk.bf16.gmra.mxu0 %vm225_vm2, %v9188_v21  ;;  %v600_v21 = vsel %vm443_vm3, %v550_v10, 0.0 }
  0xae   :  { %v9592_v23 = vpop.f32.mrf.mxu0 }
  0xb6   :  { %v9597_v25 = vpop.f32.mrf.mxu0 }
  0xb7   :  { %v455_v6 = vsel %vm443_vm3, %v9597_v25, 0.0 }
  0xb9   :  { %7666 = vmatmul.msk.bf16.gmra.mxu0 %vm225_vm2, %v9189_v24  ;;  %v449_v24 = vsel %vm443_vm3, %v9584_v20, 0.0 }
  0xbe   :  { %v9600_v26 = vpop.f32.mrf.mxu0 }
  0xbf   :  { %v555_v8 = vmul.f32 %v9600_v26, %v9600_v26 }
  0xc6   :  { %v9605_v28 = vpop.f32.mrf.mxu0 }
  0xc9   :  { %7667 = vmatmul.msk.bf16.gmra.mxu0 %vm225_vm2, %v9190_v27  ;;  %v552_v27 = vmul.f32 %v9589_v22, %v9589_v22 }
  0xce   :  { %v9608_v29 = vpop.f32.mrf.mxu0 }
  0xd6   :  { %v9613_v31 = vpop.f32.mrf.mxu0 }
  0xd9   :  { %7668 = vmatmul.msk.bf16.gmra.mxu0 %vm225_vm2, %v9191_v30  ;;  %v448_v30 = vadd.f32 %v447_v13, %v446_v15  ;;  %v556_v13 = vmul.f32 %v9605_v28, %v9605_v28 }
  0xde   :  { %v9616_v32 = vpop.f32.mrf.mxu0 }
  0xe6   :  { %v9621_v34 = vpop.f32.mrf.mxu0 }
  0xe9   :  { %7669 = vmatmul.msk.bf16.gmra.mxu0 %vm225_vm2, %v9192_v33  ;;  %v599_v33 = vadd.f32 %v598_v12, %v597_v18  ;;  %v457_v12 = vsel %vm443_vm3, %v9600_v26, 0.0  ;;  %v610_v18 = vsel %vm443_vm3, %v555_v8, 0.0  ;;  %v560_v8 = vmul.f32 %v9621_v34, %v9621_v34 }
  0xee   :  { %v9624_v35 = vpop.f32.mrf.mxu0 }
  0xf6   :  { %v9629_v37 = vpop.f32.mrf.mxu0 }
  0xf9   :  { %7670 = vmatmul.msk.bf16.gmra.mxu0 %vm225_vm2, %v9193_v36  ;;  %v602_v36 = vsel %vm443_vm3, %v551_v14, 0.0 }
  0xfe   :  { %v9632_v38 = vpop.f32.mrf.mxu0 }
 0x106   :  { %v9637_v40 = vpop.f32.mrf.mxu0 }
 0x109   :  { %7671 = vmatmul.msk.bf16.gmra.mxu0 %vm225_vm2, %v9194_v39  ;;  %v451_v39 = vsel %vm443_vm3, %v9589_v22, 0.0 }
 0x10e   :  { %v9640_v41 = vpop.f32.mrf.mxu0 }
 0x116   :  { %v9645_v43 = vpop.f32.mrf.mxu0 }
 0x119   :  { %7672 = vmatmul.msk.bf16.gmra.mxu0 %vm225_vm2, %v9195_v42  ;;  %v553_v42 = vmul.f32 %v9592_v23, %v9592_v23 }
 0x11e   :  { %v9648_v44 = vpop.f32.mrf.mxu0 }
 0x126   :  { %v9653_v46 = vpop.f32.mrf.mxu0 }
 0x129   :  { %7673 = vmatmul.msk.bf16.gmra.mxu0 %vm225_vm2, %v9196_v45  ;;  %v601_v45 = vadd.f32 %v600_v21, %v599_v33  ;;  %v459_v21 = vsel %vm443_vm3, %v9605_v28, 0.0 }
 0x12b   :  { %v603_v0 = vadd.f32 %v602_v36, %v601_v45  ;;  %v612_v36 = vsel %vm443_vm3, %v556_v13, 0.0  ;;  %v561_v13 = vmul.f32 %v9624_v35, %v9624_v35 }
 0x12e   :  { %v9656_v47 = vpop.f32.mrf.mxu0 }
 0x136   :  { %v9661_v49 = vpop.f32.mrf.mxu0 }
 0x139   :  { %7674 = vmatmul.msk.bf16.gmra.mxu0 %vm225_vm2, %v9197_v48  ;;  %v450_v48 = vadd.f32 %v449_v24, %v448_v30  ;;  %v557_v24 = vmul.f32 %v9608_v29, %v9608_v29 }
 0x13b   :  { %v452_v63 = vadd.f32 %v451_v39, %v450_v48  ;;  %v461_v39 = vsel %vm443_vm3, %v9608_v29, 0.0 }
 0x13e   :  { %v9664_v50 = vpop.f32.mrf.mxu0 }
 0x146   :  { %v9669_v52 = vpop.f32.mrf.mxu0 }
 0x149   :  { %7675 = vmatmul.msk.bf16.gmra.mxu0 %vm225_vm2, %v9198_v51 }
 0x14e   :  { %v9672_v53 = vpop.f32.mrf.mxu0 }
 0x156   :  { %v9677_v55 = vpop.f32.mrf.mxu0 }
 0x159   :  { %7676 = vmatmul.msk.bf16.gmra.mxu0 %vm225_vm2, %v9199_v54  ;;  %v604_v54 = vsel %vm443_vm3, %v552_v27, 0.0 }
 0x15a   :  { %v605_v9 = vadd.f32 %v604_v54, %v603_v0  ;;  %v614_v54 = vsel %vm443_vm3, %v557_v24, 0.0  ;;  %v469_v24 = vsel %vm443_vm3, %v9624_v35, 0.0 }
 0x15e   :  { %v9680_v56 = vpop.f32.mrf.mxu0 }
 0x166   :  { %v9685_v58 = vpop.f32.mrf.mxu0 }
 0x169   :  { %7677 = vmatmul.msk.bf16.gmra.mxu0 %vm225_vm2, %v9200_v57  ;;  %v453_v57 = vsel %vm443_vm3, %v9592_v23, 0.0 }
 0x16a   :  { %v454_v10 = vadd.f32 %v453_v57, %v452_v63  ;;  %v463_v57 = vsel %vm443_vm3, %v9613_v31, 0.0 }
 0x16c   :  { %v456_v14 = vadd.f32 %v455_v6, %v454_v10  ;;  %v465_v6 = vsel %vm443_vm3, %v9616_v32, 0.0 }
 0x16e   :  { %v9688_v59 = vpop.f32.mrf.mxu0  ;;  %v458_v30 = vadd.f32 %v457_v12, %v456_v14  ;;  %v467_v12 = vsel %vm443_vm3, %v9621_v34, 0.0 }
 0x170   :  { %v460_v45 = vadd.f32 %v459_v21, %v458_v30  ;;  %v620_v21 = vsel %vm443_vm3, %v560_v8, 0.0  ;;  %v475_v8 = vsel %vm443_vm3, %v9637_v40, 0.0 }
 0x172   :  { %v462_v0 = vadd.f32 %v461_v39, %v460_v45  ;;  %v622_v39 = vsel %vm443_vm3, %v561_v13, 0.0  ;;  %v563_v45 = vmul.f32 %v9632_v38, %v9632_v38 }
 0x176   :  { %v9693_v61 = vpop.f32.mrf.mxu0 }
 0x179   :  { %7678 = vmatmul.msk.bf16.gmra.mxu0 %vm225_vm2, %v9201_v60  ;;  %v554_v60 = vmul.f32 %v9597_v25, %v9597_v25 }
 0x17b   :  { %v608_v11 = vsel %vm443_vm3, %v554_v60, 0.0  ;;  %v559_v60 = vmul.f32 %v9616_v32, %v9616_v32 }
 0x17e   :  { %v9696_v62 = vpop.f32.mrf.mxu0 }
 0x186   :  { %v9701_v2 = vpop.f32.mrf.mxu0 }
 0x189   :  { %7679 = vmatmul.msk.bf16.gmra.mxu0 %vm225_vm2, %v219_v1  ;;  %v606_v1 = vsel %vm443_vm3, %v553_v42, 0.0  ;;  %v558_v42 = vmul.f32 %v9613_v31, %v9613_v31 }
 0x18a   :  { %v607_v15 = vadd.f32 %v606_v1, %v605_v9  ;;  %v464_v9 = vadd.f32 %v463_v57, %v462_v0 }
 0x18b   :  { %v616_v1 = vsel %vm443_vm3, %v558_v42, 0.0  ;;  %v471_v42 = vsel %vm443_vm3, %v9629_v37, 0.0 }
 0x18c   :  { %v609_v27 = vadd.f32 %v608_v11, %v607_v15  ;;  %v618_v11 = vsel %vm443_vm3, %v559_v60, 0.0  ;;  %v466_v15 = vadd.f32 %v465_v6, %v464_v9  ;;  %v473_v60 = vsel %vm443_vm3, %v9632_v38, 0.0 }
 0x18d   :  { %v626_v6 = vsel %vm443_vm3, %v563_v45, 0.0  ;;  %v565_v9 = vmul.f32 %v9640_v41, %v9640_v41 }
 0x18e   :  { %v9704_v3 = vpop.f32.mrf.mxu0  ;;  %v611_v48 = vadd.f32 %v610_v18, %v609_v27  ;;  %v562_v27 = vmul.f32 %v9629_v37, %v9629_v37  ;;  %v468_v30 = vadd.f32 %v467_v12, %v466_v15  ;;  %v566_v15 = vmul.f32 %v9645_v43, %v9645_v43 }
 0x18f   :  { %13984 = vst [vmem:[#allocation5_spill] sm:$0xff] %v9704_v3 }
 0x190   :  { %v613_v63 = vadd.f32 %v612_v36, %v611_v48  ;;  %v624_v57 = vsel %vm443_vm3, %v562_v27, 0.0  ;;  %v630_v27 = vsel %vm443_vm3, %v565_v9, 0.0  ;;  %v632_v45 = vsel %vm443_vm3, %v566_v15, 0.0 }
 0x192   :  { %v615_v10 = vadd.f32 %v614_v54, %v613_v63  ;;  %v470_v54 = vadd.f32 %v469_v24, %v468_v30  ;;  %v564_v63 = vmul.f32 %v9637_v40, %v9637_v40  ;;  %v479_v30 = vsel %vm443_vm3, %v9645_v43, 0.0 }
 0x194   :  { %v617_v14 = vadd.f32 %v616_v1, %v615_v10  ;;  %v472_v0 = vadd.f32 %v471_v42, %v470_v54  ;;  %v628_v13 = vsel %vm443_vm3, %v564_v63, 0.0  ;;  %v568_v54 = vmul.f32 %v9653_v46, %v9653_v46 }
 0x196   :  { %v9706_v4 = vpop.f32.mrf.mxu0  ;;  %v619_v36 = vadd.f32 %v618_v11, %v617_v14  ;;  %v474_v11 = vadd.f32 %v473_v60, %v472_v0  ;;  %v477_v14 = vsel %vm443_vm3, %v9640_v41, 0.0  ;;  %v483_v0 = vsel %vm443_vm3, %v9653_v46, 0.0 }
 0x198   :  { %v621_v48 = vadd.f32 %v620_v21, %v619_v36  ;;  %v476_v21 = vadd.f32 %v475_v8, %v474_v11  ;;  %v567_v36 = vmul.f32 %v9648_v44, %v9648_v44  ;;  %v485_v11 = vsel %vm443_vm3, %v9656_v47, 0.0 }
 0x19a   :  { %v623_v1 = vadd.f32 %v622_v39, %v621_v48  ;;  %v478_v42 = vadd.f32 %v477_v14, %v476_v21  ;;  %v481_v48 = vsel %vm443_vm3, %v9648_v44, 0.0  ;;  %v634_v63 = vsel %vm443_vm3, %v567_v36, 0.0 }
 0x19c   :  { %v625_v10 = vadd.f32 %v624_v57, %v623_v1  ;;  %v480_v57 = vadd.f32 %v479_v30, %v478_v42  ;;  %v569_v1 = vmul.f32 %v9656_v47, %v9656_v47  ;;  %v489_v42 = vsel %vm443_vm3, %v9664_v50, 0.0 }
 0x19e   :  { %v9708_v5 = vpop.f32.mrf.mxu0  ;;  %v627_v24 = vadd.f32 %v626_v6, %v625_v10  ;;  %v482_v8 = vadd.f32 %v481_v48, %v480_v57  ;;  %v636_v10 = vsel %vm443_vm3, %v568_v54, 0.0  ;;  %v638_v21 = vsel %vm443_vm3, %v569_v1, 0.0 }
 0x19f   :  { %13985 = vst [vmem:[#allocation6_spill] sm:$0xff] %v9708_v5 }
 0x1a0   :  { %v629_v39 = vadd.f32 %v628_v13, %v627_v24  ;;  %v570_v13 = vmul.f32 %v9661_v49, %v9661_v49  ;;  %v484_v14 = vadd.f32 %v483_v0, %v482_v8  ;;  %v487_v24 = vsel %vm443_vm3, %v9661_v49, 0.0 }
 0x1a2   :  { %v631_v60 = vadd.f32 %v630_v27, %v629_v39  ;;  %v571_v27 = vmul.f32 %v9664_v50, %v9664_v50  ;;  %v486_v36 = vadd.f32 %v485_v11, %v484_v14  ;;  %v640_v39 = vsel %vm443_vm3, %v570_v13, 0.0 }
 0x1a3   :  { %v574_v11 = vmul.f32 %v9677_v55, %v9677_v55 }
 0x1a4   :  { %v633_v6 = vadd.f32 %v632_v45, %v631_v60  ;;  %v572_v45 = vmul.f32 %v9669_v52, %v9669_v52  ;;  %v488_v48 = vadd.f32 %v487_v24, %v486_v36  ;;  %v642_v57 = vsel %vm443_vm3, %v571_v27, 0.0 }
 0x1a5   :  { %v491_v60 = vsel %vm443_vm3, %v9669_v52, 0.0  ;;  %v575_v24 = vmul.f32 %v9680_v56, %v9680_v56  ;;  %v648_v36 = vsel %vm443_vm3, %v574_v11, 0.0  ;;  %v578_v11 = vmul.f32 %v9693_v61, %v9693_v61 }
 0x1a6   :  { %v9712_v7 = vpop.f32.mrf.mxu0  ;;  %v635_v15 = vadd.f32 %v634_v63, %v633_v6  ;;  %v573_v63 = vmul.f32 %v9672_v53, %v9672_v53  ;;  %v490_v1 = vadd.f32 %v489_v42, %v488_v48  ;;  %v644_v8 = vsel %vm443_vm3, %v572_v45, 0.0 }
 0x1a7   :  { %v576_v42 = vmul.f32 %v9685_v58, %v9685_v58 }
 0x1a8   :  { %v637_v30 = vadd.f32 %v636_v10, %v635_v15  ;;  %v493_v10 = vsel %vm443_vm3, %v9672_v53, 0.0  ;;  %v492_v13 = vadd.f32 %v491_v60, %v490_v1  ;;  %v646_v15 = vsel %vm443_vm3, %v573_v63, 0.0 }
 0x1a9   :  { %v577_v60 = vmul.f32 %v9688_v59, %v9688_v59 }
 0x1aa   :  { %v639_v54 = vadd.f32 %v638_v21, %v637_v30  ;;  %v495_v21 = vsel %vm443_vm3, %v9677_v55, 0.0  ;;  %v494_v30 = vadd.f32 %v493_v10, %v492_v13  ;;  %v501_v10 = vsel %vm443_vm3, %v9688_v59, 0.0 }
 0x1ac   :  { %v641_v0 = vadd.f32 %v640_v39, %v639_v54  ;;  %v497_v39 = vsel %vm443_vm3, %v9680_v56, 0.0  ;;  %v496_v45 = vadd.f32 %v495_v21, %v494_v30  ;;  %v650_v54 = vsel %vm443_vm3, %v575_v24, 0.0 }
 0x1ad   :  { %v503_v21 = vsel %vm443_vm3, %v9693_v61, 0.0  ;;  %v579_v24 = vmul.f32 %v9696_v62, %v9696_v62 }
 0x1ae   :  { %v9738_v51 = vpop.f32.mrf.mxu0  ;;  %v643_v14 = vadd.f32 %v642_v57, %v641_v0  ;;  %v499_v57 = vsel %vm443_vm3, %v9685_v58, 0.0  ;;  %v498_v0 = vadd.f32 %v497_v39, %v496_v45  ;;  %v505_v39 = vsel %vm443_vm3, %v9696_v62, 0.0 }
 0x1af   :  { %13986 = vst [vmem:[#allocation7_spill] sm:$0xff] %v9738_v51 }
 0x1b0   :  { %v645_v27 = vadd.f32 %v644_v8, %v643_v14  ;;  %v652_v8 = vsel %vm443_vm3, %v576_v42, 0.0  ;;  %v500_v13 = vadd.f32 %v499_v57, %v498_v0  ;;  %v580_v42 = vmul.f32 %v9701_v2, %v9701_v2 }
 0x1b1   :  { %v507_v57 = vsel %vm443_vm3, %v9701_v2, 0.0 }
 0x1b2   :  { %v647_v48 = vadd.f32 %v646_v15, %v645_v27  ;;  %v654_v15 = vsel %vm443_vm3, %v577_v60, 0.0  ;;  %v502_v30 = vadd.f32 %v501_v10, %v500_v13  ;;  %v581_v60 = vmul.f32 %v9704_v3, %v9704_v3 }
 0x1b3   :  { %v660_v10 = vsel %vm443_vm3, %v580_v42, 0.0  ;;  %v582_v13 = vmul.f32 %v9706_v4, %v9706_v4  ;;  %v513_v42 = vsel %vm443_vm3, %v9708_v5, 0.0 }
 0x1b4   :  { %v649_v63 = vadd.f32 %v648_v36, %v647_v48  ;;  %v656_v36 = vsel %vm443_vm3, %v578_v11, 0.0  ;;  %v504_v45 = vadd.f32 %v503_v21, %v502_v30  ;;  %v509_v11 = vsel %vm443_vm3, %v9704_v3, 0.0 }
 0x1b5   :  { %v662_v21 = vsel %vm443_vm3, %v581_v60, 0.0  ;;  %v515_v60 = vsel %vm443_vm3, %v9712_v7, 0.0 }
 0x1b6   :  { %v9760_v33 = vpop.f32.mrf.mxu0  ;;  %v651_v14 = vadd.f32 %v650_v54, %v649_v63  ;;  %v658_v54 = vsel %vm443_vm3, %v579_v24, 0.0  ;;  %v506_v0 = vadd.f32 %v505_v39, %v504_v45  ;;  %v511_v24 = vsel %vm443_vm3, %v9706_v4, 0.0 }
 0x1b7   :  { %v664_v39 = vsel %vm443_vm3, %v582_v13, 0.0  ;;  %v584_v45 = vmul.f32 %v9712_v7, %v9712_v7 }
 0x1b8   :  { %v653_v27 = vadd.f32 %v652_v8, %v651_v14  ;;  %v508_v14 = vadd.f32 %v507_v57, %v506_v0 }
 0x1b9   :  { %v668_v13 = vsel %vm443_vm3, %v584_v45, 0.0 }
 0x1ba   :  { %v655_v48 = vadd.f32 %v654_v15, %v653_v27  ;;  %v583_v27 = vmul.f32 %v9708_v5, %v9708_v5 }
 0x1bc   :  { %v657_v63 = vadd.f32 %v656_v36, %v655_v48  ;;  %v510_v36 = vadd.f32 %v509_v11, %v508_v14  ;;  %v666_v57 = vsel %vm443_vm3, %v583_v27, 0.0  ;;  %v517_v14 = vsel %vm443_vm3, %v9738_v51, 0.0 }
 0x1be   :  { %v9782_v18 = vpop.f32.mrf.mxu0  ;;  %v659_v15 = vadd.f32 %v658_v54, %v657_v63  ;;  %v512_v48 = vadd.f32 %v511_v24, %v510_v36  ;;  %v585_v63 = vmul.f32 %v9738_v51, %v9738_v51 }
 0x1bf   :  { %13987 = vst [vmem:[#allocation8_spill] sm:$0xff] %v9782_v18  ;;  %v587_v36 = vmul.f32 %v9782_v18, %v9782_v18 }
 0x1c0   :  { %v661_v30 = vadd.f32 %v660_v10, %v659_v15  ;;  %v514_v10 = vadd.f32 %v513_v42, %v512_v48  ;;  %v586_v15 = vmul.f32 %v9760_v33, %v9760_v33  ;;  %v670_v27 = vsel %vm443_vm3, %v585_v63, 0.0 }
 0x1c1   :  { %v521_v48 = vsel %vm443_vm3, %v9782_v18, 0.0  ;;  %v674_v63 = vsel %vm443_vm3, %v587_v36, 0.0 }
 0x1c2   :  { %v663_v54 = vadd.f32 %v662_v21, %v661_v30  ;;  %v516_v21 = vadd.f32 %v515_v60, %v514_v10  ;;  %v519_v30 = vsel %vm443_vm3, %v9760_v33, 0.0  ;;  %v672_v45 = vsel %vm443_vm3, %v586_v15, 0.0 }
 0x1c4   :  { %v665_v0 = vadd.f32 %v664_v39, %v663_v54  ;;  %v518_v42 = vadd.f32 %v517_v14, %v516_v21 }
 0x1c6   :  { %v9804_v12 = vpop.f32.mrf.mxu0  ;;  %v667_v24 = vadd.f32 %v666_v57, %v665_v0  ;;  %v520_v60 = vadd.f32 %v519_v30, %v518_v42 }
 0x1c7   :  { %v588_v54 = vmul.f32 %v9804_v12, %v9804_v12  ;;  %v523_v0 = vsel %vm443_vm3, %v9804_v12, 0.0 }
 0x1c8   :  { %v669_v39 = vadd.f32 %v668_v13, %v667_v24  ;;  %v522_v14 = vadd.f32 %v521_v48, %v520_v60 }
 0x1c9   :  { %v676_v15 = vsel %vm443_vm3, %v588_v54, 0.0 }
 0x1ca   :  { %v671_v57 = vadd.f32 %v670_v27, %v669_v39  ;;  %v524_v30 = vadd.f32 %v523_v0, %v522_v14 }
 0x1cc   :  { %v673_v13 = vadd.f32 %v672_v45, %v671_v57 }
 0x1ce   :  { %v9826_v9 = vpop.f32.mrf.mxu0  ;;  %v675_v36 = vadd.f32 %v674_v63, %v673_v13 }
 0x1cf   :  { %13988 = vst [vmem:[#allocation9_spill] sm:$0xff] %v9826_v9  ;;  %v589_v10 = vmul.f32 %v9826_v9, %v9826_v9  ;;  %v525_v24 = vsel %vm443_vm3, %v9826_v9, 0.0 }
 0x1d0   :  { %v677_v48 = vadd.f32 %v676_v15, %v675_v36  ;;  %v526_v60 = vadd.f32 %v525_v24, %v524_v30 }
 0x1d1   :  { %v678_v39 = vsel %vm443_vm3, %v589_v10, 0.0 }
 0x1d2   :  { %v679_v63 = vadd.f32 %v678_v39, %v677_v48 }
 0x1d6   :  { %v9848_v6 = vpop.f32.mrf.mxu0 }
 0x1d7   :  { %13989 = vst [vmem:[#allocation10_spill] sm:$0xff] %v9848_v6  ;;  %v590_v27 = vmul.f32 %v9848_v6, %v9848_v6  ;;  %v527_v42 = vsel %vm443_vm3, %v9848_v6, 0.0 }
 0x1d8   :  { %v528_v0 = vadd.f32 %v527_v42, %v526_v60 }
 0x1d9   :  { %v680_v54 = vsel %vm443_vm3, %v590_v27, 0.0 }
 0x1da   :  { %v681_v15 = vadd.f32 %v680_v54, %v679_v63 }
 0x1de   :  { %v9870_v1 = vpop.f32.mrf.mxu0 }
 0x1df   :  { %13990 = vst [vmem:[#allocation11_spill] sm:$0xff] %v9870_v1  ;;  %v591_v45 = vmul.f32 %v9870_v1, %v9870_v1  ;;  %v529_v57 = vsel %vm443_vm3, %v9870_v1, 0.0 }
 0x1e0   :  { %v530_v24 = vadd.f32 %v529_v57, %v528_v0 }
 0x1e1   :  { %v682_v10 = vsel %vm443_vm3, %v591_v45, 0.0 }
 0x1e2   :  { %v683_v45 = vadd.f32 %v682_v10, %v681_v15 }
 0x1e6   :  { %v9892_v8 = vpop.f32.mrf.mxu0 }
 0x1e7   :  { %13991 = vst [vmem:[#allocation12_spill] sm:$0xff] %v9892_v8  ;;  %v592_v3 = vmul.f32 %v9892_v8, %v9892_v8  ;;  %v531_v13 = vsel %vm443_vm3, %v9892_v8, 0.0 }
 0x1e8   :  { %v532_v42 = vadd.f32 %v531_v13, %v530_v24 }
 0x1e9   :  { %v684_v27 = vsel %vm443_vm3, %v592_v3, 0.0 }
 0x1ea   :  { %v685_v57 = vadd.f32 %v684_v27, %v683_v45 }
 0x1ee   :  { %v9914_v11 = vpop.f32.mrf.mxu0 }
 0x1ef   :  { %13992 = vst [vmem:[#allocation13_spill] sm:$0xff] %v9914_v11  ;;  %v593_v14 = vmul.f32 %v9914_v11, %v9914_v11  ;;  %v533_v36 = vsel %vm443_vm3, %v9914_v11, 0.0 }
 0x1f0   :  { %v534_v0 = vadd.f32 %v533_v36, %v532_v42 }
 0x1f1   :  { %v686_v48 = vsel %vm443_vm3, %v593_v14, 0.0 }
 0x1f2   :  { %v687_v51 = vadd.f32 %v686_v48, %v685_v57 }
 0x1f6   :  { %v9936_v21 = vpop.f32.mrf.mxu0 }
 0x1f7   :  { %v594_v39 = vmul.f32 %v9936_v21, %v9936_v21  ;;  %v535_v60 = vsel %vm443_vm3, %v9936_v21, 0.0 }
 0x1f8   :  { %v536_v5 = vadd.f32 %v535_v60, %v534_v0 }
 0x1f9   :  { %v688_v3 = vsel %vm443_vm3, %v594_v39, 0.0 }
 0x1fa   :  { %v689_v10 = vadd.f32 %v688_v3, %v687_v51 }
 0x1fe   :  { %v9958_v30 = vpop.f32.mrf.mxu0 }
 0x1ff   :  { %v595_v54 = vmul.f32 %v9958_v30, %v9958_v30  ;;  %v537_v63 = vsel %vm443_vm3, %v9958_v30, 0.0 }
 0x200   :  { %v538_v14 = vadd.f32 %v537_v63, %v536_v5 }
 0x201   :  { %v690_v13 = vsel %vm443_vm3, %v595_v54, 0.0 }
 0x202   :  { %v691_v1 = vadd.f32 %v690_v13, %v689_v10 }
 0x206   :  { %v437_v15 = vpop.f32.mrf.mxu0 }
 0x207   :  { %v539_v24 = vsel %vm443_vm3, %v437_v15, 0.0  ;;  %v596_v18 = vmul.f32 %v437_v15, %v437_v15 }
 0x208   :  { %v540_v9 = vadd.f32 %v539_v24, %v538_v14 }
 0x209   :  { %v692_v27 = vsel %vm443_vm3, %v596_v18, 0.0 }
 0x20a   :  { %v541_v36 = vrot.slane %v540_v9, 4  ;;  %v693_v42 = vadd.f32 %v692_v27, %v691_v1 }
 0x20c   :  { %v542_v39 = vadd.f32 %v541_v36, %v540_v9  ;;  %v694_v45 = vrot.slane %v693_v42, 4 }
 0x20e   :  { %v543_v6 = vrot.slane %v542_v39, 2  ;;  %v695_v11 = vadd.f32 %v694_v45, %v693_v42  ;;  %v439_v60 = vpop.f32.mrf.mxu0 }
 0x210   :  { %v544_v48 = vadd.f32 %v543_v6, %v542_v39  ;;  %v696_v57 = vrot.slane %v695_v11, 2  ;;  %v441_v6 = vld [vmem:[%s13934_s2] sm:$0x1] }
 0x212   :  { %v545_v54 = vrot.slane %v544_v48, 1  ;;  %v697_v51 = vadd.f32 %v696_v57, %v695_v11 }
 0x214   :  { %v546_v0 = vadd.f32 %v545_v54, %v544_v48  ;;  %v698_v5 = vrot.slane %v697_v51, 1 }
 0x216   :  { %v547_v3 = vmul.f32 0.0025510204, %v546_v0  ;;  %v699_v63 = vadd.f32 %v698_v5, %v697_v51 }
 0x218   :  { %v700_v8 = vmul.f32 0.0025510204, %v699_v63  ;;  %v701_v14 = vmul.f32 %v547_v3, %v547_v3 }
 0x21a   :  { %v702_v13 = vsub.f32 %v700_v8, %v701_v14  ;;  %v442_v8 = vld [vmem:[%s13935_s3] sm:$0x1] }
 0x21c   :  { %v703_v10 = vadd.f32 1e-05, %v702_v13 }
 0x21e   :  { %9423 = vrsqrt.f32 %v703_v10  ;;  %vm710_vm5 = vweird.f32 %v703_v10 }
 0x224   :  { %v9424_v18 = vpop.eup %9423 }
 0x225   :  { %v705_v1 = vmul.f32 %v9424_v18, %v703_v10  ;;  %vm711_vm4 = vweird.f32 %v9424_v18 }
 0x226   :  { %vm712_vm6 = vmor %vm710_vm5, %vm711_vm4 }
 0x227   :  { %v706_v9 = vmul.f32 %v9424_v18, %v705_v1 }
 0x229   :  { %v707_v24 = vmul.f32 0.5, %v706_v9 }
 0x22b   :  { %v708_v27 = vsub.f32 1.5, %v707_v24  ;;  %v13993_v24 = vld [vmem:[#allocation12_spill] sm:$0xff] }
 0x22d   :  { %v709_v36 = vmul.f32 %v9424_v18, %v708_v27  ;;  %v13994_v27 = vld [vmem:[#allocation13_spill] sm:$0xff] }
 0x22f   :  { %v713_v11 = vsel %vm712_vm6, %v9424_v18, %v709_v36 }
 0x230   :  { %v714_v42 = vmul.f32 %v713_v11, %v441_v6 }
 0x232   :  { %v715_v39 = vmul.f32 %v714_v42, %v547_v3  ;;  %v9982_v60 = vperm.slane %v714_v42, 0 }
 0x234   :  { %v716_v45 = vsub.f32 %v442_v8, %v715_v39  ;;  %v768_v48 = vmul.f32 %v9982_v60, %v437_v15  ;;  %v9989_v54 = vmul.f32 %v9982_v60, %v9573_v16  ;;  %v9993_v51 = vmul.f32 %v9982_v60, %v9576_v17  ;;  %v13995_v39 = vld [vmem:[#allocation10_spill] sm:$0xff] }
 0x235   :  { %v9997_v0 = vmul.f32 %v9982_v60, %v9581_v19  ;;  %v10001_v5 = vmul.f32 %v9982_v60, %v9584_v20  ;;  %v10005_v15 = vmul.f32 %v9982_v60, %v9589_v22  ;;  %v10009_v16 = vmul.f32 %v9982_v60, %v9592_v23 }
 0x236   :  { %v9985_v57 = vperm.slane %v716_v45, 0  ;;  %v10013_v17 = vmul.f32 %v9982_v60, %v9597_v25  ;;  %v10017_v19 = vmul.f32 %v9982_v60, %v9600_v26  ;;  %v10021_v20 = vmul.f32 %v9982_v60, %v9605_v28  ;;  %v13996_v45 = vld [vmem:[#allocation11_spill] sm:$0xff] }
 0x237   :  { %v10025_v22 = vmul.f32 %v9982_v60, %v9608_v29  ;;  %v730_v23 = vmul.f32 %v9982_v60, %v9613_v31  ;;  %v731_v3 = vmul.f32 %v9982_v60, %v9616_v32  ;;  %v732_v26 = vmul.f32 %v9982_v60, %v9621_v34 }
 0x238   :  { %v10032_v25 = vadd.f32 %v9985_v57, %v768_v48  ;;  %v733_v28 = vmul.f32 %v9982_v60, %v9624_v35  ;;  %v734_v63 = vmul.f32 %v9982_v60, %v9629_v37  ;;  %v735_v29 = vmul.f32 %v9982_v60, %v9632_v38 }
 0x239   :  { %v10044_v31 = vmul.f32 %v9982_v60, %v9637_v40  ;;  %v10048_v32 = vmul.f32 %v9982_v60, %v9640_v41  ;;  %v10052_v34 = vmul.f32 %v9982_v60, %v9645_v43  ;;  %v10056_v35 = vmul.f32 %v9982_v60, %v9648_v44 }
 0x23a   :  { %v10060_v37 = vmul.f32 %v9982_v60, %v9653_v46  ;;  %v10064_v38 = vmul.f32 %v9982_v60, %v9656_v47  ;;  %v10068_v40 = vmul.f32 %v9982_v60, %v9661_v49  ;;  %v10072_v41 = vmul.f32 %v9982_v60, %v9664_v50 }
 0x23b   :  { %v744_v43 = vmul.f32 %v9982_v60, %v9669_v52  ;;  %v745_v44 = vmul.f32 %v9982_v60, %v9672_v53  ;;  %v746_v46 = vmul.f32 %v9982_v60, %v9677_v55  ;;  %v750_v47 = vmul.f32 %v9982_v60, %v9693_v61 }
 0x23c   :  { %v751_v49 = vmul.f32 %v9982_v60, %v9696_v62  ;;  %v786_v14 = vadd.f32 %v9985_v57, %v734_v63  ;;  %v787_v50 = vadd.f32 %v9985_v57, %v735_v29  ;;  %v747_v13 = vmul.f32 %v9982_v60, %v9680_v56 }
 0x23d   :  { %v748_v52 = vmul.f32 %v9982_v60, %v9685_v58  ;;  %v749_v53 = vmul.f32 %v9982_v60, %v9688_v59  ;;  %v10094_v55 = vmul.f32 %v9982_v60, %v9701_v2  ;;  %v766_v61 = vmul.f32 %v9982_v60, %v9936_v21 }
 0x23e   :  { %v767_v62 = vmul.f32 %v9982_v60, %v9958_v30  ;;  %v802_v10 = vadd.f32 %v9985_v57, %v750_v47  ;;  %v803_v56 = vadd.f32 %v9985_v57, %v751_v49  ;;  %v10104_v58 = vmul.f32 %v9982_v60, %v9706_v4 }
 0x23f   :  { %v10108_v59 = vmul.f32 %v9982_v60, %v9712_v7  ;;  %v10112_v2 = vmul.f32 %v9982_v60, %v9760_v33  ;;  %v760_v21 = vmul.f32 %v9982_v60, %v9804_v12  ;;  %v818_v30 = vadd.f32 %v9985_v57, %v766_v61 }
 0x240   :  { %v819_v18 = vadd.f32 %v9985_v57, %v767_v62  ;;  %v835_v1 = vmax.f32 %v786_v14, 0.0  ;;  %v836_v9 = vmax.f32 %v787_v50, 0.0  ;;  %v764_v4 = vmul.f32 %v9982_v60, %v13993_v24 }
 0x241   :  { %v765_v7 = vmul.f32 %v9982_v60, %v13994_v27  ;;  %v784_v36 = vadd.f32 %v9985_v57, %v732_v26  ;;  %v785_v33 = vadd.f32 %v9985_v57, %v733_v28  ;;  %v800_v6 = vadd.f32 %v9985_v57, %v748_v52 }
 0x242   :  { %v801_v12 = vadd.f32 %v9985_v57, %v749_v53  ;;  %v851_v11 = vmax.f32 %v802_v10, 0.0  ;;  %v852_v42 = vmax.f32 %v803_v56, 0.0  ;;  %v762_v8 = vmul.f32 %v9982_v60, %v13995_v39 }
 0x243   :  { %v763_v48 = vmul.f32 %v9982_v60, %v13996_v45  ;;  %v782_v63 = vadd.f32 %v9985_v57, %v730_v23  ;;  %v816_v29 = vadd.f32 %v9985_v57, %v764_v4  ;;  %v817_v26 = vadd.f32 %v9985_v57, %v765_v7  ;;  %v13997_v23 = vld [vmem:[#allocation9_spill] sm:$0xff] }
 0x244   :  { %v867_v47 = vmax.f32 %v818_v30, 0.0  ;;  %v868_v28 = vmax.f32 %v819_v18, 0.0  ;;  %v10133_v49 = vpack.c.bf16 %v836_v9, %v835_v1  ;;  %v783_v14 = vadd.f32 %v9985_v57, %v731_v3 }
 0x245   :  { %v798_v50 = vadd.f32 %v9985_v57, %v746_v46  ;;  %v833_v52 = vmax.f32 %v784_v36, 0.0  ;;  %v834_v53 = vmax.f32 %v785_v33, 0.0  ;;  %v799_v61 = vadd.f32 %v9985_v57, %v747_v13 }
 0x246   :  { %v849_v62 = vmax.f32 %v800_v6, 0.0  ;;  %v850_v10 = vmax.f32 %v801_v12, 0.0  ;;  %v10138_v56 = vpack.c.bf16 %v852_v42, %v851_v11  ;;  %1073 = vmatpush.bf16.msra.mxu1 %v10133_v49  ;;  %v761_v30 = vmul.f32 %v9982_v60, %v13997_v23  ;;  %v13998_v12 = vld [vmem:[#allocation8_spill] sm:$0xff] }
 0x247   :  { %v780_v18 = vadd.f32 %v9985_v57, %v10021_v20  ;;  %v781_v3 = vadd.f32 %v9985_v57, %v10025_v22  ;;  %v814_v46 = vadd.f32 %v9985_v57, %v762_v8  ;;  %v815_v1 = vadd.f32 %v9985_v57, %v763_v48 }
 0x248   :  { %v865_v13 = vmax.f32 %v816_v29, 0.0  ;;  %v866_v9 = vmax.f32 %v817_v26, 0.0  ;;  %v10149_v24 = vpack.c.bf16 %v868_v28, %v867_v47  ;;  %1116 = vmatpush.bf16.msra.mxu2 %v10138_v56  ;;  %v796_v4 = vadd.f32 %v9985_v57, %v744_v43 }
 0x249   :  { %v831_v27 = vmax.f32 %v782_v63, 0.0  ;;  %v832_v7 = vmax.f32 %v783_v14, 0.0  ;;  %v10153_v36 = vpack.c.bf16 %v834_v53, %v833_v52  ;;  %v797_v20 = vadd.f32 %v9985_v57, %v745_v44  ;;  %v14001_v14 = vld [vmem:[#allocation7_spill] sm:$0xff] }
 0x24a   :  { %v847_v33 = vmax.f32 %v798_v50, 0.0  ;;  %v848_v22 = vmax.f32 %v799_v61, 0.0  ;;  %v10156_v6 = vpack.c.bf16 %v850_v10, %v849_v62  ;;  %1159 = vmatpush.bf16.msra.mxu3 %v10149_v24  ;;  %2005 = vmatpush.bf16.msrb.mxu0 %v10149_v24  ;;  %v759_v11 = vmul.f32 %v9982_v60, %v13998_v12 }
 0x24b   :  { %v778_v43 = vadd.f32 %v9985_v57, %v10013_v17  ;;  %v779_v42 = vadd.f32 %v9985_v57, %v10017_v19  ;;  %v812_v39 = vadd.f32 %v9985_v57, %v760_v21  ;;  %1074 = vmatpush.bf16.msra.mxu1 %v10153_v36  ;;  %v813_v44 = vadd.f32 %v9985_v57, %v761_v30 }
 0x24c   :  { %v863_v8 = vmax.f32 %v814_v46, 0.0  ;;  %v864_v45 = vmax.f32 %v815_v1, 0.0  ;;  %v10169_v48 = vpack.c.bf16 %v866_v9, %v865_v13  ;;  %1117 = vmatpush.bf16.msra.mxu2 %v10156_v6  ;;  %v794_v63 = vadd.f32 %v9985_v57, %v10068_v40  ;;  %v14004_v1 = vld [vmem:[#allocation6_spill] sm:$0xff] }
 0x24d   :  { %v829_v29 = vmax.f32 %v780_v18, 0.0  ;;  %v830_v17 = vmax.f32 %v781_v3, 0.0  ;;  %v10174_v26 = vpack.c.bf16 %v832_v7, %v831_v27  ;;  %v795_v19 = vadd.f32 %v9985_v57, %v10072_v41 }
 0x24e   :  { %13999 = vst [vmem:[#allocation12_spill] sm:$0xff] %v10169_v48  ;;  %v845_v21 = vmax.f32 %v796_v4, 0.0  ;;  %v846_v47 = vmax.f32 %v797_v20, 0.0  ;;  %v10178_v28 = vpack.c.bf16 %v848_v22, %v847_v33  ;;  %1160 = vmatpush.bf16.msra.mxu3 %v10169_v48  ;;  %2006 = vmatpush.bf16.msrb.mxu0 %v10169_v48  ;;  %v757_v50 = vmul.f32 %v9982_v60, %v14001_v14 }
 0x24f   :  { %14000 = vst [vmem:[#allocation13_spill] sm:$0xff] %v10174_v26  ;;  %v776_v40 = vadd.f32 %v9985_v57, %v10005_v15  ;;  %v777_v52 = vadd.f32 %v9985_v57, %v10009_v16  ;;  %v810_v41 = vadd.f32 %v9985_v57, %v10112_v2  ;;  %1075 = vmatpush.bf16.msra.mxu1 %v10174_v26  ;;  %v861_v61 = vmax.f32 %v812_v39, 0.0 }
 0x250   :  { %v811_v53 = vadd.f32 %v9985_v57, %v759_v11  ;;  %v862_v62 = vmax.f32 %v813_v44, 0.0  ;;  %v10192_v10 = vpack.c.bf16 %v864_v45, %v863_v8  ;;  %1118 = vmatpush.bf16.msra.mxu2 %v10178_v28  ;;  %v792_v23 = vadd.f32 %v9985_v57, %v10060_v37 }
 0x251   :  { %v827_v15 = vmax.f32 %v778_v43, 0.0  ;;  %v828_v30 = vmax.f32 %v779_v42, 0.0  ;;  %v10197_v18 = vpack.c.bf16 %v830_v17, %v829_v29  ;;  %v793_v16 = vadd.f32 %v9985_v57, %v10064_v38  ;;  %v14006_v42 = vld [vmem:[#allocation5_spill] sm:$0xff] }
 0x252   :  { %14002 = vst [vmem:[#allocation10_spill] sm:$0xff] %v10192_v10  ;;  %v843_v2 = vmax.f32 %v794_v63, 0.0  ;;  %v844_v3 = vmax.f32 %v795_v19, 0.0  ;;  %v10201_v46 = vpack.c.bf16 %v846_v47, %v845_v21  ;;  %1161 = vmatpush.bf16.msra.mxu3 %v10192_v10  ;;  %2007 = vmatpush.bf16.msrb.mxu0 %v10192_v10  ;;  %v755_v13 = vmul.f32 %v9982_v60, %v14004_v1  ;;  %v9203_v1 = vld [vmem:[%s13936_s4 + $0x4] sm:$0xf] }
 0x253   :  { %14003 = vst [vmem:[#allocation11_spill] sm:$0xff] %v10197_v18  ;;  %v774_v37 = vadd.f32 %v9985_v57, %v9997_v0  ;;  %v775_v9 = vadd.f32 %v9985_v57, %v10001_v5  ;;  %v808_v38 = vadd.f32 %v9985_v57, %v10108_v59  ;;  %1076 = vmatpush.bf16.msra.mxu1 %v10197_v18  ;;  %v859_v27 = vmax.f32 %v810_v41, 0.0 }
 0x254   :  { %v809_v4 = vadd.f32 %v9985_v57, %v757_v50  ;;  %v860_v7 = vmax.f32 %v811_v53, 0.0  ;;  %v10215_v20 = vpack.c.bf16 %v862_v62, %v861_v61  ;;  %1119 = vmatpush.bf16.msra.mxu2 %v10201_v46  ;;  %v790_v33 = vadd.f32 %v9985_v57, %v10052_v34 }
 0x255   :  { %v825_v0 = vmax.f32 %v776_v40, 0.0  ;;  %v826_v22 = vmax.f32 %v777_v52, 0.0  ;;  %v10220_v12 = vpack.c.bf16 %v828_v30, %v827_v15  ;;  %v791_v5 = vadd.f32 %v9985_v57, %v10056_v35 }
 0x256   :  { %v841_v59 = vmax.f32 %v792_v23, 0.0  ;;  %v842_v11 = vmax.f32 %v793_v16, 0.0  ;;  %v10224_v43 = vpack.c.bf16 %v844_v3, %v843_v2  ;;  %1162 = vmatpush.bf16.msra.mxu3 %v10215_v20  ;;  %2008 = vmatpush.bf16.msrb.mxu0 %v10215_v20  ;;  %v753_v39 = vmul.f32 %v9982_v60, %v14006_v42  ;;  %v7682_v16 = vld [vmem:[%s13936_s4] sm:$0xf]  ;;  %v9205_v2 = vld [vmem:[%s13936_s4 + $0xc] sm:$0xf0] }
 0x257   :  { %14005 = vst [vmem:[#allocation9_spill] sm:$0xff] %v10220_v12  ;;  %v772_v34 = vadd.f32 %v9985_v57, %v9989_v54  ;;  %v773_v44 = vadd.f32 %v9985_v57, %v9993_v51  ;;  %v806_v35 = vadd.f32 %v9985_v57, %v10104_v58  ;;  %1077 = vmatpush.bf16.msra.mxu1 %v10220_v12  ;;  %v857_v45 = vmax.f32 %v808_v38, 0.0  ;;  %v9206_v38 = vld [vmem:[%s13936_s4 + $0x14] sm:$0xf0]  ;;  %v9209_v42 = vld [vmem:[%s13936_s4 + $0x2c] sm:$0xf0] }
 0x258   :  { %v807_v8 = vadd.f32 %v9985_v57, %v755_v13  ;;  %v858_v63 = vmax.f32 %v809_v4, 0.0  ;;  %v10238_v29 = vpack.c.bf16 %v860_v7, %v859_v27  ;;  %1120 = vmatpush.bf16.msra.mxu2 %v10224_v43  ;;  %v788_v60 = vadd.f32 %v9985_v57, %v10044_v31  ;;  %v7684_v13 = vld [vmem:[%s13936_s4 + $0x10] sm:$0xf0]  ;;  %v7963_v4 = vld [vmem:[%s13936_s4 + $0x1a8] sm:$0xf] }
 0x259   :  { %v823_v54 = vmax.f32 %v774_v37, 0.0  ;;  %v824_v17 = vmax.f32 %v775_v9, 0.0  ;;  %v10243_v19 = vpack.c.bf16 %v826_v22, %v825_v0  ;;  %v789_v51 = vadd.f32 %v9985_v57, %v10048_v32  ;;  %v7690_v37 = vld [vmem:[%s13936_s4 + $0x8] sm:$0xf]  ;;  %v9254_v27 = vld [vmem:[%s13936_s4 + $0x1b4] sm:$0xf0] }
 0x25a   :  { %14007 = vst [vmem:[#allocation8_spill] sm:$0xff] %v10238_v29  ;;  %v839_v58 = vmax.f32 %v790_v33, 0.0  ;;  %v840_v21 = vmax.f32 %v791_v5, 0.0  ;;  %v10247_v47 = vpack.c.bf16 %v842_v11, %v841_v59  ;;  %1163 = vmatpush.bf16.msra.mxu3 %v10238_v29  ;;  %2009 = vmatpush.bf16.msrb.mxu0 %v10238_v29  ;;  %v869_v14 = vmax.f32 %v10032_v25, 0.0  ;;  %v7698_v11 = vld [vmem:[%s13936_s4 + $0x20] sm:$0xf] }
 0x25b   :  { %14008 = vst [vmem:[#allocation7_spill] sm:$0xff] %v10243_v19  ;;  %v804_v31 = vadd.f32 %v9985_v57, %v10094_v55  ;;  %1078 = vmatpush.bf16.msra.mxu1 %v10243_v19  ;;  %v805_v50 = vadd.f32 %v9985_v57, %v753_v39  ;;  %v855_v40 = vmax.f32 %v806_v35, 0.0  ;;  %v856_v52 = vmax.f32 %v807_v8, 0.0  ;;  %v9207_v39 = vld [vmem:[%s13936_s4 + $0x24] sm:$0xf] }
 0x25c   :  { %v10256_v32 = vpack.c.bf16 %v858_v63, %v857_v45  ;;  %1121 = vmatpush.bf16.msra.mxu2 %v10247_v47  ;;  %v821_v41 = vmax.f32 %v772_v34, 0.0  ;;  %v822_v53 = vmax.f32 %v773_v44, 0.0  ;;  %v10259_v61 = vpack.c.bf16 %v824_v17, %v823_v54  ;;  %v7700_v34 = vld [vmem:[%s13936_s4 + $0x30] sm:$0xf0]  ;;  %v7706_v44 = vld [vmem:[%s13936_s4 + $0x28] sm:$0xf] }
 0x25d   :  { %v837_v62 = vmax.f32 %v788_v60, 0.0  ;;  %v838_v23 = vmax.f32 %v789_v51, 0.0  ;;  %v10261_v25 = vpack.c.bf16 %v840_v21, %v839_v58  ;;  %v894_v55 = vpack.c.bf16 %v869_v14, %v869_v14  ;;  %v9210_v35 = vld [vmem:[%s13936_s4 + $0x34] sm:$0xf0]  ;;  %v7979_v8 = vld [vmem:[%s13936_s4 + $0x1c8] sm:$0xf] }
 0x25e   :  { %14009 = vst [vmem:[#allocation6_spill] sm:$0xff] %v10256_v32  ;;  %1164 = vmatpush.bf16.msra.mxu3 %v10256_v32  ;;  %2010 = vmatpush.bf16.msrb.mxu0 %v10256_v32  ;;  %v853_v57 = vmax.f32 %v804_v31, 0.0  ;;  %v854_v15 = vmax.f32 %v805_v50, 0.0  ;;  %v10266_v30 = vpack.c.bf16 %v856_v52, %v855_v40  ;;  %v10275_v3 = vpack.c.bf16 %v822_v53, %v821_v41  ;;  %v9258_v45 = vld [vmem:[%s13936_s4 + $0x1d4] sm:$0xf0] }
 0x25f   :  { %14010 = vst [vmem:[#allocation5_spill] sm:$0xff] %v10259_v61  ;;  %1079 = vmatpush.bf16.msra.mxu1 %v10259_v61  ;;  %v10286_v9 = vpack.c.bf16 %v838_v23, %v837_v62  ;;  %v10300_v7 = vsel %vm301_vm0, %v894_v55, 0  ;;  %v7683_v0 = vor.u32 %v9205_v2, %v7682_v16  ;;  %v7687_v22 = vor.u32 %v9203_v1, %v7684_v13  ;;  %v7714_v51 = vld [vmem:[%s13936_s4 + $0x40] sm:$0xf]  ;;  %v9213_v58 = vld [vmem:[%s13936_s4 + $0x4c] sm:$0xf0] }
 0x260   :  { %14011 = vst [vmem:[#allocation14_spill] sm:$0xff] %v10261_v25  ;;  %1122 = vmatpush.bf16.msra.mxu2 %v10261_v25  ;;  %v10303_v33 = vpack.c.bf16 %v854_v15, %v853_v57  ;;  %v7691_v5 = vor.u32 %v9206_v38, %v7690_v37  ;;  %v7964_v59 = vor.u32 %v9254_v27, %v7963_v4  ;;  %v9211_v21 = vld [vmem:[%s13936_s4 + $0x44] sm:$0xf]  ;;  %v7716_v14 = vld [vmem:[%s13936_s4 + $0x50] sm:$0xf0]  ;;  %vm7500_vm0 = vcmask 261120  }
 0x261   :  { %14012 = vst [vmem:[#allocation15_spill] sm:$0xff] %v10266_v30  ;;  %v7699_v63 = vor.u32 %v9209_v42, %v7698_v11  ;;  %v7703_v60 = vor.u32 %v9207_v39, %v7700_v34  ;;  %v7707_v54 = vor.u32 %v9210_v35, %v7706_v44  ;;  %v7980_v17 = vor.u32 %v9258_v45, %v7979_v8  ;;  %v7722_v31 = vld [vmem:[%s13936_s4 + $0x48] sm:$0xf]  ;;  %v9214_v50 = vld [vmem:[%s13936_s4 + $0x54] sm:$0xf0] }
 0x262   :  { %14013 = vst [vmem:[#allocation16_spill] sm:$0xff] %v10275_v3  ;;  %1165 = vmatpush.bf16.msra.mxu3 %v10266_v30  ;;  %2011 = vmatpush.bf16.msrb.mxu0 %v10266_v30  ;;  %v7995_v40 = vld [vmem:[%s13936_s4 + $0x1e8] sm:$0xf]  ;;  %v9262_v52 = vld [vmem:[%s13936_s4 + $0x1f4] sm:$0xf0]  ;;  %v7715_v41 = vor.u32 %v9213_v58, %v7714_v51  ;;  %v7719_v53 = vor.u32 %v9211_v21, %v7716_v14 }
 0x263   :  { %14014 = vst [vmem:[#allocation17_spill] sm:$0xff] %v10286_v9  ;;  %1080 = vmatpush.bf16.msra.mxu1 %v10275_v3  ;;  %v7723_v62 = vor.u32 %v9214_v50, %v7722_v31  ;;  %v7996_v23 = vor.u32 %v9262_v52, %v7995_v40  ;;  %v7730_v55 = vld [vmem:[%s13936_s4 + $0x60] sm:$0xf]  ;;  %v9217_v57 = vld [vmem:[%s13936_s4 + $0x6c] sm:$0xf0] }
 0x264   :  { %14015 = vst [vmem:[#allocation18_spill] sm:$0xff] %v10303_v33  ;;  %1123 = vmatpush.bf16.msra.mxu2 %v10286_v9  ;;  %v9215_v15 = vld [vmem:[%s13936_s4 + $0x64] sm:$0xf]  ;;  %v7732_v16 = vld [vmem:[%s13936_s4 + $0x70] sm:$0xf0]  ;;  %v7731_v38 = vor.u32 %v9217_v57, %v7730_v55 }
 0x265   :  { %v7738_v2 = vld [vmem:[%s13936_s4 + $0x68] sm:$0xf]  ;;  %v9218_v1 = vld [vmem:[%s13936_s4 + $0x74] sm:$0xf0]  ;;  %v7735_v4 = vor.u32 %v9215_v15, %v7732_v16  ;;  %v7748_v11 = vld [vmem:[%s13936_s4 + $0x90] sm:$0xf0] }
 0x266   :  { %1166 = vmatpush.bf16.msra.mxu3 %v10303_v33  ;;  %2012 = vmatpush.bf16.msrb.mxu0 %v10303_v33  ;;  %v8011_v13 = vld [vmem:[%s13936_s4 + $0x208] sm:$0xf]  ;;  %v9266_v37 = vld [vmem:[%s13936_s4 + $0x214] sm:$0xf0]  ;;  %v7739_v27 = vor.u32 %v9218_v1, %v7738_v2  ;;  %v9225_v51 = vld [vmem:[%s13936_s4 + $0xac] sm:$0xf0] }
 0x267   :  { %1209 = vmatpush.bf16.msrb.mxu1 %v10300_v7  ;;  %1124 = vmatmul.bf16.vlgmr.msra.gmra.mxu2 %v7687_v22  ;;  %v7746_v22 = vld [vmem:[%s13936_s4 + $0x80] sm:$0xf]  ;;  %v7754_v42 = vld [vmem:[%s13936_s4 + $0x88] sm:$0xf]  ;;  %v9222_v39 = vld [vmem:[%s13936_s4 + $0x94] sm:$0xf0] }
 0x268   :  { %1428 = vmatpush.bf16.msrb.mxu2 %v10133_v49  ;;  %1081 = vmatmul.bf16.vlgmr.msra.gmra.mxu1 %v7683_v0  ;;  %v8012_v0 = vor.u32 %v9266_v37, %v8011_v13  ;;  %v8027_v34 = vld [vmem:[%s13936_s4 + $0x228] sm:$0xf]  ;;  %v9270_v44 = vld [vmem:[%s13936_s4 + $0x234] sm:$0xf0]  ;;  %v7755_v45 = vor.u32 %v9222_v39, %v7754_v42  ;;  %v9223_v58 = vld [vmem:[%s13936_s4 + $0xa4] sm:$0xf] }
 0x269   :  { %1167 = vmatmul.bf16.vlgmr.msra.gmra.mxu3 %v7691_v5  ;;  %2013 = vmatmul.bf16.vlgmr.msrb.gmra.mxu0 %v7964_v59  ;;  %v9221_v5 = vld [vmem:[%s13936_s4 + $0x8c] sm:$0xf0]  ;;  %v9219_v59 = vld [vmem:[%s13936_s4 + $0x84] sm:$0xf]  ;;  %v7764_v21 = vld [vmem:[%s13936_s4 + $0xb0] sm:$0xf0] }
 0x26a   :  { %1471 = vmatpush.bf16.msrb.mxu3 %v10138_v56  ;;  %2398 = vmatpush.bf16.msra.mxu0 %v10138_v56  ;;  %v7747_v35 = vor.u32 %v9221_v5, %v7746_v22  ;;  %v7751_v8 = vor.u32 %v9219_v59, %v7748_v11  ;;  %v7770_v14 = vld [vmem:[%s13936_s4 + $0xa8] sm:$0xf]  ;;  %v9226_v31 = vld [vmem:[%s13936_s4 + $0xb4] sm:$0xf0]  ;;  %v7811_v22 = vld [vmem:[%s13936_s4 + $0xd0] sm:$0xf] }
 0x26b   :  { %1514 = vmatpush.bf16.msra.mxu1 %v10149_v24  ;;  %v8043_v50 = vld [vmem:[%s13936_s4 + $0x248] sm:$0xf]  ;;  %v9274_v40 = vld [vmem:[%s13936_s4 + $0x254] sm:$0xf0]  ;;  %v9229_v5 = vld [vmem:[%s13936_s4 + $0xdc] sm:$0xf0] }
 0x26c   :  { %1429 = vmatpush.bf16.msrb.mxu2 %v10153_v36  ;;  %v10480_v55 = vld [vmem:[%s13936_s4 + $0xc8] sm:$0x11]  ;;  %v9227_v59 = vld [vmem:[%s13936_s4 + $0xd4] sm:$0xf]  ;;  %v7813_v11 = vld [vmem:[%s13936_s4 + $0xe0] sm:$0xf0] }
 0x26d   :  { %v7952_v57 = vld [vmem:[%s13936_s4 + $0x268] sm:$0x11]  ;;  %v997_v2 = vunpack.c.l.b16 %v10480_v55  ;;  %v9275_v39 = vld [vmem:[%s13936_s4 + $0x274] sm:$0xf] }
 0x26e   :  { %1472 = vmatpush.bf16.msrb.mxu3 %v10156_v6  ;;  %2399 = vmatpush.bf16.msra.mxu0 %v10156_v6  ;;  %v1847_v1 = vunpack.c.l.b16 %v7952_v57 }
 0x26f   :  { %1515 = vmatpush.bf16.msra.mxu1 %v10169_v48 }
 0x270   :  { %1430 = vmatpush.bf16.msrb.mxu2 %v10174_v26 }
 0x272   :  { %1473 = vmatpush.bf16.msrb.mxu3 %v10178_v28  ;;  %2400 = vmatpush.bf16.msra.mxu0 %v10178_v28 }
 0x273   :  { %1516 = vmatpush.bf16.msra.mxu1 %v10192_v10 }
 0x274   :  { %1431 = vmatpush.bf16.msrb.mxu2 %v10197_v18 }
 0x276   :  { %1474 = vmatpush.bf16.msrb.mxu3 %v10201_v46  ;;  %2401 = vmatpush.bf16.msra.mxu0 %v10201_v46 }
 0x277   :  { %1517 = vmatpush.bf16.msra.mxu1 %v10215_v20  ;;  %1129 = vmatmul.bf16.gmra.mxu2 %v7703_v60  ;;  %v7912_v60 = vld [vmem:[%s13937_s5 + $0x4] sm:$0x7] }
 0x278   :  { %1432 = vmatpush.bf16.msrb.mxu2 %v10220_v12  ;;  %1086 = vmatmul.bf16.gmra.mxu1 %v7699_v63  ;;  %v8028_v63 = vor.u32 %v9270_v44, %v8027_v34  ;;  %v8094_v34 = vld [vmem:[%s13936_s4 + $0x280] sm:$0xf0]  ;;  %v7812_v44 = vor.u32 %v9229_v5, %v7811_v22  ;;  %v9283_v22 = vld [vmem:[%s13936_s4 + $0x2b4] sm:$0xf] }
 0x279   :  { %1172 = vmatmul.bf16.gmra.mxu3 %v7707_v54  ;;  %2018 = vmatmul.bf16.gmra.mxu0 %v7980_v17  ;;  %v1632_v54 = vsel %vm1630_vm7, %v7912_v60, 0  ;;  %v7762_v17 = vld [vmem:[%s13936_s4 + $0xa0] sm:$0xf]  ;;  %v7827_v60 = vld [vmem:[%s13936_s4 + $0xf0] sm:$0xf] }
 0x27a   :  { %1475 = vmatpush.bf16.msrb.mxu3 %v10224_v43  ;;  %2402 = vmatpush.bf16.msra.mxu0 %v10224_v43  ;;  %v7763_v52 = vor.u32 %v9225_v51, %v7762_v17  ;;  %v9231_v17 = vld [vmem:[%s13936_s4 + $0xf4] sm:$0xf]  ;;  %v7829_v51 = vld [vmem:[%s13936_s4 + $0x100] sm:$0xf0] }
 0x27b   :  { %1518 = vmatpush.bf16.msra.mxu1 %v10238_v29  ;;  %v8126_v5 = vld [vmem:[%s13936_s4 + $0x2c0] sm:$0xf0] }
 0x27c   :  { %1433 = vmatpush.bf16.msrb.mxu2 %v10243_v19 }
 0x27e   :  { %1476 = vmatpush.bf16.msrb.mxu3 %v10247_v47  ;;  %2403 = vmatpush.bf16.msra.mxu0 %v10247_v47 }
 0x27f   :  { %1519 = vmatpush.bf16.msra.mxu1 %v10256_v32 }
 0x280   :  { %1434 = vmatpush.bf16.msrb.mxu2 %v10259_v61 }
 0x282   :  { %1477 = vmatpush.bf16.msrb.mxu3 %v10261_v25  ;;  %2404 = vmatpush.bf16.msra.mxu0 %v10261_v25 }
 0x283   :  { %1520 = vmatpush.bf16.msra.mxu1 %v10266_v30 }
 0x284   :  { %1435 = vmatpush.bf16.msrb.mxu2 %v10275_v3 }
 0x286   :  { %1478 = vmatpush.bf16.msrb.mxu3 %v10286_v9  ;;  %2405 = vmatpush.bf16.msra.mxu0 %v10286_v9 }
 0x287   :  { %1521 = vmatpush.bf16.msra.mxu1 %v10303_v33  ;;  %1134 = vmatmul.bf16.gmra.mxu2 %v7719_v53  ;;  %v7771_v53 = vor.u32 %v9226_v31, %v7770_v14  ;;  %v8110_v14 = vld [vmem:[%s13936_s4 + $0x2a0] sm:$0xf0] }
 0x288   :  { %1564 = vmatpush.bf16.msra.mxu2 %v10300_v7  ;;  %1091 = vmatmul.bf16.gmra.mxu1 %v7715_v41  ;;  %v7767_v41 = vor.u32 %v9223_v58, %v7764_v21  ;;  %v9279_v21 = vld [vmem:[%s13936_s4 + $0x294] sm:$0xf] }
 0x289   :  { %1177 = vmatmul.bf16.gmra.mxu3 %v7723_v62  ;;  %2023 = vmatmul.bf16.gmra.mxu0 %v7996_v23  ;;  %v8044_v62 = vor.u32 %v9274_v40, %v8043_v50  ;;  %v919_v23 = vld [vmem:[%s13936_s4 + $0xc0] sm:$0x11]  ;;  %v7832_v40 = vor.u32 %v9231_v17, %v7829_v51  ;;  %v7859_v17 = vld [vmem:[%s13936_s4 + $0x130] sm:$0xf] }
 0x28a   :  { %2791 = vmatpush.bf16.msrb.mxu0 %v10133_v49  ;;  %1641 = vmatpush.bf16.msra.mxu3 %v1632_v54  ;;  %v995_v15 = vunpack.c.l.b16 %v919_v23  ;;  %v996_v16 = vunpack.c.h.b16 %v919_v23  ;;  %v9233_v54 = vld [vmem:[%s13936_s4 + $0xfc] sm:$0xf0] }
 0x28b   :  { %v7828_v50 = vor.u32 %v9233_v54, %v7827_v60  ;;  %v9216_v60 = vld [vmem:[%s13936_s4 + $0x6c] sm:$0xf]  ;;  %v7740_v54 = vld [vmem:[%s13936_s4 + $0x78] sm:$0xf0]  ;;  %v9241_v51 = vld [vmem:[%s13936_s4 + $0x13c] sm:$0xf0] }
 0x28c   :  { %v1023_v13 = vpack.c.b16 %v995_v15, %v995_v15  ;;  %v1024_v37 = vpack.c.b16 %v996_v16, %v996_v16  ;;  %v9212_v15 = vld [vmem:[%s13936_s4 + $0x4c] sm:$0xf]  ;;  %v7724_v16 = vld [vmem:[%s13936_s4 + $0x58] sm:$0xf0] }
 0x28e   :  { %2792 = vmatpush.bf16.msrb.mxu0 %v10153_v36 }
 0x292   :  { %2793 = vmatpush.bf16.msrb.mxu0 %v10174_v26 }
 0x296   :  { %2794 = vmatpush.bf16.msrb.mxu0 %v10197_v18 }
 0x297   :  { %1139 = vmatmul.bf16.gmra.mxu2 %v7735_v4  ;;  %v1875_v4 = vpack.c.b16 %v1847_v1, %v1847_v1  ;;  %v9237_v1 = vld [vmem:[%s13936_s4 + $0x11c] sm:$0xf0] }
 0x298   :  { %1096 = vmatmul.bf16.gmra.mxu1 %v7731_v38  ;;  %v1025_v38 = vpack.c.b16 %v997_v2, %v997_v2  ;;  %v7843_v2 = vld [vmem:[%s13936_s4 + $0x110] sm:$0xf] }
 0x299   :  { %1182 = vmatmul.bf16.gmra.mxu3 %v7739_v27  ;;  %2028 = vmatmul.bf16.gmra.mxu0 %v8012_v0  ;;  %v9204_v27 = vld [vmem:[%s13936_s4 + $0xc] sm:$0xf]  ;;  %v7692_v0 = vld [vmem:[%s13936_s4 + $0x18] sm:$0xf0] }
 0x29a   :  { %2795 = vmatpush.bf16.msrb.mxu0 %v10220_v12  ;;  %v7695_v42 = vor.u32 %v9204_v27, %v7692_v0  ;;  %v7727_v0 = vor.u32 %v9212_v15, %v7724_v16 }
 0x29e   :  { %2796 = vmatpush.bf16.msrb.mxu0 %v10243_v19 }
 0x2a2   :  { %2797 = vmatpush.bf16.msrb.mxu0 %v10259_v61 }
 0x2a6   :  { %2798 = vmatpush.bf16.msrb.mxu0 %v10275_v3 }
 0x2a7   :  { %1144 = vmatmul.bf16.gmra.mxu2 %v7751_v8  ;;  %v8097_v8 = vor.u32 %v9275_v39, %v8094_v34  ;;  %v8129_v34 = vor.u32 %v9283_v22, %v8126_v5  ;;  %v9245_v22 = vld [vmem:[%s13936_s4 + $0x15c] sm:$0xf0]  ;;  %v9243_v5 = vld [vmem:[%s13936_s4 + $0x154] sm:$0xf] }
 0x2a8   :  { %1101 = vmatmul.bf16.gmra.mxu1 %v7747_v35  ;;  %v7816_v35 = vor.u32 %v9227_v59, %v7813_v11  ;;  %v7844_v11 = vor.u32 %v9237_v1, %v7843_v2 }
 0x2a9   :  { %1187 = vmatmul.bf16.gmra.mxu3 %v7755_v45  ;;  %2033 = vmatmul.bf16.gmra.mxu0 %v8028_v63  ;;  %v9208_v45 = vld [vmem:[%s13936_s4 + $0x2c] sm:$0xf]  ;;  %v7708_v63 = vld [vmem:[%s13936_s4 + $0x38] sm:$0xf0] }
 0x2aa   :  { %v7711_v58 = vor.u32 %v9208_v45, %v7708_v63 }
 0x2b7   :  { %1149 = vmatmul.bf16.gmra.mxu2 %v7767_v41 }
 0x2b8   :  { %1106 = vmatmul.bf16.gmra.mxu1 %v7763_v52  ;;  %v8113_v52 = vor.u32 %v9279_v21, %v8110_v14  ;;  %v7861_v21 = vld [vmem:[%s13936_s4 + $0x140] sm:$0xf0] }
 0x2b9   :  { %1192 = vmatmul.bf16.gmra.mxu3 %v7771_v53  ;;  %2038 = vmatmul.bf16.gmra.mxu0 %v8044_v62 }
 0x2c7   :  { %1154 = vmatmul.bf16.gmra.mxu2 %v1024_v37  ;;  %v7845_v37 = vld [vmem:[%s13936_s4 + $0x120] sm:$0xf0] }
 0x2c8   :  { %1111 = vmatmul.bf16.gmra.mxu1 %v1023_v13  ;;  %v9235_v13 = vld [vmem:[%s13936_s4 + $0x114] sm:$0xf] }
 0x2c9   :  { %1197 = vmatmul.bf16.gmra.mxu3 %v1025_v38  ;;  %2043 = vmatmul.bf16.gmra.mxu0 %v1875_v4 }
 0x2d7   :  { %1436 = vmatmul.bf16.vlgmr.msrb.gmra.mxu2 %v7812_v44 }
 0x2d8   :  { %7776 = vmatmul.msk.bf16.vlgmr.msrb.gmra.mxu1 %vm1048_vm8, %v7695_v42  ;;  %1919 = vmatpush.bf16.msrb.mxu2 %v10133_v49  ;;  %v7848_v42 = vor.u32 %v9235_v13, %v7845_v37 }
 0x2d9   :  { %1479 = vmatmul.bf16.vlgmr.msrb.gmra.mxu3 %v7816_v35  ;;  %2406 = vmatmul.bf16.vlgmr.msra.gmra.mxu0 %v8097_v8 }
 0x2da   :  { %1962 = vmatpush.bf16.msrb.mxu3 %v10138_v56 }
 0x2dc   :  { %1920 = vmatpush.bf16.msrb.mxu2 %v10153_v36 }
 0x2de   :  { %1963 = vmatpush.bf16.msrb.mxu3 %v10156_v6 }
 0x2e0   :  { %1921 = vmatpush.bf16.msrb.mxu2 %v10174_v26 }
 0x2e2   :  { %1964 = vmatpush.bf16.msrb.mxu3 %v10178_v28 }
 0x2e4   :  { %1922 = vmatpush.bf16.msrb.mxu2 %v10197_v18 }
 0x2e5   :  { %v1082_v31 = vpop.f32.mrf.mxu1 }
 0x2e6   :  { %1965 = vmatpush.bf16.msrb.mxu3 %v10201_v46 }
 0x2e7   :  { %1441 = vmatmul.bf16.gmra.mxu2 %v7828_v50 }
 0x2e8   :  { %7777 = vmatmul.msk.bf16.gmra.mxu1 %vm1048_vm8, %v7711_v58  ;;  %1923 = vmatpush.bf16.msrb.mxu2 %v10220_v12  ;;  %v9239_v58 = vld [vmem:[%s13936_s4 + $0x134] sm:$0xf] }
 0x2e9   :  { %1484 = vmatmul.bf16.gmra.mxu3 %v7832_v40  ;;  %2411 = vmatmul.bf16.gmra.mxu0 %v8113_v52  ;;  %v7743_v40 = vor.u32 %v9216_v60, %v7740_v54  ;;  %v9287_v52 = vld [vmem:[%s13936_s4 + $0x2d4] sm:$0xf] }
 0x2ea   :  { %1966 = vmatpush.bf16.msrb.mxu3 %v10224_v43  ;;  %v1125_v41 = vpop.f32.mrf.mxu2 }
 0x2eb   :  { %v1126_v53 = vadd.f32 %v1125_v41, %v1082_v31  ;;  %v8142_v41 = vld [vmem:[%s13936_s4 + $0x2e0] sm:$0xf0] }
 0x2ec   :  { %v1168_v62 = vpop.f32.mrf.mxu3  ;;  %1924 = vmatpush.bf16.msrb.mxu2 %v10243_v19  ;;  %v8145_v16 = vor.u32 %v9287_v52, %v8142_v41  ;;  %v7772_v52 = vld [vmem:[%s13936_s4 + $0xb8] sm:$0xf0]  ;;  %v7891_v41 = vld [vmem:[%s13936_s4 + $0x170] sm:$0xf] }
 0x2ed   :  { %v1084_v23 = vpop.f32.mrf.mxu1  ;;  %v10546_v57 = vadd.f32 %v1168_v62, %v1126_v53  ;;  %v7860_v62 = vor.u32 %v9241_v51, %v7859_v17  ;;  %v10640_v51 = vpop.f32.mrf.mxu0 }
 0x2ee   :  { %1967 = vmatpush.bf16.msrb.mxu3 %v10247_v47  ;;  %14016 = vst [vmem:[#allocation19_spill] sm:$0xff] %v10640_v51 }
 0x2f0   :  { %1925 = vmatpush.bf16.msrb.mxu2 %v10259_v61 }
 0x2f2   :  { %1968 = vmatpush.bf16.msrb.mxu3 %v10261_v25  ;;  %v1127_v38 = vpop.f32.mrf.mxu2 }
 0x2f3   :  { %v1128_v4 = vadd.f32 %v1127_v38, %v1084_v23  ;;  %v7864_v23 = vor.u32 %v9239_v58, %v7861_v21 }
 0x2f4   :  { %v1170_v27 = vpop.f32.mrf.mxu3  ;;  %1926 = vmatpush.bf16.msrb.mxu2 %v10275_v3 }
 0x2f5   :  { %v1087_v59 = vpop.f32.mrf.mxu1  ;;  %v10576_v39 = vadd.f32 %v1170_v27, %v1128_v4  ;;  %v9220_v4 = vld [vmem:[%s13936_s4 + $0x8c] sm:$0xf]  ;;  %v7756_v27 = vld [vmem:[%s13936_s4 + $0x98] sm:$0xf0] }
 0x2f6   :  { %1969 = vmatpush.bf16.msrb.mxu3 %v10286_v9 }
 0x2f7   :  { %1446 = vmatmul.bf16.gmra.mxu2 %v7844_v11 }
 0x2f8   :  { %7778 = vmatmul.msk.bf16.gmra.mxu1 %vm1048_vm8, %v7727_v0  ;;  %v7875_v0 = vld [vmem:[%s13936_s4 + $0x150] sm:$0xf] }
 0x2f9   :  { %1489 = vmatmul.bf16.gmra.mxu3 %v7848_v42  ;;  %2416 = vmatmul.bf16.gmra.mxu0 %v8129_v34  ;;  %v7759_v34 = vor.u32 %v9220_v4, %v7756_v27  ;;  %v7876_v60 = vor.u32 %v9245_v22, %v7875_v0  ;;  %v8174_v4 = vld [vmem:[%s13936_s4 + $0x320] sm:$0xf0] }
 0x2fa   :  { %v1130_v44 = vpop.f32.mrf.mxu2 }
 0x2fb   :  { %v1131_v35 = vadd.f32 %v1130_v44, %v1087_v59  ;;  %v7877_v59 = vld [vmem:[%s13936_s4 + $0x160] sm:$0xf0]  ;;  %v9291_v44 = vld [vmem:[%s13936_s4 + $0x2f4] sm:$0xf] }
 0x2fc   :  { %v1173_v8 = vpop.f32.mrf.mxu3  ;;  %v7880_v54 = vor.u32 %v9243_v5, %v7877_v59 }
 0x2fd   :  { %v1089_v45 = vpop.f32.mrf.mxu1  ;;  %v10581_v63 = vadd.f32 %v1173_v8, %v1131_v35  ;;  %v8158_v35 = vld [vmem:[%s13936_s4 + $0x300] sm:$0xf0] }
 0x2fe   :  { %v8161_v17 = vor.u32 %v9291_v44, %v8158_v35 }
 0x302   :  { %v1132_v14 = vpop.f32.mrf.mxu2 }
 0x303   :  { %v1133_v31 = vadd.f32 %v1132_v14, %v1089_v45 }
 0x304   :  { %v1175_v50 = vpop.f32.mrf.mxu3 }
 0x305   :  { %v1092_v53 = vpop.f32.mrf.mxu1  ;;  %v10607_v15 = vadd.f32 %v1175_v50, %v1133_v31 }
 0x307   :  { %1451 = vmatmul.bf16.gmra.mxu2 %v7860_v62  ;;  %v9249_v62 = vld [vmem:[%s13936_s4 + $0x17c] sm:$0xf0] }
 0x308   :  { %7779 = vmatmul.msk.bf16.gmra.mxu1 %vm1048_vm8, %v7743_v40  ;;  %v9224_v40 = vld [vmem:[%s13936_s4 + $0xac] sm:$0xf]  ;;  %v7892_v22 = vor.u32 %v9249_v62, %v7891_v41 }
 0x309   :  { %1494 = vmatmul.bf16.gmra.mxu3 %v7864_v23  ;;  %2421 = vmatmul.bf16.gmra.mxu0 %v8145_v16  ;;  %v9247_v23 = vld [vmem:[%s13936_s4 + $0x174] sm:$0xf]  ;;  %v7893_v16 = vld [vmem:[%s13936_s4 + $0x180] sm:$0xf0] }
 0x30a   :  { %v1135_v2 = vpop.f32.mrf.mxu2  ;;  %v7896_v5 = vor.u32 %v9247_v23, %v7893_v16 }
 0x30b   :  { %v1136_v13 = vadd.f32 %v1135_v2, %v1092_v53  ;;  %v10654_v53 = vpop.f32.mrf.mxu0 }
 0x30c   :  { %v1178_v1 = vpop.f32.mrf.mxu3  ;;  %14017 = vst [vmem:[#allocation20_spill] sm:$0xff] %v10654_v53 }
 0x30d   :  { %v1094_v37 = vpop.f32.mrf.mxu1  ;;  %v10610_v38 = vadd.f32 %v1178_v1, %v1136_v13  ;;  %v7775_v13 = vor.u32 %v9224_v40, %v7772_v52  ;;  %v8088_v40 = vld [vmem:[%s13936_s4 + $0x330] sm:$0x11] }
 0x30e   :  { %v2282_v62 = vunpack.c.h.b16 %v8088_v40 }
 0x312   :  { %v1137_v11 = vpop.f32.mrf.mxu2 }
 0x313   :  { %v10638_v8 = vadd.f32 %v1137_v11, %v1094_v37  ;;  %v9295_v37 = vld [vmem:[%s13936_s4 + $0x314] sm:$0xf]  ;;  %v1252_v11 = vld [vmem:[%s13937_s5] sm:$0x7] }
 0x314   :  { %v10630_v42 = vpop.f32.mrf.mxu3  ;;  %v8177_v59 = vor.u32 %v9295_v37, %v8174_v4  ;;  %v1699_v44 = vsel %vm1630_vm7, %v1252_v11, 0 }
 0x315   :  { %v1097_v45 = vpop.f32.mrf.mxu1  ;;  %1708 = vmatpush.bf16.msrb.mxu1 %v1699_v44 }
 0x317   :  { %1456 = vmatmul.bf16.gmra.mxu2 %v7876_v60 }
 0x318   :  { %7780 = vmatmul.msk.bf16.gmra.mxu1 %vm1048_vm8, %v7759_v34  ;;  %v8330_v34 = vld [vmem:[%s13937_s5 + $0x10] sm:$0x7] }
 0x319   :  { %1499 = vmatmul.bf16.gmra.mxu3 %v7880_v54  ;;  %2426 = vmatmul.bf16.gmra.mxu0 %v8161_v17  ;;  %v2994_v35 = vsel %vm1630_vm7, %v8330_v34, 0 }
 0x31a   :  { %v1140_v58 = vpop.f32.mrf.mxu2  ;;  %3003 = vmatpush.bf16.msra.mxu0 %v2994_v35 }
 0x31b   :  { %v1141_v14 = vadd.f32 %v1140_v58, %v1097_v45  ;;  %v10684_v45 = vpop.f32.mrf.mxu0 }
 0x31c   :  { %v1183_v21 = vpop.f32.mrf.mxu3  ;;  %14018 = vst [vmem:[#allocation21_spill] sm:$0xff] %v10684_v45 }
 0x31d   :  { %v1099_v31 = vpop.f32.mrf.mxu1  ;;  %v10643_v50 = vadd.f32 %v1183_v21, %v1141_v14  ;;  %v7807_v21 = vld [vmem:[%s13936_s4 + $0x190] sm:$0x11] }
 0x31e   :  { %v1354_v52 = vunpack.c.l.b16 %v7807_v21  ;;  %v1355_v41 = vunpack.c.h.b16 %v7807_v21 }
 0x320   :  { %v1382_v4 = vpack.c.b16 %v1354_v52, %v1354_v52  ;;  %v8229_v52 = vld [vmem:[%s13936_s4 + $0x340] sm:$0xf] }
 0x322   :  { %v1142_v2 = vpop.f32.mrf.mxu2 }
 0x323   :  { %v10673_v27 = vadd.f32 %v1142_v2, %v1099_v31  ;;  %v998_v31 = vunpack.c.h.b16 %v10480_v55 }
 0x324   :  { %v10665_v1 = vpop.f32.mrf.mxu3 }
 0x325   :  { %v1102_v0 = vpop.f32.mrf.mxu1  ;;  %v1026_v23 = vpack.c.b16 %v998_v31, %v998_v31 }
 0x327   :  { %1461 = vmatmul.bf16.gmra.mxu2 %v7892_v22  ;;  %v10699_v22 = vpop.f32.mrf.mxu0 }
 0x328   :  { %7781 = vmatmul.msk.bf16.gmra.mxu1 %vm1048_vm8, %v7775_v13  ;;  %14019 = vst [vmem:[#allocation22_spill] sm:$0xff] %v10699_v22 }
 0x329   :  { %1504 = vmatmul.bf16.gmra.mxu3 %v7896_v5  ;;  %2431 = vmatmul.bf16.gmra.mxu0 %v8177_v59  ;;  %v2310_v5 = vpack.c.b16 %v2282_v62, %v2282_v62 }
 0x32a   :  { %v1145_v60 = vpop.f32.mrf.mxu2 }
 0x32b   :  { %v1146_v17 = vadd.f32 %v1145_v60, %v1102_v0  ;;  %v1383_v0 = vpack.c.b16 %v1355_v41, %v1355_v41  ;;  %v7819_v60 = vld [vmem:[%s13936_s4 + $0xd8] sm:$0xf]  ;;  %v9301_v41 = vld [vmem:[%s13936_s4 + $0x34c] sm:$0xf0] }
 0x32c   :  { %v1188_v54 = vpop.f32.mrf.mxu3 }
 0x32d   :  { %v1104_v58 = vpop.f32.mrf.mxu1  ;;  %v10689_v14 = vadd.f32 %v1188_v54, %v1146_v17  ;;  %v9230_v54 = vld [vmem:[%s13936_s4 + $0xe4] sm:$0xf0]  ;;  %v9228_v17 = vld [vmem:[%s13936_s4 + $0xdc] sm:$0xf] }
 0x32e   :  { %v7820_v40 = vor.u32 %v9230_v54, %v7819_v60  ;;  %v9234_v60 = vld [vmem:[%s13936_s4 + $0x104] sm:$0xf0]  ;;  %v9232_v54 = vld [vmem:[%s13936_s4 + $0xfc] sm:$0xf] }
 0x32f   :  { %v10704_v35 = vpop.f32.mrf.mxu0 }
 0x330   :  { %14020 = vst [vmem:[#allocation23_spill] sm:$0xff] %v10704_v35 }
 0x332   :  { %v1147_v16 = vpop.f32.mrf.mxu2 }
 0x333   :  { %v10697_v13 = vadd.f32 %v1147_v16, %v1104_v58  ;;  %v7821_v58 = vld [vmem:[%s13936_s4 + $0xe8] sm:$0xf0] }
 0x334   :  { %v10695_v2 = vpop.f32.mrf.mxu3  ;;  %v7824_v16 = vor.u32 %v9228_v17, %v7821_v58  ;;  %v7837_v17 = vld [vmem:[%s13936_s4 + $0x108] sm:$0xf0] }
 0x335   :  { %v1107_v37 = vpop.f32.mrf.mxu1 }
 0x337   :  { %1466 = vmatmul.bf16.gmra.mxu2 %v1382_v4  ;;  %v10729_v4 = vpop.f32.mrf.mxu0 }
 0x338   :  { %7782 = vmatmul.msk.bf16.gmra.mxu1 %vm1048_vm8, %v1026_v23  ;;  %14021 = vst [vmem:[#allocation24_spill] sm:$0xff] %v10729_v4 }
 0x339   :  { %1509 = vmatmul.bf16.gmra.mxu3 %v1383_v0  ;;  %2436 = vmatmul.bf16.gmra.mxu0 %v2310_v5 }
 0x33a   :  { %v1150_v55 = vpop.f32.mrf.mxu2 }
 0x33b   :  { %v1151_v11 = vadd.f32 %v1150_v55, %v1107_v37  ;;  %v8230_v37 = vor.u32 %v9301_v41, %v8229_v52  ;;  %v7840_v41 = vor.u32 %v9232_v54, %v7837_v17 }
 0x33c   :  { %v1193_v59 = vpop.f32.mrf.mxu3 }
 0x33d   :  { %v1109_v34 = vpop.f32.mrf.mxu1  ;;  %v10702_v44 = vadd.f32 %v1193_v59, %v1151_v11 }
 0x342   :  { %v1152_v21 = vpop.f32.mrf.mxu2 }
 0x343   :  { %v10726_v62 = vadd.f32 %v1152_v21, %v1109_v34  ;;  %v7835_v34 = vld [vmem:[%s13936_s4 + $0xf8] sm:$0xf] }
 0x344   :  { %v10718_v31 = vpop.f32.mrf.mxu3 }
 0x345   :  { %v1112_v23 = vpop.f32.mrf.mxu1 }
 0x347   :  { %7905 = vmatmul.msk.bf16.vlgmr.msra.gmra.mxu2 %vm1048_vm8, %v7824_v16 }
 0x348   :  { %1522 = vmatmul.bf16.vlgmr.msra.gmra.mxu1 %v7820_v40  ;;  %v7836_v40 = vor.u32 %v9234_v60, %v7835_v34  ;;  %v7851_v34 = vld [vmem:[%s13936_s4 + $0x118] sm:$0xf]  ;;  %v9236_v60 = vld [vmem:[%s13936_s4 + $0x11c] sm:$0xf] }
 0x349   :  { %2055 = vmatpush.bf16.msra.mxu1 %v10300_v7  ;;  %2799 = vmatmul.bf16.vlgmr.msrb.gmra.mxu0 %v8230_v37 }
 0x34a   :  { %3363 = vmatpush.bf16.msrb.mxu0 %v10300_v7  ;;  %v1155_v0 = vpop.f32.mrf.mxu2 }
 0x34b   :  { %v1156_v55 = vadd.f32 %v1155_v0, %v1112_v23 }
 0x34c   :  { %v1198_v5 = vpop.f32.mrf.mxu3 }
 0x34d   :  { %v1114_v59 = vpop.f32.mrf.mxu1  ;;  %v10733_v11 = vadd.f32 %v1198_v5, %v1156_v55 }
 0x352   :  { %v1157_v58 = vpop.f32.mrf.mxu2 }
 0x354   :  { %v1200_v21 = vpop.f32.mrf.mxu3 }
 0x355   :  { %v1211_v52 = vpop.f32.mrf.mxu1 }
 0x356   :  { %v10748_v23 = vadd.f32 %v1211_v52, %v10546_v57  ;;  %v9238_v57 = vld [vmem:[%s13936_s4 + $0x124] sm:$0xf0] }
 0x357   :  { %7906 = vmatmul.msk.bf16.gmra.mxu2 %vm1048_vm8, %v7840_v41  ;;  %v7852_v58 = vor.u32 %v9238_v57, %v7851_v34  ;;  %v7867_v34 = vld [vmem:[%s13936_s4 + $0x138] sm:$0xf]  ;;  %v9240_v57 = vld [vmem:[%s13936_s4 + $0x13c] sm:$0xf] }
 0x358   :  { %1527 = vmatmul.bf16.gmra.mxu1 %v7836_v40 }
 0x35a   :  { %v1437_v16 = vpop.f32.mrf.mxu2 }
 0x35c   :  { %v1480_v37 = vpop.f32.mrf.mxu3 }
 0x35d   :  { %v10751_v0 = vadd.f32 %v1480_v37, %v1437_v16  ;;  %v1213_v5 = vpop.f32.mrf.mxu1 }
 0x35e   :  { %v10754_v55 = vadd.f32 %v1213_v5, %v10576_v39  ;;  %v7853_v39 = vld [vmem:[%s13936_s4 + $0x128] sm:$0xf0] }
 0x35f   :  { %v7856_v40 = vor.u32 %v9236_v60, %v7853_v39 }
 0x362   :  { %v10770_v54 = vpop.f32.mrf.mxu2 }
 0x364   :  { %v10772_v17 = vpop.f32.mrf.mxu3 }
 0x365   :  { %v1216_v21 = vpop.f32.mrf.mxu1 }
 0x366   :  { %v10775_v52 = vadd.f32 %v1216_v21, %v10581_v63  ;;  %v9242_v63 = vld [vmem:[%s13936_s4 + $0x144] sm:$0xf0] }
 0x367   :  { %7907 = vmatmul.msk.bf16.gmra.mxu2 %vm1048_vm8, %v7856_v40 }
 0x368   :  { %1532 = vmatmul.bf16.gmra.mxu1 %v7852_v58  ;;  %v7868_v58 = vor.u32 %v9242_v63, %v7867_v34  ;;  %v9246_v63 = vld [vmem:[%s13936_s4 + $0x164] sm:$0xf0] }
 0x36a   :  { %v1442_v41 = vpop.f32.mrf.mxu2 }
 0x36c   :  { %v1485_v16 = vpop.f32.mrf.mxu3 }
 0x36d   :  { %v10778_v37 = vadd.f32 %v1485_v16, %v1442_v41  ;;  %v1218_v5 = vpop.f32.mrf.mxu1  ;;  %v1181_v16 = vadd.f32 %v10630_v42, %v10638_v8  ;;  %v9244_v42 = vld [vmem:[%s13936_s4 + $0x15c] sm:$0xf]  ;;  %v7885_v8 = vld [vmem:[%s13936_s4 + $0x168] sm:$0xf0] }
 0x36e   :  { %v10781_v59 = vadd.f32 %v1218_v5, %v10607_v15  ;;  %v7869_v15 = vld [vmem:[%s13936_s4 + $0x148] sm:$0xf0] }
 0x36f   :  { %v7872_v40 = vor.u32 %v9240_v57, %v7869_v15 }
 0x372   :  { %v10797_v60 = vpop.f32.mrf.mxu2 }
 0x374   :  { %v10799_v39 = vpop.f32.mrf.mxu3 }
 0x375   :  { %v1221_v21 = vpop.f32.mrf.mxu1 }
 0x376   :  { %v10802_v41 = vadd.f32 %v1221_v21, %v10610_v38  ;;  %v7883_v38 = vld [vmem:[%s13936_s4 + $0x158] sm:$0xf] }
 0x377   :  { %7908 = vmatmul.msk.bf16.gmra.mxu2 %vm1048_vm8, %v7872_v40  ;;  %v7884_v57 = vor.u32 %v9246_v63, %v7883_v38  ;;  %v1186_v40 = vadd.f32 %v10665_v1, %v10673_v27  ;;  %v9250_v63 = vld [vmem:[%s13936_s4 + $0x184] sm:$0xf0]  ;;  %v9248_v1 = vld [vmem:[%s13936_s4 + $0x17c] sm:$0xf] }
 0x378   :  { %1537 = vmatmul.bf16.gmra.mxu1 %v7868_v58  ;;  %v7888_v58 = vor.u32 %v9244_v42, %v7885_v8 }
 0x37a   :  { %v1447_v5 = vpop.f32.mrf.mxu2 }
 0x37c   :  { %v1490_v4 = vpop.f32.mrf.mxu3 }
 0x37d   :  { %v10807_v35 = vadd.f32 %v1490_v4, %v1447_v5  ;;  %v1223_v22 = vpop.f32.mrf.mxu1 }
 0x37e   :  { %v10809_v45 = vadd.f32 %v1223_v22, %v1181_v16 }
 0x382   :  { %v10825_v22 = vpop.f32.mrf.mxu2 }
 0x384   :  { %v10827_v4 = vpop.f32.mrf.mxu3 }
 0x385   :  { %v1226_v15 = vpop.f32.mrf.mxu1 }
 0x386   :  { %v10830_v21 = vadd.f32 %v1226_v15, %v10643_v50  ;;  %v7899_v50 = vld [vmem:[%s13936_s4 + $0x178] sm:$0xf] }
 0x387   :  { %7909 = vmatmul.msk.bf16.gmra.mxu2 %vm1048_vm8, %v7888_v58  ;;  %v7900_v8 = vor.u32 %v9250_v63, %v7899_v50 }
 0x388   :  { %1542 = vmatmul.bf16.gmra.mxu1 %v7884_v57 }
 0x38a   :  { %v1452_v16 = vpop.f32.mrf.mxu2 }
 0x38c   :  { %v1495_v5 = vpop.f32.mrf.mxu3 }
 0x38d   :  { %v10835_v34 = vadd.f32 %v1495_v5, %v1452_v16  ;;  %v1228_v53 = vpop.f32.mrf.mxu1  ;;  %v1191_v5 = vadd.f32 %v10695_v2, %v10697_v13 }
 0x38e   :  { %v10837_v51 = vadd.f32 %v1228_v53, %v1186_v40  ;;  %v7901_v53 = vld [vmem:[%s13936_s4 + $0x188] sm:$0xf0]  ;;  %v8056_v40 = vld [vmem:[%s13937_s5 + $0x8] sm:$0x7] }
 0x38f   :  { %v7904_v15 = vor.u32 %v9248_v1, %v7901_v53  ;;  %v2122_v16 = vsel %vm1630_vm7, %v8056_v40, 0 }
 0x390   :  { %2131 = vmatpush.bf16.msra.mxu2 %v2122_v16 }
 0x392   :  { %v10853_v27 = vpop.f32.mrf.mxu2 }
 0x394   :  { %v10855_v42 = vpop.f32.mrf.mxu3 }
 0x395   :  { %v1231_v57 = vpop.f32.mrf.mxu1 }
 0x396   :  { %v10858_v58 = vadd.f32 %v1231_v57, %v10689_v14  ;;  %v7808_v14 = vld [vmem:[%s13936_s4 + $0x198] sm:$0x11] }
 0x397   :  { %7910 = vmatmul.msk.bf16.gmra.mxu2 %vm1048_vm8, %v7904_v15  ;;  %v1356_v57 = vunpack.c.l.b16 %v7808_v14  ;;  %v1357_v15 = vunpack.c.h.b16 %v7808_v14 }
 0x398   :  { %1547 = vmatmul.bf16.gmra.mxu1 %v7900_v8 }
 0x399   :  { %v1384_v2 = vpack.c.b16 %v1356_v57, %v1356_v57 }
 0x39a   :  { %v1457_v38 = vpop.f32.mrf.mxu2 }
 0x39c   :  { %v1500_v50 = vpop.f32.mrf.mxu3 }
 0x39d   :  { %v10867_v63 = vadd.f32 %v1500_v50, %v1457_v38  ;;  %v1233_v1 = vpop.f32.mrf.mxu1  ;;  %v1385_v38 = vpack.c.b16 %v1357_v15, %v1357_v15  ;;  %v9253_v15 = vld [vmem:[%s13936_s4 + $0x1ac] sm:$0xf0] }
 0x39e   :  { %v10872_v53 = vadd.f32 %v1233_v1, %v1191_v5  ;;  %v1196_v5 = vadd.f32 %v10718_v31, %v10726_v62 }
 0x3a2   :  { %v10876_v40 = vpop.f32.mrf.mxu2 }
 0x3a4   :  { %v10878_v16 = vpop.f32.mrf.mxu3 }
 0x3a5   :  { %v1236_v13 = vpop.f32.mrf.mxu1 }
 0x3a6   :  { %v10881_v50 = vadd.f32 %v1236_v13, %v10702_v44  ;;  %v7955_v44 = vld [vmem:[%s13936_s4 + $0x1a0] sm:$0xf] }
 0x3a7   :  { %7911 = vmatmul.msk.bf16.gmra.mxu2 %vm1048_vm8, %v1385_v38  ;;  %v14022_v38 = vpack.c.bf16 %v10754_v55, %v10748_v23  ;;  %v14023_v55 = vpack.c.bf16 %v10781_v59, %v10775_v52 }
 0x3a8   :  { %1552 = vmatmul.bf16.gmra.mxu1 %v1384_v2 }
 0x3aa   :  { %v1462_v1 = vpop.f32.mrf.mxu2 }
 0x3ac   :  { %v1505_v8 = vpop.f32.mrf.mxu3 }
 0x3ad   :  { %v10886_v9 = vadd.f32 %v1505_v8, %v1462_v1  ;;  %v1238_v14 = vpop.f32.mrf.mxu1  ;;  %v7956_v8 = vor.u32 %v9253_v15, %v7955_v44 }
 0x3ae   :  { %v10888_v25 = vadd.f32 %v1238_v14, %v1196_v5 }
 0x3b0   :  { %v1250_v57 = vpack.c.bf16 %v10888_v25, %v10881_v50 }
 0x3b2   :  { %v10898_v2 = vpop.f32.mrf.mxu2 }
 0x3b4   :  { %v10900_v31 = vpop.f32.mrf.mxu3 }
 0x3b5   :  { %v1241_v62 = vpop.f32.mrf.mxu1 }
 0x3b6   :  { %v10903_v13 = vadd.f32 %v1241_v62, %v10733_v11 }
 0x3b7   :  { %1927 = vmatmul.bf16.vlgmr.msrb.gmra.mxu2 %v7956_v8 }
 0x3b8   :  { %7920 = vmatmul.msk.bf16.vlgmr.msrb.gmra.mxu1 %vm443_vm3, %v14022_v38  ;;  %2491 = vmatpush.bf16.msrb.mxu2 %v10300_v7  ;;  %v1483_v38 = vadd.f32 %v10772_v17, %v10770_v54 }
 0x3b9   :  { %2441 = vmatpush.bf16.msrb.mxu1 %v10149_v24 }
 0x3ba   :  { %v1467_v5 = vpop.f32.mrf.mxu2 }
 0x3bc   :  { %v1510_v1 = vpop.f32.mrf.mxu3 }
 0x3bd   :  { %v10911_v14 = vadd.f32 %v1510_v1, %v1467_v5  ;;  %2442 = vmatpush.bf16.msrb.mxu1 %v10169_v48  ;;  %v1243_v44 = vpop.f32.mrf.mxu1 }
 0x3c1   :  { %2443 = vmatpush.bf16.msrb.mxu1 %v10192_v10 }
 0x3c2   :  { %v1469_v11 = vpop.f32.mrf.mxu2 }
 0x3c4   :  { %v1512_v15 = vpop.f32.mrf.mxu3 }
 0x3c5   :  { %2444 = vmatpush.bf16.msrb.mxu1 %v10215_v20  ;;  %v1523_v23 = vpop.f32.mrf.mxu1 }
 0x3c6   :  { %v1524_v5 = vadd.f32 %v1523_v23, %v10751_v0  ;;  %v1488_v0 = vadd.f32 %v10799_v39, %v10797_v60 }
 0x3c8   :  { %7921 = vmatmul.msk.bf16.gmra.mxu1 %vm443_vm3, %v14023_v55  ;;  %v14024_v55 = vpack.c.bf16 %v10809_v45, %v10802_v41 }
 0x3c9   :  { %2445 = vmatpush.bf16.msrb.mxu1 %v10238_v29 }
 0x3ca   :  { %v1566_v62 = vpop.f32.mrf.mxu2 }
 0x3cb   :  { %v1567_v11 = vadd.f32 %v1566_v62, %v1524_v5 }
 0x3cd   :  { %2446 = vmatpush.bf16.msrb.mxu1 %v10256_v32  ;;  %v1525_v8 = vpop.f32.mrf.mxu1 }
 0x3ce   :  { %v1526_v1 = vadd.f32 %v1525_v8, %v1483_v38 }
 0x3d1   :  { %2447 = vmatpush.bf16.msrb.mxu1 %v10266_v30 }
 0x3d2   :  { %v1568_v44 = vpop.f32.mrf.mxu2 }
 0x3d3   :  { %v1569_v15 = vadd.f32 %v1568_v44, %v1526_v1  ;;  %v14025_v1 = vpack.c.bf16 %v10837_v51, %v10830_v21 }
 0x3d5   :  { %2448 = vmatpush.bf16.msrb.mxu1 %v10303_v33  ;;  %v1528_v59 = vpop.f32.mrf.mxu1  ;;  %v1600_v52 = vpack.c.bf16 %v1569_v15, %v1567_v11 }
 0x3d6   :  { %v1529_v23 = vadd.f32 %v1528_v59, %v10778_v37  ;;  %v1493_v37 = vadd.f32 %v10827_v4, %v10825_v22 }
 0x3d7   :  { %7913 = vmatmul.msk.bf16.vlgmr.msra.gmra.mxu3 %vm443_vm3, %v1600_v52 }
 0x3d8   :  { %7922 = vmatmul.msk.bf16.gmra.mxu1 %vm443_vm3, %v14024_v55  ;;  %2355 = vmatpush.bf16.msra.mxu3 %v10133_v49  ;;  %v14026_v55 = vpack.c.bf16 %v10872_v53, %v10858_v58 }
 0x3da   :  { %v1571_v54 = vpop.f32.mrf.mxu2 }
 0x3db   :  { %v1572_v45 = vadd.f32 %v1571_v54, %v1529_v23 }
 0x3dc   :  { %2356 = vmatpush.bf16.msra.mxu3 %v10153_v36 }
 0x3dd   :  { %v1530_v17 = vpop.f32.mrf.mxu1 }
 0x3de   :  { %v1531_v62 = vadd.f32 %v1530_v17, %v1488_v0 }
 0x3e0   :  { %2357 = vmatpush.bf16.msra.mxu3 %v10174_v26 }
 0x3e2   :  { %v1573_v8 = vpop.f32.mrf.mxu2 }
 0x3e3   :  { %v1574_v41 = vadd.f32 %v1573_v8, %v1531_v62 }
 0x3e4   :  { %2358 = vmatpush.bf16.msra.mxu3 %v10197_v18 }
 0x3e5   :  { %v1533_v38 = vpop.f32.mrf.mxu1  ;;  %v1601_v5 = vpack.c.bf16 %v1574_v41, %v1572_v45 }
 0x3e6   :  { %v1534_v44 = vadd.f32 %v1533_v38, %v10807_v35  ;;  %v1498_v35 = vadd.f32 %v10855_v42, %v10853_v27  ;;  %v1503_v27 = vadd.f32 %v10878_v16, %v10876_v40  ;;  %v1508_v40 = vadd.f32 %v10900_v31, %v10898_v2  ;;  %v7965_v16 = vld [vmem:[%s13936_s4 + $0x1b8] sm:$0xf0] }
 0x3e7   :  { %7914 = vmatmul.msk.bf16.gmra.mxu3 %vm443_vm3, %v1601_v5 }
 0x3e8   :  { %7923 = vmatmul.msk.bf16.gmra.mxu1 %vm443_vm3, %v14025_v1  ;;  %2359 = vmatpush.bf16.msra.mxu3 %v10220_v12 }
 0x3ea   :  { %v1576_v60 = vpop.f32.mrf.mxu2 }
 0x3eb   :  { %v1577_v51 = vadd.f32 %v1576_v60, %v1534_v44  ;;  %v1251_v60 = vpack.c.bf16 %v10903_v13, %v10903_v13 }
 0x3ec   :  { %2360 = vmatpush.bf16.msra.mxu3 %v10243_v19 }
 0x3ed   :  { %v1535_v39 = vpop.f32.mrf.mxu1 }
 0x3ee   :  { %v1536_v11 = vadd.f32 %v1535_v39, %v1493_v37 }
 0x3f0   :  { %2361 = vmatpush.bf16.msra.mxu3 %v10259_v61 }
 0x3f2   :  { %v1578_v15 = vpop.f32.mrf.mxu2 }
 0x3f3   :  { %v1579_v21 = vadd.f32 %v1578_v15, %v1536_v11 }
 0x3f4   :  { %2362 = vmatpush.bf16.msra.mxu3 %v10275_v3 }
 0x3f5   :  { %v1538_v59 = vpop.f32.mrf.mxu1  ;;  %v1602_v52 = vpack.c.bf16 %v1579_v21, %v1577_v51 }
 0x3f6   :  { %v1539_v54 = vadd.f32 %v1538_v59, %v10835_v34  ;;  %v9257_v59 = vld [vmem:[%s13936_s4 + $0x1cc] sm:$0xf0] }
 0x3f7   :  { %7915 = vmatmul.msk.bf16.gmra.mxu3 %vm443_vm3, %v1602_v52 }
 0x3f8   :  { %7924 = vmatmul.msk.bf16.gmra.mxu1 %vm443_vm3, %v14026_v55 }
 0x3fa   :  { %v1581_v22 = vpop.f32.mrf.mxu2 }
 0x3fb   :  { %v1582_v23 = vadd.f32 %v1581_v22, %v1539_v54  ;;  %v9256_v22 = vld [vmem:[%s13936_s4 + $0x1cc] sm:$0xf] }
 0x3fd   :  { %v1540_v4 = vpop.f32.mrf.mxu1 }
 0x3fe   :  { %v1541_v17 = vadd.f32 %v1540_v4, %v1498_v35  ;;  %v7981_v4 = vld [vmem:[%s13936_s4 + $0x1d8] sm:$0xf0] }
 0x402   :  { %v1583_v0 = vpop.f32.mrf.mxu2 }
 0x403   :  { %v1584_v62 = vadd.f32 %v1583_v0, %v1541_v17  ;;  %v7984_v17 = vor.u32 %v9256_v22, %v7981_v4 }
 0x405   :  { %v1543_v8 = vpop.f32.mrf.mxu1  ;;  %v1603_v45 = vpack.c.bf16 %v1584_v62, %v1582_v23  ;;  %v7987_v62 = vld [vmem:[%s13936_s4 + $0x1e0] sm:$0xf] }
 0x406   :  { %v1544_v34 = vadd.f32 %v1543_v8, %v10867_v63  ;;  %v9252_v63 = vld [vmem:[%s13936_s4 + $0x1ac] sm:$0xf]  ;;  %v9261_v8 = vld [vmem:[%s13936_s4 + $0x1ec] sm:$0xf0] }
 0x407   :  { %7916 = vmatmul.msk.bf16.gmra.mxu3 %vm443_vm3, %v1603_v45  ;;  %v7968_v44 = vor.u32 %v9252_v63, %v7965_v16  ;;  %v7988_v45 = vor.u32 %v9261_v8, %v7987_v62  ;;  %v8013_v63 = vld [vmem:[%s13936_s4 + $0x218] sm:$0xf0]  ;;  %v9255_v16 = vld [vmem:[%s13936_s4 + $0x1c4] sm:$0xf]  ;;  %v8035_v8 = vld [vmem:[%s13936_s4 + $0x240] sm:$0xf] }
 0x408   :  { %7925 = vmatmul.msk.bf16.gmra.mxu1 %vm443_vm3, %v1250_v57 }
 0x40a   :  { %v1586_v58 = vpop.f32.mrf.mxu2 }
 0x40b   :  { %v1587_v38 = vadd.f32 %v1586_v58, %v1544_v34  ;;  %v14027_v58 = vld [vmem:[#allocation14_spill] sm:$0xff]  ;;  %v9251_v34 = vld [vmem:[%s13936_s4 + $0x1a4] sm:$0xf] }
 0x40d   :  { %v1545_v53 = vpop.f32.mrf.mxu1 }
 0x40e   :  { %v1546_v42 = vadd.f32 %v1545_v53, %v1503_v27  ;;  %v9260_v53 = vld [vmem:[%s13936_s4 + $0x1ec] sm:$0xf]  ;;  %v7997_v27 = vld [vmem:[%s13936_s4 + $0x1f8] sm:$0xf0] }
 0x412   :  { %v1588_v41 = vpop.f32.mrf.mxu2 }
 0x413   :  { %v1589_v5 = vadd.f32 %v1588_v41, %v1546_v42  ;;  %v7957_v42 = vld [vmem:[%s13936_s4 + $0x1b0] sm:$0xf0]  ;;  %v8000_v41 = vor.u32 %v9260_v53, %v7997_v27  ;;  %v9272_v53 = vld [vmem:[%s13936_s4 + $0x24c] sm:$0xf]  ;;  %v8045_v27 = vld [vmem:[%s13936_s4 + $0x258] sm:$0xf0] }
 0x415   :  { %v1548_v1 = vpop.f32.mrf.mxu1  ;;  %v1604_v25 = vpack.c.bf16 %v1589_v5, %v1587_v38  ;;  %v14028_v38 = vld [vmem:[#allocation17_spill] sm:$0xff] }
 0x416   :  { %v1549_v13 = vadd.f32 %v1548_v1, %v10886_v9  ;;  %v7971_v9 = vld [vmem:[%s13936_s4 + $0x1c0] sm:$0xf]  ;;  %v7960_v1 = vor.u32 %v9251_v34, %v7957_v42  ;;  %v9263_v34 = vld [vmem:[%s13936_s4 + $0x204] sm:$0xf]  ;;  %v8005_v42 = vld [vmem:[%s13936_s4 + $0x210] sm:$0xf0] }
 0x417   :  { %7917 = vmatmul.msk.bf16.gmra.mxu3 %vm443_vm3, %v1604_v25  ;;  %v7972_v52 = vor.u32 %v9257_v59, %v7971_v9  ;;  %v8003_v25 = vld [vmem:[%s13936_s4 + $0x200] sm:$0xf]  ;;  %v9268_v9 = vld [vmem:[%s13936_s4 + $0x22c] sm:$0xf]  ;;  %v8029_v59 = vld [vmem:[%s13936_s4 + $0x238] sm:$0xf0] }
 0x418   :  { %7926 = vmatmul.msk.bf16.gmra.mxu1 %vm443_vm3, %v1251_v60  ;;  %v8032_v4 = vor.u32 %v9268_v9, %v8029_v59 }
 0x419   :  { %1932 = vmatmul.bf16.gmra.mxu2 %v7972_v52  ;;  %v9259_v52 = vld [vmem:[%s13936_s4 + $0x1e4] sm:$0xf] }
 0x41a   :  { %v1591_v50 = vpop.f32.mrf.mxu2 }
 0x41b   :  { %v1592_v11 = vadd.f32 %v1591_v50, %v1549_v13  ;;  %v9265_v50 = vld [vmem:[%s13936_s4 + $0x20c] sm:$0xf0]  ;;  %v7973_v13 = vld [vmem:[%s13936_s4 + $0x1d0] sm:$0xf0] }
 0x41d   :  { %v1550_v57 = vpop.f32.mrf.mxu1 }
 0x41e   :  { %v1551_v39 = vadd.f32 %v1550_v57, %v1508_v40  ;;  %v8004_v57 = vor.u32 %v9265_v50, %v8003_v25  ;;  %v9264_v40 = vld [vmem:[%s13936_s4 + $0x20c] sm:$0xf]  ;;  %v8008_v50 = vor.u32 %v9263_v34, %v8005_v42 }
 0x422   :  { %v1593_v37 = vpop.f32.mrf.mxu2 }
 0x423   :  { %v1594_v15 = vadd.f32 %v1593_v37, %v1551_v39  ;;  %v8016_v39 = vor.u32 %v9264_v40, %v8013_v63 }
 0x425   :  { %v1553_v51 = vpop.f32.mrf.mxu1  ;;  %v1605_v21 = vpack.c.bf16 %v1594_v15, %v1592_v11 }
 0x426   :  { %v1554_v55 = vadd.f32 %v1553_v51, %v10911_v14 }
 0x427   :  { %7918 = vmatmul.msk.bf16.gmra.mxu3 %vm443_vm3, %v1605_v21  ;;  %v8019_v21 = vld [vmem:[%s13936_s4 + $0x220] sm:$0xf] }
 0x428   :  { %8049 = vmatmul.msk.bf16.vlgmr.msra.gmra.mxu1 %vm1048_vm8, %v7968_v44  ;;  %v7976_v44 = vor.u32 %v9255_v16, %v7973_v13  ;;  %v9431_v16 = vld [vmem:[%s13936_s4 + $0x268] sm:$0x11] }
 0x429   :  { %2834 = vmatpush.bf16.msra.mxu1 %v10138_v56  ;;  %1937 = vmatmul.bf16.gmra.mxu2 %v7988_v45  ;;  %v9273_v45 = vld [vmem:[%s13936_s4 + $0x24c] sm:$0xf0]  ;;  %v1848_v13 = vunpack.c.h.b16 %v9431_v16 }
 0x42a   :  { %v1596_v2 = vpop.f32.mrf.mxu2 }
 0x42b   :  { %v1597_v35 = vadd.f32 %v1596_v2, %v1554_v55  ;;  %v9269_v2 = vld [vmem:[%s13936_s4 + $0x22c] sm:$0xf0]  ;;  %v7989_v55 = vld [vmem:[%s13936_s4 + $0x1f0] sm:$0xf0] }
 0x42d   :  { %2835 = vmatpush.bf16.msra.mxu1 %v10156_v6  ;;  %v1555_v31 = vpop.f32.mrf.mxu1  ;;  %v1606_v23 = vpack.c.bf16 %v1597_v35, %v1597_v35 }
 0x42e   :  { %v8020_v31 = vor.u32 %v9269_v2, %v8019_v21 }
 0x431   :  { %2836 = vmatpush.bf16.msra.mxu1 %v10178_v28 }
 0x432   :  { %v1598_v54 = vpop.f32.mrf.mxu2 }
 0x435   :  { %2837 = vmatpush.bf16.msra.mxu1 %v10201_v46  ;;  %v1710_v0 = vpop.f32.mrf.mxu1 }
 0x437   :  { %7919 = vmatmul.msk.bf16.gmra.mxu3 %vm443_vm3, %v1606_v23 }
 0x438   :  { %8050 = vmatmul.msk.bf16.gmra.mxu1 %vm1048_vm8, %v7984_v17  ;;  %v7992_v17 = vor.u32 %v9259_v52, %v7989_v55 }
 0x439   :  { %2838 = vmatpush.bf16.msra.mxu1 %v10224_v43  ;;  %1942 = vmatmul.bf16.gmra.mxu2 %v8004_v57 }
 0x43d   :  { %2839 = vmatpush.bf16.msra.mxu1 %v10247_v47  ;;  %v1712_v14 = vpop.f32.mrf.mxu1 }
 0x441   :  { %2840 = vmatpush.bf16.msra.mxu1 %v14027_v58 }
 0x445   :  { %2841 = vmatpush.bf16.msra.mxu1 %v14028_v38  ;;  %v1715_v5 = vpop.f32.mrf.mxu1 }
 0x447   :  { %1970 = vmatmul.bf16.vlgmr.msrb.gmra.mxu3 %v7960_v1 }
 0x448   :  { %8051 = vmatmul.msk.bf16.gmra.mxu1 %vm1048_vm8, %v8000_v41 }
 0x449   :  { %1947 = vmatmul.bf16.gmra.mxu2 %v8020_v31  ;;  %v7951_v31 = vld [vmem:[%s13936_s4 + $0x260] sm:$0x11] }
 0x44a   :  { %v1845_v9 = vunpack.c.l.b16 %v7951_v31 }
 0x44c   :  { %v1873_v59 = vpack.c.b16 %v1845_v9, %v1845_v9  ;;  %v9286_v9 = vld [vmem:[%s13936_s4 + $0x2c4] sm:$0xf0] }
 0x44d   :  { %v1717_v60 = vpop.f32.mrf.mxu1 }
 0x455   :  { %v1720_v37 = vpop.f32.mrf.mxu1 }
 0x457   :  { %1975 = vmatmul.bf16.gmra.mxu3 %v7976_v44  ;;  %v1876_v44 = vpack.c.b16 %v1848_v13, %v1848_v13 }
 0x458   :  { %8052 = vmatmul.msk.bf16.gmra.mxu1 %vm1048_vm8, %v8016_v39  ;;  %v8021_v39 = vld [vmem:[%s13936_s4 + $0x230] sm:$0xf0] }
 0x45a   :  { %v1643_v11 = vpop.f32.mrf.mxu3 }
 0x45b   :  { %v11043_v15 = vadd.f32 %v1710_v0, %v1643_v11 }
 0x45d   :  { %v1722_v51 = vpop.f32.mrf.mxu1 }
 0x462   :  { %v1645_v22 = vpop.f32.mrf.mxu3 }
 0x463   :  { %v11063_v35 = vadd.f32 %v1712_v14, %v1645_v22  ;;  %v8036_v14 = vor.u32 %v9273_v45, %v8035_v8 }
 0x465   :  { %v1725_v54 = vpop.f32.mrf.mxu1  ;;  %1952 = vmatmul.bf16.gmra.mxu2 %v8036_v14 }
 0x467   :  { %1980 = vmatmul.bf16.gmra.mxu3 %v7992_v17  ;;  %v9271_v17 = vld [vmem:[%s13936_s4 + $0x244] sm:$0xf] }
 0x468   :  { %8053 = vmatmul.msk.bf16.gmra.mxu1 %vm1048_vm8, %v8032_v4  ;;  %v9278_v4 = vld [vmem:[%s13936_s4 + $0x284] sm:$0xf0] }
 0x46a   :  { %v1648_v0 = vpop.f32.mrf.mxu3 }
 0x46b   :  { %v11066_v23 = vadd.f32 %v1715_v5, %v1648_v0  ;;  %v8048_v5 = vor.u32 %v9272_v53, %v8045_v27  ;;  %v8037_v0 = vld [vmem:[%s13936_s4 + $0x250] sm:$0xf0]  ;;  %v8193_v53 = vld [vmem:[%s13937_s5 + $0xc] sm:$0x7] }
 0x46c   :  { %v8040_v14 = vor.u32 %v9271_v17, %v8037_v0  ;;  %v2558_v27 = vsel %vm1630_vm7, %v8193_v53, 0 }
 0x46d   :  { %v11068_v62 = vpop.f32.mrf.mxu1  ;;  %2567 = vmatpush.bf16.msrb.mxu3 %v2558_v27 }
 0x472   :  { %v1650_v41 = vpop.f32.mrf.mxu3 }
 0x473   :  { %v11088_v1 = vadd.f32 %v1717_v60, %v1650_v41  ;;  %v9267_v60 = vld [vmem:[%s13936_s4 + $0x224] sm:$0xf] }
 0x474   :  { %v8024_v2 = vor.u32 %v9267_v60, %v8021_v39  ;;  %v1928_v60 = vpop.f32.mrf.mxu2 }
 0x475   :  { %v1730_v25 = vpop.f32.mrf.mxu1  ;;  %1957 = vmatmul.bf16.gmra.mxu2 %v1873_v59 }
 0x477   :  { %1985 = vmatmul.bf16.gmra.mxu3 %v8008_v50  ;;  %v8116_v50 = vld [vmem:[%s13936_s4 + $0x298] sm:$0xf] }
 0x478   :  { %8054 = vmatmul.msk.bf16.gmra.mxu1 %vm1048_vm8, %v8048_v5  ;;  %v1846_v5 = vunpack.c.h.b16 %v7951_v31  ;;  %v8132_v31 = vld [vmem:[%s13936_s4 + $0x2b8] sm:$0xf] }
 0x47a   :  { %v1653_v57 = vpop.f32.mrf.mxu3 }
 0x47b   :  { %v11091_v40 = vadd.f32 %v1720_v37, %v1653_v57  ;;  %v9282_v57 = vld [vmem:[%s13936_s4 + $0x2a4] sm:$0xf0] }
 0x47c   :  { %v8117_v13 = vor.u32 %v9282_v57, %v8116_v50 }
 0x47d   :  { %v11093_v63 = vpop.f32.mrf.mxu1 }
 0x482   :  { %v1655_v11 = vpop.f32.mrf.mxu3 }
 0x483   :  { %v11104_v21 = vadd.f32 %v1722_v51, %v1655_v11  ;;  %v8100_v51 = vld [vmem:[%s13936_s4 + $0x278] sm:$0xf]  ;;  %v1930_v11 = vpop.f32.mrf.mxu2 }
 0x484   :  { %v8101_v8 = vor.u32 %v9278_v4, %v8100_v51  ;;  %v8133_v4 = vor.u32 %v9286_v9, %v8132_v31 }
 0x485   :  { %v1735_v37 = vpop.f32.mrf.mxu1 }
 0x487   :  { %1990 = vmatmul.bf16.gmra.mxu3 %v8024_v2 }
 0x488   :  { %8055 = vmatmul.msk.bf16.gmra.mxu1 %vm1048_vm8, %v1876_v44 }
 0x48a   :  { %v1658_v52 = vpop.f32.mrf.mxu3 }
 0x48b   :  { %v11110_v55 = vadd.f32 %v1725_v54, %v1658_v52  ;;  %v8092_v52 = vld [vmem:[%s13936_s4 + $0x270] sm:$0xf] }
 0x48d   :  { %v11112_v22 = vpop.f32.mrf.mxu1 }
 0x492   :  { %v11126_v54 = vpop.f32.mrf.mxu3 }
 0x495   :  { %v1740_v45 = vpop.f32.mrf.mxu1 }
 0x497   :  { %1995 = vmatmul.bf16.gmra.mxu3 %v8040_v14 }
 0x498   :  { %2449 = vmatmul.bf16.vlgmr.msrb.gmra.mxu1 %v8101_v8 }
 0x499   :  { %3227 = vmatpush.bf16.msrb.mxu1 %v10133_v49 }
 0x49a   :  { %v1663_v34 = vpop.f32.mrf.mxu3 }
 0x49b   :  { %v11133_v42 = vadd.f32 %v1730_v25, %v1663_v34  ;;  %v1874_v25 = vpack.c.b16 %v1846_v5, %v1846_v5  ;;  %v8148_v34 = vld [vmem:[%s13936_s4 + $0x2d8] sm:$0xf] }
 0x49c   :  { %v1933_v17 = vpop.f32.mrf.mxu2 }
 0x49d   :  { %3228 = vmatpush.bf16.msrb.mxu1 %v10153_v36  ;;  %v1742_v41 = vpop.f32.mrf.mxu1 }
 0x49e   :  { %v9290_v41 = vld [vmem:[%s13936_s4 + $0x2e4] sm:$0xf0] }
 0x49f   :  { %v8149_v57 = vor.u32 %v9290_v41, %v8148_v34 }
 0x4a1   :  { %3229 = vmatpush.bf16.msrb.mxu1 %v10174_v26 }
 0x4a2   :  { %v11143_v16 = vpop.f32.mrf.mxu3 }
 0x4a4   :  { %v1935_v53 = vpop.f32.mrf.mxu2 }
 0x4a5   :  { %3230 = vmatpush.bf16.msrb.mxu1 %v10197_v18  ;;  %v2057_v39 = vpop.f32.mrf.mxu1 }
 0x4a7   :  { %2000 = vmatmul.bf16.gmra.mxu3 %v1874_v25 }
 0x4a8   :  { %2454 = vmatmul.bf16.gmra.mxu1 %v8117_v13 }
 0x4a9   :  { %3231 = vmatpush.bf16.msrb.mxu1 %v10220_v12 }
 0x4aa   :  { %v1668_v44 = vpop.f32.mrf.mxu3 }
 0x4ab   :  { %v11147_v2 = vadd.f32 %v1735_v37, %v1668_v44  ;;  %v9277_v37 = vld [vmem:[%s13936_s4 + $0x27c] sm:$0xf0] }
 0x4ac   :  { %v8093_v0 = vor.u32 %v9277_v37, %v8092_v52  ;;  %v1938_v13 = vpop.f32.mrf.mxu2  ;;  %v9294_v52 = vld [vmem:[%s13936_s4 + $0x304] sm:$0xf0] }
 0x4ad   :  { %3232 = vmatpush.bf16.msrb.mxu1 %v10243_v19  ;;  %v2059_v59 = vpop.f32.mrf.mxu1 }
 0x4b1   :  { %3233 = vmatpush.bf16.msrb.mxu1 %v10259_v61 }
 0x4b2   :  { %v11163_v51 = vpop.f32.mrf.mxu3 }
 0x4b4   :  { %v1940_v31 = vpop.f32.mrf.mxu2 }
 0x4b5   :  { %3234 = vmatpush.bf16.msrb.mxu1 %v10275_v3  ;;  %v2062_v8 = vpop.f32.mrf.mxu1 }
 0x4b7   :  { %2363 = vmatmul.bf16.vlgmr.msra.gmra.mxu3 %v8093_v0 }
 0x4b8   :  { %2459 = vmatmul.bf16.gmra.mxu1 %v8133_v4  ;;  %2927 = vmatpush.bf16.msra.mxu3 %v10300_v7 }
 0x4ba   :  { %v1673_v14 = vpop.f32.mrf.mxu3 }
 0x4bb   :  { %v11167_v27 = vadd.f32 %v1740_v45, %v1673_v14  ;;  %v8164_v45 = vld [vmem:[%s13936_s4 + $0x2f8] sm:$0xf] }
 0x4bc   :  { %v8165_v0 = vor.u32 %v9294_v52, %v8164_v45  ;;  %v1943_v14 = vpop.f32.mrf.mxu2  ;;  %v14031_v52 = vld [vmem:[#allocation21_spill] sm:$0xff] }
 0x4bd   :  { %v2064_v5 = vpop.f32.mrf.mxu1 }
 0x4c2   :  { %v1675_v50 = vpop.f32.mrf.mxu3 }
 0x4c3   :  { %v14029_v50 = vld [vmem:[#allocation19_spill] sm:$0xff] }
 0x4c4   :  { %v1945_v26 = vpop.f32.mrf.mxu2 }
 0x4c5   :  { %v2067_v25 = vpop.f32.mrf.mxu1 }
 0x4c8   :  { %2464 = vmatmul.bf16.gmra.mxu1 %v8149_v57  ;;  %v14030_v57 = vld [vmem:[#allocation20_spill] sm:$0xff] }
 0x4ca   :  { %v1971_v44 = vpop.f32.mrf.mxu3 }
 0x4cb   :  { %v1972_v9 = vadd.f32 %v1971_v44, %v1928_v60  ;;  %v2029_v44 = vpop.f32.mrf.mxu0 }
 0x4cd   :  { %v2069_v37 = vpop.f32.mrf.mxu1  ;;  %v2015_v34 = vadd.f32 %v14029_v50, %v1972_v9 }
 0x4cf   :  { %v2058_v61 = vadd.f32 %v2057_v39, %v2015_v34  ;;  %v9298_v39 = vld [vmem:[%s13936_s4 + $0x324] sm:$0xf0] }
 0x4d2   :  { %v1973_v4 = vpop.f32.mrf.mxu3 }
 0x4d3   :  { %v1974_v41 = vadd.f32 %v1973_v4, %v1930_v11  ;;  %v8180_v11 = vld [vmem:[%s13936_s4 + $0x318] sm:$0xf] }
 0x4d4   :  { %v8181_v9 = vor.u32 %v9298_v39, %v8180_v11 }
 0x4d5   :  { %v2017_v3 = vadd.f32 %v14030_v57, %v1974_v41  ;;  %v11183_v12 = vpop.f32.mrf.mxu1 }
 0x4d7   :  { %v2060_v60 = vadd.f32 %v2059_v59, %v2017_v3  ;;  %v2031_v3 = vpop.f32.mrf.mxu0 }
 0x4d8   :  { %2469 = vmatmul.bf16.gmra.mxu1 %v8165_v0  ;;  %v1948_v0 = vpop.f32.mrf.mxu2 }
 0x4d9   :  { %v2091_v19 = vpack.c.bf16 %v2060_v60, %v2058_v61 }
 0x4da   :  { %v1976_v18 = vpop.f32.mrf.mxu3 }
 0x4db   :  { %8057 = vmatmul.msk.bf16.vlgmr.msra.gmra.mxu2 %vm443_vm3, %v2091_v19  ;;  %v1977_v45 = vadd.f32 %v1976_v18, %v1933_v17  ;;  %v14032_v18 = vld [vmem:[#allocation22_spill] sm:$0xff] }
 0x4dc   :  { %2877 = vmatpush.bf16.msra.mxu2 %v10149_v24 }
 0x4dd   :  { %v2074_v61 = vpop.f32.mrf.mxu1  ;;  %v2020_v19 = vadd.f32 %v14031_v52, %v1977_v45  ;;  %v14033_v52 = vld [vmem:[#allocation23_spill] sm:$0xff] }
 0x4df   :  { %v2063_v50 = vadd.f32 %v2062_v8, %v2020_v19  ;;  %v2034_v41 = vpop.f32.mrf.mxu0 }
 0x4e0   :  { %2878 = vmatpush.bf16.msra.mxu2 %v10169_v48  ;;  %v1950_v8 = vpop.f32.mrf.mxu2 }
 0x4e2   :  { %v1978_v59 = vpop.f32.mrf.mxu3 }
 0x4e3   :  { %v1979_v4 = vadd.f32 %v1978_v59, %v1935_v53  ;;  %v11202_v53 = vld [vmem:[%s13936_s4 + $0x338] sm:$0x11] }
 0x4e4   :  { %2879 = vmatpush.bf16.msra.mxu2 %v10192_v10  ;;  %v2283_v45 = vunpack.c.l.b16 %v11202_v53 }
 0x4e5   :  { %v2022_v17 = vadd.f32 %v14032_v18, %v1979_v4  ;;  %v2077_v60 = vpop.f32.mrf.mxu1  ;;  %v14034_v18 = vld [vmem:[#allocation24_spill] sm:$0xff] }
 0x4e7   :  { %v2065_v34 = vadd.f32 %v2064_v5, %v2022_v17  ;;  %v2036_v5 = vpop.f32.mrf.mxu0 }
 0x4e8   :  { %2474 = vmatmul.bf16.gmra.mxu1 %v8181_v9  ;;  %2880 = vmatpush.bf16.msra.mxu2 %v10215_v20  ;;  %v2311_v9 = vpack.c.b16 %v2283_v45, %v2283_v45 }
 0x4e9   :  { %v2092_v57 = vpack.c.bf16 %v2065_v34, %v2063_v50 }
 0x4ea   :  { %v1981_v48 = vpop.f32.mrf.mxu3 }
 0x4eb   :  { %8058 = vmatmul.msk.bf16.gmra.mxu2 %vm443_vm3, %v2092_v57  ;;  %v1982_v11 = vadd.f32 %v1981_v48, %v1938_v13  ;;  %v1953_v13 = vpop.f32.mrf.mxu2 }
 0x4ec   :  { %2881 = vmatpush.bf16.msra.mxu2 %v10238_v29 }
 0x4ed   :  { %v2079_v39 = vpop.f32.mrf.mxu1  ;;  %v2025_v19 = vadd.f32 %v14033_v52, %v1982_v11  ;;  %v8231_v11 = vld [vmem:[%s13936_s4 + $0x350] sm:$0xf0] }
 0x4ef   :  { %v2068_v50 = vadd.f32 %v2067_v25, %v2025_v19  ;;  %v2039_v57 = vpop.f32.mrf.mxu0 }
 0x4f0   :  { %2882 = vmatpush.bf16.msra.mxu2 %v10256_v32 }
 0x4f2   :  { %v1983_v59 = vpop.f32.mrf.mxu3 }
 0x4f3   :  { %v1984_v4 = vadd.f32 %v1983_v59, %v1940_v31  ;;  %v9299_v31 = vld [vmem:[%s13936_s4 + $0x344] sm:$0xf]  ;;  %v1955_v52 = vpop.f32.mrf.mxu2 }
 0x4f4   :  { %2883 = vmatpush.bf16.msra.mxu2 %v10266_v30 }
 0x4f5   :  { %v2027_v17 = vadd.f32 %v14034_v18, %v1984_v4  ;;  %v2082_v32 = vpop.f32.mrf.mxu1 }
 0x4f7   :  { %v2070_v34 = vadd.f32 %v2069_v37, %v2027_v17  ;;  %v8234_v37 = vor.u32 %v9299_v31, %v8231_v11  ;;  %v2041_v19 = vpop.f32.mrf.mxu0 }
 0x4f8   :  { %2479 = vmatmul.bf16.gmra.mxu1 %v2311_v9  ;;  %2884 = vmatpush.bf16.msra.mxu2 %v10303_v33 }
 0x4f9   :  { %v2093_v48 = vpack.c.bf16 %v2070_v34, %v2068_v50 }
 0x4fa   :  { %v1986_v29 = vpop.f32.mrf.mxu3 }
 0x4fb   :  { %8059 = vmatmul.msk.bf16.gmra.mxu2 %vm443_vm3, %v2093_v48  ;;  %v1987_v45 = vadd.f32 %v1986_v29, %v1943_v14  ;;  %v1958_v34 = vpop.f32.mrf.mxu2 }
 0x4fd   :  { %v2030_v59 = vadd.f32 %v2029_v44, %v1987_v45  ;;  %v2084_v18 = vpop.f32.mrf.mxu1  ;;  %v8247_v44 = vld [vmem:[%s13936_s4 + $0x370] sm:$0xf0] }
 0x4ff   :  { %v2073_v17 = vadd.f32 %v11183_v12, %v2030_v59  ;;  %v2044_v48 = vpop.f32.mrf.mxu0 }
 0x502   :  { %v1988_v25 = vpop.f32.mrf.mxu3 }
 0x503   :  { %v1989_v9 = vadd.f32 %v1988_v25, %v1945_v26  ;;  %v9303_v26 = vld [vmem:[%s13936_s4 + $0x364] sm:$0xf]  ;;  %v1960_v31 = vpop.f32.mrf.mxu2 }
 0x504   :  { %v8250_v45 = vor.u32 %v9303_v26, %v8247_v44  ;;  %v8295_v31 = vld [vmem:[%s13936_s4 + $0x3d0] sm:$0xf0] }
 0x505   :  { %v2032_v4 = vadd.f32 %v2031_v3, %v1989_v9  ;;  %v2087_v33 = vpop.f32.mrf.mxu1 }
 0x507   :  { %v2075_v29 = vadd.f32 %v2074_v61, %v2032_v4  ;;  %v2046_v11 = vpop.f32.mrf.mxu0 }
 0x508   :  { %2842 = vmatmul.bf16.vlgmr.msra.gmra.mxu1 %v8234_v37  ;;  %v8124_v11 = vld [vmem:[%s13936_s4 + $0x2b0] sm:$0xf] }
 0x509   :  { %v2094_v14 = vpack.c.bf16 %v2075_v29, %v2073_v17  ;;  %v9307_v29 = vld [vmem:[%s13936_s4 + $0x384] sm:$0xf] }
 0x50a   :  { %v1991_v50 = vpop.f32.mrf.mxu3 }
 0x50b   :  { %8060 = vmatmul.msk.bf16.gmra.mxu2 %vm443_vm3, %v2094_v14  ;;  %v1992_v30 = vadd.f32 %v1991_v50, %v1948_v0 }
 0x50d   :  { %v2035_v12 = vadd.f32 %v2034_v41, %v1992_v30  ;;  %v2089_v37 = vpop.f32.mrf.mxu1  ;;  %v8263_v30 = vld [vmem:[%s13936_s4 + $0x390] sm:$0xf0] }
 0x50f   :  { %v2078_v59 = vadd.f32 %v2077_v60, %v2035_v12 }
 0x512   :  { %v1993_v3 = vpop.f32.mrf.mxu3 }
 0x513   :  { %v1994_v61 = vadd.f32 %v1993_v3, %v1950_v8  ;;  %v8266_v8 = vor.u32 %v9307_v29, %v8263_v30  ;;  %v9319_v29 = vld [vmem:[%s13936_s4 + $0x3e4] sm:$0xf]  ;;  %v8311_v30 = vld [vmem:[%s13936_s4 + $0x3f0] sm:$0xf0] }
 0x515   :  { %v2037_v25 = vadd.f32 %v2036_v5, %v1994_v61 }
 0x517   :  { %v2080_v9 = vadd.f32 %v2079_v39, %v2037_v25 }
 0x518   :  { %2847 = vmatmul.bf16.gmra.mxu1 %v8250_v45  ;;  %v9281_v45 = vld [vmem:[%s13936_s4 + $0x29c] sm:$0xf0] }
 0x519   :  { %v2095_v0 = vpack.c.bf16 %v2080_v9, %v2078_v59  ;;  %v11259_v59 = vpop.f32.mrf.mxu1  ;;  %v9276_v9 = vld [vmem:[%s13936_s4 + $0x27c] sm:$0xf] }
 0x51a   :  { %v1996_v4 = vpop.f32.mrf.mxu3 }
 0x51b   :  { %8061 = vmatmul.msk.bf16.gmra.mxu2 %vm443_vm3, %v2095_v0  ;;  %v1997_v17 = vadd.f32 %v1996_v4, %v1953_v13  ;;  %v8108_v13 = vld [vmem:[%s13936_s4 + $0x290] sm:$0xf]  ;;  %v8102_v0 = vld [vmem:[%s13936_s4 + $0x288] sm:$0xf0] }
 0x51c   :  { %v8109_v12 = vor.u32 %v9281_v45, %v8108_v13  ;;  %v8105_v4 = vor.u32 %v9276_v9, %v8102_v0  ;;  %v11302_v13 = vld [vmem:[%s13936_s4 + $0x400] sm:$0x11]  ;;  %v8172_v0 = vld [vmem:[%s13936_s4 + $0x310] sm:$0xf] }
 0x51d   :  { %v2040_v5 = vadd.f32 %v2039_v57, %v1997_v17 }
 0x51e   :  { %2368 = vmatmul.bf16.gmra.mxu3 %v8109_v12  ;;  %v2718_v12 = vunpack.c.h.b16 %v11302_v13 }
 0x51f   :  { %v2083_v60 = vadd.f32 %v2082_v32, %v2040_v5  ;;  %v9311_v32 = vld [vmem:[%s13936_s4 + $0x3a4] sm:$0xf] }
 0x521   :  { %v11269_v17 = vpop.f32.mrf.mxu1 }
 0x522   :  { %v1998_v41 = vpop.f32.mrf.mxu3 }
 0x523   :  { %v1999_v14 = vadd.f32 %v1998_v41, %v1955_v52  ;;  %v8279_v52 = vld [vmem:[%s13936_s4 + $0x3b0] sm:$0xf0]  ;;  %v8140_v41 = vld [vmem:[%s13936_s4 + $0x2d0] sm:$0xf] }
 0x525   :  { %v2042_v50 = vadd.f32 %v2041_v19, %v1999_v14  ;;  %v8314_v14 = vor.u32 %v9319_v29, %v8311_v30 }
 0x527   :  { %v2085_v39 = vadd.f32 %v2084_v18, %v2042_v50  ;;  %v8282_v18 = vor.u32 %v9311_v32, %v8279_v52  ;;  %v9280_v50 = vld [vmem:[%s13936_s4 + $0x29c] sm:$0xf]  ;;  %v8156_v32 = vld [vmem:[%s13936_s4 + $0x2f0] sm:$0xf]  ;;  %v9293_v52 = vld [vmem:[%s13936_s4 + $0x2fc] sm:$0xf0] }
 0x528   :  { %2852 = vmatmul.bf16.gmra.mxu1 %v8266_v8  ;;  %v9289_v8 = vld [vmem:[%s13936_s4 + $0x2dc] sm:$0xf0] }
 0x529   :  { %v2096_v26 = vpack.c.bf16 %v2085_v39, %v2083_v60  ;;  %v8141_v5 = vor.u32 %v9289_v8, %v8140_v41  ;;  %v8118_v60 = vld [vmem:[%s13936_s4 + $0x2a8] sm:$0xf0]  ;;  %v11291_v39 = vpop.f32.mrf.mxu1 }
 0x52a   :  { %v2001_v44 = vpop.f32.mrf.mxu3  ;;  %v8150_v8 = vld [vmem:[%s13936_s4 + $0x2e8] sm:$0xf0] }
 0x52b   :  { %v2002_v3 = vadd.f32 %v2001_v44, %v1958_v34  ;;  %8062 = vmatmul.msk.bf16.gmra.mxu2 %vm443_vm3, %v2096_v26  ;;  %v8121_v26 = vor.u32 %v9280_v50, %v8118_v60  ;;  %v8467_v44 = vld [vmem:[%s13937_s5 + $0x14] sm:$0x7] }
 0x52d   :  { %v2045_v57 = vadd.f32 %v2044_v48, %v2002_v3  ;;  %v9315_v48 = vld [vmem:[%s13936_s4 + $0x3c4] sm:$0xf]  ;;  %v3430_v3 = vsel %vm1630_vm7, %v8467_v44, 0  ;;  %v9292_v44 = vld [vmem:[%s13936_s4 + $0x2fc] sm:$0xf] }
 0x52e   :  { %v8298_v37 = vor.u32 %v9315_v48, %v8295_v31  ;;  %3439 = vmatpush.bf16.msra.mxu1 %v3430_v3  ;;  %v8166_v3 = vld [vmem:[%s13936_s4 + $0x308] sm:$0xf0] }
 0x52f   :  { %v2088_v34 = vadd.f32 %v2087_v33, %v2045_v57  ;;  %v9285_v33 = vld [vmem:[%s13936_s4 + $0x2bc] sm:$0xf0] }
 0x530   :  { %v8125_v25 = vor.u32 %v9285_v33, %v8124_v11 }
 0x531   :  { %v2097_v61 = vpack.c.bf16 %v2088_v34, %v2088_v34  ;;  %v2746_v34 = vpack.c.b16 %v2718_v12, %v2718_v12 }
 0x532   :  { %v2003_v19 = vpop.f32.mrf.mxu3  ;;  %2373 = vmatmul.bf16.gmra.mxu3 %v8125_v25 }
 0x533   :  { %v11316_v19 = vpop.f32.mrf.mxu1 }
 0x538   :  { %2857 = vmatmul.bf16.gmra.mxu1 %v8282_v18  ;;  %v8157_v18 = vor.u32 %v9293_v52, %v8156_v32  ;;  %v8169_v52 = vor.u32 %v9292_v44, %v8166_v3 }
 0x53b   :  { %8063 = vmatmul.msk.bf16.gmra.mxu2 %vm443_vm3, %v2097_v61  ;;  %v8134_v61 = vld [vmem:[%s13936_s4 + $0x2c8] sm:$0xf0]  ;;  %v11329_v33 = vpop.f32.mrf.mxu1 }
 0x542   :  { %2378 = vmatmul.bf16.gmra.mxu3 %v8141_v5 }
 0x543   :  { %v11347_v41 = vpop.f32.mrf.mxu1 }
 0x548   :  { %2862 = vmatmul.bf16.gmra.mxu1 %v8298_v37  ;;  %v8366_v37 = vld [vmem:[%s13936_s4 + $0x410] sm:$0xf] }
 0x54b   :  { %8186 = vmatmul.msk.bf16.vlgmr.msrb.gmra.mxu2 %vm1048_vm8, %v8105_v4  ;;  %v9297_v4 = vld [vmem:[%s13936_s4 + $0x31c] sm:$0xf0] }
 0x54c   :  { %3270 = vmatpush.bf16.msrb.mxu2 %v10138_v56  ;;  %v8173_v29 = vor.u32 %v9297_v4, %v8172_v0  ;;  %v2407_v0 = vpop.f32.mrf.mxu0  ;;  %v2284_v4 = vunpack.c.h.b16 %v11202_v53  ;;  %v8237_v53 = vld [vmem:[%s13936_s4 + $0x348] sm:$0xf] }
 0x550   :  { %3271 = vmatpush.bf16.msrb.mxu2 %v10156_v6 }
 0x552   :  { %2383 = vmatmul.bf16.gmra.mxu3 %v8157_v18 }
 0x554   :  { %3272 = vmatpush.bf16.msrb.mxu2 %v10178_v28 }
 0x558   :  { %2867 = vmatmul.bf16.gmra.mxu1 %v8314_v14  ;;  %3273 = vmatpush.bf16.msrb.mxu2 %v10201_v46 }
 0x55b   :  { %8187 = vmatmul.msk.bf16.gmra.mxu2 %vm1048_vm8, %v8121_v26 }
 0x55c   :  { %3274 = vmatpush.bf16.msrb.mxu2 %v10224_v43 }
 0x55e   :  { %v2133_v45 = vpop.f32.mrf.mxu2 }
 0x55f   :  { %v11307_v57 = vadd.f32 %v2133_v45, %v11043_v15  ;;  %v9284_v15 = vld [vmem:[%s13936_s4 + $0x2bc] sm:$0xf] }
 0x560   :  { %3275 = vmatpush.bf16.msrb.mxu2 %v10247_v47  ;;  %v8137_v11 = vor.u32 %v9284_v15, %v8134_v61  ;;  %v9296_v15 = vld [vmem:[%s13936_s4 + $0x31c] sm:$0xf]  ;;  %v8182_v61 = vld [vmem:[%s13936_s4 + $0x328] sm:$0xf0] }
 0x562   :  { %2388 = vmatmul.bf16.gmra.mxu3 %v8173_v29  ;;  %v1733_v29 = vadd.f32 %v11093_v63, %v11143_v16  ;;  %v9302_v63 = vld [vmem:[%s13936_s4 + $0x354] sm:$0xf0]  ;;  %v1738_v16 = vadd.f32 %v11112_v22, %v11163_v51  ;;  %v8253_v22 = vld [vmem:[%s13936_s4 + $0x368] sm:$0xf] }
 0x563   :  { %v9306_v51 = vld [vmem:[%s13936_s4 + $0x374] sm:$0xf0] }
 0x564   :  { %3276 = vmatpush.bf16.msrb.mxu2 %v14027_v58 }
 0x566   :  { %v2135_v48 = vpop.f32.mrf.mxu2 }
 0x567   :  { %v11326_v31 = vadd.f32 %v2135_v48, %v11063_v35  ;;  %v9325_v35 = vld [vmem:[%s13936_s4 + $0x41c] sm:$0xf0] }
 0x568   :  { %2872 = vmatmul.bf16.gmra.mxu1 %v2746_v34  ;;  %3277 = vmatpush.bf16.msrb.mxu2 %v14028_v38  ;;  %v8367_v30 = vor.u32 %v9325_v35, %v8366_v37  ;;  %v2364_v35 = vpop.f32.mrf.mxu3 }
 0x56b   :  { %8188 = vmatmul.msk.bf16.gmra.mxu2 %vm1048_vm8, %v8137_v11 }
 0x56e   :  { %v2138_v25 = vpop.f32.mrf.mxu2 }
 0x56f   :  { %v11336_v9 = vadd.f32 %v2138_v25, %v11066_v23  ;;  %v9288_v23 = vld [vmem:[%s13936_s4 + $0x2dc] sm:$0xf]  ;;  %v8185_v25 = vor.u32 %v9296_v15, %v8182_v61 }
 0x570   :  { %v8153_v50 = vor.u32 %v9288_v23, %v8150_v8  ;;  %v2312_v23 = vpack.c.b16 %v2284_v4, %v2284_v4  ;;  %v2409_v8 = vpop.f32.mrf.mxu0 }
 0x576   :  { %v2140_v5 = vpop.f32.mrf.mxu2 }
 0x577   :  { %v11356_v14 = vadd.f32 %v2140_v5, %v11088_v1  ;;  %v9432_v1 = vld [vmem:[%s13936_s4 + $0x330] sm:$0x11] }
 0x578   :  { %3235 = vmatmul.bf16.vlgmr.msrb.gmra.mxu1 %v8367_v30  ;;  %v2281_v12 = vunpack.c.l.b16 %v9432_v1 }
 0x579   :  { %3799 = vmatpush.bf16.msrb.mxu1 %v10300_v7 }
 0x57b   :  { %8189 = vmatmul.msk.bf16.gmra.mxu2 %vm1048_vm8, %v8153_v50 }
 0x57e   :  { %v2143_v60 = vpop.f32.mrf.mxu2 }
 0x57f   :  { %v11361_v26 = vadd.f32 %v2143_v60, %v11091_v40  ;;  %v2309_v40 = vpack.c.b16 %v2281_v12, %v2281_v12 }
 0x581   :  { %2393 = vmatmul.bf16.gmra.mxu3 %v2309_v40 }
 0x586   :  { %v2145_v45 = vpop.f32.mrf.mxu2 }
 0x587   :  { %v11373_v32 = vadd.f32 %v2145_v45, %v11104_v21  ;;  %v1728_v21 = vadd.f32 %v11068_v62, %v11126_v54  ;;  %v2366_v54 = vpop.f32.mrf.mxu3  ;;  %v8238_v45 = vor.u32 %v9302_v63, %v8237_v53  ;;  %v14039_v63 = vld [vmem:[#allocation5_spill] sm:$0xff] }
 0x58b   :  { %8190 = vmatmul.msk.bf16.gmra.mxu2 %vm1048_vm8, %v8169_v52 }
 0x58e   :  { %v2148_v18 = vpop.f32.mrf.mxu2 }
 0x58f   :  { %v11377_v34 = vadd.f32 %v2148_v18, %v11110_v55  ;;  %v14035_v18 = vld [vmem:[#allocation13_spill] sm:$0xff] }
 0x596   :  { %v2150_v48 = vpop.f32.mrf.mxu2 }
 0x597   :  { %v11387_v11 = vadd.f32 %v2150_v48, %v1728_v21  ;;  %v8254_v21 = vor.u32 %v9306_v51, %v8253_v22  ;;  %v14036_v48 = vld [vmem:[#allocation11_spill] sm:$0xff] }
 0x59b   :  { %8191 = vmatmul.msk.bf16.gmra.mxu2 %vm1048_vm8, %v8185_v25  ;;  %v14037_v25 = vld [vmem:[#allocation9_spill] sm:$0xff] }
 0x59e   :  { %v2153_v37 = vpop.f32.mrf.mxu2 }
 0x59f   :  { %v11391_v55 = vadd.f32 %v2153_v37, %v11133_v42  ;;  %v2412_v42 = vpop.f32.mrf.mxu0 }
 0x5a1   :  { %v2369_v60 = vpop.f32.mrf.mxu3 }
 0x5a6   :  { %v2155_v30 = vpop.f32.mrf.mxu2 }
 0x5a7   :  { %v11396_v62 = vadd.f32 %v2155_v30, %v1733_v29  ;;  %v2414_v1 = vpop.f32.mrf.mxu0  ;;  %v2408_v29 = vadd.f32 %v2407_v0, %v2364_v35  ;;  %v14038_v30 = vld [vmem:[#allocation7_spill] sm:$0xff] }
 0x5a9   :  { %v2451_v53 = vadd.f32 %v11259_v59, %v2408_v29  ;;  %v14040_v59 = vld [vmem:[#allocation16_spill] sm:$0xff] }
 0x5ab   :  { %8192 = vmatmul.msk.bf16.gmra.mxu2 %vm1048_vm8, %v2312_v23  ;;  %v2410_v23 = vadd.f32 %v2409_v8, %v2366_v54 }
 0x5ad   :  { %v2453_v35 = vadd.f32 %v11269_v17, %v2410_v23 }
 0x5ae   :  { %v2158_v5 = vpop.f32.mrf.mxu2 }
 0x5af   :  { %v11400_v50 = vadd.f32 %v2158_v5, %v11147_v2  ;;  %v2371_v2 = vpop.f32.mrf.mxu3  ;;  %v2417_v40 = vpop.f32.mrf.mxu0 }
 0x5b0   :  { %v2415_v17 = vadd.f32 %v2414_v1, %v2371_v2 }
 0x5b6   :  { %v2160_v44 = vpop.f32.mrf.mxu2 }
 0x5b7   :  { %v11410_v3 = vadd.f32 %v2160_v44, %v1738_v16  ;;  %v2374_v15 = vpop.f32.mrf.mxu3  ;;  %v8269_v16 = vld [vmem:[%s13936_s4 + $0x388] sm:$0xf]  ;;  %v9310_v44 = vld [vmem:[%s13936_s4 + $0x394] sm:$0xf0] }
 0x5b8   :  { %v8270_v22 = vor.u32 %v9310_v44, %v8269_v16  ;;  %v9314_v16 = vld [vmem:[%s13936_s4 + $0x3b4] sm:$0xf0]  ;;  %v2458_v44 = vadd.f32 %v11316_v19, %v2415_v17 }
 0x5bb   :  { %2885 = vmatmul.bf16.vlgmr.msra.gmra.mxu2 %v8238_v45  ;;  %v11437_v45 = vpop.f32.mrf.mxu1 }
 0x5bc   :  { %3663 = vmatpush.bf16.msra.mxu2 %v10133_v49 }
 0x5be   :  { %v2163_v12 = vpop.f32.mrf.mxu2 }
 0x5bf   :  { %v11414_v52 = vadd.f32 %v2163_v12, %v11167_v27  ;;  %v2419_v27 = vpop.f32.mrf.mxu0  ;;  %v2376_v37 = vpop.f32.mrf.mxu3 }
 0x5c0   :  { %3664 = vmatpush.bf16.msra.mxu2 %v10153_v36  ;;  %v2420_v19 = vadd.f32 %v2419_v27, %v2376_v37  ;;  %v14045_v37 = vld [vmem:[#allocation18_spill] sm:$0xff] }
 0x5c4   :  { %3665 = vmatpush.bf16.msra.mxu2 %v14035_v18 }
 0x5c6   :  { %v2165_v61 = vpop.f32.mrf.mxu2 }
 0x5c7   :  { %v11427_v5 = vpop.f32.mrf.mxu0  ;;  %v2379_v0 = vpop.f32.mrf.mxu3 }
 0x5c8   :  { %3666 = vmatpush.bf16.msra.mxu2 %v14036_v48 }
 0x5cb   :  { %2890 = vmatmul.bf16.gmra.mxu2 %v8254_v21  ;;  %v2467_v21 = vpop.f32.mrf.mxu1 }
 0x5cc   :  { %3667 = vmatpush.bf16.msra.mxu2 %v14037_v25  ;;  %v14041_v25 = vld [vmem:[#allocation12_spill] sm:$0xff] }
 0x5ce   :  { %v2493_v4 = vpop.f32.mrf.mxu2 }
 0x5cf   :  { %v2494_v8 = vadd.f32 %v2493_v4, %v2451_v53  ;;  %v2424_v61 = vpop.f32.mrf.mxu0  ;;  %v2381_v29 = vpop.f32.mrf.mxu3  ;;  %v8285_v53 = vld [vmem:[%s13936_s4 + $0x3a8] sm:$0xf] }
 0x5d0   :  { %3668 = vmatpush.bf16.msra.mxu2 %v14038_v30  ;;  %v2413_v30 = vadd.f32 %v2412_v42, %v2369_v60  ;;  %v8286_v1 = vor.u32 %v9314_v16, %v8285_v53  ;;  %v8301_v53 = vld [vmem:[%s13936_s4 + $0x3c8] sm:$0xf]  ;;  %v9318_v16 = vld [vmem:[%s13936_s4 + $0x3d4] sm:$0xf0] }
 0x5d2   :  { %v2456_v4 = vadd.f32 %v11291_v39, %v2413_v30  ;;  %v14042_v30 = vld [vmem:[#allocation8_spill] sm:$0xff] }
 0x5d4   :  { %3669 = vmatpush.bf16.msra.mxu2 %v14039_v63 }
 0x5d6   :  { %v2495_v54 = vpop.f32.mrf.mxu2 }
 0x5d7   :  { %v2496_v12 = vadd.f32 %v2495_v54, %v2453_v35  ;;  %v2427_v23 = vpop.f32.mrf.mxu0  ;;  %v2470_v35 = vpop.f32.mrf.mxu1 }
 0x5d8   :  { %3670 = vmatpush.bf16.msra.mxu2 %v14040_v59  ;;  %v2384_v2 = vpop.f32.mrf.mxu3 }
 0x5d9   :  { %v2527_v51 = vpack.c.bf16 %v2496_v12, %v2494_v8 }
 0x5db   :  { %8194 = vmatmul.msk.bf16.vlgmr.msrb.gmra.mxu3 %vm443_vm3, %v2527_v51  ;;  %2895 = vmatmul.bf16.gmra.mxu2 %v8270_v22  ;;  %v2418_v22 = vadd.f32 %v2417_v40, %v2374_v15 }
 0x5dc   :  { %3313 = vmatpush.bf16.msrb.mxu3 %v10149_v24 }
 0x5de   :  { %v2498_v63 = vpop.f32.mrf.mxu2 }
 0x5df   :  { %v2499_v60 = vadd.f32 %v2498_v63, %v2456_v4  ;;  %v2429_v8 = vpop.f32.mrf.mxu0  ;;  %v2472_v51 = vpop.f32.mrf.mxu1  ;;  %v2461_v63 = vadd.f32 %v11329_v33, %v2418_v22  ;;  %v14044_v4 = vld [vmem:[#allocation15_spill] sm:$0xff]  ;;  %v2423_v22 = vadd.f32 %v11427_v5, %v2379_v0 }
 0x5e0   :  { %3314 = vmatpush.bf16.msrb.mxu3 %v14041_v25  ;;  %v2386_v17 = vpop.f32.mrf.mxu3 }
 0x5e4   :  { %3315 = vmatpush.bf16.msrb.mxu3 %v10192_v10  ;;  %v14043_v10 = vld [vmem:[#allocation6_spill] sm:$0xff] }
 0x5e6   :  { %v2500_v42 = vpop.f32.mrf.mxu2 }
 0x5e7   :  { %v2501_v54 = vadd.f32 %v2500_v42, %v2458_v44  ;;  %v2463_v44 = vadd.f32 %v11347_v41, %v2420_v19  ;;  %v2432_v27 = vpop.f32.mrf.mxu0  ;;  %v2466_v41 = vadd.f32 %v11437_v45, %v2423_v22 }
 0x5e8   :  { %3316 = vmatpush.bf16.msrb.mxu3 %v10215_v20 }
 0x5e9   :  { %v2528_v39 = vpack.c.bf16 %v2501_v54, %v2499_v60  ;;  %v8302_v60 = vor.u32 %v9318_v16, %v8301_v53  ;;  %v2475_v54 = vpop.f32.mrf.mxu1 }
 0x5eb   :  { %8195 = vmatmul.msk.bf16.gmra.mxu3 %vm443_vm3, %v2528_v39  ;;  %2900 = vmatmul.bf16.gmra.mxu2 %v8286_v1  ;;  %v2389_v1 = vpop.f32.mrf.mxu3 }
 0x5ec   :  { %3317 = vmatpush.bf16.msrb.mxu3 %v14042_v30 }
 0x5ee   :  { %v2503_v12 = vpop.f32.mrf.mxu2 }
 0x5ef   :  { %v2504_v15 = vadd.f32 %v2503_v12, %v2461_v63  ;;  %v8317_v12 = vld [vmem:[%s13936_s4 + $0x3e8] sm:$0xf]  ;;  %v9322_v63 = vld [vmem:[%s13936_s4 + $0x3f4] sm:$0xf0] }
 0x5f0   :  { %3318 = vmatpush.bf16.msrb.mxu3 %v14043_v10  ;;  %v2434_v10 = vpop.f32.mrf.mxu0 }
 0x5f1   :  { %v2477_v19 = vpop.f32.mrf.mxu1 }
 0x5f3   :  { %v2391_v16 = vpop.f32.mrf.mxu3 }
 0x5f4   :  { %3319 = vmatpush.bf16.msrb.mxu3 %v14044_v4  ;;  %v2425_v4 = vadd.f32 %v2424_v61, %v2381_v29 }
 0x5f6   :  { %v2505_v40 = vpop.f32.mrf.mxu2  ;;  %v2468_v53 = vadd.f32 %v2467_v21, %v2425_v4  ;;  %v2430_v21 = vadd.f32 %v2429_v8, %v2386_v17  ;;  %v8368_v8 = vld [vmem:[%s13936_s4 + $0x420] sm:$0xf0] }
 0x5f7   :  { %v2506_v42 = vadd.f32 %v2505_v40, %v2463_v44 }
 0x5f8   :  { %3320 = vmatpush.bf16.msrb.mxu3 %v14045_v37  ;;  %v2437_v0 = vpop.f32.mrf.mxu0 }
 0x5f9   :  { %v2529_v33 = vpack.c.bf16 %v2506_v42, %v2504_v15  ;;  %v8318_v42 = vor.u32 %v9322_v63, %v8317_v12  ;;  %v2480_v45 = vpop.f32.mrf.mxu1  ;;  %v2473_v12 = vadd.f32 %v2472_v51, %v2430_v21 }
 0x5fb   :  { %8196 = vmatmul.msk.bf16.gmra.mxu3 %vm443_vm3, %v2529_v33  ;;  %2905 = vmatmul.bf16.gmra.mxu2 %v8302_v60  ;;  %v2428_v60 = vadd.f32 %v2427_v23, %v2384_v2  ;;  %v11480_v33 = vld [vmem:[%s13936_s4 + $0x408] sm:$0x11]  ;;  %v2433_v2 = vadd.f32 %v2432_v27, %v2389_v1  ;;  %v9327_v1 = vld [vmem:[%s13936_s4 + $0x434] sm:$0xf] }
 0x5fd   :  { %v2471_v22 = vadd.f32 %v2470_v35, %v2428_v60  ;;  %v2476_v37 = vadd.f32 %v2475_v54, %v2433_v2  ;;  %v9323_v35 = vld [vmem:[%s13936_s4 + $0x414] sm:$0xf]  ;;  %v8277_v2 = vld [vmem:[%s13936_s4 + $0x3a0] sm:$0xf] }
 0x5fe   :  { %v2508_v39 = vpop.f32.mrf.mxu2  ;;  %v8371_v21 = vor.u32 %v9323_v35, %v8368_v8  ;;  %v9304_v35 = vld [vmem:[%s13936_s4 + $0x36c] sm:$0xf] }
 0x5ff   :  { %v2509_v40 = vadd.f32 %v2508_v39, %v2466_v41  ;;  %v2719_v39 = vunpack.c.l.b16 %v11480_v33 }
 0x600   :  { %v2439_v4 = vpop.f32.mrf.mxu0 }
 0x601   :  { %v2482_v41 = vpop.f32.mrf.mxu1 }
 0x602   :  { %v9300_v41 = vld [vmem:[%s13936_s4 + $0x34c] sm:$0xf] }
 0x604   :  { %v2394_v61 = vpop.f32.mrf.mxu3 }
 0x606   :  { %v2510_v44 = vpop.f32.mrf.mxu2 }
 0x607   :  { %v2511_v15 = vadd.f32 %v2510_v44, %v2468_v53 }
 0x609   :  { %v2530_v5 = vpack.c.bf16 %v2511_v15, %v2509_v40  ;;  %v2747_v15 = vpack.c.b16 %v2719_v39, %v2719_v39 }
 0x60b   :  { %8197 = vmatmul.msk.bf16.gmra.mxu3 %vm443_vm3, %v2530_v5  ;;  %2910 = vmatmul.bf16.gmra.mxu2 %v8318_v42  ;;  %v2435_v5 = vadd.f32 %v2434_v10, %v2391_v16  ;;  %v9305_v16 = vld [vmem:[%s13936_s4 + $0x36c] sm:$0xf0] }
 0x60c   :  { %v2396_v63 = vpop.f32.mrf.mxu3 }
 0x60d   :  { %v2478_v51 = vadd.f32 %v2477_v19, %v2435_v5  ;;  %v8384_v19 = vld [vmem:[%s13936_s4 + $0x440] sm:$0xf0]  ;;  %v9331_v63 = vld [vmem:[%s13936_s4 + $0x454] sm:$0xf]  ;;  %v9313_v5 = vld [vmem:[%s13936_s4 + $0x3ac] sm:$0xf0] }
 0x60e   :  { %v2513_v29 = vpop.f32.mrf.mxu2  ;;  %v8387_v39 = vor.u32 %v9327_v1, %v8384_v19  ;;  %v8278_v8 = vor.u32 %v9313_v5, %v8277_v2  ;;  %v9339_v19 = vld [vmem:[%s13936_s4 + $0x494] sm:$0xf] }
 0x60f   :  { %v2514_v44 = vadd.f32 %v2513_v29, %v2471_v22  ;;  %v2438_v22 = vadd.f32 %v2437_v0, %v2394_v61 }
 0x611   :  { %v2481_v27 = vadd.f32 %v2480_v45, %v2438_v22 }
 0x616   :  { %v2515_v53 = vpop.f32.mrf.mxu2 }
 0x617   :  { %v2516_v40 = vadd.f32 %v2515_v53, %v2473_v12  ;;  %v8239_v12 = vld [vmem:[%s13936_s4 + $0x358] sm:$0xf0]  ;;  %v8400_v53 = vld [vmem:[%s13936_s4 + $0x460] sm:$0xf0] }
 0x619   :  { %v2531_v42 = vpack.c.bf16 %v2516_v40, %v2514_v44  ;;  %v8261_v44 = vld [vmem:[%s13936_s4 + $0x380] sm:$0xf]  ;;  %v9309_v40 = vld [vmem:[%s13936_s4 + $0x38c] sm:$0xf0] }
 0x61b   :  { %8198 = vmatmul.msk.bf16.gmra.mxu3 %vm443_vm3, %v2531_v42  ;;  %2915 = vmatmul.bf16.gmra.mxu2 %v2747_v15  ;;  %v8262_v15 = vor.u32 %v9309_v40, %v8261_v44  ;;  %v8242_v42 = vor.u32 %v9300_v41, %v8239_v12  ;;  %v9312_v44 = vld [vmem:[%s13936_s4 + $0x3ac] sm:$0xf] }
 0x61e   :  { %v2518_v23 = vpop.f32.mrf.mxu2 }
 0x61f   :  { %v2519_v29 = vadd.f32 %v2518_v23, %v2476_v37  ;;  %v8245_v37 = vld [vmem:[%s13936_s4 + $0x360] sm:$0xf]  ;;  %v8403_v23 = vor.u32 %v9331_v63, %v8400_v53 }
 0x620   :  { %v8246_v0 = vor.u32 %v9305_v16, %v8245_v37  ;;  %v8432_v37 = vld [vmem:[%s13936_s4 + $0x4a0] sm:$0xf0]  ;;  %v8309_v63 = vld [vmem:[%s13936_s4 + $0x3e0] sm:$0xf] }
 0x622   :  { %2804 = vmatmul.bf16.gmra.mxu0 %v8246_v0 }
 0x626   :  { %v2520_v17 = vpop.f32.mrf.mxu2 }
 0x627   :  { %v2521_v60 = vadd.f32 %v2520_v17, %v2478_v51  ;;  %v8255_v51 = vld [vmem:[%s13936_s4 + $0x378] sm:$0xf0]  ;;  %v9335_v17 = vld [vmem:[%s13936_s4 + $0x474] sm:$0xf] }
 0x629   :  { %v2532_v4 = vpack.c.bf16 %v2521_v60, %v2519_v29  ;;  %v8416_v29 = vld [vmem:[%s13936_s4 + $0x480] sm:$0xf0]  ;;  %v8258_v60 = vor.u32 %v9304_v35, %v8255_v51 }
 0x62b   :  { %8199 = vmatmul.msk.bf16.gmra.mxu3 %vm443_vm3, %v2532_v4  ;;  %3278 = vmatmul.bf16.vlgmr.msrb.gmra.mxu2 %v8371_v21  ;;  %v8419_v21 = vor.u32 %v9335_v17, %v8416_v29 }
 0x62e   :  { %v2523_v10 = vpop.f32.mrf.mxu2 }
 0x62f   :  { %v2524_v54 = vadd.f32 %v2523_v10, %v2481_v27  ;;  %v8293_v10 = vld [vmem:[%s13936_s4 + $0x3c0] sm:$0xf]  ;;  %v9317_v27 = vld [vmem:[%s13936_s4 + $0x3cc] sm:$0xf0] }
 0x630   :  { %v8294_v1 = vor.u32 %v9317_v27, %v8293_v10  ;;  %v8303_v10 = vld [vmem:[%s13936_s4 + $0x3d8] sm:$0xf0] }
 0x631   :  { %v2533_v45 = vpack.c.bf16 %v2524_v54, %v2524_v54  ;;  %v9308_v54 = vld [vmem:[%s13936_s4 + $0x38c] sm:$0xf] }
 0x632   :  { %2809 = vmatmul.bf16.gmra.mxu0 %v8262_v15  ;;  %v9343_v15 = vld [vmem:[%s13936_s4 + $0x4b4] sm:$0xf] }
 0x636   :  { %v2525_v61 = vpop.f32.mrf.mxu2 }
 0x63b   :  { %8200 = vmatmul.msk.bf16.gmra.mxu3 %vm443_vm3, %v2533_v45  ;;  %3283 = vmatmul.bf16.gmra.mxu2 %v8387_v39  ;;  %v8435_v45 = vor.u32 %v9339_v19, %v8432_v37  ;;  %v2717_v19 = vunpack.c.l.b16 %v11302_v13  ;;  %v8503_v13 = vld [vmem:[%s13936_s4 + $0x4e0] sm:$0xf] }
 0x63d   :  { %v2745_v37 = vpack.c.b16 %v2717_v19, %v2717_v19 }
 0x63e   :  { %v11573_v39 = vpop.f32.mrf.mxu2 }
 0x642   :  { %2814 = vmatmul.bf16.gmra.mxu0 %v8278_v8  ;;  %v8604_v8 = vld [vmem:[%s13937_s5 + $0x18] sm:$0x7] }
 0x643   :  { %v3866_v51 = vsel %vm1630_vm7, %v8604_v8, 0 }
 0x644   :  { %3875 = vmatpush.bf16.msrb.mxu2 %v3866_v51 }
 0x646   :  { %v11586_v53 = vpop.f32.mrf.mxu2 }
 0x64b   :  { %8323 = vmatmul.msk.bf16.vlgmr.msra.gmra.mxu3 %vm1048_vm8, %v8242_v42  ;;  %3288 = vmatmul.bf16.gmra.mxu2 %v8403_v23  ;;  %v8448_v42 = vld [vmem:[%s13936_s4 + $0x4c0] sm:$0xf0] }
 0x64c   :  { %3706 = vmatpush.bf16.msra.mxu3 %v10138_v56  ;;  %v8451_v35 = vor.u32 %v9343_v15, %v8448_v42 }
 0x64e   :  { %v11608_v17 = vpop.f32.mrf.mxu2 }
 0x650   :  { %3707 = vmatpush.bf16.msra.mxu3 %v10156_v6 }
 0x652   :  { %2819 = vmatmul.bf16.gmra.mxu0 %v8294_v1 }
 0x654   :  { %3708 = vmatpush.bf16.msra.mxu3 %v10178_v28 }
 0x656   :  { %v11625_v27 = vpop.f32.mrf.mxu2 }
 0x658   :  { %3709 = vmatpush.bf16.msra.mxu3 %v10201_v46 }
 0x65b   :  { %8324 = vmatmul.msk.bf16.gmra.mxu3 %vm1048_vm8, %v8258_v60  ;;  %3293 = vmatmul.bf16.gmra.mxu2 %v8419_v21 }
 0x65c   :  { %3710 = vmatpush.bf16.msra.mxu3 %v10224_v43 }
 0x65e   :  { %v2569_v4 = vpop.f32.mrf.mxu3 }
 0x65f   :  { %v11548_v22 = vadd.f32 %v2569_v4, %v11307_v57  ;;  %v8271_v57 = vld [vmem:[%s13936_s4 + $0x398] sm:$0xf0]  ;;  %v9316_v4 = vld [vmem:[%s13936_s4 + $0x3cc] sm:$0xf] }
 0x660   :  { %3711 = vmatpush.bf16.msra.mxu3 %v10247_v47  ;;  %v8274_v61 = vor.u32 %v9308_v54, %v8271_v57  ;;  %v8306_v1 = vor.u32 %v9316_v4, %v8303_v10 }
 0x664   :  { %3712 = vmatpush.bf16.msra.mxu3 %v14027_v58 }
 0x666   :  { %v2571_v16 = vpop.f32.mrf.mxu3 }
 0x667   :  { %v11571_v0 = vadd.f32 %v2571_v16, %v11326_v31  ;;  %v9321_v31 = vld [vmem:[%s13936_s4 + $0x3ec] sm:$0xf0] }
 0x668   :  { %3713 = vmatpush.bf16.msra.mxu3 %v14028_v38  ;;  %v8310_v40 = vor.u32 %v9321_v31, %v8309_v63 }
 0x66a   :  { %2824 = vmatmul.bf16.gmra.mxu0 %v8310_v40 }
 0x66b   :  { %8325 = vmatmul.msk.bf16.gmra.mxu3 %vm1048_vm8, %v8274_v61  ;;  %3298 = vmatmul.bf16.gmra.mxu2 %v8435_v45  ;;  %v11635_v45 = vpop.f32.mrf.mxu2 }
 0x66e   :  { %v2574_v41 = vpop.f32.mrf.mxu3 }
 0x66f   :  { %v11578_v12 = vadd.f32 %v2574_v41, %v11336_v9  ;;  %v8287_v9 = vld [vmem:[%s13936_s4 + $0x3b8] sm:$0xf0] }
 0x670   :  { %v8290_v5 = vor.u32 %v9312_v44, %v8287_v9  ;;  %v8319_v41 = vld [vmem:[%s13936_s4 + $0x3f8] sm:$0xf0] }
 0x673   :  { %v11652_v9 = vpop.f32.mrf.mxu2 }
 0x676   :  { %v2576_v23 = vpop.f32.mrf.mxu3 }
 0x677   :  { %v11601_v2 = vadd.f32 %v2576_v23, %v11356_v14  ;;  %v11616_v14 = vld [vmem:[%s13936_s4 + $0x4d0] sm:$0x11]  ;;  %v2800_v23 = vpop.f32.mrf.mxu0 }
 0x678   :  { %v3154_v21 = vunpack.c.h.b16 %v11616_v14 }
 0x67a   :  { %v3182_v57 = vpack.c.b16 %v3154_v21, %v3154_v21  ;;  %2829 = vmatmul.bf16.gmra.mxu0 %v2745_v37 }
 0x67b   :  { %8326 = vmatmul.msk.bf16.gmra.mxu3 %vm1048_vm8, %v8290_v5  ;;  %3303 = vmatmul.bf16.gmra.mxu2 %v8451_v35  ;;  %v2843_v5 = vpop.f32.mrf.mxu1  ;;  %v2720_v35 = vunpack.c.h.b16 %v11480_v33  ;;  %v9326_v33 = vld [vmem:[%s13936_s4 + $0x424] sm:$0xf0] }
 0x67e   :  { %v2579_v29 = vpop.f32.mrf.mxu3 }
 0x67f   :  { %v11611_v60 = vadd.f32 %v2579_v29, %v11361_v26  ;;  %v2802_v21 = vpop.f32.mrf.mxu0 }
 0x683   :  { %v2845_v29 = vpop.f32.mrf.mxu1 }
 0x686   :  { %v2581_v54 = vpop.f32.mrf.mxu3 }
 0x687   :  { %v11628_v26 = vadd.f32 %v2581_v54, %v11373_v32  ;;  %v9320_v32 = vld [vmem:[%s13936_s4 + $0x3ec] sm:$0xf] }
 0x688   :  { %v8322_v44 = vor.u32 %v9320_v32, %v8319_v41 }
 0x68b   :  { %8327 = vmatmul.msk.bf16.gmra.mxu3 %vm1048_vm8, %v8306_v1  ;;  %3308 = vmatmul.bf16.gmra.mxu2 %v3182_v57  ;;  %v2848_v54 = vpop.f32.mrf.mxu1 }
 0x68e   :  { %v2584_v16 = vpop.f32.mrf.mxu3 }
 0x68f   :  { %v11633_v61 = vadd.f32 %v2584_v16, %v11377_v34  ;;  %v9349_v34 = vld [vmem:[%s13936_s4 + $0x4ec] sm:$0xf0] }
 0x690   :  { %v8504_v40 = vor.u32 %v9349_v34, %v8503_v13  ;;  %v9330_v13 = vld [vmem:[%s13936_s4 + $0x444] sm:$0xf0] }
 0x693   :  { %v2850_v37 = vpop.f32.mrf.mxu1 }
 0x696   :  { %v2586_v63 = vpop.f32.mrf.mxu3 }
 0x697   :  { %v11650_v31 = vadd.f32 %v2586_v63, %v11387_v11  ;;  %v2748_v11 = vpack.c.b16 %v2720_v35, %v2720_v35 }
 0x699   :  { %14046 = vst [vmem:[#allocation14_spill] sm:$0xff] %v11650_v31 }
 0x69b   :  { %8328 = vmatmul.msk.bf16.gmra.mxu3 %vm1048_vm8, %v8322_v44  ;;  %3671 = vmatmul.bf16.vlgmr.msra.gmra.mxu2 %v8504_v40  ;;  %v2853_v41 = vpop.f32.mrf.mxu1  ;;  %v14049_v40 = vld [vmem:[#allocation9_spill] sm:$0xff] }
 0x69c   :  { %4235 = vmatpush.bf16.msra.mxu2 %v10300_v7 }
 0x69e   :  { %v2589_v15 = vpop.f32.mrf.mxu3 }
 0x69f   :  { %v11657_v42 = vadd.f32 %v2589_v15, %v11391_v55  ;;  %v8374_v55 = vld [vmem:[%s13936_s4 + $0x418] sm:$0xf]  ;;  %v2805_v1 = vpop.f32.mrf.mxu0 }
 0x6a0   :  { %v8375_v19 = vor.u32 %v9326_v33, %v8374_v55  ;;  %v2849_v31 = vadd.f32 %v2848_v54, %v2805_v1 }
 0x6a6   :  { %v2591_v8 = vpop.f32.mrf.mxu3 }
 0x6a7   :  { %v11661_v51 = vadd.f32 %v2591_v8, %v11396_v62  ;;  %v2844_v8 = vadd.f32 %v2843_v5, %v2800_v23 }
 0x6a9   :  { %14047 = vst [vmem:[#allocation17_spill] sm:$0xff] %v11661_v51  ;;  %v2887_v33 = vadd.f32 %v11573_v39, %v2844_v8 }
 0x6ab   :  { %8329 = vmatmul.msk.bf16.gmra.mxu3 %vm1048_vm8, %v2748_v11  ;;  %v14050_v11 = vld [vmem:[#allocation7_spill] sm:$0xff] }
 0x6ae   :  { %v2594_v4 = vpop.f32.mrf.mxu3 }
 0x6af   :  { %v11665_v10 = vadd.f32 %v2594_v4, %v11400_v50  ;;  %v2807_v50 = vpop.f32.mrf.mxu0  ;;  %v2846_v4 = vadd.f32 %v2845_v29, %v2802_v21 }
 0x6b1   :  { %v2889_v23 = vadd.f32 %v11586_v53, %v2846_v4  ;;  %v2851_v53 = vadd.f32 %v2850_v37, %v2807_v50 }
 0x6b6   :  { %v2596_v62 = vpop.f32.mrf.mxu3 }
 0x6b7   :  { %v11674_v57 = vadd.f32 %v2596_v62, %v11410_v3  ;;  %v8390_v3 = vld [vmem:[%s13936_s4 + $0x438] sm:$0xf]  ;;  %v2810_v34 = vpop.f32.mrf.mxu0  ;;  %v14051_v62 = vld [vmem:[#allocation5_spill] sm:$0xff] }
 0x6b8   :  { %v8391_v44 = vor.u32 %v9330_v13, %v8390_v3  ;;  %v2901_v13 = vpop.f32.mrf.mxu2 }
 0x6b9   :  { %14048 = vst [vmem:[#allocation19_spill] sm:$0xff] %v11674_v57 }
 0x6bb   :  { %3321 = vmatmul.bf16.vlgmr.msrb.gmra.mxu3 %v8375_v19  ;;  %v8406_v19 = vld [vmem:[%s13936_s4 + $0x458] sm:$0xf] }
 0x6bc   :  { %4099 = vmatpush.bf16.msrb.mxu3 %v10133_v49 }
 0x6be   :  { %v2599_v16 = vpop.f32.mrf.mxu3 }
 0x6bf   :  { %v11678_v32 = vadd.f32 %v2599_v16, %v11414_v52  ;;  %v2855_v52 = vpop.f32.mrf.mxu1  ;;  %v2812_v15 = vpop.f32.mrf.mxu0  ;;  %v9334_v16 = vld [vmem:[%s13936_s4 + $0x464] sm:$0xf0] }
 0x6c0   :  { %4100 = vmatpush.bf16.msrb.mxu3 %v10153_v36  ;;  %v2903_v57 = vpop.f32.mrf.mxu2 }
 0x6c4   :  { %4101 = vmatpush.bf16.msrb.mxu3 %v14035_v18 }
 0x6c6   :  { %v2601_v63 = vpop.f32.mrf.mxu3 }
 0x6c7   :  { %v11691_v55 = vpop.f32.mrf.mxu1  ;;  %v2815_v3 = vpop.f32.mrf.mxu0  ;;  %v8407_v63 = vor.u32 %v9334_v16, %v8406_v19  ;;  %v8422_v19 = vld [vmem:[%s13936_s4 + $0x478] sm:$0xf]  ;;  %v9338_v16 = vld [vmem:[%s13936_s4 + $0x484] sm:$0xf0] }
 0x6c8   :  { %4102 = vmatpush.bf16.msrb.mxu3 %v14036_v48  ;;  %v8423_v50 = vor.u32 %v9338_v16, %v8422_v19  ;;  %v8438_v19 = vld [vmem:[%s13936_s4 + $0x498] sm:$0xf]  ;;  %v9342_v16 = vld [vmem:[%s13936_s4 + $0x4a4] sm:$0xf0] }
 0x6cb   :  { %3326 = vmatmul.bf16.gmra.mxu3 %v8391_v44 }
 0x6cc   :  { %4103 = vmatpush.bf16.msrb.mxu3 %v14049_v40 }
 0x6ce   :  { %v2929_v35 = vpop.f32.mrf.mxu3 }
 0x6cf   :  { %v2930_v29 = vadd.f32 %v2929_v35, %v2887_v33  ;;  %v2860_v44 = vpop.f32.mrf.mxu1  ;;  %v2817_v8 = vpop.f32.mrf.mxu0  ;;  %v2892_v35 = vadd.f32 %v11608_v17, %v2849_v31  ;;  %v14052_v33 = vld [vmem:[#allocation10_spill] sm:$0xff] }
 0x6d0   :  { %4104 = vmatpush.bf16.msrb.mxu3 %v14050_v11 }
 0x6d4   :  { %4105 = vmatpush.bf16.msrb.mxu3 %v14051_v62 }
 0x6d6   :  { %v2931_v5 = vpop.f32.mrf.mxu3 }
 0x6d7   :  { %v2932_v21 = vadd.f32 %v2931_v5, %v2889_v23  ;;  %v2863_v4 = vpop.f32.mrf.mxu1  ;;  %v2894_v23 = vadd.f32 %v11625_v27, %v2851_v53  ;;  %v2906_v5 = vpop.f32.mrf.mxu2  ;;  %v2856_v53 = vadd.f32 %v2855_v52, %v2812_v15  ;;  %v14055_v52 = vld [vmem:[#allocation18_spill] sm:$0xff] }
 0x6d8   :  { %4106 = vmatpush.bf16.msrb.mxu3 %v14040_v59  ;;  %v2820_v1 = vpop.f32.mrf.mxu0 }
 0x6d9   :  { %v2963_v39 = vpack.c.bf16 %v2932_v21, %v2930_v29 }
 0x6db   :  { %8331 = vmatmul.msk.bf16.vlgmr.msra.gmra.mxu0 %vm443_vm3, %v2963_v39  ;;  %3331 = vmatmul.bf16.gmra.mxu3 %v8407_v63  ;;  %v2854_v63 = vadd.f32 %v2853_v41, %v2810_v34 }
 0x6dc   :  { %3749 = vmatpush.bf16.msra.mxu0 %v10149_v24 }
 0x6de   :  { %v2934_v51 = vpop.f32.mrf.mxu3 }
 0x6df   :  { %v2935_v29 = vadd.f32 %v2934_v51, %v2892_v35  ;;  %v2865_v31 = vpop.f32.mrf.mxu1  ;;  %v2908_v39 = vpop.f32.mrf.mxu2  ;;  %v2897_v51 = vadd.f32 %v11635_v45, %v2854_v63  ;;  %v14054_v35 = vld [vmem:[#allocation15_spill] sm:$0xff]  ;;  %v2859_v63 = vadd.f32 %v11691_v55, %v2815_v3 }
 0x6e0   :  { %3750 = vmatpush.bf16.msra.mxu0 %v14041_v25  ;;  %v2822_v27 = vpop.f32.mrf.mxu0 }
 0x6e4   :  { %3751 = vmatpush.bf16.msra.mxu0 %v14052_v33  ;;  %v14053_v33 = vld [vmem:[#allocation6_spill] sm:$0xff] }
 0x6e6   :  { %v2936_v54 = vpop.f32.mrf.mxu3 }
 0x6e7   :  { %v2937_v37 = vadd.f32 %v2936_v54, %v2894_v23  ;;  %v2899_v23 = vadd.f32 %v11652_v9, %v2856_v53  ;;  %v2911_v15 = vpop.f32.mrf.mxu2  ;;  %v9346_v53 = vld [vmem:[%s13936_s4 + $0x4c4] sm:$0xf0] }
 0x6e8   :  { %3752 = vmatpush.bf16.msra.mxu0 %v10215_v20 }
 0x6e9   :  { %v2964_v17 = vpack.c.bf16 %v2937_v37, %v2935_v29  ;;  %v8439_v29 = vor.u32 %v9342_v16, %v8438_v19  ;;  %v2868_v37 = vpop.f32.mrf.mxu1 }
 0x6eb   :  { %8332 = vmatmul.msk.bf16.gmra.mxu0 %vm443_vm3, %v2964_v17  ;;  %3336 = vmatmul.bf16.gmra.mxu3 %v8423_v50  ;;  %v2825_v50 = vpop.f32.mrf.mxu0 }
 0x6ec   :  { %3753 = vmatpush.bf16.msra.mxu0 %v14042_v30  ;;  %v2902_v30 = vadd.f32 %v2901_v13, %v2859_v63 }
 0x6ee   :  { %v2939_v21 = vpop.f32.mrf.mxu3 }
 0x6ef   :  { %v2940_v34 = vadd.f32 %v2939_v21, %v2897_v51  ;;  %v2913_v9 = vpop.f32.mrf.mxu2  ;;  %v8454_v21 = vld [vmem:[%s13936_s4 + $0x4b8] sm:$0xf] }
 0x6f0   :  { %3754 = vmatpush.bf16.msra.mxu0 %v14053_v33 }
 0x6f1   :  { %v2870_v33 = vpop.f32.mrf.mxu1 }
 0x6f3   :  { %v2827_v51 = vpop.f32.mrf.mxu0 }
 0x6f4   :  { %3755 = vmatpush.bf16.msra.mxu0 %v14054_v35  ;;  %v2861_v35 = vadd.f32 %v2860_v44, %v2817_v8  ;;  %v2864_v8 = vadd.f32 %v2863_v4, %v2820_v1  ;;  %v2869_v1 = vadd.f32 %v2868_v37, %v2825_v50  ;;  %v9329_v37 = vld [vmem:[%s13936_s4 + $0x43c] sm:$0xf0] }
 0x6f6   :  { %v2941_v41 = vpop.f32.mrf.mxu3  ;;  %v2904_v19 = vadd.f32 %v2903_v57, %v2861_v35  ;;  %v2907_v35 = vadd.f32 %v2906_v5, %v2864_v8  ;;  %v9347_v5 = vld [vmem:[%s13936_s4 + $0x4e4] sm:$0xf] }
 0x6f7   :  { %v2942_v54 = vadd.f32 %v2941_v41, %v2899_v23  ;;  %v2916_v3 = vpop.f32.mrf.mxu2 }
 0x6f8   :  { %3756 = vmatpush.bf16.msra.mxu0 %v14055_v52 }
 0x6f9   :  { %v2965_v45 = vpack.c.bf16 %v2942_v54, %v2940_v34  ;;  %v8455_v34 = vor.u32 %v9346_v53, %v8454_v21  ;;  %v2873_v55 = vpop.f32.mrf.mxu1 }
 0x6fb   :  { %8333 = vmatmul.msk.bf16.gmra.mxu0 %vm443_vm3, %v2965_v45  ;;  %3341 = vmatmul.bf16.gmra.mxu3 %v8439_v29  ;;  %v2830_v13 = vpop.f32.mrf.mxu0  ;;  %v11741_v29 = vld [vmem:[%s13936_s4 + $0x4d8] sm:$0x11]  ;;  %v2866_v45 = vadd.f32 %v2865_v31, %v2822_v27  ;;  %v8505_v31 = vld [vmem:[%s13936_s4 + $0x4f0] sm:$0xf0] }
 0x6fd   :  { %v2909_v21 = vadd.f32 %v2908_v39, %v2866_v45  ;;  %v8508_v45 = vor.u32 %v9347_v5, %v8505_v31  ;;  %v9328_v31 = vld [vmem:[%s13936_s4 + $0x43c] sm:$0xf] }
 0x6fe   :  { %v2944_v17 = vpop.f32.mrf.mxu3 }
 0x6ff   :  { %v2945_v23 = vadd.f32 %v2944_v17, %v2902_v30  ;;  %v3155_v30 = vunpack.c.l.b16 %v11741_v29  ;;  %v2918_v17 = vpop.f32.mrf.mxu2 }
 0x701   :  { %v2875_v57 = vpop.f32.mrf.mxu1 }
 0x703   :  { %v2832_v63 = vpop.f32.mrf.mxu0 }
 0x706   :  { %v2946_v16 = vpop.f32.mrf.mxu3 }
 0x707   :  { %v2947_v41 = vadd.f32 %v2946_v16, %v2904_v19 }
 0x709   :  { %v2966_v54 = vpack.c.bf16 %v2947_v41, %v2945_v23  ;;  %v3183_v23 = vpack.c.b16 %v3155_v30, %v3155_v30 }
 0x70b   :  { %8334 = vmatmul.msk.bf16.gmra.mxu0 %vm443_vm3, %v2966_v54  ;;  %3346 = vmatmul.bf16.gmra.mxu3 %v8455_v34  ;;  %v2871_v34 = vadd.f32 %v2870_v33, %v2827_v51  ;;  %v2912_v54 = vadd.f32 %v2911_v15, %v2869_v1  ;;  %v8382_v33 = vld [vmem:[%s13936_s4 + $0x430] sm:$0xf] }
 0x70c   :  { %v8383_v15 = vor.u32 %v9329_v37, %v8382_v33  ;;  %v8430_v33 = vld [vmem:[%s13936_s4 + $0x490] sm:$0xf]  ;;  %v9341_v37 = vld [vmem:[%s13936_s4 + $0x49c] sm:$0xf0] }
 0x70d   :  { %v2914_v39 = vadd.f32 %v2913_v9, %v2871_v34  ;;  %v8414_v34 = vld [vmem:[%s13936_s4 + $0x470] sm:$0xf] }
 0x70e   :  { %v2949_v44 = vpop.f32.mrf.mxu3  ;;  %3240 = vmatmul.bf16.gmra.mxu1 %v8383_v15  ;;  %v8431_v15 = vor.u32 %v9341_v37, %v8430_v33 }
 0x70f   :  { %v2950_v19 = vadd.f32 %v2949_v44, %v2907_v35  ;;  %v2874_v35 = vadd.f32 %v2873_v55, %v2830_v13  ;;  %v9351_v55 = vld [vmem:[%s13936_s4 + $0x504] sm:$0xf]  ;;  %v8521_v13 = vld [vmem:[%s13936_s4 + $0x510] sm:$0xf0] }
 0x710   :  { %v8524_v63 = vor.u32 %v9351_v55, %v8521_v13  ;;  %v9363_v55 = vld [vmem:[%s13936_s4 + $0x564] sm:$0xf]  ;;  %v8569_v13 = vld [vmem:[%s13936_s4 + $0x570] sm:$0xf0] }
 0x711   :  { %v2917_v9 = vadd.f32 %v2916_v3, %v2874_v35  ;;  %v8398_v3 = vld [vmem:[%s13936_s4 + $0x450] sm:$0xf] }
 0x716   :  { %v2951_v53 = vpop.f32.mrf.mxu3 }
 0x717   :  { %v2952_v16 = vadd.f32 %v2951_v53, %v2909_v21  ;;  %v9333_v21 = vld [vmem:[%s13936_s4 + $0x45c] sm:$0xf0] }
 0x718   :  { %v8399_v53 = vor.u32 %v9333_v21, %v8398_v3  ;;  %v8446_v21 = vld [vmem:[%s13936_s4 + $0x4b0] sm:$0xf] }
 0x719   :  { %v2967_v41 = vpack.c.bf16 %v2952_v16, %v2950_v19  ;;  %v9324_v19 = vld [vmem:[%s13936_s4 + $0x41c] sm:$0xf]  ;;  %v8376_v16 = vld [vmem:[%s13936_s4 + $0x428] sm:$0xf0] }
 0x71b   :  { %8335 = vmatmul.msk.bf16.gmra.mxu0 %vm443_vm3, %v2967_v41  ;;  %3351 = vmatmul.bf16.gmra.mxu3 %v3183_v23  ;;  %v9355_v23 = vld [vmem:[%s13936_s4 + $0x524] sm:$0xf]  ;;  %v8537_v41 = vld [vmem:[%s13936_s4 + $0x530] sm:$0xf0] }
 0x71c   :  { %v8540_v1 = vor.u32 %v9355_v23, %v8537_v41 }
 0x71e   :  { %v2954_v4 = vpop.f32.mrf.mxu3  ;;  %3245 = vmatmul.bf16.gmra.mxu1 %v8399_v53  ;;  %v9345_v53 = vld [vmem:[%s13936_s4 + $0x4bc] sm:$0xf0] }
 0x71f   :  { %v2955_v44 = vadd.f32 %v2954_v4, %v2912_v54  ;;  %v8379_v4 = vor.u32 %v9324_v19, %v8376_v16  ;;  %v9337_v54 = vld [vmem:[%s13936_s4 + $0x47c] sm:$0xf0]  ;;  %v8447_v19 = vor.u32 %v9345_v53, %v8446_v21 }
 0x720   :  { %v8415_v5 = vor.u32 %v9337_v54, %v8414_v34  ;;  %v8585_v34 = vld [vmem:[%s13936_s4 + $0x590] sm:$0xf0]  ;;  %v9373_v21 = vld [vmem:[%s13936_s4 + $0x5bc] sm:$0xf0] }
 0x726   :  { %v2956_v27 = vpop.f32.mrf.mxu3 }
 0x727   :  { %v2957_v8 = vadd.f32 %v2956_v27, %v2914_v39  ;;  %v8392_v39 = vld [vmem:[%s13936_s4 + $0x448] sm:$0xf0]  ;;  %v9359_v27 = vld [vmem:[%s13936_s4 + $0x544] sm:$0xf] }
 0x729   :  { %v2968_v57 = vpack.c.bf16 %v2957_v8, %v2955_v44  ;;  %v8553_v44 = vld [vmem:[%s13936_s4 + $0x550] sm:$0xf0]  ;;  %v8395_v8 = vor.u32 %v9328_v31, %v8392_v39  ;;  %v8741_v39 = vld [vmem:[%s13937_s5 + $0x1c] sm:$0x7] }
 0x72b   :  { %8336 = vmatmul.msk.bf16.gmra.mxu0 %vm443_vm3, %v2968_v57  ;;  %3714 = vmatmul.bf16.vlgmr.msra.gmra.mxu3 %v8508_v45  ;;  %v8556_v45 = vor.u32 %v9359_v27, %v8553_v44  ;;  %v4302_v27 = vsel %vm1630_vm7, %v8741_v39, 0 }
 0x72c   :  { %4311 = vmatpush.bf16.msra.mxu3 %v4302_v27 }
 0x72e   :  { %v2959_v50 = vpop.f32.mrf.mxu3  ;;  %3250 = vmatmul.bf16.gmra.mxu1 %v8415_v5 }
 0x72f   :  { %v2960_v51 = vadd.f32 %v2959_v50, %v2917_v9  ;;  %v9332_v9 = vld [vmem:[%s13936_s4 + $0x45c] sm:$0xf] }
 0x731   :  { %v2969_v17 = vpack.c.bf16 %v2960_v51, %v2960_v51  ;;  %v8408_v51 = vld [vmem:[%s13936_s4 + $0x468] sm:$0xf0] }
 0x736   :  { %v2961_v30 = vpop.f32.mrf.mxu3 }
 0x737   :  { %v8572_v30 = vor.u32 %v9363_v55, %v8569_v13 }
 0x73b   :  { %8337 = vmatmul.msk.bf16.gmra.mxu0 %vm443_vm3, %v2969_v17  ;;  %3719 = vmatmul.bf16.gmra.mxu3 %v8524_v63 }
 0x73e   :  { %3255 = vmatmul.bf16.gmra.mxu1 %v8431_v15  ;;  %v11834_v17 = vpop.f32.mrf.mxu3  ;;  %v9340_v15 = vld [vmem:[%s13936_s4 + $0x49c] sm:$0xf] }
 0x746   :  { %v11850_v41 = vpop.f32.mrf.mxu3 }
 0x74b   :  { %8460 = vmatmul.msk.bf16.vlgmr.msrb.gmra.mxu0 %vm1048_vm8, %v8379_v4  ;;  %3724 = vmatmul.bf16.gmra.mxu3 %v8540_v1  ;;  %v8424_v4 = vld [vmem:[%s13936_s4 + $0x488] sm:$0xf0]  ;;  %v9367_v1 = vld [vmem:[%s13936_s4 + $0x584] sm:$0xf] }
 0x74c   :  { %4142 = vmatpush.bf16.msrb.mxu0 %v10138_v56  ;;  %v8588_v54 = vor.u32 %v9367_v1, %v8585_v34  ;;  %v3236_v1 = vpop.f32.mrf.mxu1  ;;  %v3279_v34 = vpop.f32.mrf.mxu2 }
 0x74e   :  { %3260 = vmatmul.bf16.gmra.mxu1 %v8447_v19  ;;  %v11872_v44 = vpop.f32.mrf.mxu3 }
 0x750   :  { %4143 = vmatpush.bf16.msrb.mxu0 %v10156_v6 }
 0x754   :  { %4144 = vmatpush.bf16.msrb.mxu0 %v10178_v28  ;;  %v3281_v39 = vpop.f32.mrf.mxu2 }
 0x758   :  { %4145 = vmatpush.bf16.msrb.mxu0 %v10201_v46  ;;  %v3005_v57 = vpop.f32.mrf.mxu0 }
 0x759   :  { %v11807_v35 = vadd.f32 %v3005_v57, %v11548_v22  ;;  %v3153_v57 = vunpack.c.l.b16 %v11616_v14 }
 0x75b   :  { %8461 = vmatmul.msk.bf16.gmra.mxu0 %vm1048_vm8, %v8395_v8  ;;  %3729 = vmatmul.bf16.gmra.mxu3 %v8556_v45  ;;  %v11877_v45 = vld [vmem:[%s13936_s4 + $0x5a0] sm:$0x11]  ;;  %v3181_v37 = vpack.c.b16 %v3153_v57, %v3153_v57 }
 0x75c   :  { %4146 = vmatpush.bf16.msrb.mxu0 %v10224_v43  ;;  %v3590_v33 = vunpack.c.h.b16 %v11877_v45 }
 0x75e   :  { %3265 = vmatmul.bf16.gmra.mxu1 %v3181_v37  ;;  %v3618_v55 = vpack.c.b16 %v3590_v33, %v3590_v33  ;;  %v3284_v33 = vpop.f32.mrf.mxu2 }
 0x760   :  { %4147 = vmatpush.bf16.msrb.mxu0 %v10247_v47  ;;  %v3007_v50 = vpop.f32.mrf.mxu0 }
 0x761   :  { %v11819_v22 = vadd.f32 %v3007_v50, %v11571_v0  ;;  %v8411_v0 = vor.u32 %v9332_v9, %v8408_v51  ;;  %v8440_v50 = vld [vmem:[%s13936_s4 + $0x4a8] sm:$0xf0]  ;;  %v11890_v9 = vpop.f32.mrf.mxu3 }
 0x762   :  { %v8443_v51 = vor.u32 %v9340_v15, %v8440_v50 }
 0x764   :  { %4148 = vmatpush.bf16.msrb.mxu0 %v14027_v58 }
 0x766   :  { %v3286_v50 = vpop.f32.mrf.mxu2 }
 0x768   :  { %4149 = vmatpush.bf16.msrb.mxu0 %v14028_v38  ;;  %v3010_v63 = vpop.f32.mrf.mxu0 }
 0x769   :  { %v11838_v3 = vadd.f32 %v3010_v63, %v11578_v12  ;;  %v9336_v12 = vld [vmem:[%s13936_s4 + $0x47c] sm:$0xf]  ;;  %v11896_v14 = vpop.f32.mrf.mxu3  ;;  %v8456_v63 = vld [vmem:[%s13936_s4 + $0x4c8] sm:$0xf0] }
 0x76b   :  { %8462 = vmatmul.msk.bf16.gmra.mxu0 %vm1048_vm8, %v8411_v0  ;;  %3734 = vmatmul.bf16.gmra.mxu3 %v8572_v30  ;;  %v9344_v30 = vld [vmem:[%s13936_s4 + $0x4bc] sm:$0xf] }
 0x76c   :  { %v8459_v53 = vor.u32 %v9344_v30, %v8456_v63 }
 0x76e   :  { %v3289_v30 = vpop.f32.mrf.mxu2 }
 0x770   :  { %v3012_v16 = vpop.f32.mrf.mxu0 }
 0x771   :  { %v11848_v23 = vadd.f32 %v3012_v16, %v11601_v2  ;;  %v8427_v2 = vor.u32 %v9336_v12, %v8424_v4  ;;  %v11915_v4 = vpop.f32.mrf.mxu3 }
 0x778   :  { %v3015_v5 = vpop.f32.mrf.mxu0 }
 0x779   :  { %v11865_v31 = vadd.f32 %v3015_v5, %v11611_v60  ;;  %v3238_v5 = vpop.f32.mrf.mxu1 }
 0x77b   :  { %8463 = vmatmul.msk.bf16.gmra.mxu0 %vm1048_vm8, %v8427_v2  ;;  %3739 = vmatmul.bf16.gmra.mxu3 %v8588_v54  ;;  %v3156_v54 = vunpack.c.h.b16 %v11741_v29  ;;  %v9350_v29 = vld [vmem:[%s13936_s4 + $0x4f4] sm:$0xf0] }
 0x77d   :  { %v3184_v27 = vpack.c.b16 %v3156_v54, %v3156_v54 }
 0x780   :  { %v3017_v8 = vpop.f32.mrf.mxu0 }
 0x781   :  { %v11880_v60 = vadd.f32 %v3017_v8, %v11628_v26 }
 0x788   :  { %v3020_v26 = vpop.f32.mrf.mxu0 }
 0x789   :  { %v11893_v13 = vadd.f32 %v3020_v26, %v11633_v61  ;;  %v8640_v61 = vld [vmem:[%s13936_s4 + $0x5b0] sm:$0xf] }
 0x78a   :  { %v8641_v19 = vor.u32 %v9373_v21, %v8640_v61  ;;  %v3291_v21 = vpop.f32.mrf.mxu2 }
 0x78b   :  { %8464 = vmatmul.msk.bf16.gmra.mxu0 %vm1048_vm8, %v8443_v51  ;;  %3744 = vmatmul.bf16.gmra.mxu3 %v3618_v55  ;;  %v3241_v57 = vpop.f32.mrf.mxu1 }
 0x790   :  { %v11898_v0 = vpop.f32.mrf.mxu0 }
 0x792   :  { %v3294_v54 = vpop.f32.mrf.mxu2 }
 0x793   :  { %v3243_v15 = vpop.f32.mrf.mxu1 }
 0x798   :  { %v3025_v16 = vpop.f32.mrf.mxu0 }
 0x799   :  { %v11913_v12 = vadd.f32 %v3025_v16, %v11657_v42  ;;  %v3282_v16 = vadd.f32 %v3281_v39, %v3238_v5 }
 0x79b   :  { %8465 = vmatmul.msk.bf16.gmra.mxu0 %vm1048_vm8, %v8459_v53  ;;  %4107 = vmatmul.bf16.vlgmr.msrb.gmra.mxu3 %v8641_v19  ;;  %v3246_v26 = vpop.f32.mrf.mxu1  ;;  %v3280_v19 = vadd.f32 %v3279_v34, %v3236_v1  ;;  %v3296_v1 = vpop.f32.mrf.mxu2  ;;  %v3285_v34 = vadd.f32 %v3284_v33, %v3241_v57  ;;  %v14057_v57 = vld [vmem:[#allocation8_spill] sm:$0xff] }
 0x79c   :  { %4671 = vmatpush.bf16.msrb.mxu3 %v10300_v7  ;;  %v8511_v7 = vld [vmem:[%s13936_s4 + $0x4e8] sm:$0xf] }
 0x79d   :  { %v8512_v51 = vor.u32 %v9350_v29, %v8511_v7 }
 0x7a0   :  { %v11919_v2 = vpop.f32.mrf.mxu0 }
 0x7a3   :  { %v3248_v61 = vpop.f32.mrf.mxu1  ;;  %v3299_v39 = vpop.f32.mrf.mxu2 }
 0x7a8   :  { %v3030_v8 = vpop.f32.mrf.mxu0 }
 0x7a9   :  { %v11923_v42 = vadd.f32 %v3030_v8, %v11665_v10  ;;  %v3325_v8 = vadd.f32 %v11850_v41, %v3282_v16  ;;  %v3328_v41 = vadd.f32 %v11872_v44, %v3285_v34 }
 0x7ab   :  { %8466 = vmatmul.msk.bf16.gmra.mxu0 %vm1048_vm8, %v3184_v27  ;;  %v3337_v27 = vpop.f32.mrf.mxu3 }
 0x7b0   :  { %v11926_v37 = vpop.f32.mrf.mxu0 }
 0x7b8   :  { %v3035_v55 = vpop.f32.mrf.mxu0 }
 0x7b9   :  { %v11935_v10 = vadd.f32 %v3035_v55, %v11678_v32  ;;  %v3251_v32 = vpop.f32.mrf.mxu1 }
 0x7bb   :  { %3757 = vmatmul.bf16.vlgmr.msra.gmra.mxu0 %v8512_v51  ;;  %v14056_v51 = vld [vmem:[#allocation10_spill] sm:$0xff] }
 0x7bc   :  { %4535 = vmatpush.bf16.msra.mxu0 %v10133_v49  ;;  %v3323_v49 = vadd.f32 %v11834_v17, %v3280_v19 }
 0x7c0   :  { %4536 = vmatpush.bf16.msra.mxu0 %v10153_v36  ;;  %v3037_v63 = vpop.f32.mrf.mxu0 }
 0x7c4   :  { %4537 = vmatpush.bf16.msra.mxu0 %v14035_v18 }
 0x7c8   :  { %4538 = vmatpush.bf16.msra.mxu0 %v14036_v48  ;;  %v3365_v53 = vpop.f32.mrf.mxu0  ;;  %v3253_v48 = vpop.f32.mrf.mxu1 }
 0x7c9   :  { %v3366_v18 = vadd.f32 %v3365_v53, %v3323_v49  ;;  %v14058_v49 = vld [vmem:[#allocation6_spill] sm:$0xff] }
 0x7cc   :  { %4539 = vmatpush.bf16.msra.mxu0 %v14049_v40  ;;  %v3339_v40 = vpop.f32.mrf.mxu3 }
 0x7d0   :  { %4540 = vmatpush.bf16.msra.mxu0 %v14050_v11  ;;  %v3367_v36 = vpop.f32.mrf.mxu0  ;;  %v3287_v11 = vadd.f32 %v3286_v50, %v3243_v15  ;;  %v3256_v5 = vpop.f32.mrf.mxu1  ;;  %v3290_v50 = vadd.f32 %v3289_v30, %v3246_v26  ;;  %v3295_v30 = vadd.f32 %v3294_v54, %v3251_v32 }
 0x7d1   :  { %v3368_v7 = vadd.f32 %v3367_v36, %v3325_v8  ;;  %v3301_v15 = vpop.f32.mrf.mxu2  ;;  %v3292_v8 = vadd.f32 %v3291_v21, %v3248_v61  ;;  %v14059_v36 = vld [vmem:[#allocation15_spill] sm:$0xff]  ;;  %v3297_v61 = vadd.f32 %v3296_v1, %v3253_v48 }
 0x7d3   :  { %v3399_v29 = vpack.c.bf16 %v3368_v7, %v3366_v18  ;;  %v3335_v18 = vadd.f32 %v11915_v4, %v3292_v8 }
 0x7d4   :  { %4541 = vmatpush.bf16.msra.mxu0 %v14051_v62  ;;  %v3330_v62 = vadd.f32 %v11890_v9, %v3287_v11  ;;  %v3342_v55 = vpop.f32.mrf.mxu3  ;;  %v3333_v9 = vadd.f32 %v11896_v14, %v3290_v50 }
 0x7d5   :  { %8468 = vmatmul.msk.bf16.vlgmr.msra.gmra.mxu1 %vm443_vm3, %v3399_v29 }
 0x7d6   :  { %4185 = vmatpush.bf16.msra.mxu1 %v10149_v24 }
 0x7d8   :  { %4542 = vmatpush.bf16.msra.mxu0 %v14040_v59  ;;  %v3370_v17 = vpop.f32.mrf.mxu0  ;;  %v3258_v33 = vpop.f32.mrf.mxu1 }
 0x7d9   :  { %v3371_v53 = vadd.f32 %v3370_v17, %v3328_v41  ;;  %v3304_v11 = vpop.f32.mrf.mxu2 }
 0x7da   :  { %4186 = vmatpush.bf16.msra.mxu1 %v14041_v25 }
 0x7dc   :  { %v3344_v16 = vpop.f32.mrf.mxu3 }
 0x7de   :  { %4187 = vmatpush.bf16.msra.mxu1 %v14056_v51 }
 0x7e0   :  { %v3372_v63 = vpop.f32.mrf.mxu0  ;;  %v3261_v34 = vpop.f32.mrf.mxu1 }
 0x7e1   :  { %v3373_v19 = vadd.f32 %v3372_v63, %v3330_v62  ;;  %v3306_v14 = vpop.f32.mrf.mxu2  ;;  %v3338_v63 = vadd.f32 %v3337_v27, %v3295_v30 }
 0x7e2   :  { %4188 = vmatpush.bf16.msra.mxu1 %v10215_v20 }
 0x7e3   :  { %v3400_v59 = vpack.c.bf16 %v3373_v19, %v3371_v53  ;;  %v3340_v19 = vadd.f32 %v3339_v40, %v3297_v61 }
 0x7e4   :  { %v3347_v62 = vpop.f32.mrf.mxu3 }
 0x7e5   :  { %8469 = vmatmul.msk.bf16.gmra.mxu1 %vm443_vm3, %v3400_v59 }
 0x7e6   :  { %4189 = vmatpush.bf16.msra.mxu1 %v14057_v57 }
 0x7e8   :  { %v3375_v44 = vpop.f32.mrf.mxu0  ;;  %v3263_v21 = vpop.f32.mrf.mxu1 }
 0x7e9   :  { %v3376_v29 = vadd.f32 %v3375_v44, %v3333_v9  ;;  %v3309_v9 = vpop.f32.mrf.mxu2 }
 0x7ea   :  { %4190 = vmatpush.bf16.msra.mxu1 %v14058_v49 }
 0x7ec   :  { %v3349_v53 = vpop.f32.mrf.mxu3 }
 0x7ee   :  { %4191 = vmatpush.bf16.msra.mxu1 %v14059_v36 }
 0x7f0   :  { %v3377_v7 = vpop.f32.mrf.mxu0  ;;  %v3266_v8 = vpop.f32.mrf.mxu1 }
 0x7f1   :  { %v3378_v17 = vadd.f32 %v3377_v7, %v3335_v18  ;;  %v3311_v32 = vpop.f32.mrf.mxu2 }
 0x7f2   :  { %4192 = vmatpush.bf16.msra.mxu1 %v14055_v52 }
 0x7f3   :  { %v3401_v41 = vpack.c.bf16 %v3378_v17, %v3376_v29  ;;  %v3300_v29 = vadd.f32 %v3299_v39, %v3256_v5  ;;  %v3302_v17 = vadd.f32 %v3301_v15, %v3258_v33  ;;  %v9353_v5 = vld [vmem:[%s13936_s4 + $0x50c] sm:$0xf0]  ;;  %v3307_v15 = vadd.f32 %v3306_v14, %v3263_v21 }
 0x7f4   :  { %v3352_v18 = vpop.f32.mrf.mxu3 }
 0x7f5   :  { %8470 = vmatmul.msk.bf16.gmra.mxu1 %vm443_vm3, %v3401_v41  ;;  %v3343_v54 = vadd.f32 %v3342_v55, %v3300_v29  ;;  %v3345_v1 = vadd.f32 %v3344_v16, %v3302_v17  ;;  %v3305_v55 = vadd.f32 %v3304_v11, %v3261_v34  ;;  %v8527_v17 = vld [vmem:[%s13936_s4 + $0x508] sm:$0xf]  ;;  %v9354_v34 = vld [vmem:[%s13936_s4 + $0x514] sm:$0xf0] }
 0x7f6   :  { %v8528_v11 = vor.u32 %v9354_v34, %v8527_v17 }
 0x7f7   :  { %v3348_v16 = vadd.f32 %v3347_v62, %v3305_v55 }
 0x7f8   :  { %v3380_v26 = vpop.f32.mrf.mxu0  ;;  %v3268_v41 = vpop.f32.mrf.mxu1  ;;  %3762 = vmatmul.bf16.gmra.mxu0 %v8528_v11  ;;  %v9360_v11 = vld [vmem:[%s13936_s4 + $0x54c] sm:$0xf] }
 0x7f9   :  { %v3381_v59 = vadd.f32 %v3380_v26, %v3338_v63  ;;  %v8519_v26 = vld [vmem:[%s13936_s4 + $0x500] sm:$0xf]  ;;  %v3350_v63 = vadd.f32 %v3349_v53, %v3307_v15  ;;  %v9358_v41 = vld [vmem:[%s13936_s4 + $0x534] sm:$0xf0]  ;;  %v9365_v15 = vld [vmem:[%s13936_s4 + $0x56c] sm:$0xf0] }
 0x7fa   :  { %v8520_v39 = vor.u32 %v9353_v5, %v8519_v26  ;;  %v8535_v53 = vld [vmem:[%s13936_s4 + $0x520] sm:$0xf]  ;;  %v9362_v26 = vld [vmem:[%s13936_s4 + $0x554] sm:$0xf0] }
 0x7fc   :  { %v3354_v48 = vpop.f32.mrf.mxu3  ;;  %3676 = vmatmul.bf16.gmra.mxu2 %v8520_v39  ;;  %v9352_v39 = vld [vmem:[%s13936_s4 + $0x50c] sm:$0xf] }
 0x7fd   :  { %v8513_v48 = vld [vmem:[%s13936_s4 + $0x4f8] sm:$0xf0] }
 0x800   :  { %v3382_v4 = vpop.f32.mrf.mxu0 }
 0x801   :  { %v3383_v44 = vadd.f32 %v3382_v4, %v3340_v19 }
 0x803   :  { %v3402_v50 = vpack.c.bf16 %v3383_v44, %v3381_v59 }
 0x805   :  { %8471 = vmatmul.msk.bf16.gmra.mxu1 %vm443_vm3, %v3402_v50  ;;  %v3310_v50 = vadd.f32 %v3309_v9, %v3266_v8  ;;  %v9357_v8 = vld [vmem:[%s13936_s4 + $0x52c] sm:$0xf0] }
 0x806   :  { %v8536_v9 = vor.u32 %v9357_v8, %v8535_v53  ;;  %v3589_v8 = vunpack.c.l.b16 %v11877_v45 }
 0x807   :  { %v3353_v29 = vadd.f32 %v3352_v18, %v3310_v50  ;;  %v8543_v18 = vld [vmem:[%s13936_s4 + $0x528] sm:$0xf]  ;;  %v9369_v50 = vld [vmem:[%s13936_s4 + $0x58c] sm:$0xf0] }
 0x808   :  { %v3385_v7 = vpop.f32.mrf.mxu0  ;;  %v8544_v32 = vor.u32 %v9358_v41, %v8543_v18  ;;  %v9364_v18 = vld [vmem:[%s13936_s4 + $0x56c] sm:$0xf]  ;;  %v8577_v41 = vld [vmem:[%s13936_s4 + $0x578] sm:$0xf0] }
 0x809   :  { %v3386_v30 = vadd.f32 %v3385_v7, %v3343_v54  ;;  %v9348_v54 = vld [vmem:[%s13936_s4 + $0x4ec] sm:$0xf] }
 0x80a   :  { %3767 = vmatmul.bf16.gmra.mxu0 %v8544_v32  ;;  %v8580_v32 = vor.u32 %v9364_v18, %v8577_v41 }
 0x80c   :  { %3681 = vmatmul.bf16.gmra.mxu2 %v8536_v9  ;;  %v3617_v9 = vpack.c.b16 %v3589_v8, %v3589_v8 }
 0x810   :  { %v3387_v27 = vpop.f32.mrf.mxu0 }
 0x811   :  { %v3388_v40 = vadd.f32 %v3387_v27, %v3345_v1  ;;  %v8516_v1 = vor.u32 %v9348_v54, %v8513_v48  ;;  %v8551_v27 = vld [vmem:[%s13936_s4 + $0x540] sm:$0xf] }
 0x813   :  { %v3403_v61 = vpack.c.bf16 %v3388_v40, %v3386_v30  ;;  %v9361_v30 = vld [vmem:[%s13936_s4 + $0x54c] sm:$0xf0] }
 0x814   :  { %v8552_v40 = vor.u32 %v9361_v30, %v8551_v27  ;;  %v9368_v30 = vld [vmem:[%s13936_s4 + $0x58c] sm:$0xf] }
 0x815   :  { %8472 = vmatmul.msk.bf16.gmra.mxu1 %vm443_vm3, %v3403_v61  ;;  %v8559_v61 = vld [vmem:[%s13936_s4 + $0x548] sm:$0xf] }
 0x816   :  { %v8560_v5 = vor.u32 %v9362_v26, %v8559_v61 }
 0x818   :  { %v3390_v33 = vpop.f32.mrf.mxu0 }
 0x819   :  { %v3391_v4 = vadd.f32 %v3390_v33, %v3348_v16 }
 0x81a   :  { %3772 = vmatmul.bf16.gmra.mxu0 %v8560_v5 }
 0x81c   :  { %3686 = vmatmul.bf16.gmra.mxu2 %v8552_v40  ;;  %v8593_v40 = vld [vmem:[%s13936_s4 + $0x598] sm:$0xf0] }
 0x81d   :  { %v8596_v61 = vor.u32 %v9368_v30, %v8593_v40 }
 0x820   :  { %v3392_v19 = vpop.f32.mrf.mxu0 }
 0x821   :  { %v3393_v59 = vadd.f32 %v3392_v19, %v3350_v63  ;;  %v8575_v63 = vld [vmem:[%s13936_s4 + $0x568] sm:$0xf]  ;;  %v9366_v19 = vld [vmem:[%s13936_s4 + $0x574] sm:$0xf0] }
 0x823   :  { %v3404_v44 = vpack.c.bf16 %v3393_v59, %v3391_v4  ;;  %v8576_v4 = vor.u32 %v9366_v19, %v8575_v63 }
 0x825   :  { %8473 = vmatmul.msk.bf16.gmra.mxu1 %vm443_vm3, %v3404_v44 }
 0x828   :  { %v3395_v7 = vpop.f32.mrf.mxu0 }
 0x829   :  { %v3396_v62 = vadd.f32 %v3395_v7, %v3353_v29 }
 0x82a   :  { %3777 = vmatmul.bf16.gmra.mxu0 %v8576_v4 }
 0x82b   :  { %v3405_v14 = vpack.c.bf16 %v3396_v62, %v3396_v62  ;;  %v8561_v62 = vld [vmem:[%s13936_s4 + $0x558] sm:$0xf0] }
 0x830   :  { %v3397_v21 = vpop.f32.mrf.mxu0 }
 0x835   :  { %8474 = vmatmul.msk.bf16.gmra.mxu1 %vm443_vm3, %v3405_v14 }
 0x845   :  { %8597 = vmatmul.msk.bf16.vlgmr.msrb.gmra.mxu1 %vm1048_vm8, %v8516_v1 }
 0x846   :  { %4578 = vmatpush.bf16.msrb.mxu1 %v10138_v56  ;;  %v8529_v56 = vld [vmem:[%s13936_s4 + $0x518] sm:$0xf0] }
 0x84a   :  { %4579 = vmatpush.bf16.msrb.mxu1 %v10156_v6  ;;  %v8532_v6 = vor.u32 %v9352_v39, %v8529_v56  ;;  %v3715_v39 = vpop.f32.mrf.mxu3  ;;  %v3758_v56 = vpop.f32.mrf.mxu0 }
 0x84e   :  { %4580 = vmatpush.bf16.msrb.mxu1 %v10178_v28  ;;  %v8567_v28 = vld [vmem:[%s13936_s4 + $0x560] sm:$0xf] }
 0x84f   :  { %v8568_v16 = vor.u32 %v9365_v15, %v8567_v28 }
 0x851   :  { %3691 = vmatmul.bf16.gmra.mxu2 %v8568_v16 }
 0x852   :  { %4581 = vmatpush.bf16.msrb.mxu1 %v10201_v46  ;;  %v3441_v33 = vpop.f32.mrf.mxu1  ;;  %v3717_v28 = vpop.f32.mrf.mxu3 }
 0x853   :  { %v12020_v55 = vadd.f32 %v3441_v33, %v11807_v35  ;;  %v3760_v16 = vpop.f32.mrf.mxu0 }
 0x855   :  { %8598 = vmatmul.msk.bf16.gmra.mxu1 %vm1048_vm8, %v8532_v6 }
 0x856   :  { %4582 = vmatpush.bf16.msrb.mxu1 %v10224_v43  ;;  %v9356_v43 = vld [vmem:[%s13936_s4 + $0x52c] sm:$0xf] }
 0x85a   :  { %4583 = vmatpush.bf16.msrb.mxu1 %v10247_v47  ;;  %v3443_v46 = vpop.f32.mrf.mxu1  ;;  %v8545_v47 = vld [vmem:[%s13936_s4 + $0x538] sm:$0xf0]  ;;  %v3720_v4 = vpop.f32.mrf.mxu3 }
 0x85b   :  { %v12032_v35 = vadd.f32 %v3443_v46, %v11819_v22  ;;  %v8548_v22 = vor.u32 %v9356_v43, %v8545_v47 }
 0x85e   :  { %4584 = vmatpush.bf16.msrb.mxu1 %v14027_v58  ;;  %v8583_v58 = vld [vmem:[%s13936_s4 + $0x580] sm:$0xf] }
 0x85f   :  { %v8584_v7 = vor.u32 %v9369_v50, %v8583_v58 }
 0x861   :  { %3696 = vmatmul.bf16.gmra.mxu2 %v8584_v7 }
 0x862   :  { %4585 = vmatpush.bf16.msrb.mxu1 %v14028_v38  ;;  %v3446_v59 = vpop.f32.mrf.mxu1  ;;  %v8591_v38 = vld [vmem:[%s13936_s4 + $0x588] sm:$0xf] }
 0x863   :  { %v12049_v44 = vadd.f32 %v3446_v59, %v11838_v3  ;;  %v9370_v3 = vld [vmem:[%s13936_s4 + $0x594] sm:$0xf0] }
 0x864   :  { %v8592_v34 = vor.u32 %v9370_v3, %v8591_v38 }
 0x865   :  { %8599 = vmatmul.msk.bf16.gmra.mxu1 %vm1048_vm8, %v8548_v22  ;;  %v3722_v22 = vpop.f32.mrf.mxu3 }
 0x866   :  { %3782 = vmatmul.bf16.gmra.mxu0 %v8592_v34 }
 0x86a   :  { %v3448_v29 = vpop.f32.mrf.mxu1 }
 0x86b   :  { %v12059_v17 = vadd.f32 %v3448_v29, %v11848_v23  ;;  %v8564_v23 = vor.u32 %v9360_v11, %v8561_v62 }
 0x86d   :  { %v3725_v29 = vpop.f32.mrf.mxu3 }
 0x871   :  { %3701 = vmatmul.bf16.gmra.mxu2 %v3617_v9 }
 0x872   :  { %v3451_v21 = vpop.f32.mrf.mxu1 }
 0x873   :  { %v12074_v14 = vadd.f32 %v3451_v21, %v11865_v31  ;;  %v8500_v31 = vld [vmem:[%s13936_s4 + $0x5a8] sm:$0x11] }
 0x874   :  { %v3591_v48 = vunpack.c.l.b16 %v8500_v31  ;;  %v3592_v15 = vunpack.c.h.b16 %v8500_v31 }
 0x875   :  { %8600 = vmatmul.msk.bf16.gmra.mxu1 %vm1048_vm8, %v8564_v23  ;;  %v3763_v47 = vpop.f32.mrf.mxu0 }
 0x876   :  { %v3619_v45 = vpack.c.b16 %v3591_v48, %v3591_v48  ;;  %v3620_v46 = vpack.c.b16 %v3592_v15, %v3592_v15 }
 0x878   :  { %3787 = vmatmul.bf16.gmra.mxu0 %v3619_v45 }
 0x87a   :  { %v12077_v53 = vpop.f32.mrf.mxu1 }
 0x87d   :  { %v3765_v50 = vpop.f32.mrf.mxu0 }
 0x882   :  { %v3456_v54 = vpop.f32.mrf.mxu1 }
 0x883   :  { %v12090_v1 = vadd.f32 %v3456_v54, %v11893_v13  ;;  %v3672_v13 = vpop.f32.mrf.mxu2 }
 0x884   :  { %v3716_v23 = vadd.f32 %v3715_v39, %v3672_v13 }
 0x885   :  { %8601 = vmatmul.msk.bf16.gmra.mxu1 %vm1048_vm8, %v8580_v32 }
 0x886   :  { %v3759_v18 = vadd.f32 %v3758_v56, %v3716_v23 }
 0x887   :  { %v3768_v34 = vpop.f32.mrf.mxu0 }
 0x88a   :  { %v12093_v27 = vpop.f32.mrf.mxu1 }
 0x88b   :  { %v3674_v33 = vpop.f32.mrf.mxu2 }
 0x88c   :  { %v3718_v8 = vadd.f32 %v3717_v28, %v3674_v33 }
 0x88e   :  { %v3761_v41 = vadd.f32 %v3760_v16, %v3718_v8 }
 0x88f   :  { %v3770_v21 = vpop.f32.mrf.mxu0 }
 0x892   :  { %v3461_v26 = vpop.f32.mrf.mxu1 }
 0x893   :  { %v12102_v5 = vadd.f32 %v3461_v26, %v11913_v12  ;;  %v3677_v12 = vpop.f32.mrf.mxu2 }
 0x894   :  { %v3721_v26 = vadd.f32 %v3720_v4, %v3677_v12 }
 0x895   :  { %8602 = vmatmul.msk.bf16.gmra.mxu1 %vm1048_vm8, %v8596_v61 }
 0x896   :  { %v3764_v56 = vadd.f32 %v3763_v47, %v3721_v26 }
 0x897   :  { %v3773_v45 = vpop.f32.mrf.mxu0 }
 0x89a   :  { %v12105_v6 = vpop.f32.mrf.mxu1 }
 0x89b   :  { %v3679_v59 = vpop.f32.mrf.mxu2 }
 0x89c   :  { %v3723_v39 = vadd.f32 %v3722_v22, %v3679_v59 }
 0x89e   :  { %v3766_v28 = vadd.f32 %v3765_v50, %v3723_v39 }
 0x89f   :  { %v3775_v13 = vpop.f32.mrf.mxu0 }
 0x8a2   :  { %v3466_v63 = vpop.f32.mrf.mxu1 }
 0x8a3   :  { %v12108_v19 = vadd.f32 %v3466_v63, %v11923_v42  ;;  %v3682_v38 = vpop.f32.mrf.mxu2  ;;  %v3727_v42 = vpop.f32.mrf.mxu3 }
 0x8a4   :  { %v3726_v12 = vadd.f32 %v3725_v29, %v3682_v38 }
 0x8a5   :  { %8603 = vmatmul.msk.bf16.gmra.mxu1 %vm1048_vm8, %v3620_v46 }
 0x8a6   :  { %v3769_v22 = vadd.f32 %v3768_v34, %v3726_v12 }
 0x8aa   :  { %v12111_v43 = vpop.f32.mrf.mxu1 }
 0x8ab   :  { %v3684_v11 = vpop.f32.mrf.mxu2  ;;  %v3730_v9 = vpop.f32.mrf.mxu3 }
 0x8ac   :  { %v3728_v47 = vadd.f32 %v3727_v42, %v3684_v11 }
 0x8ae   :  { %v3771_v50 = vadd.f32 %v3770_v21, %v3728_v47 }
 0x8b2   :  { %v3471_v58 = vpop.f32.mrf.mxu1 }
 0x8b3   :  { %v12114_v7 = vadd.f32 %v3471_v58, %v11935_v10  ;;  %v3687_v32 = vpop.f32.mrf.mxu2  ;;  %v3732_v30 = vpop.f32.mrf.mxu3 }
 0x8ba   :  { %v3473_v3 = vpop.f32.mrf.mxu1 }
 0x8bb   :  { %v3689_v40 = vpop.f32.mrf.mxu2  ;;  %v3735_v33 = vpop.f32.mrf.mxu3 }
 0x8bc   :  { %v3733_v42 = vadd.f32 %v3732_v30, %v3689_v40 }
 0x8c2   :  { %v3801_v62 = vpop.f32.mrf.mxu1 }
 0x8c3   :  { %v3802_v54 = vadd.f32 %v3801_v62, %v3759_v18  ;;  %v3737_v4 = vpop.f32.mrf.mxu3  ;;  %v3776_v18 = vadd.f32 %v3775_v13, %v3733_v42  ;;  %v9378_v42 = vld [vmem:[%s13936_s4 + $0x5e4] sm:$0xf0] }
 0x8ca   :  { %v3803_v31 = vpop.f32.mrf.mxu1 }
 0x8cb   :  { %v3804_v48 = vadd.f32 %v3803_v31, %v3761_v41  ;;  %v3740_v23 = vpop.f32.mrf.mxu3 }
 0x8cd   :  { %v3835_v10 = vpack.c.bf16 %v3804_v48, %v3802_v54 }
 0x8cf   :  { %8605 = vmatmul.msk.bf16.vlgmr.msrb.gmra.mxu2 %vm443_vm3, %v3835_v10 }
 0x8d0   :  { %4621 = vmatpush.bf16.msrb.mxu2 %v10149_v24  ;;  %v3778_v24 = vpop.f32.mrf.mxu0 }
 0x8d2   :  { %v3806_v61 = vpop.f32.mrf.mxu1 }
 0x8d3   :  { %v3807_v16 = vadd.f32 %v3806_v61, %v3764_v56  ;;  %v3742_v11 = vpop.f32.mrf.mxu3 }
 0x8d4   :  { %4622 = vmatpush.bf16.msrb.mxu2 %v14041_v25  ;;  %v3692_v63 = vpop.f32.mrf.mxu2 }
 0x8d5   :  { %v3736_v26 = vadd.f32 %v3735_v33, %v3692_v63  ;;  %v8642_v33 = vld [vmem:[%s13936_s4 + $0x5c0] sm:$0xf0]  ;;  %v8648_v63 = vld [vmem:[%s13936_s4 + $0x5b8] sm:$0xf] }
 0x8d8   :  { %4623 = vmatpush.bf16.msrb.mxu2 %v14056_v51  ;;  %v3780_v59 = vpop.f32.mrf.mxu0 }
 0x8da   :  { %v3808_v15 = vpop.f32.mrf.mxu1 }
 0x8db   :  { %v3809_v46 = vadd.f32 %v3808_v15, %v3766_v28  ;;  %v3745_v10 = vpop.f32.mrf.mxu3 }
 0x8dc   :  { %4624 = vmatpush.bf16.msrb.mxu2 %v10215_v20  ;;  %v3694_v51 = vpop.f32.mrf.mxu2 }
 0x8dd   :  { %v3836_v58 = vpack.c.bf16 %v3809_v46, %v3807_v16  ;;  %v3738_v56 = vadd.f32 %v3737_v4, %v3694_v51  ;;  %v9371_v46 = vld [vmem:[%s13936_s4 + $0x5b4] sm:$0xf] }
 0x8df   :  { %8606 = vmatmul.msk.bf16.gmra.mxu2 %vm443_vm3, %v3836_v58  ;;  %v8645_v58 = vor.u32 %v9371_v46, %v8642_v33  ;;  %v9376_v33 = vld [vmem:[%s13936_s4 + $0x5dc] sm:$0xf] }
 0x8e0   :  { %4625 = vmatpush.bf16.msrb.mxu2 %v14057_v57 }
 0x8e1   :  { %4150 = vmatmul.bf16.vlgmr.msrb.gmra.mxu0 %v8645_v58 }
 0x8e2   :  { %v3811_v25 = vpop.f32.mrf.mxu1 }
 0x8e3   :  { %v3812_v20 = vadd.f32 %v3811_v25, %v3769_v22  ;;  %v3783_v29 = vpop.f32.mrf.mxu0  ;;  %v3747_v28 = vpop.f32.mrf.mxu3 }
 0x8e4   :  { %4626 = vmatpush.bf16.msrb.mxu2 %v14058_v49  ;;  %v3697_v57 = vpop.f32.mrf.mxu2  ;;  %v3731_v49 = vadd.f32 %v3730_v9, %v3687_v32  ;;  %v3779_v9 = vadd.f32 %v3778_v24, %v3736_v26  ;;  %v3781_v32 = vadd.f32 %v3780_v59, %v3738_v56  ;;  %v9374_v24 = vld [vmem:[%s13936_s4 + $0x5c4] sm:$0xf0]  ;;  %v8650_v56 = vld [vmem:[%s13936_s4 + $0x5c8] sm:$0xf0] }
 0x8e5   :  { %v8649_v4 = vor.u32 %v9374_v24, %v8648_v63  ;;  %v3741_v12 = vadd.f32 %v3740_v23, %v3697_v57  ;;  %v9375_v23 = vld [vmem:[%s13936_s4 + $0x5d4] sm:$0xf]  ;;  %v8666_v63 = vld [vmem:[%s13936_s4 + $0x5e8] sm:$0xf0]  ;;  %v8696_v24 = vld [vmem:[%s13936_s4 + $0x618] sm:$0xf] }
 0x8e6   :  { %v3774_v34 = vadd.f32 %v3773_v45, %v3731_v49  ;;  %v8664_v49 = vld [vmem:[%s13936_s4 + $0x5d8] sm:$0xf]  ;;  %v8669_v58 = vor.u32 %v9376_v33, %v8666_v63 }
 0x8e7   :  { %4193 = vmatmul.bf16.vlgmr.msra.gmra.mxu1 %v8649_v4  ;;  %v3784_v51 = vadd.f32 %v3783_v29, %v3741_v12  ;;  %v8658_v29 = vld [vmem:[%s13936_s4 + $0x5e0] sm:$0xf0]  ;;  %v9386_v4 = vld [vmem:[%s13936_s4 + $0x624] sm:$0xf0] }
 0x8e8   :  { %4627 = vmatpush.bf16.msrb.mxu2 %v14059_v36 }
 0x8ea   :  { %v3813_v3 = vpop.f32.mrf.mxu1 }
 0x8eb   :  { %v3814_v62 = vadd.f32 %v3813_v3, %v3771_v50  ;;  %v3785_v54 = vpop.f32.mrf.mxu0 }
 0x8ec   :  { %4628 = vmatpush.bf16.msrb.mxu2 %v14055_v52  ;;  %v3699_v41 = vpop.f32.mrf.mxu2 }
 0x8ed   :  { %v3837_v8 = vpack.c.bf16 %v3814_v62, %v3812_v20  ;;  %v3743_v47 = vadd.f32 %v3742_v11, %v3699_v41  ;;  %v8661_v11 = vor.u32 %v9375_v23, %v8658_v29  ;;  %v9390_v29 = vld [vmem:[%s13936_s4 + $0x644] sm:$0xf0] }
 0x8ef   :  { %8607 = vmatmul.msk.bf16.gmra.mxu2 %vm443_vm3, %v3837_v8  ;;  %v3786_v22 = vadd.f32 %v3785_v54, %v3743_v47  ;;  %v8656_v8 = vld [vmem:[%s13936_s4 + $0x5d0] sm:$0xf] }
 0x8f0   :  { %v8672_v54 = vld [vmem:[%s13936_s4 + $0x5f0] sm:$0xf] }
 0x8f1   :  { %4155 = vmatmul.bf16.gmra.mxu0 %v8661_v11 }
 0x8f2   :  { %v3816_v38 = vpop.f32.mrf.mxu1 }
 0x8f3   :  { %v3817_v21 = vadd.f32 %v3816_v38, %v3774_v34  ;;  %v9377_v38 = vld [vmem:[%s13936_s4 + $0x5dc] sm:$0xf0]  ;;  %v8665_v34 = vor.u32 %v9378_v42, %v8664_v49 }
 0x8f4   :  { %v3702_v52 = vpop.f32.mrf.mxu2  ;;  %v8657_v57 = vor.u32 %v9377_v38, %v8656_v8 }
 0x8f5   :  { %v3788_v39 = vpop.f32.mrf.mxu0  ;;  %v3746_v62 = vadd.f32 %v3745_v10, %v3702_v52  ;;  %v9379_v10 = vld [vmem:[%s13936_s4 + $0x5f4] sm:$0xf] }
 0x8f6   :  { %4112 = vmatmul.bf16.gmra.mxu3 %v8657_v57  ;;  %v8712_v57 = vld [vmem:[%s13936_s4 + $0x638] sm:$0xf] }
 0x8f7   :  { %v3789_v41 = vadd.f32 %v3788_v39, %v3746_v62  ;;  %4198 = vmatmul.bf16.gmra.mxu1 %v8665_v34  ;;  %v9372_v39 = vld [vmem:[%s13936_s4 + $0x5bc] sm:$0xf]  ;;  %v8682_v62 = vld [vmem:[%s13936_s4 + $0x608] sm:$0xf0]  ;;  %v8713_v49 = vor.u32 %v9390_v29, %v8712_v57  ;;  %v9393_v34 = vld [vmem:[%s13936_s4 + $0x65c] sm:$0xf0] }
 0x8f8   :  { %v8653_v28 = vor.u32 %v9372_v39, %v8650_v56 }
 0x8fa   :  { %v3818_v36 = vpop.f32.mrf.mxu1 }
 0x8fb   :  { %v3819_v31 = vadd.f32 %v3818_v36, %v3776_v18 }
 0x8fc   :  { %v3704_v30 = vpop.f32.mrf.mxu2 }
 0x8fd   :  { %v3838_v48 = vpack.c.bf16 %v3819_v31, %v3817_v21  ;;  %v3790_v15 = vpop.f32.mrf.mxu0 }
 0x8ff   :  { %8608 = vmatmul.msk.bf16.gmra.mxu2 %vm443_vm3, %v3838_v48  ;;  %v9381_v48 = vld [vmem:[%s13936_s4 + $0x5fc] sm:$0xf0] }
 0x900   :  { %v8673_v52 = vor.u32 %v9381_v48, %v8672_v54 }
 0x902   :  { %v3821_v61 = vpop.f32.mrf.mxu1 }
 0x903   :  { %v3822_v40 = vadd.f32 %v3821_v61, %v3779_v9  ;;  %v8674_v61 = vld [vmem:[%s13936_s4 + $0x600] sm:$0xf0]  ;;  %v8680_v9 = vld [vmem:[%s13936_s4 + $0x5f8] sm:$0xf] }
 0x904   :  { %v8677_v26 = vor.u32 %v9379_v10, %v8674_v61  ;;  %v9394_v61 = vld [vmem:[%s13936_s4 + $0x664] sm:$0xf0] }
 0x906   :  { %4117 = vmatmul.bf16.gmra.mxu3 %v8673_v52  ;;  %4160 = vmatmul.bf16.gmra.mxu0 %v8677_v26  ;;  %v8728_v52 = vld [vmem:[%s13936_s4 + $0x658] sm:$0xf] }
 0x907   :  { %v8729_v26 = vor.u32 %v9394_v61, %v8728_v52 }
 0x90a   :  { %v3823_v45 = vpop.f32.mrf.mxu1 }
 0x90b   :  { %v3824_v13 = vadd.f32 %v3823_v45, %v3781_v32  ;;  %v9382_v32 = vld [vmem:[%s13936_s4 + $0x604] sm:$0xf0]  ;;  %v8688_v45 = vld [vmem:[%s13936_s4 + $0x610] sm:$0xf] }
 0x90c   :  { %v8681_v30 = vor.u32 %v9382_v32, %v8680_v9  ;;  %v8636_v9 = vld [vmem:[%s13936_s4 + $0x670] sm:$0x11] }
 0x90d   :  { %v3839_v16 = vpack.c.bf16 %v3824_v13, %v3822_v40  ;;  %v9385_v40 = vld [vmem:[%s13936_s4 + $0x61c] sm:$0xf0]  ;;  %v9383_v13 = vld [vmem:[%s13936_s4 + $0x614] sm:$0xf] }
 0x90e   :  { %4203 = vmatmul.bf16.gmra.mxu1 %v8681_v30  ;;  %v8689_v15 = vor.u32 %v9385_v40, %v8688_v45  ;;  %v4025_v30 = vunpack.c.l.b16 %v8636_v9 }
 0x90f   :  { %8609 = vmatmul.msk.bf16.gmra.mxu2 %vm443_vm3, %v3839_v16  ;;  %v8690_v16 = vld [vmem:[%s13936_s4 + $0x620] sm:$0xf0] }
 0x910   :  { %v8693_v46 = vor.u32 %v9383_v13, %v8690_v16  ;;  %v4053_v40 = vpack.c.b16 %v4025_v30, %v4025_v30  ;;  %v8637_v13 = vld [vmem:[%s13936_s4 + $0x678] sm:$0x11] }
 0x912   :  { %v3826_v25 = vpop.f32.mrf.mxu1 }
 0x913   :  { %v3827_v50 = vadd.f32 %v3826_v25, %v3784_v51  ;;  %v8697_v25 = vor.u32 %v9386_v4, %v8696_v24  ;;  %v8704_v51 = vld [vmem:[%s13936_s4 + $0x630] sm:$0xf]  ;;  %v8730_v24 = vld [vmem:[%s13936_s4 + $0x668] sm:$0xf0] }
 0x916   :  { %4122 = vmatmul.bf16.gmra.mxu3 %v8689_v15  ;;  %4165 = vmatmul.bf16.gmra.mxu0 %v8693_v46  ;;  %v4027_v46 = vunpack.c.l.b16 %v8637_v13 }
 0x918   :  { %v4055_v63 = vpack.c.b16 %v4027_v46, %v4027_v46 }
 0x91a   :  { %v3828_v59 = vpop.f32.mrf.mxu1 }
 0x91b   :  { %v3829_v3 = vadd.f32 %v3828_v59, %v3786_v22  ;;  %v9389_v22 = vld [vmem:[%s13936_s4 + $0x63c] sm:$0xf0]  ;;  %v9387_v59 = vld [vmem:[%s13936_s4 + $0x634] sm:$0xf] }
 0x91d   :  { %v3840_v20 = vpack.c.bf16 %v3829_v3, %v3827_v50  ;;  %v8705_v50 = vor.u32 %v9389_v22, %v8704_v51  ;;  %v8706_v3 = vld [vmem:[%s13936_s4 + $0x640] sm:$0xf0]  ;;  %v4108_v51 = vpop.f32.mrf.mxu3 }
 0x91e   :  { %4208 = vmatmul.bf16.gmra.mxu1 %v8697_v25 }
 0x91f   :  { %8610 = vmatmul.msk.bf16.gmra.mxu2 %vm443_vm3, %v3840_v20  ;;  %v8709_v20 = vor.u32 %v9387_v59, %v8706_v3 }
 0x922   :  { %v3831_v18 = vpop.f32.mrf.mxu1 }
 0x923   :  { %v3832_v36 = vadd.f32 %v3831_v18, %v3789_v41  ;;  %v9391_v18 = vld [vmem:[%s13936_s4 + $0x654] sm:$0xf] }
 0x925   :  { %v3841_v31 = vpack.c.bf16 %v3832_v36, %v3832_v36  ;;  %v8722_v36 = vld [vmem:[%s13936_s4 + $0x660] sm:$0xf0] }
 0x926   :  { %4127 = vmatmul.bf16.gmra.mxu3 %v8705_v50  ;;  %4170 = vmatmul.bf16.gmra.mxu0 %v8709_v20  ;;  %v4028_v50 = vunpack.c.h.b16 %v8637_v13 }
 0x928   :  { %v4056_v20 = vpack.c.b16 %v4028_v50, %v4028_v50 }
 0x92a   :  { %v3833_v21 = vpop.f32.mrf.mxu1 }
 0x92b   :  { %v8725_v21 = vor.u32 %v9391_v18, %v8722_v36 }
 0x92e   :  { %4213 = vmatmul.bf16.gmra.mxu1 %v8713_v49 }
 0x92f   :  { %8611 = vmatmul.msk.bf16.gmra.mxu2 %vm443_vm3, %v3841_v31  ;;  %v8698_v31 = vld [vmem:[%s13936_s4 + $0x628] sm:$0xf0] }
 0x936   :  { %4175 = vmatmul.bf16.gmra.mxu0 %v8725_v21 }
 0x93e   :  { %4218 = vmatmul.bf16.gmra.mxu1 %v8729_v26 }
 0x93f   :  { %8734 = vmatmul.msk.bf16.vlgmr.msra.gmra.mxu2 %vm1048_vm8, %v8653_v28  ;;  %v8714_v28 = vld [vmem:[%s13936_s4 + $0x648] sm:$0xf0] }
 0x94e   :  { %4223 = vmatmul.bf16.gmra.mxu1 %v4055_v63 }
 0x94f   :  { %8735 = vmatmul.msk.bf16.gmra.mxu2 %vm1048_vm8, %v8669_v58  ;;  %v9392_v58 = vld [vmem:[%s13936_s4 + $0x65c] sm:$0xf] }
 0x950   :  { %v8733_v25 = vor.u32 %v9392_v58, %v8730_v24 }
 0x952   :  { %v3877_v12 = vpop.f32.mrf.mxu2 }
 0x953   :  { %v12212_v47 = vadd.f32 %v3877_v12, %v12020_v55  ;;  %v9380_v55 = vld [vmem:[%s13936_s4 + $0x5fc] sm:$0xf] }
 0x954   :  { %v8685_v23 = vor.u32 %v9380_v55, %v8682_v62  ;;  %v4110_v55 = vpop.f32.mrf.mxu3 }
 0x95a   :  { %v3879_v8 = vpop.f32.mrf.mxu2 }
 0x95b   :  { %v12233_v38 = vadd.f32 %v3879_v8, %v12032_v35  ;;  %v8720_v35 = vld [vmem:[%s13936_s4 + $0x650] sm:$0xf] }
 0x95c   :  { %v8721_v41 = vor.u32 %v9393_v34, %v8720_v35 }
 0x95e   :  { %4132 = vmatmul.bf16.gmra.mxu3 %v8721_v41  ;;  %v4151_v22 = vpop.f32.mrf.mxu0 }
 0x95f   :  { %8736 = vmatmul.msk.bf16.gmra.mxu2 %vm1048_vm8, %v8685_v23  ;;  %v4152_v61 = vadd.f32 %v4151_v22, %v4108_v51 }
 0x962   :  { %v3882_v42 = vpop.f32.mrf.mxu2 }
 0x963   :  { %v12243_v11 = vadd.f32 %v3882_v42, %v12049_v44  ;;  %v9384_v44 = vld [vmem:[%s13936_s4 + $0x61c] sm:$0xf] }
 0x964   :  { %v8701_v10 = vor.u32 %v9384_v44, %v8698_v31  ;;  %v4194_v59 = vpop.f32.mrf.mxu1 }
 0x966   :  { %v4153_v62 = vpop.f32.mrf.mxu0 }
 0x96a   :  { %v3884_v54 = vpop.f32.mrf.mxu2 }
 0x96b   :  { %v12264_v48 = vadd.f32 %v3884_v54, %v12059_v17  ;;  %v9388_v17 = vld [vmem:[%s13936_s4 + $0x63c] sm:$0xf] }
 0x96c   :  { %v8717_v45 = vor.u32 %v9388_v17, %v8714_v28  ;;  %v4196_v8 = vpop.f32.mrf.mxu1  ;;  %v4195_v28 = vadd.f32 %v4194_v59, %v4152_v61 }
 0x96e   :  { %4137 = vmatmul.bf16.gmra.mxu3 %v4053_v40  ;;  %v4156_v29 = vpop.f32.mrf.mxu0 }
 0x96f   :  { %8737 = vmatmul.msk.bf16.gmra.mxu2 %vm1048_vm8, %v8701_v10 }
 0x972   :  { %v3887_v39 = vpop.f32.mrf.mxu2 }
 0x973   :  { %v12274_v56 = vadd.f32 %v3887_v39, %v12074_v14  ;;  %v4026_v14 = vunpack.c.h.b16 %v8636_v9  ;;  %v4154_v39 = vadd.f32 %v4153_v62, %v4110_v55 }
 0x975   :  { %v4054_v15 = vpack.c.b16 %v4026_v14, %v4026_v14  ;;  %v4197_v9 = vadd.f32 %v4196_v8, %v4154_v39 }
 0x976   :  { %v4158_v35 = vpop.f32.mrf.mxu0 }
 0x977   :  { %4180 = vmatmul.bf16.gmra.mxu0 %v4054_v15 }
 0x979   :  { %v4113_v49 = vpop.f32.mrf.mxu3 }
 0x97a   :  { %v12285_v32 = vpop.f32.mrf.mxu2  ;;  %v4157_v63 = vadd.f32 %v4156_v29, %v4113_v49 }
 0x97f   :  { %8738 = vmatmul.msk.bf16.gmra.mxu2 %vm1048_vm8, %v8717_v45 }
 0x981   :  { %v4115_v34 = vpop.f32.mrf.mxu3 }
 0x982   :  { %v3892_v16 = vpop.f32.mrf.mxu2  ;;  %v4159_v24 = vadd.f32 %v4158_v35, %v4115_v34 }
 0x983   :  { %v12292_v33 = vadd.f32 %v3892_v16, %v12090_v1  ;;  %v4161_v21 = vpop.f32.mrf.mxu0 }
 0x989   :  { %v4118_v44 = vpop.f32.mrf.mxu3 }
 0x98a   :  { %v12300_v4 = vpop.f32.mrf.mxu2 }
 0x98b   :  { %v4163_v10 = vpop.f32.mrf.mxu0 }
 0x98f   :  { %8739 = vmatmul.msk.bf16.gmra.mxu2 %vm1048_vm8, %v8733_v25 }
 0x991   :  { %v4120_v52 = vpop.f32.mrf.mxu3 }
 0x992   :  { %v3897_v12 = vpop.f32.mrf.mxu2 }
 0x993   :  { %v12304_v1 = vadd.f32 %v3897_v12, %v12102_v5  ;;  %v4199_v5 = vpop.f32.mrf.mxu1  ;;  %v4166_v17 = vpop.f32.mrf.mxu0 }
 0x994   :  { %v4200_v25 = vadd.f32 %v4199_v5, %v4157_v63 }
 0x999   :  { %v4123_v30 = vpop.f32.mrf.mxu3 }
 0x99a   :  { %v12306_v3 = vpop.f32.mrf.mxu2 }
 0x99b   :  { %v4201_v18 = vpop.f32.mrf.mxu1  ;;  %v4168_v15 = vpop.f32.mrf.mxu0 }
 0x99c   :  { %v4202_v12 = vadd.f32 %v4201_v18, %v4159_v24 }
 0x99f   :  { %8740 = vmatmul.msk.bf16.gmra.mxu2 %vm1048_vm8, %v4056_v20 }
 0x9a1   :  { %v4125_v16 = vpop.f32.mrf.mxu3 }
 0x9a2   :  { %v3902_v23 = vpop.f32.mrf.mxu2 }
 0x9a3   :  { %v12310_v57 = vadd.f32 %v3902_v23, %v12108_v19  ;;  %v4204_v54 = vpop.f32.mrf.mxu1  ;;  %v4171_v22 = vpop.f32.mrf.mxu0  ;;  %v4162_v23 = vadd.f32 %v4161_v21, %v4118_v44 }
 0x9a5   :  { %v4205_v61 = vadd.f32 %v4204_v54, %v4162_v23 }
 0x9a9   :  { %v4128_v20 = vpop.f32.mrf.mxu3 }
 0x9aa   :  { %v12312_v42 = vpop.f32.mrf.mxu2 }
 0x9ab   :  { %v4206_v26 = vpop.f32.mrf.mxu1 }
 0x9b2   :  { %v3907_v41 = vpop.f32.mrf.mxu2 }
 0x9b3   :  { %v12315_v36 = vadd.f32 %v3907_v41, %v12114_v7  ;;  %v4209_v13 = vpop.f32.mrf.mxu1  ;;  %v4173_v41 = vpop.f32.mrf.mxu0 }
 0x9b5   :  { %14060 = vst [vmem:[#allocation20_spill] sm:$0xff] %v12315_v36 }
 0x9ba   :  { %v3909_v31 = vpop.f32.mrf.mxu2 }
 0x9bb   :  { %v4211_v58 = vpop.f32.mrf.mxu1  ;;  %v4164_v31 = vadd.f32 %v4163_v10, %v4120_v52  ;;  %v4176_v39 = vpop.f32.mrf.mxu0 }
 0x9bd   :  { %v4207_v49 = vadd.f32 %v4206_v26, %v4164_v31  ;;  %v8785_v31 = vld [vmem:[%s13936_s4 + $0x688] sm:$0xf] }
 0x9c2   :  { %v4237_v19 = vpop.f32.mrf.mxu2 }
 0x9c3   :  { %v4238_v40 = vadd.f32 %v4237_v19, %v4195_v28  ;;  %v4214_v62 = vpop.f32.mrf.mxu1  ;;  %v4130_v19 = vpop.f32.mrf.mxu3 }
 0x9c4   :  { %v4178_v21 = vpop.f32.mrf.mxu0 }
 0x9ca   :  { %v4239_v45 = vpop.f32.mrf.mxu2 }
 0x9cb   :  { %v4240_v14 = vadd.f32 %v4239_v45, %v4197_v9  ;;  %v4216_v29 = vpop.f32.mrf.mxu1 }
 0x9cd   :  { %v4271_v7 = vpack.c.bf16 %v4240_v14, %v4238_v40  ;;  %v4167_v40 = vadd.f32 %v4166_v17, %v4123_v30  ;;  %v4169_v14 = vadd.f32 %v4168_v15, %v4125_v16 }
 0x9cf   :  { %8742 = vmatmul.msk.bf16.vlgmr.msra.gmra.mxu3 %vm443_vm3, %v4271_v7  ;;  %v4210_v7 = vadd.f32 %v4209_v13, %v4167_v40  ;;  %v4212_v44 = vadd.f32 %v4211_v58, %v4169_v14 }
 0x9d2   :  { %v4242_v46 = vpop.f32.mrf.mxu2 }
 0x9d3   :  { %v4243_v59 = vadd.f32 %v4242_v46, %v4200_v25  ;;  %v4219_v9 = vpop.f32.mrf.mxu1 }
 0x9da   :  { %v4244_v51 = vpop.f32.mrf.mxu2 }
 0x9db   :  { %v4245_v50 = vadd.f32 %v4244_v51, %v4202_v12  ;;  %v4221_v26 = vpop.f32.mrf.mxu1  ;;  %v4172_v51 = vadd.f32 %v4171_v22, %v4128_v20  ;;  %v9398_v22 = vld [vmem:[%s13936_s4 + $0x694] sm:$0xf0]  ;;  %v8777_v20 = vld [vmem:[%s13936_s4 + $0x680] sm:$0xf] }
 0x9dd   :  { %v4272_v55 = vpack.c.bf16 %v4245_v50, %v4243_v59  ;;  %v4174_v50 = vadd.f32 %v4173_v41, %v4130_v19  ;;  %v9397_v41 = vld [vmem:[%s13936_s4 + $0x68c] sm:$0xf0]  ;;  %v9395_v19 = vld [vmem:[%s13936_s4 + $0x684] sm:$0xf] }
 0x9df   :  { %8743 = vmatmul.msk.bf16.gmra.mxu3 %vm443_vm3, %v4272_v55  ;;  %v4215_v55 = vadd.f32 %v4214_v62, %v4172_v51  ;;  %v4217_v30 = vadd.f32 %v4216_v29, %v4174_v50  ;;  %v8786_v62 = vor.u32 %v9398_v22, %v8785_v31  ;;  %v8778_v29 = vor.u32 %v9397_v41, %v8777_v20  ;;  %v8787_v31 = vld [vmem:[%s13936_s4 + $0x698] sm:$0xf0]  ;;  %v8833_v20 = vld [vmem:[%s13936_s4 + $0x6e8] sm:$0xf]  ;;  %v8825_v41 = vld [vmem:[%s13936_s4 + $0x6e0] sm:$0xf] }
 0x9e1   :  { %v4133_v28 = vpop.f32.mrf.mxu3  ;;  %4629 = vmatmul.bf16.vlgmr.msrb.gmra.mxu2 %v8786_v62  ;;  %4543 = vmatmul.bf16.vlgmr.msra.gmra.mxu0 %v8778_v29  ;;  %v9410_v62 = vld [vmem:[%s13936_s4 + $0x6f4] sm:$0xf0]  ;;  %v9407_v29 = vld [vmem:[%s13936_s4 + $0x6e4] sm:$0xf] }
 0x9e2   :  { %v4247_v8 = vpop.f32.mrf.mxu2 }
 0x9e3   :  { %v4248_v5 = vadd.f32 %v4247_v8, %v4205_v61  ;;  %v4224_v59 = vpop.f32.mrf.mxu1  ;;  %v8779_v61 = vld [vmem:[%s13936_s4 + $0x690] sm:$0xf0] }
 0x9e9   :  { %v4135_v10 = vpop.f32.mrf.mxu3 }
 0x9ea   :  { %v4249_v35 = vpop.f32.mrf.mxu2 }
 0x9eb   :  { %v4250_v34 = vadd.f32 %v4249_v35, %v4207_v49  ;;  %v4226_v8 = vpop.f32.mrf.mxu1  ;;  %v8782_v49 = vor.u32 %v9395_v19, %v8779_v61  ;;  %v8834_v19 = vor.u32 %v9410_v62, %v8833_v20  ;;  %v9409_v61 = vld [vmem:[%s13936_s4 + $0x6ec] sm:$0xf0]  ;;  %v8851_v20 = vld [vmem:[%s13936_s4 + $0x718] sm:$0xf0] }
 0x9ed   :  { %v4273_v18 = vpack.c.bf16 %v4250_v34, %v4248_v5  ;;  %v4177_v5 = vadd.f32 %v4176_v39, %v4133_v28  ;;  %4586 = vmatmul.bf16.vlgmr.msrb.gmra.mxu1 %v8782_v49  ;;  %v4179_v34 = vadd.f32 %v4178_v21, %v4135_v10  ;;  %v9402_v39 = vld [vmem:[%s13936_s4 + $0x6b4] sm:$0xf0]  ;;  %v8793_v28 = vld [vmem:[%s13936_s4 + $0x6a0] sm:$0xf]  ;;  %v9401_v21 = vld [vmem:[%s13936_s4 + $0x6ac] sm:$0xf0] }
 0x9ee   :  { %v9399_v10 = vld [vmem:[%s13936_s4 + $0x6a4] sm:$0xf]  ;;  %v8827_v49 = vld [vmem:[%s13936_s4 + $0x6f0] sm:$0xf0] }
 0x9ef   :  { %8744 = vmatmul.msk.bf16.gmra.mxu3 %vm443_vm3, %v4273_v18  ;;  %v4220_v18 = vadd.f32 %v4219_v9, %v4177_v5  ;;  %v8830_v5 = vor.u32 %v9407_v29, %v8827_v49  ;;  %v8773_v29 = vld [vmem:[%s13936_s4 + $0x740] sm:$0x11] }
 0x9f0   :  { %v4461_v49 = vunpack.c.l.b16 %v8773_v29 }
 0x9f1   :  { %v4138_v25 = vpop.f32.mrf.mxu3 }
 0x9f2   :  { %v4252_v45 = vpop.f32.mrf.mxu2 }
 0x9f3   :  { %v4253_v54 = vadd.f32 %v4252_v45, %v4210_v7  ;;  %v4222_v45 = vadd.f32 %v4221_v26, %v4179_v34  ;;  %v8794_v26 = vor.u32 %v9401_v21, %v8793_v28  ;;  %v9400_v34 = vld [vmem:[%s13936_s4 + $0x6ac] sm:$0xf]  ;;  %v8843_v28 = vld [vmem:[%s13936_s4 + $0x710] sm:$0xf0] }
 0x9f4   :  { %v4181_v24 = vpop.f32.mrf.mxu0 }
 0x9f5   :  { %4548 = vmatmul.bf16.gmra.mxu0 %v8794_v26 }
 0x9f9   :  { %v4140_v13 = vpop.f32.mrf.mxu3 }
 0x9fa   :  { %v4254_v52 = vpop.f32.mrf.mxu2  ;;  %v9405_v13 = vld [vmem:[%s13936_s4 + $0x6cc] sm:$0xf0] }
 0x9fb   :  { %v4255_v46 = vadd.f32 %v4254_v52, %v4212_v44  ;;  %v4182_v52 = vadd.f32 %v4181_v24, %v4138_v25 }
 0x9fc   :  { %v4183_v17 = vpop.f32.mrf.mxu0 }
 0x9fd   :  { %v4274_v63 = vpack.c.bf16 %v4255_v46, %v4253_v54  ;;  %v8801_v54 = vld [vmem:[%s13936_s4 + $0x6a8] sm:$0xf]  ;;  %v8795_v46 = vld [vmem:[%s13936_s4 + $0x6b0] sm:$0xf0]  ;;  %v4225_v25 = vadd.f32 %v4224_v59, %v4182_v52  ;;  %v9406_v17 = vld [vmem:[%s13936_s4 + $0x6d4] sm:$0xf0] }
 0x9fe   :  { %v8802_v9 = vor.u32 %v9402_v39, %v8801_v54  ;;  %v8841_v52 = vld [vmem:[%s13936_s4 + $0x700] sm:$0xf]  ;;  %v9413_v39 = vld [vmem:[%s13936_s4 + $0x70c] sm:$0xf0] }
 0x9ff   :  { %8745 = vmatmul.msk.bf16.gmra.mxu3 %vm443_vm3, %v4274_v63  ;;  %v8798_v63 = vor.u32 %v9399_v10, %v8795_v46  ;;  %v9404_v10 = vld [vmem:[%s13936_s4 + $0x6cc] sm:$0xf]  ;;  %v8819_v46 = vld [vmem:[%s13936_s4 + $0x6d8] sm:$0xf0] }
 0xa00   :  { %4634 = vmatmul.bf16.gmra.mxu2 %v8802_v9  ;;  %v8842_v9 = vor.u32 %v9413_v39, %v8841_v52 }
 0xa01   :  { %4591 = vmatmul.bf16.gmra.mxu1 %v8798_v63 }
 0xa02   :  { %v4257_v12 = vpop.f32.mrf.mxu2 }
 0xa03   :  { %v4258_v16 = vadd.f32 %v4257_v12, %v4215_v55  ;;  %v8817_v55 = vld [vmem:[%s13936_s4 + $0x6c8] sm:$0xf] }
 0xa04   :  { %v8818_v59 = vor.u32 %v9406_v17, %v8817_v55  ;;  %v9417_v17 = vld [vmem:[%s13936_s4 + $0x72c] sm:$0xf0] }
 0xa0a   :  { %v4259_v15 = vpop.f32.mrf.mxu2 }
 0xa0b   :  { %v4260_v58 = vadd.f32 %v4259_v15, %v4217_v30  ;;  %v8809_v30 = vld [vmem:[%s13936_s4 + $0x6c0] sm:$0xf]  ;;  %v9403_v15 = vld [vmem:[%s13936_s4 + $0x6c4] sm:$0xf] }
 0xa0d   :  { %v4275_v23 = vpack.c.bf16 %v4260_v58, %v4258_v16  ;;  %v8811_v16 = vld [vmem:[%s13936_s4 + $0x6d0] sm:$0xf0]  ;;  %v8810_v58 = vor.u32 %v9405_v13, %v8809_v30 }
 0xa0e   :  { %v8814_v8 = vor.u32 %v9403_v15, %v8811_v16  ;;  %v8859_v30 = vld [vmem:[%s13936_s4 + $0x730] sm:$0xf0]  ;;  %v9408_v15 = vld [vmem:[%s13936_s4 + $0x6ec] sm:$0xf]  ;;  %v8835_v16 = vld [vmem:[%s13936_s4 + $0x6f8] sm:$0xf0] }
 0xa0f   :  { %8746 = vmatmul.msk.bf16.gmra.mxu3 %vm443_vm3, %v4275_v23  ;;  %4553 = vmatmul.bf16.gmra.mxu0 %v8810_v58  ;;  %v9396_v23 = vld [vmem:[%s13936_s4 + $0x68c] sm:$0xf] }
 0xa10   :  { %4639 = vmatmul.bf16.gmra.mxu2 %v8818_v59  ;;  %v8790_v22 = vor.u32 %v9396_v23, %v8787_v31  ;;  %v8838_v23 = vor.u32 %v9408_v15, %v8835_v16 }
 0xa11   :  { %4596 = vmatmul.bf16.gmra.mxu1 %v8814_v8 }
 0xa12   :  { %v4262_v35 = vpop.f32.mrf.mxu2 }
 0xa13   :  { %v4263_v14 = vadd.f32 %v4262_v35, %v4220_v18  ;;  %v8826_v35 = vor.u32 %v9409_v61, %v8825_v41  ;;  %v8803_v18 = vld [vmem:[%s13936_s4 + $0x6b8] sm:$0xf0] }
 0xa1a   :  { %v4264_v40 = vpop.f32.mrf.mxu2 }
 0xa1b   :  { %v4265_v7 = vadd.f32 %v4264_v40, %v4222_v45  ;;  %v8806_v45 = vor.u32 %v9400_v34, %v8803_v18  ;;  %v4489_v34 = vpack.c.b16 %v4461_v49, %v4461_v49 }
 0xa1d   :  { %v4276_v44 = vpack.c.bf16 %v4265_v7, %v4263_v14  ;;  %v8849_v7 = vld [vmem:[%s13936_s4 + $0x708] sm:$0xf] }
 0xa1f   :  { %8747 = vmatmul.msk.bf16.gmra.mxu3 %vm443_vm3, %v4276_v44  ;;  %4558 = vmatmul.bf16.gmra.mxu0 %v8826_v35  ;;  %v9414_v44 = vld [vmem:[%s13936_s4 + $0x714] sm:$0xf0]  ;;  %v4462_v35 = vunpack.c.h.b16 %v8773_v29 }
 0xa20   :  { %4644 = vmatmul.bf16.gmra.mxu2 %v8834_v19  ;;  %v8850_v54 = vor.u32 %v9414_v44, %v8849_v7 }
 0xa21   :  { %4601 = vmatmul.bf16.gmra.mxu1 %v8830_v5  ;;  %v4490_v18 = vpack.c.b16 %v4462_v35, %v4462_v35 }
 0xa22   :  { %v4267_v24 = vpop.f32.mrf.mxu2 }
 0xa23   :  { %v4268_v12 = vadd.f32 %v4267_v24, %v4225_v25  ;;  %v8822_v24 = vor.u32 %v9404_v10, %v8819_v46 }
 0xa25   :  { %v4277_v50 = vpack.c.bf16 %v4268_v12, %v4268_v12 }
 0xa2a   :  { %v4269_v51 = vpop.f32.mrf.mxu2 }
 0xa2b   :  { %v8865_v51 = vld [vmem:[%s13936_s4 + $0x728] sm:$0xf] }
 0xa2f   :  { %8748 = vmatmul.msk.bf16.gmra.mxu3 %vm443_vm3, %v4277_v50  ;;  %4563 = vmatmul.bf16.gmra.mxu0 %v8842_v9  ;;  %v9418_v50 = vld [vmem:[%s13936_s4 + $0x734] sm:$0xf0] }
 0xa30   :  { %4649 = vmatmul.bf16.gmra.mxu2 %v8850_v54  ;;  %v8866_v55 = vor.u32 %v9418_v50, %v8865_v51 }
 0xa3f   :  { %8871 = vmatmul.msk.bf16.vlgmr.msrb.gmra.mxu3 %vm1048_vm8, %v8790_v22  ;;  %v9412_v22 = vld [vmem:[%s13936_s4 + $0x70c] sm:$0xf] }
 0xa40   :  { %4654 = vmatmul.bf16.gmra.mxu2 %v8866_v55  ;;  %v8854_v41 = vor.u32 %v9412_v22, %v8851_v20 }
 0xa4f   :  { %8872 = vmatmul.msk.bf16.gmra.mxu3 %vm1048_vm8, %v8806_v45  ;;  %v9416_v45 = vld [vmem:[%s13936_s4 + $0x72c] sm:$0xf] }
 0xa52   :  { %v4313_v40 = vpop.f32.mrf.mxu3 }
 0xa53   :  { %v12411_v14 = vadd.f32 %v4313_v40, %v12212_v47  ;;  %v9411_v47 = vld [vmem:[%s13936_s4 + $0x704] sm:$0xf]  ;;  %v8867_v40 = vld [vmem:[%s13936_s4 + $0x738] sm:$0xf0] }
 0xa54   :  { %v8846_v21 = vor.u32 %v9411_v47, %v8843_v28  ;;  %v8870_v44 = vor.u32 %v9416_v45, %v8867_v40  ;;  %v8878_v47 = vld [vmem:[%s13937_s5 + $0x20] sm:$0x7] }
 0xa55   :  { %v4738_v28 = vsel %vm1630_vm7, %v8878_v47, 0 }
 0xa56   :  { %4606 = vmatmul.bf16.gmra.mxu1 %v8846_v21  ;;  %4747 = vmatpush.bf16.msrb.mxu0 %v4738_v28 }
 0xa5a   :  { %v4315_v26 = vpop.f32.mrf.mxu3 }
 0xa5b   :  { %v12438_v63 = vadd.f32 %v4315_v26, %v12233_v38  ;;  %v8857_v38 = vld [vmem:[%s13936_s4 + $0x720] sm:$0xf] }
 0xa5c   :  { %v8858_v59 = vor.u32 %v9417_v17, %v8857_v38 }
 0xa5e   :  { %4568 = vmatmul.bf16.gmra.mxu0 %v8858_v59  ;;  %v4544_v54 = vpop.f32.mrf.mxu0 }
 0xa5f   :  { %8873 = vmatmul.msk.bf16.gmra.mxu3 %vm1048_vm8, %v8822_v24 }
 0xa62   :  { %v4318_v25 = vpop.f32.mrf.mxu3 }
 0xa63   :  { %v12442_v12 = vadd.f32 %v4318_v25, %v12243_v11  ;;  %v9415_v11 = vld [vmem:[%s13936_s4 + $0x724] sm:$0xf] }
 0xa64   :  { %v8862_v13 = vor.u32 %v9415_v11, %v8859_v30  ;;  %v4630_v9 = vpop.f32.mrf.mxu2 }
 0xa66   :  { %4611 = vmatmul.bf16.gmra.mxu1 %v8862_v13  ;;  %v4546_v26 = vpop.f32.mrf.mxu0 }
 0xa6a   :  { %v4320_v58 = vpop.f32.mrf.mxu3  ;;  %v4587_v39 = vpop.f32.mrf.mxu1 }
 0xa6b   :  { %v12469_v8 = vadd.f32 %v4320_v58, %v12264_v48  ;;  %v8774_v48 = vld [vmem:[%s13936_s4 + $0x748] sm:$0x11] }
 0xa6c   :  { %v4463_v19 = vunpack.c.l.b16 %v8774_v48  ;;  %v4464_v21 = vunpack.c.h.b16 %v8774_v48  ;;  %v4632_v25 = vpop.f32.mrf.mxu2 }
 0xa6e   :  { %v4491_v61 = vpack.c.b16 %v4463_v19, %v4463_v19  ;;  %4573 = vmatmul.bf16.gmra.mxu0 %v4489_v34  ;;  %v4492_v46 = vpack.c.b16 %v4464_v21, %v4464_v21  ;;  %v4588_v19 = vadd.f32 %v4587_v39, %v4544_v54 }
 0xa6f   :  { %8874 = vmatmul.msk.bf16.gmra.mxu3 %vm1048_vm8, %v8838_v23 }
 0xa70   :  { %4659 = vmatmul.bf16.gmra.mxu2 %v4491_v61  ;;  %v4631_v29 = vadd.f32 %v4630_v9, %v4588_v19 }
 0xa72   :  { %v12472_v31 = vpop.f32.mrf.mxu3  ;;  %v4589_v24 = vpop.f32.mrf.mxu1 }
 0xa73   :  { %v4549_v50 = vpop.f32.mrf.mxu0  ;;  %v4590_v61 = vadd.f32 %v4589_v24, %v4546_v26 }
 0xa75   :  { %v4633_v34 = vadd.f32 %v4632_v25, %v4590_v61 }
 0xa76   :  { %4616 = vmatmul.bf16.gmra.mxu1 %v4490_v18 }
 0xa7a   :  { %v12480_v62 = vpop.f32.mrf.mxu3 }
 0xa7b   :  { %v4551_v11 = vpop.f32.mrf.mxu0 }
 0xa7e   :  { %v4592_v38 = vpop.f32.mrf.mxu1 }
 0xa7f   :  { %8875 = vmatmul.msk.bf16.gmra.mxu3 %vm1048_vm8, %v8854_v41 }
 0xa82   :  { %v12489_v5 = vpop.f32.mrf.mxu3 }
 0xa83   :  { %v4635_v55 = vpop.f32.mrf.mxu2 }
 0xa86   :  { %v4594_v30 = vpop.f32.mrf.mxu1 }
 0xa87   :  { %v4595_v36 = vadd.f32 %v4594_v30, %v4551_v11 }
 0xa8a   :  { %v12497_v7 = vpop.f32.mrf.mxu3 }
 0xa8b   :  { %v4637_v59 = vpop.f32.mrf.mxu2 }
 0xa8c   :  { %v4554_v15 = vpop.f32.mrf.mxu0  ;;  %v4638_v54 = vadd.f32 %v4637_v59, %v4595_v36 }
 0xa8e   :  { %v4597_v16 = vpop.f32.mrf.mxu1 }
 0xa8f   :  { %8876 = vmatmul.msk.bf16.gmra.mxu3 %vm1048_vm8, %v8870_v44 }
 0xa92   :  { %v12500_v52 = vpop.f32.mrf.mxu3 }
 0xa93   :  { %v4640_v58 = vpop.f32.mrf.mxu2 }
 0xa94   :  { %v4556_v22 = vpop.f32.mrf.mxu0 }
 0xa96   :  { %v4599_v20 = vpop.f32.mrf.mxu1 }
 0xa9a   :  { %v12506_v10 = vpop.f32.mrf.mxu3 }
 0xa9b   :  { %v4642_v41 = vpop.f32.mrf.mxu2 }
 0xa9c   :  { %v4559_v49 = vpop.f32.mrf.mxu0 }
 0xa9e   :  { %v4602_v35 = vpop.f32.mrf.mxu1 }
 0xa9f   :  { %8877 = vmatmul.msk.bf16.gmra.mxu3 %vm1048_vm8, %v4492_v46 }
 0xaa2   :  { %v12509_v51 = vpop.f32.mrf.mxu3 }
 0xaa3   :  { %v4645_v18 = vpop.f32.mrf.mxu2 }
 0xaa4   :  { %v4561_v28 = vpop.f32.mrf.mxu0 }
 0xaa6   :  { %v4604_v21 = vpop.f32.mrf.mxu1 }
 0xaaa   :  { %v12511_v17 = vpop.f32.mrf.mxu3 }
 0xaab   :  { %14061 = vst [vmem:[#allocation21_spill] sm:$0xff] %v12511_v17 }
 0xaac   :  { %v4564_v24 = vpop.f32.mrf.mxu0 }
 0xab2   :  { %v12513_v13 = vpop.f32.mrf.mxu3 }
 0xab3   :  { %14062 = vst [vmem:[#allocation22_spill] sm:$0xff] %v12513_v13  ;;  %v4647_v13 = vpop.f32.mrf.mxu2 }
 0xaba   :  { %v4345_v23 = vpop.f32.mrf.mxu3 }
 0xabb   :  { %v4593_v23 = vadd.f32 %v4592_v38, %v4549_v50  ;;  %v4650_v61 = vpop.f32.mrf.mxu2 }
 0xabd   :  { %v4636_v17 = vadd.f32 %v4635_v55, %v4593_v23  ;;  %v4603_v23 = vadd.f32 %v4602_v35, %v4559_v49 }
 0xac2   :  { %v4673_v48 = vpop.f32.mrf.mxu3 }
 0xac3   :  { %v4674_v40 = vadd.f32 %v4673_v48, %v4631_v29  ;;  %v4598_v29 = vadd.f32 %v4597_v16, %v4554_v15  ;;  %v4652_v50 = vpop.f32.mrf.mxu2 }
 0xaca   :  { %v4675_v45 = vpop.f32.mrf.mxu3 }
 0xacb   :  { %v4676_v44 = vadd.f32 %v4675_v45, %v4633_v34  ;;  %v4600_v34 = vadd.f32 %v4599_v20, %v4556_v22  ;;  %v4566_v45 = vpop.f32.mrf.mxu0 }
 0xacd   :  { %v4707_v47 = vpack.c.bf16 %v4676_v44, %v4674_v40  ;;  %v4641_v44 = vadd.f32 %v4640_v58, %v4598_v29  ;;  %v4643_v38 = vadd.f32 %v4642_v41, %v4600_v34 }
 0xacf   :  { %8879 = vmatmul.msk.bf16.vlgmr.msrb.gmra.mxu0 %vm443_vm3, %v4707_v47  ;;  %v4655_v47 = vpop.f32.mrf.mxu2 }
 0xad2   :  { %v4678_v46 = vpop.f32.mrf.mxu3 }
 0xad3   :  { %v4679_v9 = vadd.f32 %v4678_v46, %v4636_v17  ;;  %v4607_v25 = vpop.f32.mrf.mxu1 }
 0xad4   :  { %v4608_v34 = vadd.f32 %v4607_v25, %v4564_v24 }
 0xad7   :  { %v4657_v41 = vpop.f32.mrf.mxu2 }
 0xada   :  { %v4680_v39 = vpop.f32.mrf.mxu3 }
 0xadb   :  { %v4681_v26 = vadd.f32 %v4680_v39, %v4638_v54  ;;  %v4609_v40 = vpop.f32.mrf.mxu1  ;;  %v4569_v17 = vpop.f32.mrf.mxu0  ;;  %v4605_v54 = vadd.f32 %v4604_v21, %v4561_v28  ;;  %v4646_v39 = vadd.f32 %v4645_v18, %v4603_v23 }
 0xadd   :  { %v4708_v19 = vpack.c.bf16 %v4681_v26, %v4679_v9  ;;  %v4648_v15 = vadd.f32 %v4647_v13, %v4605_v54 }
 0xadf   :  { %8880 = vmatmul.msk.bf16.gmra.mxu0 %vm443_vm3, %v4708_v19 }
 0xae2   :  { %v4683_v48 = vpop.f32.mrf.mxu3 }
 0xae3   :  { %v4684_v55 = vadd.f32 %v4683_v48, %v4641_v44  ;;  %v4612_v59 = vpop.f32.mrf.mxu1  ;;  %v4571_v16 = vpop.f32.mrf.mxu0 }
 0xaea   :  { %v4685_v11 = vpop.f32.mrf.mxu3 }
 0xaeb   :  { %v4686_v36 = vadd.f32 %v4685_v11, %v4643_v38  ;;  %v4614_v22 = vpop.f32.mrf.mxu1  ;;  %v4574_v19 = vpop.f32.mrf.mxu0  ;;  %v4610_v38 = vadd.f32 %v4609_v40, %v4566_v45  ;;  %v4651_v11 = vadd.f32 %v4650_v61, %v4608_v34 }
 0xaec   :  { %v4615_v23 = vadd.f32 %v4614_v22, %v4571_v16 }
 0xaed   :  { %v4709_v30 = vpack.c.bf16 %v4686_v36, %v4684_v55  ;;  %v4653_v49 = vadd.f32 %v4652_v50, %v4610_v38 }
 0xaef   :  { %8881 = vmatmul.msk.bf16.gmra.mxu0 %vm443_vm3, %v4709_v30 }
 0xaf2   :  { %v4688_v46 = vpop.f32.mrf.mxu3 }
 0xaf3   :  { %v4689_v58 = vadd.f32 %v4688_v46, %v4646_v39  ;;  %v4617_v48 = vpop.f32.mrf.mxu1  ;;  %v4660_v44 = vpop.f32.mrf.mxu2  ;;  %v4613_v46 = vadd.f32 %v4612_v59, %v4569_v17  ;;  %v4658_v39 = vadd.f32 %v4657_v41, %v4615_v23 }
 0xaf4   :  { %v4576_v35 = vpop.f32.mrf.mxu0  ;;  %v4618_v61 = vadd.f32 %v4617_v48, %v4574_v19  ;;  %v3480_v19 = vadd.f32 %v12077_v53, %v11880_v60 }
 0xaf5   :  { %v4656_v54 = vadd.f32 %v4655_v47, %v4613_v46  ;;  %v4355_v46 = vadd.f32 %v12500_v52, %v12304_v1 }
 0xaf6   :  { %v4661_v50 = vadd.f32 %v4660_v44, %v4618_v61  ;;  %v14063_v44 = vld [vmem:[#allocation14_spill] sm:$0xff] }
 0xaf7   :  { %v3046_v38 = vadd.f32 %v11898_v0, %v14063_v44 }
 0xaf9   :  { %v3482_v53 = vadd.f32 %v12093_v27, %v3046_v38 }
 0xafa   :  { %v4690_v20 = vpop.f32.mrf.mxu3 }
 0xafb   :  { %v4691_v9 = vadd.f32 %v4690_v20, %v4648_v15  ;;  %v4619_v18 = vpop.f32.mrf.mxu1  ;;  %v4662_v55 = vpop.f32.mrf.mxu2  ;;  %v3918_v35 = vadd.f32 %v12300_v4, %v3482_v53 }
 0xafd   :  { %v4710_v26 = vpack.c.bf16 %v4691_v9, %v4689_v58 }
 0xaff   :  { %8882 = vmatmul.msk.bf16.gmra.mxu0 %vm443_vm3, %v4710_v26 }
 0xb02   :  { %v4693_v29 = vpop.f32.mrf.mxu3 }
 0xb03   :  { %v4694_v28 = vadd.f32 %v4693_v29, %v4651_v11  ;;  %v3916_v11 = vadd.f32 %v12285_v32, %v3480_v19 }
 0xb05   :  { %v4352_v0 = vadd.f32 %v12480_v62, %v3916_v11 }
 0xb0a   :  { %v4695_v13 = vpop.f32.mrf.mxu3 }
 0xb0b   :  { %v4696_v21 = vadd.f32 %v4695_v13, %v4653_v49  ;;  %v4351_v49 = vadd.f32 %v12472_v31, %v12274_v56 }
 0xb0d   :  { %v4711_v36 = vpack.c.bf16 %v4696_v21, %v4694_v28  ;;  %v4354_v21 = vadd.f32 %v12497_v7, %v3918_v35 }
 0xb0f   :  { %8883 = vmatmul.msk.bf16.gmra.mxu0 %vm443_vm3, %v4711_v36 }
 0xb12   :  { %v4698_v30 = vpop.f32.mrf.mxu3 }
 0xb13   :  { %v4699_v24 = vadd.f32 %v4698_v30, %v4656_v54 }
 0xb1a   :  { %v4700_v15 = vpop.f32.mrf.mxu3 }
 0xb1b   :  { %v4701_v25 = vadd.f32 %v4700_v15, %v4658_v39 }
 0xb1d   :  { %v4712_v45 = vpack.c.bf16 %v4701_v25, %v4699_v24  ;;  %v14064_v25 = vld [vmem:[#allocation17_spill] sm:$0xff] }
 0xb1f   :  { %8884 = vmatmul.msk.bf16.gmra.mxu0 %vm443_vm3, %v4712_v45  ;;  %v3048_v45 = vadd.f32 %v11919_v2, %v14064_v25 }
 0xb22   :  { %v4703_v40 = vpop.f32.mrf.mxu3 }
 0xb23   :  { %v4704_v20 = vadd.f32 %v4703_v40, %v4661_v50 }
 0xb25   :  { %v4713_v9 = vpack.c.bf16 %v4704_v20, %v4704_v20 }
 0xb2a   :  { %v4705_v58 = vpop.f32.mrf.mxu3 }
 0xb2f   :  { %8885 = vmatmul.msk.bf16.gmra.mxu0 %vm443_vm3, %v4713_v9 }
 0xb4c   :  { %v4749_v26 = vpop.f32.mrf.mxu0 }
 0xb4d   :  { %v12528_v48 = vadd.f32 %v4749_v26, %v12411_v14 }
 0xb4f   :  { %v4832_v14 = vmul.f32 %v12528_v48, %v12528_v48  ;;  %v4799_v27 = vsel %vm4798_vm9, %v12528_v48, 0.0 }
 0xb51   :  { %v4845_v4 = vsel %vm4798_vm9, %v4832_v14, 0.0 }
 0xb54   :  { %v4751_v29 = vpop.f32.mrf.mxu0 }
 0xb55   :  { %v12523_v41 = vadd.f32 %v4751_v29, %v12438_v63  ;;  %v3484_v29 = vadd.f32 %v12105_v6, %v3048_v45 }
 0xb57   :  { %v4833_v63 = vmul.f32 %v12523_v41, %v12523_v41  ;;  %v4800_v32 = vsel %vm4798_vm9, %v12523_v41, 0.0 }
 0xb58   :  { %v4801_v55 = vadd.f32 %v4800_v32, %v4799_v27 }
 0xb59   :  { %v4846_v18 = vsel %vm4798_vm9, %v4833_v63, 0.0 }
 0xb5a   :  { %v4847_v23 = vadd.f32 %v4846_v18, %v4845_v4 }
 0xb5c   :  { %v4754_v17 = vpop.f32.mrf.mxu0 }
 0xb5d   :  { %v12531_v34 = vadd.f32 %v4754_v17, %v12442_v12 }
 0xb5f   :  { %v4834_v56 = vmul.f32 %v12531_v34, %v12531_v34  ;;  %v4802_v62 = vsel %vm4798_vm9, %v12531_v34, 0.0 }
 0xb60   :  { %v4803_v54 = vadd.f32 %v4802_v62, %v4801_v55  ;;  %v14065_v55 = vld [vmem:[#allocation19_spill] sm:$0xff] }
 0xb64   :  { %v4756_v59 = vpop.f32.mrf.mxu0 }
 0xb65   :  { %v12541_v60 = vadd.f32 %v4756_v59, %v12469_v8  ;;  %v4353_v8 = vadd.f32 %v12489_v5, %v12292_v33  ;;  %v4848_v33 = vsel %vm4798_vm9, %v4834_v56, 0.0 }
 0xb66   :  { %v4849_v61 = vadd.f32 %v4848_v33, %v4847_v23  ;;  %v3050_v33 = vadd.f32 %v11926_v37, %v14065_v55 }
 0xb67   :  { %v4835_v13 = vmul.f32 %v12541_v60, %v12541_v60  ;;  %v4804_v5 = vsel %vm4798_vm9, %v12541_v60, 0.0 }
 0xb68   :  { %v4805_v40 = vadd.f32 %v4804_v5, %v4803_v54 }
 0xb69   :  { %v4850_v7 = vsel %vm4798_vm9, %v4835_v13, 0.0 }
 0xb6a   :  { %v4851_v9 = vadd.f32 %v4850_v7, %v4849_v61 }
 0xb6c   :  { %v4759_v47 = vpop.f32.mrf.mxu0 }
 0xb6d   :  { %v12551_v31 = vadd.f32 %v4759_v47, %v4351_v49 }
 0xb6f   :  { %v4836_v36 = vmul.f32 %v12551_v31, %v12551_v31  ;;  %v4806_v39 = vsel %vm4798_vm9, %v12551_v31, 0.0 }
 0xb70   :  { %v4807_v26 = vadd.f32 %v4806_v39, %v4805_v40 }
 0xb71   :  { %v4852_v1 = vsel %vm4798_vm9, %v4836_v36, 0.0  ;;  %v3486_v36 = vadd.f32 %v12111_v43, %v3050_v33 }
 0xb72   :  { %v4853_v47 = vadd.f32 %v4852_v1, %v4851_v9  ;;  %v14067_v1 = vld [vmem:[#allocation20_spill] sm:$0xff] }
 0xb73   :  { %v3922_v7 = vadd.f32 %v12312_v42, %v3486_v36  ;;  %v4797_v36 = vld [vmem:[%s13939_s7] sm:$0x1] }
 0xb74   :  { %v4761_v16 = vpop.f32.mrf.mxu0 }
 0xb75   :  { %v12563_v28 = vadd.f32 %v4761_v16, %v4352_v0 }
 0xb77   :  { %v4837_v15 = vmul.f32 %v12563_v28, %v12563_v28  ;;  %v4808_v52 = vsel %vm4798_vm9, %v12563_v28, 0.0 }
 0xb78   :  { %v4809_v16 = vadd.f32 %v4808_v52, %v4807_v26  ;;  %v14068_v52 = vld [vmem:[#allocation22_spill] sm:$0xff] }
 0xb79   :  { %v4854_v17 = vsel %vm4798_vm9, %v4837_v15, 0.0 }
 0xb7a   :  { %v4855_v38 = vadd.f32 %v4854_v17, %v4853_v47 }
 0xb7c   :  { %v4764_v22 = vpop.f32.mrf.mxu0 }
 0xb7d   :  { %v12572_v30 = vadd.f32 %v4764_v22, %v4353_v8  ;;  %v3920_v22 = vadd.f32 %v12306_v3, %v3484_v29 }
 0xb7f   :  { %v4838_v20 = vmul.f32 %v12572_v30, %v12572_v30  ;;  %v4810_v2 = vsel %vm4798_vm9, %v12572_v30, 0.0  ;;  %v4356_v49 = vadd.f32 %v12506_v10, %v3920_v22 }
 0xb80   :  { %v4811_v11 = vadd.f32 %v4810_v2, %v4809_v16 }
 0xb81   :  { %v4856_v19 = vsel %vm4798_vm9, %v4838_v20, 0.0  ;;  %v4359_v20 = vadd.f32 %v14068_v52, %v14067_v1 }
 0xb82   :  { %v4857_v14 = vadd.f32 %v4856_v19, %v4855_v38 }
 0xb84   :  { %v4766_v12 = vpop.f32.mrf.mxu0 }
 0xb85   :  { %v12581_v24 = vadd.f32 %v4766_v12, %v4354_v21  ;;  %v4357_v21 = vadd.f32 %v12509_v51, %v12310_v57  ;;  %v14066_v51 = vld [vmem:[#allocation21_spill] sm:$0xff] }
 0xb86   :  { %v4358_v15 = vadd.f32 %v14066_v51, %v3922_v7 }
 0xb87   :  { %v4839_v59 = vmul.f32 %v12581_v24, %v12581_v24  ;;  %v4812_v44 = vsel %vm4798_vm9, %v12581_v24, 0.0 }
 0xb88   :  { %v4813_v12 = vadd.f32 %v4812_v44, %v4811_v11 }
 0xb89   :  { %v4858_v63 = vsel %vm4798_vm9, %v4839_v59, 0.0 }
 0xb8a   :  { %v4859_v56 = vadd.f32 %v4858_v63, %v4857_v14 }
 0xb8c   :  { %v4769_v50 = vpop.f32.mrf.mxu0 }
 0xb8d   :  { %v12590_v58 = vadd.f32 %v4769_v50, %v4355_v46 }
 0xb8f   :  { %v4840_v6 = vmul.f32 %v12590_v58, %v12590_v58  ;;  %v4814_v53 = vsel %vm4798_vm9, %v12590_v58, 0.0 }
 0xb90   :  { %v4815_v35 = vadd.f32 %v4814_v53, %v4813_v12 }
 0xb91   :  { %v4860_v0 = vsel %vm4798_vm9, %v4840_v6, 0.0 }
 0xb92   :  { %v4861_v27 = vadd.f32 %v4860_v0, %v4859_v56 }
 0xb94   :  { %v4771_v3 = vpop.f32.mrf.mxu0 }
 0xb95   :  { %v12609_v32 = vadd.f32 %v4771_v3, %v4356_v49 }
 0xb97   :  { %v4816_v8 = vsel %vm4798_vm9, %v12609_v32, 0.0  ;;  %v4841_v10 = vmul.f32 %v12609_v32, %v12609_v32 }
 0xb98   :  { %v4817_v18 = vadd.f32 %v4816_v8, %v4815_v35 }
 0xb99   :  { %v4862_v62 = vsel %vm4798_vm9, %v4841_v10, 0.0 }
 0xb9a   :  { %v4863_v13 = vadd.f32 %v4862_v62, %v4861_v27 }
 0xb9c   :  { %v4774_v4 = vpop.f32.mrf.mxu0 }
 0xb9d   :  { %v12620_v5 = vadd.f32 %v4774_v4, %v4357_v21  ;;  %v4796_v21 = vld [vmem:[%s13938_s6] sm:$0x1] }
 0xb9f   :  { %v4818_v46 = vsel %vm4798_vm9, %v12620_v5, 0.0  ;;  %v4842_v23 = vmul.f32 %v12620_v5, %v12620_v5 }
 0xba0   :  { %v4819_v54 = vadd.f32 %v4818_v46, %v4817_v18 }
 0xba1   :  { %v4864_v39 = vsel %vm4798_vm9, %v4842_v23, 0.0 }
 0xba2   :  { %v4865_v57 = vadd.f32 %v4864_v39, %v4863_v13 }
 0xba4   :  { %v4776_v25 = vpop.f32.mrf.mxu0 }
 0xba5   :  { %v4794_v37 = vadd.f32 %v4776_v25, %v4358_v15 }
 0xba7   :  { %v4820_v45 = vsel %vm4798_vm9, %v4794_v37, 0.0  ;;  %v4843_v61 = vmul.f32 %v4794_v37, %v4794_v37 }
 0xba8   :  { %v4821_v43 = vadd.f32 %v4820_v45, %v4819_v54 }
 0xba9   :  { %v4866_v40 = vsel %vm4798_vm9, %v4843_v61, 0.0 }
 0xbaa   :  { %v4867_v50 = vadd.f32 %v4866_v40, %v4865_v57 }
 0xbac   :  { %v4779_v9 = vpop.f32.mrf.mxu0 }
 0xbad   :  { %v4795_v42 = vadd.f32 %v4779_v9, %v4359_v20 }
 0xbaf   :  { %v4823_v26 = vsel %vm4822_vm10, %v4795_v42, 0.0  ;;  %v4844_v29 = vmul.f32 %v4795_v42, %v4795_v42 }
 0xbb0   :  { %v4824_v17 = vadd.f32 %v4823_v26, %v4821_v43 }
 0xbb1   :  { %v4868_v2 = vsel %vm4822_vm10, %v4844_v29, 0.0 }
 0xbb2   :  { %v4825_v59 = vrot.slane %v4824_v17, 4  ;;  %v4869_v47 = vadd.f32 %v4868_v2, %v4867_v50 }
 0xbb4   :  { %v4826_v16 = vadd.f32 %v4825_v59, %v4824_v17  ;;  %v4870_v22 = vrot.slane %v4869_v47, 4  ;;  %v4781_v19 = vpop.f32.mrf.mxu0 }
 0xbb6   :  { %v4827_v44 = vrot.slane %v4826_v16, 2  ;;  %v4871_v6 = vadd.f32 %v4870_v22, %v4869_v47 }
 0xbb8   :  { %v4828_v38 = vadd.f32 %v4827_v44, %v4826_v16  ;;  %v4872_v11 = vrot.slane %v4871_v6, 2 }
 0xbba   :  { %v4829_v49 = vrot.slane %v4828_v38, 1  ;;  %v4873_v63 = vadd.f32 %v4872_v11, %v4871_v6  ;;  %v8888_v11 = vld [vmem:[%s13940_s8 + $0x2] sm:$0x3] }
 0xbbc   :  { %v4830_v53 = vadd.f32 %v4829_v49, %v4828_v38  ;;  %v4874_v14 = vrot.slane %v4873_v63, 1  ;;  %v4938_v49 = vld [vmem:[%s13940_s8] sm:$0x3] }
 0xbbe   :  { %v4831_v12 = vmul.f32 0.010204081, %v4830_v53  ;;  %v4875_v3 = vadd.f32 %v4874_v14, %v4873_v63  ;;  %v8907_v63 = vld [vmem:[%s13940_s8 + $0x8] sm:$0x3]  ;;  %v8895_v53 = vld [vmem:[%s13940_s8 + $0x4] sm:$0x3] }
 0xbbf   :  { %v8925_v14 = vld [vmem:[%s13940_s8 + $0xe] sm:$0x3] }
 0xbc0   :  { %v4876_v0 = vmul.f32 0.010204081, %v4875_v3  ;;  %v4877_v56 = vmul.f32 %v4831_v12, %v4831_v12  ;;  %v8961_v3 = vld [vmem:[%s13940_s8 + $0x1a] sm:$0x3] }
 0xbc2   :  { %v4878_v35 = vsub.f32 %v4876_v0, %v4877_v56  ;;  %v8892_v0 = vld [vmem:[%s13941_s9 + $0x18] sm:$0xff]  ;;  %v8891_v56 = vld [vmem:[%s13941_s9 + $0x10] sm:$0xff] }
 0xbc4   :  { %v4879_v8 = vadd.f32 1e-05, %v4878_v35  ;;  %v4968_v35 = vld [vmem:[%s13941_s9 + $0x8] sm:$0xff] }
 0xbc6   :  { %9425 = vrsqrt.f32 %v4879_v8  ;;  %vm4886_vm12 = vweird.f32 %v4879_v8 }
 0xbcc   :  { %v9426_v10 = vpop.eup %9425 }
 0xbcd   :  { %v4881_v27 = vmul.f32 %v9426_v10, %v4879_v8  ;;  %vm4887_vm11 = vweird.f32 %v9426_v10  ;;  %v8979_v8 = vld [vmem:[%s13940_s8 + $0x20] sm:$0x3] }
 0xbce   :  { %vm4888_vm13 = vmor %vm4886_vm12, %vm4887_vm11 }
 0xbcf   :  { %v4882_v18 = vmul.f32 %v9426_v10, %v4881_v27  ;;  %v8899_v27 = vld [vmem:[%s13941_s9 + $0x28] sm:$0xff] }
 0xbd0   :  { %5088 = vmatpush.msra.mxu3 %v8899_v27 }
 0xbd1   :  { %v4883_v62 = vmul.f32 0.5, %v4882_v18  ;;  %v8997_v18 = vld [vmem:[%s13940_s8 + $0x26] sm:$0x3] }
 0xbd3   :  { %v4884_v13 = vsub.f32 1.5, %v4883_v62  ;;  %v8898_v62 = vld [vmem:[%s13941_s9 + $0x20] sm:$0xff] }
 0xbd4   :  { %5089 = vmatpush.msra.mxu3 %v8898_v62  ;;  %v8937_v62 = vld [vmem:[%s13940_s8 + $0x12] sm:$0x3] }
 0xbd5   :  { %v4885_v4 = vmul.f32 %v9426_v10, %v4884_v13 }
 0xbd7   :  { %v4889_v55 = vsel %vm4888_vm13, %v9426_v10, %v4885_v4  ;;  %v4967_v10 = vld [vmem:[%s13941_s9] sm:$0xff]  ;;  %v9015_v4 = vld [vmem:[%s13940_s8 + $0x2c] sm:$0x3] }
 0xbd8   :  { %v4890_v33 = vmul.f32 %v4889_v55, %v4796_v21  ;;  %v8901_v55 = vld [vmem:[%s13940_s8 + $0x6] sm:$0x3] }
 0xbda   :  { %v4891_v46 = vmul.f32 %v4890_v33, %v4831_v12  ;;  %v4894_v23 = vperm.slane %v4890_v33, 0  ;;  %v8943_v12 = vld [vmem:[%s13940_s8 + $0x14] sm:$0x3] }
 0xbdc   :  { %v4892_v54 = vsub.f32 %v4797_v36, %v4891_v46  ;;  %v4896_v7 = vmul.f32 %v4894_v23, %v12528_v48  ;;  %v4897_v39 = vmul.f32 %v4894_v23, %v12523_v41  ;;  %v4898_v57 = vmul.f32 %v4894_v23, %v12531_v34  ;;  %v9033_v36 = vld [vmem:[%s13940_s8 + $0x32] sm:$0x3]  ;;  %v9051_v46 = vld [vmem:[%s13940_s8 + $0x38] sm:$0x3] }
 0xbdd   :  { %v4904_v51 = vmul.f32 %v4894_v23, %v12590_v58  ;;  %v4905_v15 = vmul.f32 %v4894_v23, %v12609_v32  ;;  %v4906_v25 = vmul.f32 %v4894_v23, %v12620_v5  ;;  %v4899_v45 = vmul.f32 %v4894_v23, %v12541_v60 }
 0xbde   :  { %v4907_v61 = vmul.f32 %v4894_v23, %v4794_v37  ;;  %v4908_v43 = vmul.f32 %v4894_v23, %v4795_v42  ;;  %v4910_v40 = vperm.slane %v4892_v54, 0  ;;  %v4900_v50 = vmul.f32 %v4894_v23, %v12551_v31  ;;  %v8905_v54 = vld [vmem:[%s13941_s9 + $0x38] sm:$0xff] }
 0xbdf   :  { %v4901_v1 = vmul.f32 %v4894_v23, %v12563_v28  ;;  %v4902_v48 = vmul.f32 %v4894_v23, %v12572_v30  ;;  %v4903_v41 = vmul.f32 %v4894_v23, %v12581_v24  ;;  %v9069_v23 = vld [vmem:[%s13940_s8 + $0x3e] sm:$0x3]  ;;  %5140 = vmatpush.msrb.mxu3 %v8905_v54  ;;  %v8949_v54 = vld [vmem:[%s13940_s8 + $0x16] sm:$0x3] }
 0xbe0   :  { %v4912_v34 = vadd.f32 %v4910_v40, %v4896_v7  ;;  %v4913_v52 = vadd.f32 %v4910_v40, %v4897_v39  ;;  %v4914_v58 = vadd.f32 %v4910_v40, %v4898_v57  ;;  %v4915_v20 = vadd.f32 %v4910_v40, %v4899_v45  ;;  %v8904_v7 = vld [vmem:[%s13941_s9 + $0x30] sm:$0xff]  ;;  %v8911_v39 = vld [vmem:[%s13941_s9 + $0x48] sm:$0xff]  ;;  %v9087_v57 = vld [vmem:[%s13940_s8 + $0x44] sm:$0x3] }
 0xbe1   :  { %v4916_v32 = vadd.f32 %v4910_v40, %v4900_v50  ;;  %v4917_v9 = vadd.f32 %v4910_v40, %v4901_v1  ;;  %v4918_v5 = vadd.f32 %v4910_v40, %v4902_v48  ;;  %v4919_v26 = vadd.f32 %v4910_v40, %v4903_v41  ;;  %5141 = vmatpush.msrb.mxu3 %v8904_v7  ;;  %v9105_v45 = vld [vmem:[%s13940_s8 + $0x4a] sm:$0x3]  ;;  %v8919_v1 = vld [vmem:[%s13940_s8 + $0xc] sm:$0x3] }
 0xbe2   :  { %v4920_v60 = vadd.f32 %v4910_v40, %v4904_v51  ;;  %v4921_v37 = vadd.f32 %v4910_v40, %v4905_v15  ;;  %v4922_v42 = vadd.f32 %v4910_v40, %v4906_v25  ;;  %v4923_v29 = vadd.f32 %v4910_v40, %v4907_v61  ;;  %v8910_v51 = vld [vmem:[%s13941_s9 + $0x40] sm:$0xff]  ;;  %v9127_v25 = vld [vmem:[%s13941_s9 + $0x288] sm:$0xff] }
 0xbe3   :  { %v4924_v17 = vadd.f32 %v4910_v40, %v4908_v43  ;;  %v12676_v59 = vmax.f32 %v4919_v26, 0.0  ;;  %v12681_v47 = vmax.f32 %v4918_v5, 0.0  ;;  %v12686_v16 = vmax.f32 %v4917_v9, 0.0  ;;  %v9126_v43 = vld [vmem:[%s13941_s9 + $0x280] sm:$0xff]  ;;  %v8913_v48 = vld [vmem:[%s13940_s8 + $0xa] sm:$0x3] }
 0xbe4   :  { %v12653_v28 = vmax.f32 %v4923_v29, 0.0  ;;  %v12661_v30 = vmax.f32 %v4922_v42, 0.0  ;;  %v12666_v24 = vmax.f32 %v4921_v37, 0.0  ;;  %v12671_v2 = vmax.f32 %v4920_v60, 0.0  ;;  %v8935_v41 = vld [vmem:[%s13941_s9 + $0x88] sm:$0xff]  ;;  %v8929_v60 = vld [vmem:[%s13941_s9 + $0x78] sm:$0xff] }
 0xbe5   :  { %v12651_v31 = vmax.f32 %v4924_v17, 0.0  ;;  %v12691_v22 = vmax.f32 %v4916_v32, 0.0  ;;  %v12696_v19 = vmax.f32 %v4915_v20, 0.0  ;;  %v12701_v44 = vmax.f32 %v4914_v58, 0.0  ;;  %v8916_v58 = vld [vmem:[%s13941_s9 + $0x50] sm:$0xff]  ;;  %v8923_v20 = vld [vmem:[%s13941_s9 + $0x68] sm:$0xff] }
 0xbe6   :  { %v12706_v6 = vmax.f32 %v4913_v52, 0.0  ;;  %v12711_v38 = vmax.f32 %v4912_v34, 0.0  ;;  %v8934_v34 = vld [vmem:[%s13941_s9 + $0x80] sm:$0xff]  ;;  %v8917_v52 = vld [vmem:[%s13941_s9 + $0x58] sm:$0xff]  ;;  %v8928_v42 = vld [vmem:[%s13941_s9 + $0x70] sm:$0xff] }
 0xbe7   :  { %8886 = vmatpush.msk.msra.mxu1 %vm4943_vm14, %v12651_v31  ;;  %8889 = vmatpush.msk.msra.mxu2 %vm4943_vm14, %v12651_v31  ;;  %v8922_v32 = vld [vmem:[%s13941_s9 + $0x60] sm:$0xff]  ;;  %v8971_v7 = vld [vmem:[%s13941_s9 + $0xe8] sm:$0xff] }
 0xbe8   :  { %8908 = vmatpush.msk.msra.mxu0 %vm4943_vm14, %v12651_v31 }
 0xbe9   :  { %4951 = vmatpush.msra.mxu1 %v12653_v28  ;;  %4978 = vmatpush.msra.mxu2 %v12653_v28 }
 0xbea   :  { %5156 = vmatpush.msra.mxu0 %v12653_v28 }
 0xbeb   :  { %4952 = vmatpush.msra.mxu1 %v12661_v30  ;;  %4979 = vmatpush.msra.mxu2 %v12661_v30 }
 0xbec   :  { %5157 = vmatpush.msra.mxu0 %v12661_v30 }
 0xbed   :  { %4953 = vmatpush.msra.mxu1 %v12666_v24  ;;  %4980 = vmatpush.msra.mxu2 %v12666_v24 }
 0xbee   :  { %5158 = vmatpush.msra.mxu0 %v12666_v24 }
 0xbef   :  { %4954 = vmatpush.msra.mxu1 %v12671_v2  ;;  %4981 = vmatpush.msra.mxu2 %v12671_v2 }
 0xbf0   :  { %5159 = vmatpush.msra.mxu0 %v12671_v2 }
 0xbf1   :  { %4955 = vmatpush.msra.mxu1 %v12676_v59  ;;  %4982 = vmatpush.msra.mxu2 %v12676_v59 }
 0xbf2   :  { %5160 = vmatpush.msra.mxu0 %v12676_v59 }
 0xbf3   :  { %4956 = vmatpush.msra.mxu1 %v12681_v47  ;;  %4983 = vmatpush.msra.mxu2 %v12681_v47 }
 0xbf4   :  { %5161 = vmatpush.msra.mxu0 %v12681_v47 }
 0xbf5   :  { %4957 = vmatpush.msra.mxu1 %v12686_v16  ;;  %4984 = vmatpush.msra.mxu2 %v12686_v16 }
 0xbf6   :  { %5162 = vmatpush.msra.mxu0 %v12686_v16 }
 0xbf7   :  { %4958 = vmatpush.msra.mxu1 %v12691_v22  ;;  %4985 = vmatpush.msra.mxu2 %v12691_v22 }
 0xbf8   :  { %5163 = vmatpush.msra.mxu0 %v12691_v22 }
 0xbf9   :  { %4959 = vmatpush.msra.mxu1 %v12696_v19  ;;  %4986 = vmatpush.msra.mxu2 %v12696_v19 }
 0xbfa   :  { %5164 = vmatpush.msra.mxu0 %v12696_v19 }
 0xbfb   :  { %4960 = vmatpush.msra.mxu1 %v12701_v44  ;;  %4987 = vmatpush.msra.mxu2 %v12701_v44 }
 0xbfc   :  { %5165 = vmatpush.msra.mxu0 %v12701_v44 }
 0xbfd   :  { %4961 = vmatpush.msra.mxu1 %v12706_v6  ;;  %4988 = vmatpush.msra.mxu2 %v12706_v6 }
 0xbfe   :  { %5166 = vmatpush.msra.mxu0 %v12706_v6 }
 0xbff   :  { %4962 = vmatpush.msra.mxu1 %v12711_v38  ;;  %4989 = vmatpush.msra.mxu2 %v12711_v38 }
 0xc00   :  { %5167 = vmatpush.msra.mxu0 %v12711_v38  ;;  %8890 = vmatmul.msk.f32.vlgmr.msra.gmra.mxu2 %vm4939_vm15, %v8888_v11  ;;  %v8931_v11 = vld [vmem:[%s13940_s8 + $0x10] sm:$0x3] }
 0xc01   :  { %8896 = vmatpush.msk.msrb.mxu2 %vm4943_vm14, %v12651_v31  ;;  %8887 = vmatmul.msk.f32.vlgmr.msra.gmra.mxu1 %vm4939_vm15, %v4938_v49  ;;  %v8953_v49 = vld [vmem:[%s13941_s9 + $0xb8] sm:$0xff] }
 0xc02   :  { %8926 = vmatpush.msk.msrb.mxu0 %vm4943_vm14, %v12651_v31  ;;  %5014 = vmatpush.msrb.mxu1 %v8892_v0 }
 0xc03   :  { %8909 = vmatmul.msk.f32.vlgmr.msra.gmra.mxu0 %vm4939_vm15, %v8907_v63  ;;  %5052 = vmatpush.msrb.mxu2 %v12653_v28  ;;  %v8952_v63 = vld [vmem:[%s13941_s9 + $0xb0] sm:$0xff] }
 0xc04   :  { %5312 = vmatpush.msrb.mxu0 %v12653_v28  ;;  %5015 = vmatpush.msrb.mxu1 %v8891_v56 }
 0xc05   :  { %5053 = vmatpush.msrb.mxu2 %v12661_v30 }
 0xc06   :  { %5313 = vmatpush.msrb.mxu0 %v12661_v30  ;;  %5037 = vmatpush.msra.mxu1 %v4968_v35 }
 0xc07   :  { %5054 = vmatpush.msrb.mxu2 %v12666_v24 }
 0xc08   :  { %5314 = vmatpush.msrb.mxu0 %v12666_v24  ;;  %5038 = vmatpush.msra.mxu1 %v4967_v10 }
 0xc09   :  { %5055 = vmatpush.msrb.mxu2 %v12671_v2 }
 0xc0a   :  { %5315 = vmatpush.msrb.mxu0 %v12671_v2 }
 0xc0b   :  { %5056 = vmatpush.msrb.mxu2 %v12676_v59 }
 0xc0c   :  { %5316 = vmatpush.msrb.mxu0 %v12676_v59 }
 0xc0d   :  { %5057 = vmatpush.msrb.mxu2 %v12681_v47 }
 0xc0e   :  { %5317 = vmatpush.msrb.mxu0 %v12681_v47 }
 0xc0f   :  { %5058 = vmatpush.msrb.mxu2 %v12686_v16 }
 0xc10   :  { %5318 = vmatpush.msrb.mxu0 %v12686_v16 }
 0xc11   :  { %5059 = vmatpush.msrb.mxu2 %v12691_v22 }
 0xc12   :  { %5319 = vmatpush.msrb.mxu0 %v12691_v22 }
 0xc13   :  { %5060 = vmatpush.msrb.mxu2 %v12696_v19 }
 0xc14   :  { %5320 = vmatpush.msrb.mxu0 %v12696_v19 }
 0xc15   :  { %5061 = vmatpush.msrb.mxu2 %v12701_v44 }
 0xc16   :  { %5321 = vmatpush.msrb.mxu0 %v12701_v44 }
 0xc17   :  { %5062 = vmatpush.msrb.mxu2 %v12706_v6 }
 0xc18   :  { %5322 = vmatpush.msrb.mxu0 %v12706_v6 }
 0xc19   :  { %5063 = vmatpush.msrb.mxu2 %v12711_v38 }
 0xc1a   :  { %5323 = vmatpush.msrb.mxu0 %v12711_v38  ;;  %8897 = vmatmul.msk.f32.vlgmr.msrb.gmra.mxu2 %vm4939_vm15, %v8895_v53 }
 0xc1b   :  { %8927 = vmatmul.msk.f32.vlgmr.msrb.gmra.mxu0 %vm4939_vm15, %v8925_v14  ;;  %5244 = vmatpush.msra.mxu2 %v8917_v52 }
 0xc1c   :  { %8944 = vmatpush.msk.msra.mxu0 %vm4943_vm14, %v12651_v31 }
 0xc1d   :  { %5245 = vmatpush.msra.mxu2 %v8916_v58  ;;  %v8967_v58 = vld [vmem:[%s13940_s8 + $0x1c] sm:$0x3] }
 0xc1e   :  { %5468 = vmatpush.msra.mxu0 %v12653_v28 }
 0xc1f   :  { %5296 = vmatpush.msrb.mxu2 %v8923_v20  ;;  %v8989_v20 = vld [vmem:[%s13941_s9 + $0x118] sm:$0xff] }
 0xc20   :  { %5469 = vmatpush.msra.mxu0 %v12661_v30 }
 0xc21   :  { %5297 = vmatpush.msrb.mxu2 %v8922_v32  ;;  %v8988_v32 = vld [vmem:[%s13941_s9 + $0x110] sm:$0xff] }
 0xc22   :  { %5470 = vmatpush.msra.mxu0 %v12666_v24 }
 0xc24   :  { %5471 = vmatpush.msra.mxu0 %v12671_v2 }
 0xc26   :  { %5472 = vmatpush.msra.mxu0 %v12676_v59 }
 0xc28   :  { %5473 = vmatpush.msra.mxu0 %v12681_v47 }
 0xc2a   :  { %5474 = vmatpush.msra.mxu0 %v12686_v16 }
 0xc2c   :  { %5475 = vmatpush.msra.mxu0 %v12691_v22 }
 0xc2e   :  { %5476 = vmatpush.msra.mxu0 %v12696_v19 }
 0xc30   :  { %5477 = vmatpush.msra.mxu0 %v12701_v44 }
 0xc32   :  { %5478 = vmatpush.msra.mxu0 %v12706_v6 }
 0xc34   :  { %5479 = vmatpush.msra.mxu0 %v12711_v38 }
 0xc35   :  { %8945 = vmatmul.msk.f32.vlgmr.msra.gmra.mxu0 %vm4939_vm15, %v8943_v12 }
 0xc36   :  { %8962 = vmatpush.msk.msrb.mxu0 %vm4943_vm14, %v12651_v31 }
 0xc38   :  { %5624 = vmatpush.msrb.mxu0 %v12653_v28 }
 0xc3a   :  { %5625 = vmatpush.msrb.mxu0 %v12661_v30 }
 0xc3c   :  { %5626 = vmatpush.msrb.mxu0 %v12666_v24 }
 0xc3e   :  { %5627 = vmatpush.msrb.mxu0 %v12671_v2 }
 0xc40   :  { %5628 = vmatpush.msrb.mxu0 %v12676_v59 }
 0xc42   :  { %5629 = vmatpush.msrb.mxu0 %v12681_v47 }
 0xc44   :  { %5630 = vmatpush.msrb.mxu0 %v12686_v16 }
 0xc46   :  { %5631 = vmatpush.msrb.mxu0 %v12691_v22 }
 0xc48   :  { %5632 = vmatpush.msrb.mxu0 %v12696_v19 }
 0xc4a   :  { %5633 = vmatpush.msrb.mxu0 %v12701_v44 }
 0xc4c   :  { %5634 = vmatpush.msrb.mxu0 %v12706_v6 }
 0xc4e   :  { %5635 = vmatpush.msrb.mxu0 %v12711_v38 }
 0xc4f   :  { %8963 = vmatmul.msk.f32.vlgmr.msrb.gmra.mxu0 %vm4939_vm15, %v8961_v3 }
 0xc50   :  { %8980 = vmatpush.msk.msra.mxu0 %vm4943_vm14, %v12651_v31 }
 0xc52   :  { %5780 = vmatpush.msra.mxu0 %v12653_v28 }
 0xc54   :  { %5781 = vmatpush.msra.mxu0 %v12661_v30 }
 0xc56   :  { %5782 = vmatpush.msra.mxu0 %v12666_v24 }
 0xc58   :  { %5783 = vmatpush.msra.mxu0 %v12671_v2 }
 0xc5a   :  { %5784 = vmatpush.msra.mxu0 %v12676_v59 }
 0xc5c   :  { %5785 = vmatpush.msra.mxu0 %v12681_v47 }
 0xc5e   :  { %5786 = vmatpush.msra.mxu0 %v12686_v16 }
 0xc60   :  { %5787 = vmatpush.msra.mxu0 %v12691_v22 }
 0xc62   :  { %5788 = vmatpush.msra.mxu0 %v12696_v19 }
 0xc64   :  { %5789 = vmatpush.msra.mxu0 %v12701_v44 }
 0xc66   :  { %5790 = vmatpush.msra.mxu0 %v12706_v6 }
 0xc68   :  { %5791 = vmatpush.msra.mxu0 %v12711_v38 }
 0xc69   :  { %8981 = vmatmul.msk.f32.vlgmr.msra.gmra.mxu0 %vm4939_vm15, %v8979_v8 }
 0xc6a   :  { %8998 = vmatpush.msk.msrb.mxu0 %vm4943_vm14, %v12651_v31 }
 0xc6c   :  { %5936 = vmatpush.msrb.mxu0 %v12653_v28 }
 0xc6e   :  { %5937 = vmatpush.msrb.mxu0 %v12661_v30 }
 0xc70   :  { %5938 = vmatpush.msrb.mxu0 %v12666_v24 }
 0xc72   :  { %5939 = vmatpush.msrb.mxu0 %v12671_v2 }
 0xc74   :  { %5940 = vmatpush.msrb.mxu0 %v12676_v59 }
 0xc76   :  { %5941 = vmatpush.msrb.mxu0 %v12681_v47 }
 0xc78   :  { %5942 = vmatpush.msrb.mxu0 %v12686_v16 }
 0xc7a   :  { %5943 = vmatpush.msrb.mxu0 %v12691_v22 }
 0xc7c   :  { %5944 = vmatpush.msrb.mxu0 %v12696_v19 }
 0xc7e   :  { %5945 = vmatpush.msrb.mxu0 %v12701_v44  ;;  %v4964_v21 = vpop.f32.mrf.mxu1 }
 0xc80   :  { %5946 = vmatpush.msrb.mxu0 %v12706_v6  ;;  %v5169_v50 = vpop.f32.mrf.mxu0 }
 0xc82   :  { %5947 = vmatpush.msrb.mxu0 %v12711_v38 }
 0xc83   :  { %8999 = vmatmul.msk.f32.vlgmr.msrb.gmra.mxu0 %vm4939_vm15, %v8997_v18  ;;  %v4991_v13 = vpop.f32.mrf.mxu2 }
 0xc84   :  { %9016 = vmatpush.msk.msra.mxu0 %vm4943_vm14, %v12651_v31  ;;  %8893 = vmatmul.msk.f32.vlgmr.msrb.gmra.mxu1 %vm4798_vm9, %v4991_v13  ;;  %v8941_v13 = vld [vmem:[%s13941_s9 + $0x98] sm:$0xff] }
 0xc85   :  { %8902 = vmatpush.msk.msrb.mxu1 %vm4943_vm14, %v12651_v31 }
 0xc86   :  { %6092 = vmatpush.msra.mxu0 %v12653_v28 }
 0xc87   :  { %5104 = vmatpush.msrb.mxu1 %v12653_v28 }
 0xc88   :  { %6093 = vmatpush.msra.mxu0 %v12661_v30 }
 0xc89   :  { %5105 = vmatpush.msrb.mxu1 %v12661_v30 }
 0xc8a   :  { %6094 = vmatpush.msra.mxu0 %v12666_v24 }
 0xc8b   :  { %5106 = vmatpush.msrb.mxu1 %v12666_v24 }
 0xc8c   :  { %6095 = vmatpush.msra.mxu0 %v12671_v2  ;;  %8894 = vmatmul.msk.f32.vlgmr.msra.gmra.mxu1 %vm4798_vm9, %v4964_v21  ;;  %v8940_v21 = vld [vmem:[%s13941_s9 + $0x90] sm:$0xff] }
 0xc8d   :  { %5107 = vmatpush.msrb.mxu1 %v12671_v2 }
 0xc8e   :  { %6096 = vmatpush.msra.mxu0 %v12676_v59 }
 0xc8f   :  { %5108 = vmatpush.msrb.mxu1 %v12676_v59 }
 0xc90   :  { %6097 = vmatpush.msra.mxu0 %v12681_v47 }
 0xc91   :  { %5109 = vmatpush.msrb.mxu1 %v12681_v47 }
 0xc92   :  { %6098 = vmatpush.msra.mxu0 %v12686_v16 }
 0xc93   :  { %5110 = vmatpush.msrb.mxu1 %v12686_v16 }
 0xc94   :  { %6099 = vmatpush.msra.mxu0 %v12691_v22 }
 0xc95   :  { %5111 = vmatpush.msrb.mxu1 %v12691_v22 }
 0xc96   :  { %6100 = vmatpush.msra.mxu0 %v12696_v19 }
 0xc97   :  { %5112 = vmatpush.msrb.mxu1 %v12696_v19 }
 0xc98   :  { %6101 = vmatpush.msra.mxu0 %v12701_v44  ;;  %v5325_v17 = vpop.f32.mrf.mxu0 }
 0xc99   :  { %5113 = vmatpush.msrb.mxu1 %v12701_v44 }
 0xc9a   :  { %6102 = vmatpush.msra.mxu0 %v12706_v6 }
 0xc9b   :  { %5114 = vmatpush.msrb.mxu1 %v12706_v6 }
 0xc9c   :  { %6103 = vmatpush.msra.mxu0 %v12711_v38 }
 0xc9d   :  { %9017 = vmatmul.msk.f32.vlgmr.msra.gmra.mxu0 %vm4939_vm15, %v9015_v4  ;;  %5115 = vmatpush.msrb.mxu1 %v12711_v38  ;;  %v5065_v33 = vpop.f32.mrf.mxu2  ;;  %v8947_v4 = vld [vmem:[%s13941_s9 + $0xa8] sm:$0xff] }
 0xc9e   :  { %9034 = vmatpush.msk.msrb.mxu0 %vm4943_vm14, %v12651_v31  ;;  %8903 = vmatmul.msk.f32.vlgmr.msrb.gmra.mxu1 %vm4939_vm15, %v8901_v55  ;;  %v8946_v55 = vld [vmem:[%s13941_s9 + $0xa0] sm:$0xff] }
 0xc9f   :  { %8900 = vmatmul.msk.f32.vlgmr.msra.gmra.mxu3 %vm4798_vm9, %v5065_v33  ;;  %8920 = vmatpush.msk.msra.mxu1 %vm4943_vm14, %v12651_v31 }
 0xca0   :  { %6248 = vmatpush.msrb.mxu0 %v12653_v28  ;;  %5192 = vmatpush.msra.mxu3 %v8911_v39  ;;  %v8970_v39 = vld [vmem:[%s13941_s9 + $0xe0] sm:$0xff] }
 0xca1   :  { %5260 = vmatpush.msra.mxu1 %v12653_v28 }
 0xca2   :  { %6249 = vmatpush.msrb.mxu0 %v12661_v30  ;;  %5193 = vmatpush.msra.mxu3 %v8910_v51 }
 0xca3   :  { %5261 = vmatpush.msra.mxu1 %v12661_v30 }
 0xca4   :  { %6250 = vmatpush.msrb.mxu0 %v12666_v24 }
 0xca5   :  { %5262 = vmatpush.msra.mxu1 %v12666_v24 }
 0xca6   :  { %6251 = vmatpush.msrb.mxu0 %v12671_v2 }
 0xca7   :  { %5263 = vmatpush.msra.mxu1 %v12671_v2 }
 0xca8   :  { %6252 = vmatpush.msrb.mxu0 %v12676_v59 }
 0xca9   :  { %5264 = vmatpush.msra.mxu1 %v12676_v59 }
 0xcaa   :  { %6253 = vmatpush.msrb.mxu0 %v12681_v47 }
 0xcab   :  { %5265 = vmatpush.msra.mxu1 %v12681_v47 }
 0xcac   :  { %6254 = vmatpush.msrb.mxu0 %v12686_v16 }
 0xcad   :  { %5266 = vmatpush.msra.mxu1 %v12686_v16 }
 0xcae   :  { %6255 = vmatpush.msrb.mxu0 %v12691_v22 }
 0xcaf   :  { %5267 = vmatpush.msra.mxu1 %v12691_v22 }
 0xcb0   :  { %6256 = vmatpush.msrb.mxu0 %v12696_v19 }
 0xcb1   :  { %5268 = vmatpush.msra.mxu1 %v12696_v19 }
 0xcb2   :  { %6257 = vmatpush.msrb.mxu0 %v12701_v44 }
 0xcb3   :  { %5269 = vmatpush.msra.mxu1 %v12701_v44 }
 0xcb4   :  { %6258 = vmatpush.msrb.mxu0 %v12706_v6 }
 0xcb5   :  { %5270 = vmatpush.msra.mxu1 %v12706_v6 }
 0xcb6   :  { %6259 = vmatpush.msrb.mxu0 %v12711_v38 }
 0xcb7   :  { %9035 = vmatmul.msk.f32.vlgmr.msrb.gmra.mxu0 %vm4939_vm15, %v9033_v36  ;;  %5271 = vmatpush.msra.mxu1 %v12711_v38 }
 0xcb8   :  { %9052 = vmatpush.msk.msra.mxu0 %vm4943_vm14, %v12651_v31  ;;  %8921 = vmatmul.msk.f32.vlgmr.msra.gmra.mxu1 %vm4939_vm15, %v8919_v1  ;;  %v8964_v1 = vld [vmem:[%s13941_s9 + $0xd0] sm:$0xff] }
 0xcb9   :  { %5452 = vmatpush.msrb.mxu1 %v8941_v13  ;;  %v8995_v13 = vld [vmem:[%s13941_s9 + $0x128] sm:$0xff] }
 0xcba   :  { %6404 = vmatpush.msra.mxu0 %v12653_v28 }
 0xcbb   :  { %5453 = vmatpush.msrb.mxu1 %v8940_v21  ;;  %v8994_v21 = vld [vmem:[%s13941_s9 + $0x120] sm:$0xff] }
 0xcbc   :  { %6405 = vmatpush.msra.mxu0 %v12661_v30 }
 0xcbd   :  { %5504 = vmatpush.msra.mxu1 %v8947_v4  ;;  %v9001_v4 = vld [vmem:[%s13941_s9 + $0x138] sm:$0xff] }
 0xcbe   :  { %6406 = vmatpush.msra.mxu0 %v12666_v24 }
 0xcbf   :  { %5505 = vmatpush.msra.mxu1 %v8946_v55  ;;  %v9000_v55 = vld [vmem:[%s13941_s9 + $0x130] sm:$0xff] }
 0xcc0   :  { %6407 = vmatpush.msra.mxu0 %v12671_v2 }
 0xcc2   :  { %6408 = vmatpush.msra.mxu0 %v12676_v59 }
 0xcc4   :  { %6409 = vmatpush.msra.mxu0 %v12681_v47 }
 0xcc6   :  { %6410 = vmatpush.msra.mxu0 %v12686_v16 }
 0xcc8   :  { %6411 = vmatpush.msra.mxu0 %v12691_v22 }
 0xcca   :  { %6412 = vmatpush.msra.mxu0 %v12696_v19 }
 0xccc   :  { %6413 = vmatpush.msra.mxu0 %v12701_v44 }
 0xcce   :  { %6414 = vmatpush.msra.mxu0 %v12706_v6 }
 0xcd0   :  { %6415 = vmatpush.msra.mxu0 %v12711_v38 }
 0xcd1   :  { %9053 = vmatmul.msk.f32.vlgmr.msra.gmra.mxu0 %vm4939_vm15, %v9051_v46 }
 0xcd2   :  { %9070 = vmatpush.msk.msrb.mxu0 %vm4943_vm14, %v12651_v31 }
 0xcd4   :  { %6560 = vmatpush.msrb.mxu0 %v12653_v28 }
 0xcd6   :  { %6561 = vmatpush.msrb.mxu0 %v12661_v30 }
 0xcd8   :  { %6562 = vmatpush.msrb.mxu0 %v12666_v24 }
 0xcda   :  { %6563 = vmatpush.msrb.mxu0 %v12671_v2 }
 0xcdc   :  { %6564 = vmatpush.msrb.mxu0 %v12676_v59 }
 0xcde   :  { %6565 = vmatpush.msrb.mxu0 %v12681_v47 }
 0xce0   :  { %6566 = vmatpush.msrb.mxu0 %v12686_v16 }
 0xce2   :  { %6567 = vmatpush.msrb.mxu0 %v12691_v22 }
 0xce4   :  { %6568 = vmatpush.msrb.mxu0 %v12696_v19 }
 0xce6   :  { %6569 = vmatpush.msrb.mxu0 %v12701_v44 }
 0xce8   :  { %6570 = vmatpush.msrb.mxu0 %v12706_v6 }
 0xcea   :  { %6571 = vmatpush.msrb.mxu0 %v12711_v38 }
 0xceb   :  { %9071 = vmatmul.msk.f32.vlgmr.msrb.gmra.mxu0 %vm4939_vm15, %v9069_v23  ;;  %v5481_v23 = vpop.f32.mrf.mxu0 }
 0xcec   :  { %9088 = vmatpush.msk.msra.mxu0 %vm4943_vm14, %v12651_v31 }
 0xcee   :  { %6716 = vmatpush.msra.mxu0 %v12653_v28 }
 0xcf0   :  { %6717 = vmatpush.msra.mxu0 %v12661_v30 }
 0xcf2   :  { %6718 = vmatpush.msra.mxu0 %v12666_v24 }
 0xcf3   :  { %v5637_v52 = vpop.f32.mrf.mxu0 }
 0xcf4   :  { %6719 = vmatpush.msra.mxu0 %v12671_v2 }
 0xcf6   :  { %6720 = vmatpush.msra.mxu0 %v12676_v59 }
 0xcf8   :  { %6721 = vmatpush.msra.mxu0 %v12681_v47 }
 0xcfa   :  { %6722 = vmatpush.msra.mxu0 %v12686_v16 }
 0xcfc   :  { %6723 = vmatpush.msra.mxu0 %v12691_v22 }
 0xcfe   :  { %6724 = vmatpush.msra.mxu0 %v12696_v19 }
 0xd00   :  { %6725 = vmatpush.msra.mxu0 %v12701_v44 }
 0xd01   :  { %v13003_v15 = vpop.f32.mrf.mxu1 }
 0xd02   :  { %6726 = vmatpush.msra.mxu0 %v12706_v6 }
 0xd04   :  { %6727 = vmatpush.msra.mxu0 %v12711_v38 }
 0xd05   :  { %9089 = vmatmul.msk.f32.vlgmr.msra.gmra.mxu0 %vm4939_vm15, %v9087_v57 }
 0xd06   :  { %9106 = vmatpush.msk.msrb.mxu0 %vm4943_vm14, %v12651_v31 }
 0xd08   :  { %6872 = vmatpush.msrb.mxu0 %v12653_v28 }
 0xd09   :  { %v13015_v61 = vpop.f32.mrf.mxu1 }
 0xd0a   :  { %6873 = vmatpush.msrb.mxu0 %v12661_v30  ;;  %v5041_v14 = vadd.f32 %v13015_v61, %v13003_v15  ;;  %v8955_v61 = vld [vmem:[%s13940_s8 + $0x18] sm:$0x3] }
 0xd0c   :  { %6874 = vmatpush.msrb.mxu0 %v12666_v24 }
 0xd0e   :  { %6875 = vmatpush.msrb.mxu0 %v12671_v2 }
 0xd10   :  { %6876 = vmatpush.msrb.mxu0 %v12676_v59 }
 0xd12   :  { %6877 = vmatpush.msrb.mxu0 %v12681_v47 }
 0xd14   :  { %6878 = vmatpush.msrb.mxu0 %v12686_v16 }
 0xd16   :  { %6879 = vmatpush.msrb.mxu0 %v12691_v22 }
 0xd18   :  { %6880 = vmatpush.msrb.mxu0 %v12696_v19 }
 0xd1a   :  { %6881 = vmatpush.msrb.mxu0 %v12701_v44 }
 0xd1b   :  { %v5117_v40 = vpop.f32.mrf.mxu1 }
 0xd1c   :  { %6882 = vmatpush.msrb.mxu0 %v12706_v6  ;;  %8906 = vmatmul.msk.f32.vlgmr.msrb.gmra.mxu3 %vm4798_vm9, %v5117_v40  ;;  %v8958_v40 = vld [vmem:[%s13941_s9 + $0xc0] sm:$0xff] }
 0xd1d   :  { %8914 = vmatpush.msk.msrb.mxu3 %vm4943_vm14, %v12651_v31 }
 0xd1e   :  { %6883 = vmatpush.msrb.mxu0 %v12711_v38 }
 0xd1f   :  { %9107 = vmatmul.msk.f32.vlgmr.msrb.gmra.mxu0 %vm4939_vm15, %v9105_v45  ;;  %5208 = vmatpush.msrb.mxu3 %v12653_v28 }
 0xd20   :  { %7064 = vmatpush.msra.mxu0 %v9127_v25 }
 0xd21   :  { %5209 = vmatpush.msrb.mxu3 %v12661_v30 }
 0xd22   :  { %7065 = vmatpush.msra.mxu0 %v9126_v43  ;;  %v5091_v9 = vpop.f32.mrf.mxu3  ;;  %v8959_v43 = vld [vmem:[%s13941_s9 + $0xc8] sm:$0xff] }
 0xd23   :  { %5210 = vmatpush.msrb.mxu3 %v12666_v24  ;;  %v5094_v12 = vadd.f32 %v5091_v9, %v5041_v14 }
 0xd24   :  { %9130 = vmatpush.msk.msrb.mxu0 %vm4943_vm14, %v12651_v31  ;;  %8912 = vmatmul.msk.f32.vlgmr.msra.gmra.mxu3 %vm4798_vm9, %v5169_v50  ;;  %v8965_v50 = vld [vmem:[%s13941_s9 + $0xd8] sm:$0xff] }
 0xd25   :  { %5211 = vmatpush.msrb.mxu3 %v12671_v2 }
 0xd26   :  { %7080 = vmatpush.msrb.mxu0 %v12653_v28 }
 0xd27   :  { %5212 = vmatpush.msrb.mxu3 %v12676_v59 }
 0xd28   :  { %7081 = vmatpush.msrb.mxu0 %v12661_v30 }
 0xd29   :  { %5213 = vmatpush.msrb.mxu3 %v12681_v47 }
 0xd2a   :  { %7082 = vmatpush.msrb.mxu0 %v12666_v24 }
 0xd2b   :  { %5214 = vmatpush.msrb.mxu3 %v12686_v16 }
 0xd2c   :  { %7083 = vmatpush.msrb.mxu0 %v12671_v2 }
 0xd2d   :  { %5215 = vmatpush.msrb.mxu3 %v12691_v22 }
 0xd2e   :  { %7084 = vmatpush.msrb.mxu0 %v12676_v59 }
 0xd2f   :  { %5216 = vmatpush.msrb.mxu3 %v12696_v19 }
 0xd30   :  { %7085 = vmatpush.msrb.mxu0 %v12681_v47 }
 0xd31   :  { %5217 = vmatpush.msrb.mxu3 %v12701_v44 }
 0xd32   :  { %7086 = vmatpush.msrb.mxu0 %v12686_v16 }
 0xd33   :  { %5218 = vmatpush.msrb.mxu3 %v12706_v6 }
 0xd34   :  { %7087 = vmatpush.msrb.mxu0 %v12691_v22 }
 0xd35   :  { %5219 = vmatpush.msrb.mxu3 %v12711_v38  ;;  %v5273_v29 = vpop.f32.mrf.mxu1 }
 0xd36   :  { %7088 = vmatpush.msrb.mxu0 %v12696_v19  ;;  %8915 = vmatmul.msk.f32.vlgmr.msrb.gmra.mxu3 %vm4939_vm15, %v8913_v48 }
 0xd37   :  { %5400 = vmatpush.msra.mxu3 %v8935_v41 }
 0xd38   :  { %7089 = vmatpush.msrb.mxu0 %v12701_v44 }
 0xd39   :  { %5401 = vmatpush.msra.mxu3 %v8934_v34 }
 0xd3a   :  { %7090 = vmatpush.msrb.mxu0 %v12706_v6 }
 0xd3b   :  { %8938 = vmatpush.msk.msrb.mxu3 %vm4943_vm14, %v12651_v31 }
 0xd3c   :  { %7091 = vmatpush.msrb.mxu0 %v12711_v38 }
 0xd3d   :  { %5416 = vmatpush.msrb.mxu3 %v12653_v28 }
 0xd3f   :  { %5417 = vmatpush.msrb.mxu3 %v12661_v30 }
 0xd41   :  { %5418 = vmatpush.msrb.mxu3 %v12666_v24 }
 0xd43   :  { %5419 = vmatpush.msrb.mxu3 %v12671_v2 }
 0xd45   :  { %5420 = vmatpush.msrb.mxu3 %v12676_v59 }
 0xd47   :  { %5421 = vmatpush.msrb.mxu3 %v12681_v47 }
 0xd49   :  { %5422 = vmatpush.msrb.mxu3 %v12686_v16 }
 0xd4b   :  { %5423 = vmatpush.msrb.mxu3 %v12691_v22 }
 0xd4d   :  { %5424 = vmatpush.msrb.mxu3 %v12696_v19 }
 0xd4f   :  { %5425 = vmatpush.msrb.mxu3 %v12701_v44 }
 0xd51   :  { %5426 = vmatpush.msrb.mxu3 %v12706_v6 }
 0xd53   :  { %5427 = vmatpush.msrb.mxu3 %v12711_v38 }
 0xd9f   :  { %v5143_v5 = vpop.f32.mrf.mxu3 }
 0xda0   :  { %v5146_v0 = vadd.f32 %v5143_v5, %v5094_v12  ;;  %v5793_v12 = vpop.f32.mrf.mxu0 }
 0xda7   :  { %v5195_v26 = vpop.f32.mrf.mxu3 }
 0xda8   :  { %v5198_v56 = vadd.f32 %v5195_v26, %v5146_v0  ;;  %v9007_v0 = vld [vmem:[%s13941_s9 + $0x148] sm:$0xff] }
 0xdb9   :  { %v5221_v37 = vpop.f32.mrf.mxu3 }
 0xdba   :  { %8918 = vmatmul.msk.f32.vlgmr.msra.gmra.mxu2 %vm4798_vm9, %v5221_v37 }
 0xdbb   :  { %5348 = vmatpush.msra.mxu2 %v8929_v60 }
 0xdbd   :  { %5349 = vmatpush.msra.mxu2 %v8928_v42  ;;  %v8973_v42 = vld [vmem:[%s13940_s8 + $0x1e] sm:$0x3] }
 0xdc2   :  { %8924 = vmatmul.msk.f32.vlgmr.msrb.gmra.mxu2 %vm4798_vm9, %v5273_v29  ;;  %v8977_v29 = vld [vmem:[%s13941_s9 + $0xf8] sm:$0xff] }
 0xdc3   :  { %8932 = vmatpush.msk.msrb.mxu2 %vm4943_vm14, %v12651_v31 }
 0xdc5   :  { %5364 = vmatpush.msrb.mxu2 %v12653_v28 }
 0xdc7   :  { %5365 = vmatpush.msrb.mxu2 %v12661_v30 }
 0xdc9   :  { %5366 = vmatpush.msrb.mxu2 %v12666_v24 }
 0xdca   :  { %8930 = vmatmul.msk.f32.vlgmr.msra.gmra.mxu2 %vm4798_vm9, %v5325_v17  ;;  %v8976_v17 = vld [vmem:[%s13941_s9 + $0xf0] sm:$0xff] }
 0xdcb   :  { %5367 = vmatpush.msrb.mxu2 %v12671_v2 }
 0xdcd   :  { %5368 = vmatpush.msrb.mxu2 %v12676_v59 }
 0xdcf   :  { %5369 = vmatpush.msrb.mxu2 %v12681_v47 }
 0xdd1   :  { %5370 = vmatpush.msrb.mxu2 %v12686_v16 }
 0xdd3   :  { %5371 = vmatpush.msrb.mxu2 %v12691_v22 }
 0xdd5   :  { %5372 = vmatpush.msrb.mxu2 %v12696_v19 }
 0xdd7   :  { %5373 = vmatpush.msrb.mxu2 %v12701_v44 }
 0xdd9   :  { %5374 = vmatpush.msrb.mxu2 %v12706_v6 }
 0xddb   :  { %5375 = vmatpush.msrb.mxu2 %v12711_v38 }
 0xddc   :  { %8933 = vmatmul.msk.f32.vlgmr.msrb.gmra.mxu2 %vm4939_vm15, %v8931_v11  ;;  %v8983_v11 = vld [vmem:[%s13941_s9 + $0x108] sm:$0xff] }
 0xddd   :  { %5556 = vmatpush.msra.mxu2 %v8953_v49  ;;  %v8982_v49 = vld [vmem:[%s13941_s9 + $0x100] sm:$0xff] }
 0xddf   :  { %5557 = vmatpush.msra.mxu2 %v8952_v63 }
 0xde1   :  { %8956 = vmatpush.msk.msrb.mxu2 %vm4943_vm14, %v12651_v31 }
 0xde3   :  { %5572 = vmatpush.msrb.mxu2 %v12653_v28 }
 0xde5   :  { %5573 = vmatpush.msrb.mxu2 %v12661_v30 }
 0xde7   :  { %5574 = vmatpush.msrb.mxu2 %v12666_v24 }
 0xde9   :  { %5575 = vmatpush.msrb.mxu2 %v12671_v2 }
 0xdeb   :  { %5576 = vmatpush.msrb.mxu2 %v12676_v59 }
 0xded   :  { %5577 = vmatpush.msrb.mxu2 %v12681_v47 }
 0xdef   :  { %5578 = vmatpush.msrb.mxu2 %v12686_v16 }
 0xdf1   :  { %5579 = vmatpush.msrb.mxu2 %v12691_v22 }
 0xdf3   :  { %5580 = vmatpush.msrb.mxu2 %v12696_v19 }
 0xdf5   :  { %5581 = vmatpush.msrb.mxu2 %v12701_v44 }
 0xdf7   :  { %5582 = vmatpush.msrb.mxu2 %v12706_v6 }
 0xdf9   :  { %5583 = vmatpush.msrb.mxu2 %v12711_v38 }
 0xe3d   :  { %v5247_v53 = vpop.f32.mrf.mxu2 }
 0xe3e   :  { %v5250_v35 = vadd.f32 %v5247_v53, %v5198_v56  ;;  %v9006_v56 = vld [vmem:[%s13941_s9 + $0x140] sm:$0xff] }
 0xe45   :  { %v5299_v3 = vpop.f32.mrf.mxu2 }
 0xe46   :  { %v5302_v8 = vadd.f32 %v5299_v3, %v5250_v35  ;;  %v8985_v3 = vld [vmem:[%s13940_s8 + $0x22] sm:$0x3] }
 0xe4d   :  { %v5351_v10 = vpop.f32.mrf.mxu2 }
 0xe4e   :  { %v5354_v27 = vadd.f32 %v5351_v10, %v5302_v8 }
 0xe5f   :  { %v5377_v18 = vpop.f32.mrf.mxu2 }
 0xe60   :  { %8936 = vmatmul.msk.f32.vlgmr.msra.gmra.mxu3 %vm4798_vm9, %v5377_v18 }
 0xe61   :  { %5608 = vmatpush.msra.mxu3 %v8959_v43  ;;  %v9013_v43 = vld [vmem:[%s13941_s9 + $0x158] sm:$0xff] }
 0xe63   :  { %5609 = vmatpush.msra.mxu3 %v8958_v40  ;;  %v9012_v40 = vld [vmem:[%s13941_s9 + $0x150] sm:$0xff] }
 0xe68   :  { %8939 = vmatmul.msk.f32.vlgmr.msrb.gmra.mxu3 %vm4939_vm15, %v8937_v62  ;;  %v8991_v62 = vld [vmem:[%s13940_s8 + $0x24] sm:$0x3] }
 0xe69   :  { %5660 = vmatpush.msrb.mxu3 %v8965_v50  ;;  %v9019_v50 = vld [vmem:[%s13941_s9 + $0x168] sm:$0xff] }
 0xe6b   :  { %5661 = vmatpush.msrb.mxu3 %v8964_v1  ;;  %v9018_v1 = vld [vmem:[%s13941_s9 + $0x160] sm:$0xff] }
 0xee3   :  { %v5403_v33 = vpop.f32.mrf.mxu3 }
 0xee4   :  { %v5406_v36 = vadd.f32 %v5403_v33, %v5354_v27 }
 0xeeb   :  { %v5429_v46 = vpop.f32.mrf.mxu3 }
 0xeec   :  { %8942 = vmatmul.msk.f32.vlgmr.msrb.gmra.mxu1 %vm4798_vm9, %v5429_v46 }
 0xeed   :  { %8950 = vmatpush.msk.msrb.mxu1 %vm4943_vm14, %v12651_v31 }
 0xeef   :  { %5520 = vmatpush.msrb.mxu1 %v12653_v28 }
 0xef1   :  { %5521 = vmatpush.msrb.mxu1 %v12661_v30 }
 0xef3   :  { %5522 = vmatpush.msrb.mxu1 %v12666_v24 }
 0xef4   :  { %8948 = vmatmul.msk.f32.vlgmr.msra.gmra.mxu1 %vm4798_vm9, %v5481_v23  ;;  %v5949_v23 = vpop.f32.mrf.mxu0 }
 0xef5   :  { %5523 = vmatpush.msrb.mxu1 %v12671_v2 }
 0xef7   :  { %5524 = vmatpush.msrb.mxu1 %v12676_v59 }
 0xef9   :  { %5525 = vmatpush.msrb.mxu1 %v12681_v47 }
 0xefb   :  { %5526 = vmatpush.msrb.mxu1 %v12686_v16 }
 0xefd   :  { %5527 = vmatpush.msrb.mxu1 %v12691_v22 }
 0xeff   :  { %5528 = vmatpush.msrb.mxu1 %v12696_v19 }
 0xf01   :  { %5529 = vmatpush.msrb.mxu1 %v12701_v44 }
 0xf03   :  { %5530 = vmatpush.msrb.mxu1 %v12706_v6 }
 0xf05   :  { %5531 = vmatpush.msrb.mxu1 %v12711_v38 }
 0xf06   :  { %8951 = vmatmul.msk.f32.vlgmr.msrb.gmra.mxu1 %vm4939_vm15, %v8949_v54  ;;  %v9003_v54 = vld [vmem:[%s13940_s8 + $0x28] sm:$0x3] }
 0xf07   :  { %5712 = vmatpush.msra.mxu1 %v8971_v7  ;;  %v9025_v7 = vld [vmem:[%s13941_s9 + $0x178] sm:$0xff] }
 0xf09   :  { %5713 = vmatpush.msra.mxu1 %v8970_v39  ;;  %v9024_v39 = vld [vmem:[%s13941_s9 + $0x170] sm:$0xff] }
 0xf0b   :  { %8974 = vmatpush.msk.msrb.mxu1 %vm4943_vm14, %v12651_v31 }
 0xf0d   :  { %5728 = vmatpush.msrb.mxu1 %v12653_v28 }
 0xf0f   :  { %5729 = vmatpush.msrb.mxu1 %v12661_v30 }
 0xf11   :  { %5730 = vmatpush.msrb.mxu1 %v12666_v24 }
 0xf13   :  { %5731 = vmatpush.msrb.mxu1 %v12671_v2 }
 0xf15   :  { %5732 = vmatpush.msrb.mxu1 %v12676_v59 }
 0xf17   :  { %5733 = vmatpush.msrb.mxu1 %v12681_v47 }
 0xf19   :  { %5734 = vmatpush.msrb.mxu1 %v12686_v16 }
 0xf1b   :  { %5735 = vmatpush.msrb.mxu1 %v12691_v22 }
 0xf1d   :  { %5736 = vmatpush.msrb.mxu1 %v12696_v19 }
 0xf1f   :  { %5737 = vmatpush.msrb.mxu1 %v12701_v44 }
 0xf21   :  { %5738 = vmatpush.msrb.mxu1 %v12706_v6 }
 0xf23   :  { %5739 = vmatpush.msrb.mxu1 %v12711_v38 }
 0xf69   :  { %v5455_v57 = vpop.f32.mrf.mxu1 }
 0xf6a   :  { %v5458_v51 = vadd.f32 %v5455_v57, %v5406_v36 }
 0xf71   :  { %v5507_v15 = vpop.f32.mrf.mxu1 }
 0xf72   :  { %v5510_v25 = vadd.f32 %v5507_v15, %v5458_v51 }
 0xf83   :  { %v5533_v45 = vpop.f32.mrf.mxu1 }
 0xf84   :  { %8954 = vmatmul.msk.f32.vlgmr.msra.gmra.mxu2 %vm4798_vm9, %v5533_v45 }
 0xf85   :  { %5764 = vmatpush.msra.mxu2 %v8977_v29  ;;  %v9031_v29 = vld [vmem:[%s13941_s9 + $0x188] sm:$0xff] }
 0xf87   :  { %5765 = vmatpush.msra.mxu2 %v8976_v17  ;;  %v9030_v17 = vld [vmem:[%s13941_s9 + $0x180] sm:$0xff] }
 0xf8c   :  { %8957 = vmatmul.msk.f32.vlgmr.msrb.gmra.mxu2 %vm4939_vm15, %v8955_v61  ;;  %v9009_v61 = vld [vmem:[%s13940_s8 + $0x2a] sm:$0x3] }
 0xf8d   :  { %5816 = vmatpush.msrb.mxu2 %v8983_v11  ;;  %v9037_v11 = vld [vmem:[%s13941_s9 + $0x198] sm:$0xff] }
 0xf8f   :  { %5817 = vmatpush.msrb.mxu2 %v8982_v49  ;;  %v9036_v49 = vld [vmem:[%s13941_s9 + $0x190] sm:$0xff] }
0x1007   :  { %v5559_v48 = vpop.f32.mrf.mxu2 }
0x1008   :  { %v5562_v41 = vadd.f32 %v5559_v48, %v5510_v25 }
0x100f   :  { %v5585_v34 = vpop.f32.mrf.mxu2 }
0x1010   :  { %8960 = vmatmul.msk.f32.vlgmr.msra.gmra.mxu3 %vm4798_vm9, %v5585_v34 }
0x1011   :  { %8968 = vmatpush.msk.msra.mxu3 %vm4943_vm14, %v12651_v31 }
0x1013   :  { %5676 = vmatpush.msra.mxu3 %v12653_v28 }
0x1015   :  { %5677 = vmatpush.msra.mxu3 %v12661_v30 }
0x1017   :  { %5678 = vmatpush.msra.mxu3 %v12666_v24 }
0x1018   :  { %8966 = vmatmul.msk.f32.vlgmr.msrb.gmra.mxu3 %vm4798_vm9, %v5637_v52  ;;  %v6105_v52 = vpop.f32.mrf.mxu0 }
0x1019   :  { %5679 = vmatpush.msra.mxu3 %v12671_v2 }
0x101b   :  { %5680 = vmatpush.msra.mxu3 %v12676_v59 }
0x101d   :  { %5681 = vmatpush.msra.mxu3 %v12681_v47 }
0x101f   :  { %5682 = vmatpush.msra.mxu3 %v12686_v16 }
0x1021   :  { %5683 = vmatpush.msra.mxu3 %v12691_v22 }
0x1023   :  { %5684 = vmatpush.msra.mxu3 %v12696_v19 }
0x1025   :  { %5685 = vmatpush.msra.mxu3 %v12701_v44 }
0x1027   :  { %5686 = vmatpush.msra.mxu3 %v12706_v6 }
0x1029   :  { %5687 = vmatpush.msra.mxu3 %v12711_v38 }
0x102a   :  { %8969 = vmatmul.msk.f32.vlgmr.msra.gmra.mxu3 %vm4939_vm15, %v8967_v58  ;;  %v9021_v58 = vld [vmem:[%s13940_s8 + $0x2e] sm:$0x3] }
0x102b   :  { %5868 = vmatpush.msrb.mxu3 %v8989_v20  ;;  %v9043_v20 = vld [vmem:[%s13941_s9 + $0x1a8] sm:$0xff] }
0x102d   :  { %5869 = vmatpush.msrb.mxu3 %v8988_v32  ;;  %v9042_v32 = vld [vmem:[%s13941_s9 + $0x1a0] sm:$0xff] }
0x102f   :  { %8992 = vmatpush.msk.msra.mxu3 %vm4943_vm14, %v12651_v31 }
0x1031   :  { %5884 = vmatpush.msra.mxu3 %v12653_v28 }
0x1033   :  { %5885 = vmatpush.msra.mxu3 %v12661_v30 }
0x1035   :  { %5886 = vmatpush.msra.mxu3 %v12666_v24 }
0x1037   :  { %5887 = vmatpush.msra.mxu3 %v12671_v2 }
0x1039   :  { %5888 = vmatpush.msra.mxu3 %v12676_v59 }
0x103b   :  { %5889 = vmatpush.msra.mxu3 %v12681_v47 }
0x103d   :  { %5890 = vmatpush.msra.mxu3 %v12686_v16 }
0x103f   :  { %5891 = vmatpush.msra.mxu3 %v12691_v22 }
0x1041   :  { %5892 = vmatpush.msra.mxu3 %v12696_v19 }
0x1043   :  { %5893 = vmatpush.msra.mxu3 %v12701_v44 }
0x1045   :  { %5894 = vmatpush.msra.mxu3 %v12706_v6 }
0x1047   :  { %5895 = vmatpush.msra.mxu3 %v12711_v38 }
0x1093   :  { %v5611_v9 = vpop.f32.mrf.mxu3 }
0x1094   :  { %v5614_v5 = vadd.f32 %v5611_v9, %v5562_v41 }
0x109b   :  { %v5663_v26 = vpop.f32.mrf.mxu3 }
0x109c   :  { %v5666_v60 = vadd.f32 %v5663_v26, %v5614_v5 }
0x10ad   :  { %v5689_v37 = vpop.f32.mrf.mxu3 }
0x10ae   :  { %8972 = vmatmul.msk.f32.vlgmr.msra.gmra.mxu1 %vm4798_vm9, %v5689_v37 }
0x10af   :  { %5920 = vmatpush.msra.mxu1 %v8995_v13  ;;  %v9049_v13 = vld [vmem:[%s13941_s9 + $0x1b8] sm:$0xff] }
0x10b1   :  { %5921 = vmatpush.msra.mxu1 %v8994_v21  ;;  %v9048_v21 = vld [vmem:[%s13941_s9 + $0x1b0] sm:$0xff] }
0x10b6   :  { %8975 = vmatmul.msk.f32.vlgmr.msrb.gmra.mxu1 %vm4939_vm15, %v8973_v42  ;;  %v9027_v42 = vld [vmem:[%s13940_s8 + $0x30] sm:$0x3] }
0x10b7   :  { %5972 = vmatpush.msrb.mxu1 %v9001_v4  ;;  %v9055_v4 = vld [vmem:[%s13941_s9 + $0x1c8] sm:$0xff] }
0x10b9   :  { %5973 = vmatpush.msrb.mxu1 %v9000_v55  ;;  %v9054_v55 = vld [vmem:[%s13941_s9 + $0x1c0] sm:$0xff] }
0x112b   :  { %v5715_v63 = vpop.f32.mrf.mxu1 }
0x112c   :  { %v5718_v53 = vadd.f32 %v5715_v63, %v5666_v60 }
0x1133   :  { %v5741_v14 = vpop.f32.mrf.mxu1 }
0x1134   :  { %8978 = vmatmul.msk.f32.vlgmr.msra.gmra.mxu2 %vm4798_vm9, %v5741_v14 }
0x1135   :  { %8986 = vmatpush.msk.msra.mxu2 %vm4943_vm14, %v12651_v31 }
0x1137   :  { %5832 = vmatpush.msra.mxu2 %v12653_v28 }
0x1139   :  { %5833 = vmatpush.msra.mxu2 %v12661_v30 }
0x113b   :  { %5834 = vmatpush.msra.mxu2 %v12666_v24 }
0x113c   :  { %8984 = vmatmul.msk.f32.vlgmr.msrb.gmra.mxu2 %vm4798_vm9, %v5793_v12  ;;  %v6261_v12 = vpop.f32.mrf.mxu0 }
0x113d   :  { %5835 = vmatpush.msra.mxu2 %v12671_v2 }
0x113f   :  { %5836 = vmatpush.msra.mxu2 %v12676_v59 }
0x1141   :  { %5837 = vmatpush.msra.mxu2 %v12681_v47 }
0x1143   :  { %5838 = vmatpush.msra.mxu2 %v12686_v16 }
0x1145   :  { %5839 = vmatpush.msra.mxu2 %v12691_v22 }
0x1147   :  { %5840 = vmatpush.msra.mxu2 %v12696_v19 }
0x1149   :  { %5841 = vmatpush.msra.mxu2 %v12701_v44 }
0x114b   :  { %5842 = vmatpush.msra.mxu2 %v12706_v6 }
0x114d   :  { %5843 = vmatpush.msra.mxu2 %v12711_v38 }
0x114e   :  { %8987 = vmatmul.msk.f32.vlgmr.msra.gmra.mxu2 %vm4939_vm15, %v8985_v3  ;;  %v9039_v3 = vld [vmem:[%s13940_s8 + $0x34] sm:$0x3] }
0x114f   :  { %6024 = vmatpush.msrb.mxu2 %v9007_v0  ;;  %v9061_v0 = vld [vmem:[%s13941_s9 + $0x1d8] sm:$0xff] }
0x1151   :  { %6025 = vmatpush.msrb.mxu2 %v9006_v56  ;;  %v9060_v56 = vld [vmem:[%s13941_s9 + $0x1d0] sm:$0xff] }
0x1153   :  { %9010 = vmatpush.msk.msra.mxu2 %vm4943_vm14, %v12651_v31 }
0x1155   :  { %6040 = vmatpush.msra.mxu2 %v12653_v28 }
0x1157   :  { %6041 = vmatpush.msra.mxu2 %v12661_v30 }
0x1159   :  { %6042 = vmatpush.msra.mxu2 %v12666_v24 }
0x115b   :  { %6043 = vmatpush.msra.mxu2 %v12671_v2 }
0x115d   :  { %6044 = vmatpush.msra.mxu2 %v12676_v59 }
0x115f   :  { %6045 = vmatpush.msra.mxu2 %v12681_v47 }
0x1161   :  { %6046 = vmatpush.msra.mxu2 %v12686_v16 }
0x1163   :  { %6047 = vmatpush.msra.mxu2 %v12691_v22 }
0x1165   :  { %6048 = vmatpush.msra.mxu2 %v12696_v19 }
0x1167   :  { %6049 = vmatpush.msra.mxu2 %v12701_v44 }
0x1169   :  { %6050 = vmatpush.msra.mxu2 %v12706_v6 }
0x116b   :  { %6051 = vmatpush.msra.mxu2 %v12711_v38 }
0x11b7   :  { %v5767_v35 = vpop.f32.mrf.mxu2 }
0x11b8   :  { %v5770_v8 = vadd.f32 %v5767_v35, %v5718_v53 }
0x11bf   :  { %v5819_v10 = vpop.f32.mrf.mxu2 }
0x11c0   :  { %v5822_v27 = vadd.f32 %v5819_v10, %v5770_v8 }
0x11d1   :  { %v5845_v18 = vpop.f32.mrf.mxu2 }
0x11d2   :  { %8990 = vmatmul.msk.f32.vlgmr.msrb.gmra.mxu3 %vm4798_vm9, %v5845_v18 }
0x11d3   :  { %6076 = vmatpush.msrb.mxu3 %v9013_v43  ;;  %v9067_v43 = vld [vmem:[%s13941_s9 + $0x1e8] sm:$0xff] }
0x11d5   :  { %6077 = vmatpush.msrb.mxu3 %v9012_v40  ;;  %v9066_v40 = vld [vmem:[%s13941_s9 + $0x1e0] sm:$0xff] }
0x11da   :  { %8993 = vmatmul.msk.f32.vlgmr.msra.gmra.mxu3 %vm4939_vm15, %v8991_v62  ;;  %v9045_v62 = vld [vmem:[%s13940_s8 + $0x36] sm:$0x3] }
0x11db   :  { %6128 = vmatpush.msra.mxu3 %v9019_v50  ;;  %v9073_v50 = vld [vmem:[%s13941_s9 + $0x1f8] sm:$0xff] }
0x11dd   :  { %6129 = vmatpush.msra.mxu3 %v9018_v1  ;;  %v9072_v1 = vld [vmem:[%s13941_s9 + $0x1f0] sm:$0xff] }
0x1255   :  { %v5871_v33 = vpop.f32.mrf.mxu3 }
0x1256   :  { %v5874_v36 = vadd.f32 %v5871_v33, %v5822_v27 }
0x125d   :  { %v5897_v46 = vpop.f32.mrf.mxu3 }
0x125e   :  { %8996 = vmatmul.msk.f32.vlgmr.msra.gmra.mxu1 %vm4798_vm9, %v5897_v46 }
0x125f   :  { %9004 = vmatpush.msk.msra.mxu1 %vm4943_vm14, %v12651_v31 }
0x1261   :  { %5988 = vmatpush.msra.mxu1 %v12653_v28 }
0x1263   :  { %5989 = vmatpush.msra.mxu1 %v12661_v30 }
0x1265   :  { %5990 = vmatpush.msra.mxu1 %v12666_v24 }
0x1266   :  { %9002 = vmatmul.msk.f32.vlgmr.msrb.gmra.mxu1 %vm4798_vm9, %v5949_v23  ;;  %v6417_v23 = vpop.f32.mrf.mxu0 }
0x1267   :  { %5991 = vmatpush.msra.mxu1 %v12671_v2 }
0x1269   :  { %5992 = vmatpush.msra.mxu1 %v12676_v59 }
0x126b   :  { %5993 = vmatpush.msra.mxu1 %v12681_v47 }
0x126d   :  { %5994 = vmatpush.msra.mxu1 %v12686_v16 }
0x126f   :  { %5995 = vmatpush.msra.mxu1 %v12691_v22 }
0x1271   :  { %5996 = vmatpush.msra.mxu1 %v12696_v19 }
0x1273   :  { %5997 = vmatpush.msra.mxu1 %v12701_v44 }
0x1275   :  { %5998 = vmatpush.msra.mxu1 %v12706_v6 }
0x1277   :  { %5999 = vmatpush.msra.mxu1 %v12711_v38 }
0x1278   :  { %9005 = vmatmul.msk.f32.vlgmr.msra.gmra.mxu1 %vm4939_vm15, %v9003_v54  ;;  %v9057_v54 = vld [vmem:[%s13940_s8 + $0x3a] sm:$0x3] }
0x1279   :  { %6180 = vmatpush.msrb.mxu1 %v9025_v7  ;;  %v9079_v7 = vld [vmem:[%s13941_s9 + $0x208] sm:$0xff] }
0x127b   :  { %6181 = vmatpush.msrb.mxu1 %v9024_v39  ;;  %v9078_v39 = vld [vmem:[%s13941_s9 + $0x200] sm:$0xff] }
0x127d   :  { %9028 = vmatpush.msk.msra.mxu1 %vm4943_vm14, %v12651_v31 }
0x127f   :  { %6196 = vmatpush.msra.mxu1 %v12653_v28 }
0x1281   :  { %6197 = vmatpush.msra.mxu1 %v12661_v30 }
0x1283   :  { %6198 = vmatpush.msra.mxu1 %v12666_v24 }
0x1285   :  { %6199 = vmatpush.msra.mxu1 %v12671_v2 }
0x1287   :  { %6200 = vmatpush.msra.mxu1 %v12676_v59 }
0x1289   :  { %6201 = vmatpush.msra.mxu1 %v12681_v47 }
0x128b   :  { %6202 = vmatpush.msra.mxu1 %v12686_v16 }
0x128d   :  { %6203 = vmatpush.msra.mxu1 %v12691_v22 }
0x128f   :  { %6204 = vmatpush.msra.mxu1 %v12696_v19 }
0x1291   :  { %6205 = vmatpush.msra.mxu1 %v12701_v44 }
0x1293   :  { %6206 = vmatpush.msra.mxu1 %v12706_v6 }
0x1295   :  { %6207 = vmatpush.msra.mxu1 %v12711_v38 }
0x12db   :  { %v5923_v57 = vpop.f32.mrf.mxu1 }
0x12dc   :  { %v5926_v51 = vadd.f32 %v5923_v57, %v5874_v36 }
0x12e3   :  { %v5975_v15 = vpop.f32.mrf.mxu1 }
0x12e4   :  { %v5978_v25 = vadd.f32 %v5975_v15, %v5926_v51 }
0x12f5   :  { %v6001_v45 = vpop.f32.mrf.mxu1 }
0x12f6   :  { %9008 = vmatmul.msk.f32.vlgmr.msrb.gmra.mxu2 %vm4798_vm9, %v6001_v45 }
0x12f7   :  { %6232 = vmatpush.msrb.mxu2 %v9031_v29  ;;  %v9085_v29 = vld [vmem:[%s13941_s9 + $0x218] sm:$0xff] }
0x12f9   :  { %6233 = vmatpush.msrb.mxu2 %v9030_v17  ;;  %v9084_v17 = vld [vmem:[%s13941_s9 + $0x210] sm:$0xff] }
0x12fe   :  { %9011 = vmatmul.msk.f32.vlgmr.msra.gmra.mxu2 %vm4939_vm15, %v9009_v61  ;;  %v9063_v61 = vld [vmem:[%s13940_s8 + $0x3c] sm:$0x3] }
0x12ff   :  { %6284 = vmatpush.msra.mxu2 %v9037_v11  ;;  %v9091_v11 = vld [vmem:[%s13941_s9 + $0x228] sm:$0xff] }
0x1301   :  { %6285 = vmatpush.msra.mxu2 %v9036_v49  ;;  %v9090_v49 = vld [vmem:[%s13941_s9 + $0x220] sm:$0xff] }
0x1379   :  { %v6027_v48 = vpop.f32.mrf.mxu2 }
0x137a   :  { %v6030_v41 = vadd.f32 %v6027_v48, %v5978_v25 }
0x1381   :  { %v6053_v34 = vpop.f32.mrf.mxu2 }
0x1382   :  { %9014 = vmatmul.msk.f32.vlgmr.msrb.gmra.mxu3 %vm4798_vm9, %v6053_v34 }
0x1383   :  { %9022 = vmatpush.msk.msrb.mxu3 %vm4943_vm14, %v12651_v31 }
0x1385   :  { %6144 = vmatpush.msrb.mxu3 %v12653_v28 }
0x1387   :  { %6145 = vmatpush.msrb.mxu3 %v12661_v30 }
0x1389   :  { %6146 = vmatpush.msrb.mxu3 %v12666_v24 }
0x138a   :  { %9020 = vmatmul.msk.f32.vlgmr.msra.gmra.mxu3 %vm4798_vm9, %v6105_v52  ;;  %v6573_v52 = vpop.f32.mrf.mxu0 }
0x138b   :  { %6147 = vmatpush.msrb.mxu3 %v12671_v2 }
0x138d   :  { %6148 = vmatpush.msrb.mxu3 %v12676_v59 }
0x138f   :  { %6149 = vmatpush.msrb.mxu3 %v12681_v47 }
0x1391   :  { %6150 = vmatpush.msrb.mxu3 %v12686_v16 }
0x1393   :  { %6151 = vmatpush.msrb.mxu3 %v12691_v22 }
0x1395   :  { %6152 = vmatpush.msrb.mxu3 %v12696_v19 }
0x1397   :  { %6153 = vmatpush.msrb.mxu3 %v12701_v44 }
0x1399   :  { %6154 = vmatpush.msrb.mxu3 %v12706_v6 }
0x139b   :  { %6155 = vmatpush.msrb.mxu3 %v12711_v38 }
0x139c   :  { %9023 = vmatmul.msk.f32.vlgmr.msrb.gmra.mxu3 %vm4939_vm15, %v9021_v58  ;;  %v9075_v58 = vld [vmem:[%s13940_s8 + $0x40] sm:$0x3] }
0x139d   :  { %6336 = vmatpush.msra.mxu3 %v9043_v20  ;;  %v9097_v20 = vld [vmem:[%s13941_s9 + $0x238] sm:$0xff] }
0x139f   :  { %6337 = vmatpush.msra.mxu3 %v9042_v32  ;;  %v9096_v32 = vld [vmem:[%s13941_s9 + $0x230] sm:$0xff] }
0x13a1   :  { %9046 = vmatpush.msk.msrb.mxu3 %vm4943_vm14, %v12651_v31 }
0x13a3   :  { %6352 = vmatpush.msrb.mxu3 %v12653_v28 }
0x13a5   :  { %6353 = vmatpush.msrb.mxu3 %v12661_v30 }
0x13a7   :  { %6354 = vmatpush.msrb.mxu3 %v12666_v24 }
0x13a9   :  { %6355 = vmatpush.msrb.mxu3 %v12671_v2 }
0x13ab   :  { %6356 = vmatpush.msrb.mxu3 %v12676_v59 }
0x13ad   :  { %6357 = vmatpush.msrb.mxu3 %v12681_v47 }
0x13af   :  { %6358 = vmatpush.msrb.mxu3 %v12686_v16 }
0x13b1   :  { %6359 = vmatpush.msrb.mxu3 %v12691_v22 }
0x13b3   :  { %6360 = vmatpush.msrb.mxu3 %v12696_v19 }
0x13b5   :  { %6361 = vmatpush.msrb.mxu3 %v12701_v44 }
0x13b7   :  { %6362 = vmatpush.msrb.mxu3 %v12706_v6 }
0x13b9   :  { %6363 = vmatpush.msrb.mxu3 %v12711_v38 }
0x1405   :  { %v6079_v9 = vpop.f32.mrf.mxu3 }
0x1406   :  { %v6082_v5 = vadd.f32 %v6079_v9, %v6030_v41 }
0x140d   :  { %v6131_v26 = vpop.f32.mrf.mxu3 }
0x140e   :  { %v6134_v60 = vadd.f32 %v6131_v26, %v6082_v5 }
0x141f   :  { %v6157_v37 = vpop.f32.mrf.mxu3 }
0x1420   :  { %9026 = vmatmul.msk.f32.vlgmr.msrb.gmra.mxu1 %vm4798_vm9, %v6157_v37 }
0x1421   :  { %6388 = vmatpush.msrb.mxu1 %v9049_v13  ;;  %v9120_v13 = vld [vmem:[%s13941_s9 + $0x270] sm:$0xff] }
0x1423   :  { %6389 = vmatpush.msrb.mxu1 %v9048_v21  ;;  %v9099_v21 = vld [vmem:[%s13940_s8 + $0x48] sm:$0x3] }
0x1428   :  { %9029 = vmatmul.msk.f32.vlgmr.msra.gmra.mxu1 %vm4939_vm15, %v9027_v42  ;;  %v9081_v42 = vld [vmem:[%s13940_s8 + $0x42] sm:$0x3] }
0x1429   :  { %6440 = vmatpush.msra.mxu1 %v9055_v4  ;;  %v9103_v4 = vld [vmem:[%s13941_s9 + $0x248] sm:$0xff] }
0x142b   :  { %6441 = vmatpush.msra.mxu1 %v9054_v55  ;;  %v9102_v55 = vld [vmem:[%s13941_s9 + $0x240] sm:$0xff] }
0x149d   :  { %v6183_v63 = vpop.f32.mrf.mxu1 }
0x149e   :  { %v6186_v53 = vadd.f32 %v6183_v63, %v6134_v60 }
0x14a5   :  { %v6209_v14 = vpop.f32.mrf.mxu1 }
0x14a6   :  { %9032 = vmatmul.msk.f32.vlgmr.msrb.gmra.mxu2 %vm4798_vm9, %v6209_v14 }
0x14a7   :  { %9040 = vmatpush.msk.msrb.mxu2 %vm4943_vm14, %v12651_v31 }
0x14a9   :  { %6300 = vmatpush.msrb.mxu2 %v12653_v28 }
0x14ab   :  { %6301 = vmatpush.msrb.mxu2 %v12661_v30 }
0x14ad   :  { %6302 = vmatpush.msrb.mxu2 %v12666_v24 }
0x14ae   :  { %9038 = vmatmul.msk.f32.vlgmr.msra.gmra.mxu2 %vm4798_vm9, %v6261_v12  ;;  %v6729_v12 = vpop.f32.mrf.mxu0 }
0x14af   :  { %6303 = vmatpush.msrb.mxu2 %v12671_v2 }
0x14b1   :  { %6304 = vmatpush.msrb.mxu2 %v12676_v59 }
0x14b3   :  { %6305 = vmatpush.msrb.mxu2 %v12681_v47 }
0x14b5   :  { %6306 = vmatpush.msrb.mxu2 %v12686_v16 }
0x14b7   :  { %6307 = vmatpush.msrb.mxu2 %v12691_v22 }
0x14b9   :  { %6308 = vmatpush.msrb.mxu2 %v12696_v19 }
0x14bb   :  { %6309 = vmatpush.msrb.mxu2 %v12701_v44 }
0x14bd   :  { %6310 = vmatpush.msrb.mxu2 %v12706_v6 }
0x14bf   :  { %6311 = vmatpush.msrb.mxu2 %v12711_v38 }
0x14c0   :  { %9041 = vmatmul.msk.f32.vlgmr.msrb.gmra.mxu2 %vm4939_vm15, %v9039_v3  ;;  %v9093_v3 = vld [vmem:[%s13940_s8 + $0x46] sm:$0x3] }
0x14c1   :  { %6492 = vmatpush.msra.mxu2 %v9061_v0  ;;  %v9115_v0 = vld [vmem:[%s13941_s9 + $0x268] sm:$0xff] }
0x14c3   :  { %6493 = vmatpush.msra.mxu2 %v9060_v56  ;;  %v9114_v56 = vld [vmem:[%s13941_s9 + $0x260] sm:$0xff] }
0x14c5   :  { %9064 = vmatpush.msk.msrb.mxu2 %vm4943_vm14, %v12651_v31 }
0x14c7   :  { %6508 = vmatpush.msrb.mxu2 %v12653_v28 }
0x14c9   :  { %6509 = vmatpush.msrb.mxu2 %v12661_v30 }
0x14cb   :  { %6510 = vmatpush.msrb.mxu2 %v12666_v24 }
0x14cd   :  { %6511 = vmatpush.msrb.mxu2 %v12671_v2 }
0x14cf   :  { %6512 = vmatpush.msrb.mxu2 %v12676_v59 }
0x14d1   :  { %6513 = vmatpush.msrb.mxu2 %v12681_v47 }
0x14d3   :  { %6514 = vmatpush.msrb.mxu2 %v12686_v16 }
0x14d5   :  { %6515 = vmatpush.msrb.mxu2 %v12691_v22 }
0x14d7   :  { %6516 = vmatpush.msrb.mxu2 %v12696_v19 }
0x14d9   :  { %6517 = vmatpush.msrb.mxu2 %v12701_v44 }
0x14db   :  { %6518 = vmatpush.msrb.mxu2 %v12706_v6 }
0x14dd   :  { %6519 = vmatpush.msrb.mxu2 %v12711_v38 }
0x1529   :  { %v6235_v35 = vpop.f32.mrf.mxu2 }
0x152a   :  { %v6238_v8 = vadd.f32 %v6235_v35, %v6186_v53 }
0x1531   :  { %v6287_v10 = vpop.f32.mrf.mxu2 }
0x1532   :  { %v6290_v27 = vadd.f32 %v6287_v10, %v6238_v8 }
0x1543   :  { %v6313_v18 = vpop.f32.mrf.mxu2 }
0x1544   :  { %9044 = vmatmul.msk.f32.vlgmr.msra.gmra.mxu3 %vm4798_vm9, %v6313_v18  ;;  %v9121_v18 = vld [vmem:[%s13941_s9 + $0x278] sm:$0xff] }
0x1545   :  { %6544 = vmatpush.msra.mxu3 %v9067_v43  ;;  %v9139_v43 = vld [vmem:[%s13941_s9 + $0x2a8] sm:$0xff] }
0x1547   :  { %6545 = vmatpush.msra.mxu3 %v9066_v40 }
0x154c   :  { %9047 = vmatmul.msk.f32.vlgmr.msrb.gmra.mxu3 %vm4939_vm15, %v9045_v62 }
0x154d   :  { %6596 = vmatpush.msrb.mxu3 %v9073_v50  ;;  %v9138_v50 = vld [vmem:[%s13941_s9 + $0x2a0] sm:$0xff] }
0x154f   :  { %6597 = vmatpush.msrb.mxu3 %v9072_v1  ;;  %v9117_v1 = vld [vmem:[%s13940_s8 + $0x4e] sm:$0x3] }
0x15c7   :  { %v6339_v33 = vpop.f32.mrf.mxu3 }
0x15c8   :  { %v6342_v36 = vadd.f32 %v6339_v33, %v6290_v27  ;;  %v9109_v33 = vld [vmem:[%s13941_s9 + $0x258] sm:$0xff] }
0x15cf   :  { %v6365_v46 = vpop.f32.mrf.mxu3 }
0x15d0   :  { %9050 = vmatmul.msk.f32.vlgmr.msrb.gmra.mxu1 %vm4798_vm9, %v6365_v46 }
0x15d1   :  { %9058 = vmatpush.msk.msrb.mxu1 %vm4943_vm14, %v12651_v31 }
0x15d3   :  { %6456 = vmatpush.msrb.mxu1 %v12653_v28 }
0x15d5   :  { %6457 = vmatpush.msrb.mxu1 %v12661_v30 }
0x15d7   :  { %6458 = vmatpush.msrb.mxu1 %v12666_v24 }
0x15d8   :  { %9056 = vmatmul.msk.f32.vlgmr.msra.gmra.mxu1 %vm4798_vm9, %v6417_v23 }
0x15d9   :  { %6459 = vmatpush.msrb.mxu1 %v12671_v2 }
0x15db   :  { %6460 = vmatpush.msrb.mxu1 %v12676_v59 }
0x15dd   :  { %6461 = vmatpush.msrb.mxu1 %v12681_v47 }
0x15df   :  { %6462 = vmatpush.msrb.mxu1 %v12686_v16 }
0x15e1   :  { %6463 = vmatpush.msrb.mxu1 %v12691_v22 }
0x15e3   :  { %6464 = vmatpush.msrb.mxu1 %v12696_v19 }
0x15e5   :  { %6465 = vmatpush.msrb.mxu1 %v12701_v44 }
0x15e7   :  { %6466 = vmatpush.msrb.mxu1 %v12706_v6 }
0x15e9   :  { %6467 = vmatpush.msrb.mxu1 %v12711_v38 }
0x15ea   :  { %9059 = vmatmul.msk.f32.vlgmr.msrb.gmra.mxu1 %vm4939_vm15, %v9057_v54 }
0x15eb   :  { %6648 = vmatpush.msra.mxu1 %v9079_v7  ;;  %v6885_v7 = vpop.f32.mrf.mxu0 }
0x15ed   :  { %6649 = vmatpush.msra.mxu1 %v9078_v39  ;;  %v9111_v39 = vld [vmem:[%s13940_s8 + $0x4c] sm:$0x3] }
0x15ef   :  { %9082 = vmatpush.msk.msrb.mxu1 %vm4943_vm14, %v12651_v31 }
0x15f1   :  { %6664 = vmatpush.msrb.mxu1 %v12653_v28 }
0x15f3   :  { %6665 = vmatpush.msrb.mxu1 %v12661_v30 }
0x15f5   :  { %6666 = vmatpush.msrb.mxu1 %v12666_v24 }
0x15f7   :  { %6667 = vmatpush.msrb.mxu1 %v12671_v2 }
0x15f9   :  { %6668 = vmatpush.msrb.mxu1 %v12676_v59 }
0x15fb   :  { %6669 = vmatpush.msrb.mxu1 %v12681_v47 }
0x15fd   :  { %6670 = vmatpush.msrb.mxu1 %v12686_v16 }
0x15ff   :  { %6671 = vmatpush.msrb.mxu1 %v12691_v22 }
0x1601   :  { %6672 = vmatpush.msrb.mxu1 %v12696_v19 }
0x1603   :  { %6673 = vmatpush.msrb.mxu1 %v12701_v44 }
0x1605   :  { %6674 = vmatpush.msrb.mxu1 %v12706_v6 }
0x1607   :  { %6675 = vmatpush.msrb.mxu1 %v12711_v38 }
0x164d   :  { %v6391_v57 = vpop.f32.mrf.mxu1 }
0x164e   :  { %v6394_v51 = vadd.f32 %v6391_v57, %v6342_v36  ;;  %v9108_v36 = vld [vmem:[%s13941_s9 + $0x250] sm:$0xff]  ;;  %v9133_v57 = vld [vmem:[%s13941_s9 + $0x298] sm:$0xff] }
0x1655   :  { %v6443_v15 = vpop.f32.mrf.mxu1 }
0x1656   :  { %v6446_v25 = vadd.f32 %v6443_v15, %v6394_v51  ;;  %v9132_v51 = vld [vmem:[%s13941_s9 + $0x290] sm:$0xff] }
0x1667   :  { %v6469_v45 = vpop.f32.mrf.mxu1 }
0x1668   :  { %9062 = vmatmul.msk.f32.vlgmr.msra.gmra.mxu2 %vm4798_vm9, %v6469_v45 }
0x1669   :  { %6700 = vmatpush.msra.mxu2 %v9085_v29 }
0x166b   :  { %6701 = vmatpush.msra.mxu2 %v9084_v17  ;;  %v9157_v17 = vld [vmem:[%s13941_s9 + $0x2d8] sm:$0xff] }
0x1670   :  { %9065 = vmatmul.msk.f32.vlgmr.msrb.gmra.mxu2 %vm4939_vm15, %v9063_v61 }
0x1671   :  { %6752 = vmatpush.msrb.mxu2 %v9091_v11 }
0x1673   :  { %6753 = vmatpush.msrb.mxu2 %v9090_v49  ;;  %v9156_v49 = vld [vmem:[%s13941_s9 + $0x2d0] sm:$0xff] }
0x16eb   :  { %v6495_v48 = vpop.f32.mrf.mxu2 }
0x16ec   :  { %v6498_v41 = vadd.f32 %v6495_v48, %v6446_v25 }
0x16f3   :  { %v6521_v34 = vpop.f32.mrf.mxu2 }
0x16f4   :  { %9068 = vmatmul.msk.f32.vlgmr.msra.gmra.mxu3 %vm4798_vm9, %v6521_v34  ;;  %v9145_v34 = vld [vmem:[%s13941_s9 + $0x2b8] sm:$0xff] }
0x16f5   :  { %9076 = vmatpush.msk.msra.mxu3 %vm4943_vm14, %v12651_v31 }
0x16f7   :  { %6612 = vmatpush.msra.mxu3 %v12653_v28 }
0x16f9   :  { %6613 = vmatpush.msra.mxu3 %v12661_v30 }
0x16fb   :  { %6614 = vmatpush.msra.mxu3 %v12666_v24 }
0x16fc   :  { %9074 = vmatmul.msk.f32.vlgmr.msrb.gmra.mxu3 %vm4798_vm9, %v6573_v52 }
0x16fd   :  { %6615 = vmatpush.msra.mxu3 %v12671_v2 }
0x16ff   :  { %6616 = vmatpush.msra.mxu3 %v12676_v59 }
0x1701   :  { %6617 = vmatpush.msra.mxu3 %v12681_v47 }
0x1703   :  { %6618 = vmatpush.msra.mxu3 %v12686_v16 }
0x1705   :  { %6619 = vmatpush.msra.mxu3 %v12691_v22 }
0x1707   :  { %6620 = vmatpush.msra.mxu3 %v12696_v19 }
0x1709   :  { %6621 = vmatpush.msra.mxu3 %v12701_v44 }
0x170b   :  { %6622 = vmatpush.msra.mxu3 %v12706_v6 }
0x170d   :  { %6623 = vmatpush.msra.mxu3 %v12711_v38 }
0x170e   :  { %9077 = vmatmul.msk.f32.vlgmr.msra.gmra.mxu3 %vm4939_vm15, %v9075_v58  ;;  %v9144_v58 = vld [vmem:[%s13941_s9 + $0x2b0] sm:$0xff] }
0x170f   :  { %6804 = vmatpush.msrb.mxu3 %v9097_v20  ;;  %v9123_v20 = vld [vmem:[%s13940_s8 + $0x50] sm:$0x3] }
0x1711   :  { %6805 = vmatpush.msrb.mxu3 %v9096_v32 }
0x1713   :  { %9100 = vmatpush.msk.msra.mxu3 %vm4943_vm14, %v12651_v31 }
0x1715   :  { %6820 = vmatpush.msra.mxu3 %v12653_v28 }
0x1717   :  { %6821 = vmatpush.msra.mxu3 %v12661_v30 }
0x1719   :  { %6822 = vmatpush.msra.mxu3 %v12666_v24 }
0x171b   :  { %6823 = vmatpush.msra.mxu3 %v12671_v2 }
0x171d   :  { %6824 = vmatpush.msra.mxu3 %v12676_v59 }
0x171f   :  { %6825 = vmatpush.msra.mxu3 %v12681_v47 }
0x1721   :  { %6826 = vmatpush.msra.mxu3 %v12686_v16 }
0x1723   :  { %6827 = vmatpush.msra.mxu3 %v12691_v22 }
0x1725   :  { %6828 = vmatpush.msra.mxu3 %v12696_v19 }
0x1727   :  { %6829 = vmatpush.msra.mxu3 %v12701_v44 }
0x1729   :  { %6830 = vmatpush.msra.mxu3 %v12706_v6 }
0x172b   :  { %6831 = vmatpush.msra.mxu3 %v12711_v38 }
0x1777   :  { %v6547_v9 = vpop.f32.mrf.mxu3 }
0x1778   :  { %v6550_v5 = vadd.f32 %v6547_v9, %v6498_v41 }
0x177f   :  { %v6599_v26 = vpop.f32.mrf.mxu3 }
0x1780   :  { %v6602_v60 = vadd.f32 %v6599_v26, %v6550_v5  ;;  %v9151_v5 = vld [vmem:[%s13941_s9 + $0x2c8] sm:$0xff] }
0x1791   :  { %v6625_v37 = vpop.f32.mrf.mxu3 }
0x1792   :  { %9080 = vmatmul.msk.f32.vlgmr.msra.gmra.mxu1 %vm4798_vm9, %v6625_v37  ;;  %v9129_v37 = vld [vmem:[%s13940_s8 + $0x52] sm:$0x3] }
0x1793   :  { %6856 = vmatpush.msra.mxu1 %v9103_v4  ;;  %v9171_v4 = vld [vmem:[%s13940_s8 + $0x60] sm:$0x3] }
0x1795   :  { %6857 = vmatpush.msra.mxu1 %v9102_v55  ;;  %v9175_v55 = vld [vmem:[%s13941_s9 + $0x308] sm:$0xff] }
0x179a   :  { %9083 = vmatmul.msk.f32.vlgmr.msrb.gmra.mxu1 %vm4939_vm15, %v9081_v42 }
0x179b   :  { %6908 = vmatpush.msrb.mxu1 %v9109_v33  ;;  %v9174_v33 = vld [vmem:[%s13941_s9 + $0x300] sm:$0xff] }
0x179d   :  { %6909 = vmatpush.msrb.mxu1 %v9108_v36  ;;  %v7495_v36 = vld [vmem:[%s13943_s11 + $0x18] sm:$0xff] }
0x180f   :  { %v6651_v63 = vpop.f32.mrf.mxu1 }
0x1810   :  { %v6654_v53 = vadd.f32 %v6651_v63, %v6602_v60  ;;  %v9150_v60 = vld [vmem:[%s13941_s9 + $0x2c0] sm:$0xff]  ;;  %v9135_v63 = vld [vmem:[%s13940_s8 + $0x54] sm:$0x3] }
0x1817   :  { %v6677_v14 = vpop.f32.mrf.mxu1 }
0x1818   :  { %9086 = vmatmul.msk.f32.vlgmr.msra.gmra.mxu2 %vm4798_vm9, %v6677_v14 }
0x1819   :  { %9094 = vmatpush.msk.msra.mxu2 %vm4943_vm14, %v12651_v31 }
0x181b   :  { %6768 = vmatpush.msra.mxu2 %v12653_v28 }
0x181d   :  { %6769 = vmatpush.msra.mxu2 %v12661_v30 }
0x181f   :  { %6770 = vmatpush.msra.mxu2 %v12666_v24 }
0x1820   :  { %9092 = vmatmul.msk.f32.vlgmr.msrb.gmra.mxu2 %vm4798_vm9, %v6729_v12  ;;  %v9163_v12 = vld [vmem:[%s13941_s9 + $0x2e8] sm:$0xff] }
0x1821   :  { %6771 = vmatpush.msra.mxu2 %v12671_v2 }
0x1823   :  { %6772 = vmatpush.msra.mxu2 %v12676_v59 }
0x1825   :  { %6773 = vmatpush.msra.mxu2 %v12681_v47 }
0x1827   :  { %6774 = vmatpush.msra.mxu2 %v12686_v16 }
0x1829   :  { %6775 = vmatpush.msra.mxu2 %v12691_v22 }
0x182b   :  { %6776 = vmatpush.msra.mxu2 %v12696_v19 }
0x182d   :  { %6777 = vmatpush.msra.mxu2 %v12701_v44 }
0x182f   :  { %6778 = vmatpush.msra.mxu2 %v12706_v6 }
0x1831   :  { %6779 = vmatpush.msra.mxu2 %v12711_v38 }
0x1832   :  { %9095 = vmatmul.msk.f32.vlgmr.msra.gmra.mxu2 %vm4939_vm15, %v9093_v3 }
0x1833   :  { %6960 = vmatpush.msrb.mxu2 %v9115_v0  ;;  %v9162_v0 = vld [vmem:[%s13941_s9 + $0x2e0] sm:$0xff] }
0x1835   :  { %6961 = vmatpush.msrb.mxu2 %v9114_v56  ;;  %v9141_v56 = vld [vmem:[%s13940_s8 + $0x56] sm:$0x3] }
0x1837   :  { %9118 = vmatpush.msk.msra.mxu2 %vm4943_vm14, %v12651_v31 }
0x1839   :  { %6976 = vmatpush.msra.mxu2 %v12653_v28 }
0x183b   :  { %6977 = vmatpush.msra.mxu2 %v12661_v30 }
0x183d   :  { %6978 = vmatpush.msra.mxu2 %v12666_v24 }
0x183f   :  { %6979 = vmatpush.msra.mxu2 %v12671_v2 }
0x1841   :  { %6980 = vmatpush.msra.mxu2 %v12676_v59 }
0x1843   :  { %6981 = vmatpush.msra.mxu2 %v12681_v47 }
0x1845   :  { %6982 = vmatpush.msra.mxu2 %v12686_v16 }
0x1847   :  { %6983 = vmatpush.msra.mxu2 %v12691_v22 }
0x1849   :  { %6984 = vmatpush.msra.mxu2 %v12696_v19 }
0x184b   :  { %6985 = vmatpush.msra.mxu2 %v12701_v44 }
0x184d   :  { %6986 = vmatpush.msra.mxu2 %v12706_v6 }
0x184f   :  { %6987 = vmatpush.msra.mxu2 %v12711_v38 }
0x189b   :  { %v6703_v35 = vpop.f32.mrf.mxu2 }
0x189c   :  { %v6706_v8 = vadd.f32 %v6703_v35, %v6654_v53 }
0x18a3   :  { %v6755_v10 = vpop.f32.mrf.mxu2 }
0x18a4   :  { %v6758_v27 = vadd.f32 %v6755_v10, %v6706_v8  ;;  %v9169_v10 = vld [vmem:[%s13941_s9 + $0x2f8] sm:$0xff] }
0x18b5   :  { %v6781_v62 = vpop.f32.mrf.mxu2 }
0x18b6   :  { %9098 = vmatmul.msk.f32.vlgmr.msrb.gmra.mxu3 %vm4798_vm9, %v6781_v62  ;;  %v9147_v62 = vld [vmem:[%s13940_s8 + $0x58] sm:$0x3] }
0x18b7   :  { %7012 = vmatpush.msrb.mxu3 %v9121_v18  ;;  %v9168_v18 = vld [vmem:[%s13941_s9 + $0x2f0] sm:$0xff] }
0x18b9   :  { %7013 = vmatpush.msrb.mxu3 %v9120_v13 }
0x18be   :  { %9101 = vmatmul.msk.f32.vlgmr.msra.gmra.mxu3 %vm4939_vm15, %v9099_v21 }
0x18bf   :  { %9124 = vmatpush.msk.msra.mxu3 %vm4943_vm14, %v12651_v31 }
0x18c1   :  { %7028 = vmatpush.msra.mxu3 %v12653_v28 }
0x18c3   :  { %7029 = vmatpush.msra.mxu3 %v12661_v30 }
0x18c5   :  { %7030 = vmatpush.msra.mxu3 %v12666_v24 }
0x18c7   :  { %7031 = vmatpush.msra.mxu3 %v12671_v2 }
0x18c9   :  { %7032 = vmatpush.msra.mxu3 %v12676_v59 }
0x18cb   :  { %7033 = vmatpush.msra.mxu3 %v12681_v47 }
0x18cd   :  { %7034 = vmatpush.msra.mxu3 %v12686_v16 }
0x18cf   :  { %7035 = vmatpush.msra.mxu3 %v12691_v22 }
0x18d1   :  { %7036 = vmatpush.msra.mxu3 %v12696_v19 }
0x18d3   :  { %7037 = vmatpush.msra.mxu3 %v12701_v44 }
0x18d5   :  { %7038 = vmatpush.msra.mxu3 %v12706_v6 }
0x18d7   :  { %7039 = vmatpush.msra.mxu3 %v12711_v38 }
0x1939   :  { %v6807_v46 = vpop.f32.mrf.mxu3 }
0x193a   :  { %v6810_v23 = vadd.f32 %v6807_v46, %v6758_v27 }
0x1941   :  { %v6833_v54 = vpop.f32.mrf.mxu3 }
0x1942   :  { %9104 = vmatmul.msk.f32.vlgmr.msra.gmra.mxu1 %vm4798_vm9, %v6833_v54 }
0x1943   :  { %9112 = vmatpush.msk.msra.mxu1 %vm4943_vm14, %v12651_v31 }
0x1945   :  { %6924 = vmatpush.msra.mxu1 %v12653_v28 }
0x1947   :  { %6925 = vmatpush.msra.mxu1 %v12661_v30 }
0x1949   :  { %6926 = vmatpush.msra.mxu1 %v12666_v24 }
0x194a   :  { %9110 = vmatmul.msk.f32.vlgmr.msrb.gmra.mxu1 %vm4798_vm9, %v6885_v7  ;;  %v7494_v7 = vld [vmem:[%s13943_s11 + $0x10] sm:$0xff] }
0x194b   :  { %6927 = vmatpush.msra.mxu1 %v12671_v2 }
0x194d   :  { %6928 = vmatpush.msra.mxu1 %v12676_v59 }
0x194f   :  { %6929 = vmatpush.msra.mxu1 %v12681_v47 }
0x1951   :  { %6930 = vmatpush.msra.mxu1 %v12686_v16 }
0x1953   :  { %6931 = vmatpush.msra.mxu1 %v12691_v22 }
0x1955   :  { %6932 = vmatpush.msra.mxu1 %v12696_v19 }
0x1957   :  { %6933 = vmatpush.msra.mxu1 %v12701_v44 }
0x1959   :  { %6934 = vmatpush.msra.mxu1 %v12706_v6 }
0x195b   :  { %6935 = vmatpush.msra.mxu1 %v12711_v38 }
0x195c   :  { %9113 = vmatmul.msk.f32.vlgmr.msra.gmra.mxu1 %vm4939_vm15, %v9111_v39  ;;  %v7493_v39 = vld [vmem:[%s13943_s11 + $0x8] sm:$0xff] }
0x195d   :  { %7116 = vmatpush.msrb.mxu1 %v9133_v57  ;;  %v7492_v57 = vld [vmem:[%s13943_s11] sm:$0xff] }
0x195f   :  { %7117 = vmatpush.msrb.mxu1 %v9132_v51  ;;  %v9421_v51 = vld [vmem:[%s13942_s10] ss:$0 sm:$0xff]  ;;  %s9460_s10 = smov [#allocation2]  }
0x1960   :  { %s7544_s11 = sshll.u32 %s9460_s10, 4  ;;  %s7545_s11 = int_to_ptr.vmem [resolvable:$true] %s7544_s11 }
0x1961   :  { %9136 = vmatpush.msk.msra.mxu1 %vm4943_vm14, %v12651_v31 }
0x1963   :  { %7132 = vmatpush.msra.mxu1 %v12653_v28 }
0x1965   :  { %7133 = vmatpush.msra.mxu1 %v12661_v30 }
0x1967   :  { %7134 = vmatpush.msra.mxu1 %v12666_v24 }
0x1969   :  { %7135 = vmatpush.msra.mxu1 %v12671_v2 }
0x196b   :  { %7136 = vmatpush.msra.mxu1 %v12676_v59 }
0x196d   :  { %7137 = vmatpush.msra.mxu1 %v12681_v47 }
0x196f   :  { %7138 = vmatpush.msra.mxu1 %v12686_v16 }
0x1971   :  { %7139 = vmatpush.msra.mxu1 %v12691_v22 }
0x1973   :  { %7140 = vmatpush.msra.mxu1 %v12696_v19 }
0x1975   :  { %7141 = vmatpush.msra.mxu1 %v12701_v44 }
0x1977   :  { %7142 = vmatpush.msra.mxu1 %v12706_v6 }
0x1979   :  { %7143 = vmatpush.msra.mxu1 %v12711_v38 }
0x19bf   :  { %v6859_v15 = vpop.f32.mrf.mxu1 }
0x19c0   :  { %v6862_v25 = vadd.f32 %v6859_v15, %v6810_v23 }
0x19c7   :  { %v6911_v45 = vpop.f32.mrf.mxu1 }
0x19c8   :  { %v6914_v61 = vadd.f32 %v6911_v45, %v6862_v25 }
0x19d9   :  { %v6937_v40 = vpop.f32.mrf.mxu1 }
0x19da   :  { %9116 = vmatmul.msk.f32.vlgmr.msrb.gmra.mxu2 %vm4798_vm9, %v6937_v40 }
0x19db   :  { %7168 = vmatpush.msrb.mxu2 %v9139_v43 }
0x19dd   :  { %7169 = vmatpush.msrb.mxu2 %v9138_v50 }
0x19e2   :  { %9119 = vmatmul.msk.f32.vlgmr.msra.gmra.mxu2 %vm4939_vm15, %v9117_v1 }
0x19e3   :  { %9142 = vmatpush.msk.msra.mxu2 %vm4943_vm14, %v12651_v31 }
0x19e5   :  { %7184 = vmatpush.msra.mxu2 %v12653_v28 }
0x19e7   :  { %7185 = vmatpush.msra.mxu2 %v12661_v30 }
0x19e9   :  { %7186 = vmatpush.msra.mxu2 %v12666_v24 }
0x19eb   :  { %7187 = vmatpush.msra.mxu2 %v12671_v2 }
0x19ed   :  { %7188 = vmatpush.msra.mxu2 %v12676_v59 }
0x19ef   :  { %7189 = vmatpush.msra.mxu2 %v12681_v47 }
0x19f1   :  { %7190 = vmatpush.msra.mxu2 %v12686_v16 }
0x19f3   :  { %7191 = vmatpush.msra.mxu2 %v12691_v22 }
0x19f5   :  { %7192 = vmatpush.msra.mxu2 %v12696_v19 }
0x19f7   :  { %7193 = vmatpush.msra.mxu2 %v12701_v44 }
0x19f9   :  { %7194 = vmatpush.msra.mxu2 %v12706_v6 }
0x19fb   :  { %7195 = vmatpush.msra.mxu2 %v12711_v38 }
0x1a5d   :  { %v6963_v48 = vpop.f32.mrf.mxu2 }
0x1a5e   :  { %v6966_v41 = vadd.f32 %v6963_v48, %v6914_v61  ;;  %v9422_v61 = vld [vmem:[%s13944_s12] ss:$0 sm:$0xff] }
0x1a65   :  { %v6989_v52 = vpop.f32.mrf.mxu2 }
0x1a66   :  { %9122 = vmatmul.msk.f32.vlgmr.msrb.gmra.mxu3 %vm4798_vm9, %v6989_v52 }
0x1a67   :  { %7220 = vmatpush.msrb.mxu3 %v9145_v34 }
0x1a69   :  { %7221 = vmatpush.msrb.mxu3 %v9144_v58 }
0x1a6e   :  { %9125 = vmatmul.msk.f32.vlgmr.msra.gmra.mxu3 %vm4939_vm15, %v9123_v20 }
0x1a6f   :  { %9148 = vmatpush.msk.msra.mxu3 %vm4943_vm14, %v12651_v31 }
0x1a71   :  { %7236 = vmatpush.msra.mxu3 %v12653_v28 }
0x1a73   :  { %7237 = vmatpush.msra.mxu3 %v12661_v30 }
0x1a75   :  { %7238 = vmatpush.msra.mxu3 %v12666_v24 }
0x1a77   :  { %7239 = vmatpush.msra.mxu3 %v12671_v2 }
0x1a79   :  { %7240 = vmatpush.msra.mxu3 %v12676_v59 }
0x1a7b   :  { %7241 = vmatpush.msra.mxu3 %v12681_v47 }
0x1a7d   :  { %7242 = vmatpush.msra.mxu3 %v12686_v16 }
0x1a7f   :  { %7243 = vmatpush.msra.mxu3 %v12691_v22 }
0x1a81   :  { %7244 = vmatpush.msra.mxu3 %v12696_v19 }
0x1a83   :  { %7245 = vmatpush.msra.mxu3 %v12701_v44 }
0x1a85   :  { %7246 = vmatpush.msra.mxu3 %v12706_v6 }
0x1a87   :  { %7247 = vmatpush.msra.mxu3 %v12711_v38 }
0x1ae9   :  { %v7015_v32 = vpop.f32.mrf.mxu3 }
0x1aea   :  { %v7018_v9 = vadd.f32 %v7015_v32, %v6966_v41 }
0x1af1   :  { %v7041_v26 = vpop.f32.mrf.mxu3 }
0x1af2   :  { %9128 = vmatmul.msk.f32.vlgmr.msra.gmra.mxu0 %vm4798_vm9, %v7041_v26 }
0x1af3   :  { %7272 = vmatpush.msra.mxu0 %v9151_v5 }
0x1af5   :  { %7273 = vmatpush.msra.mxu0 %v9150_v60 }
0x1afa   :  { %9131 = vmatmul.msk.f32.vlgmr.msrb.gmra.mxu0 %vm4939_vm15, %v9129_v37 }
0x1afb   :  { %9154 = vmatpush.msk.msrb.mxu0 %vm4943_vm14, %v12651_v31 }
0x1afd   :  { %7288 = vmatpush.msrb.mxu0 %v12653_v28 }
0x1aff   :  { %7289 = vmatpush.msrb.mxu0 %v12661_v30 }
0x1b01   :  { %7290 = vmatpush.msrb.mxu0 %v12666_v24 }
0x1b03   :  { %7291 = vmatpush.msrb.mxu0 %v12671_v2 }
0x1b05   :  { %7292 = vmatpush.msrb.mxu0 %v12676_v59 }
0x1b07   :  { %7293 = vmatpush.msrb.mxu0 %v12681_v47 }
0x1b09   :  { %7294 = vmatpush.msrb.mxu0 %v12686_v16 }
0x1b0b   :  { %7295 = vmatpush.msrb.mxu0 %v12691_v22 }
0x1b0d   :  { %7296 = vmatpush.msrb.mxu0 %v12696_v19 }
0x1b0f   :  { %7297 = vmatpush.msrb.mxu0 %v12701_v44 }
0x1b11   :  { %7298 = vmatpush.msrb.mxu0 %v12706_v6 }
0x1b13   :  { %7299 = vmatpush.msrb.mxu0 %v12711_v38 }
0x1b6f   :  { %v7067_v42 = vpop.f32.mrf.mxu0 }
0x1b70   :  { %v7070_v29 = vadd.f32 %v7067_v42, %v7018_v9 }
0x1b77   :  { %v7093_v11 = vpop.f32.mrf.mxu0 }
0x1b78   :  { %9134 = vmatmul.msk.f32.vlgmr.msrb.gmra.mxu1 %vm4798_vm9, %v7093_v11 }
0x1b79   :  { %7324 = vmatpush.msrb.mxu1 %v9157_v17 }
0x1b7b   :  { %7325 = vmatpush.msrb.mxu1 %v9156_v49 }
0x1b80   :  { %9137 = vmatmul.msk.f32.vlgmr.msra.gmra.mxu1 %vm4939_vm15, %v9135_v63 }
0x1b81   :  { %9160 = vmatpush.msk.msra.mxu1 %vm4943_vm14, %v12651_v31 }
0x1b83   :  { %7340 = vmatpush.msra.mxu1 %v12653_v28 }
0x1b85   :  { %7341 = vmatpush.msra.mxu1 %v12661_v30 }
0x1b87   :  { %7342 = vmatpush.msra.mxu1 %v12666_v24 }
0x1b89   :  { %7343 = vmatpush.msra.mxu1 %v12671_v2 }
0x1b8b   :  { %7344 = vmatpush.msra.mxu1 %v12676_v59 }
0x1b8d   :  { %7345 = vmatpush.msra.mxu1 %v12681_v47 }
0x1b8f   :  { %7346 = vmatpush.msra.mxu1 %v12686_v16 }
0x1b91   :  { %7347 = vmatpush.msra.mxu1 %v12691_v22 }
0x1b93   :  { %7348 = vmatpush.msra.mxu1 %v12696_v19 }
0x1b95   :  { %7349 = vmatpush.msra.mxu1 %v12701_v44 }
0x1b97   :  { %7350 = vmatpush.msra.mxu1 %v12706_v6 }
0x1b99   :  { %7351 = vmatpush.msra.mxu1 %v12711_v38 }
0x1bf5   :  { %v7119_v53 = vpop.f32.mrf.mxu1 }
0x1bf6   :  { %v7122_v14 = vadd.f32 %v7119_v53, %v7070_v29 }
0x1bfd   :  { %v7145_v3 = vpop.f32.mrf.mxu1 }
0x1bfe   :  { %9140 = vmatmul.msk.f32.vlgmr.msrb.gmra.mxu2 %vm4798_vm9, %v7145_v3 }
0x1bff   :  { %7376 = vmatpush.msrb.mxu2 %v9163_v12 }
0x1c01   :  { %7377 = vmatpush.msrb.mxu2 %v9162_v0 }
0x1c06   :  { %9143 = vmatmul.msk.f32.vlgmr.msra.gmra.mxu2 %vm4939_vm15, %v9141_v56 }
0x1c07   :  { %9166 = vmatpush.msk.msra.mxu2 %vm4943_vm14, %v12651_v31 }
0x1c09   :  { %7392 = vmatpush.msra.mxu2 %v12653_v28 }
0x1c0b   :  { %7393 = vmatpush.msra.mxu2 %v12661_v30 }
0x1c0d   :  { %7394 = vmatpush.msra.mxu2 %v12666_v24 }
0x1c0f   :  { %7395 = vmatpush.msra.mxu2 %v12671_v2 }
0x1c11   :  { %7396 = vmatpush.msra.mxu2 %v12676_v59 }
0x1c13   :  { %7397 = vmatpush.msra.mxu2 %v12681_v47 }
0x1c15   :  { %7398 = vmatpush.msra.mxu2 %v12686_v16 }
0x1c17   :  { %7399 = vmatpush.msra.mxu2 %v12691_v22 }
0x1c19   :  { %7400 = vmatpush.msra.mxu2 %v12696_v19 }
0x1c1b   :  { %7401 = vmatpush.msra.mxu2 %v12701_v44 }
0x1c1d   :  { %7402 = vmatpush.msra.mxu2 %v12706_v6 }
0x1c1f   :  { %7403 = vmatpush.msra.mxu2 %v12711_v38 }
0x1c81   :  { %v7171_v35 = vpop.f32.mrf.mxu2 }
0x1c82   :  { %v7174_v8 = vadd.f32 %v7171_v35, %v7122_v14 }
0x1c89   :  { %v7197_v27 = vpop.f32.mrf.mxu2 }
0x1c8a   :  { %9146 = vmatmul.msk.f32.vlgmr.msrb.gmra.mxu3 %vm4798_vm9, %v7197_v27 }
0x1c8b   :  { %7428 = vmatpush.msrb.mxu3 %v9169_v10 }
0x1c8d   :  { %7429 = vmatpush.msrb.mxu3 %v9168_v18 }
0x1c92   :  { %9149 = vmatmul.msk.f32.vlgmr.msra.gmra.mxu3 %vm4939_vm15, %v9147_v62 }
0x1c93   :  { %9172 = vmatpush.msk.msra.mxu3 %vm4943_vm14, %v12651_v31 }
0x1c95   :  { %7444 = vmatpush.msra.mxu3 %v12653_v28 }
0x1c97   :  { %7445 = vmatpush.msra.mxu3 %v12661_v30 }
0x1c99   :  { %7446 = vmatpush.msra.mxu3 %v12666_v24  ;;  %v9153_v24 = vld [vmem:[%s13940_s8 + $0x5a] sm:$0x3] }
0x1c9b   :  { %7447 = vmatpush.msra.mxu3 %v12671_v2 }
0x1c9d   :  { %7448 = vmatpush.msra.mxu3 %v12676_v59 }
0x1c9f   :  { %7449 = vmatpush.msra.mxu3 %v12681_v47 }
0x1ca1   :  { %7450 = vmatpush.msra.mxu3 %v12686_v16  ;;  %v9159_v16 = vld [vmem:[%s13940_s8 + $0x5c] sm:$0x3] }
0x1ca3   :  { %7451 = vmatpush.msra.mxu3 %v12691_v22 }
0x1ca5   :  { %7452 = vmatpush.msra.mxu3 %v12696_v19 }
0x1ca7   :  { %7453 = vmatpush.msra.mxu3 %v12701_v44 }
0x1ca9   :  { %7454 = vmatpush.msra.mxu3 %v12706_v6  ;;  %v9165_v6 = vld [vmem:[%s13940_s8 + $0x5e] sm:$0x3] }
0x1cab   :  { %7455 = vmatpush.msra.mxu3 %v12711_v38 }
0x1d0d   :  { %v7223_v31 = vpop.f32.mrf.mxu3 }
0x1d0e   :  { %v7226_v28 = vadd.f32 %v7223_v31, %v7174_v8 }
0x1d15   :  { %v7249_v30 = vpop.f32.mrf.mxu3 }
0x1d16   :  { %9152 = vmatmul.msk.f32.vlgmr.msra.gmra.mxu0 %vm4798_vm9, %v7249_v30 }
0x1d17   :  { %7480 = vmatpush.msra.mxu0 %v9175_v55 }
0x1d19   :  { %7481 = vmatpush.msra.mxu0 %v9174_v33 }
0x1d1e   :  { %9155 = vmatmul.msk.f32.vlgmr.msrb.gmra.mxu0 %vm4939_vm15, %v9153_v24 }
0x1d1f   :  { %7516 = vmatpush.msrb.mxu0 %v7495_v36 }
0x1d21   :  { %7517 = vmatpush.msrb.mxu0 %v7494_v7 }
0x1d23   :  { %7518 = vmatpush.msrb.mxu0 %v7493_v39 }
0x1d25   :  { %7519 = vmatpush.msrb.mxu0 %v7492_v57 }
0x1d93   :  { %v7275_v2 = vpop.f32.mrf.mxu0 }
0x1d94   :  { %v7278_v59 = vadd.f32 %v7275_v2, %v7226_v28 }
0x1d9b   :  { %v7301_v47 = vpop.f32.mrf.mxu0 }
0x1d9c   :  { %9158 = vmatmul.msk.f32.vlgmr.msrb.gmra.mxu1 %vm4798_vm9, %v7301_v47 }
0x1da4   :  { %9161 = vmatmul.msk.f32.vlgmr.msra.gmra.mxu1 %vm4939_vm15, %v9159_v16 }
0x1e19   :  { %v7327_v22 = vpop.f32.mrf.mxu1 }
0x1e1a   :  { %v7330_v19 = vadd.f32 %v7327_v22, %v7278_v59 }
0x1e21   :  { %v7353_v44 = vpop.f32.mrf.mxu1 }
0x1e22   :  { %9164 = vmatmul.msk.f32.vlgmr.msrb.gmra.mxu2 %vm4798_vm9, %v7353_v44 }
0x1e2a   :  { %9167 = vmatmul.msk.f32.vlgmr.msra.gmra.mxu2 %vm4939_vm15, %v9165_v6 }
0x1ea5   :  { %v7379_v38 = vpop.f32.mrf.mxu2 }
0x1ea6   :  { %v7382_v13 = vadd.f32 %v7379_v38, %v7330_v19 }
0x1ead   :  { %v7405_v21 = vpop.f32.mrf.mxu2 }
0x1eae   :  { %9170 = vmatmul.msk.f32.vlgmr.msrb.gmra.mxu3 %vm4798_vm9, %v7405_v21 }
0x1eb6   :  { %9173 = vmatmul.msk.f32.vlgmr.msra.gmra.mxu3 %vm4939_vm15, %v9171_v4 }
0x1f31   :  { %v7431_v46 = vpop.f32.mrf.mxu3 }
0x1f32   :  { %v7434_v23 = vadd.f32 %v7431_v46, %v7382_v13 }
0x1f39   :  { %v7457_v54 = vpop.f32.mrf.mxu3 }
0x1f3a   :  { %9176 = vmatmul.msk.f32.vlgmr.msra.gmra.mxu0 %vm4798_vm9, %v7457_v54 }
0x1fb7   :  { %v7483_v15 = vpop.f32.mrf.mxu0 }
0x1fb8   :  { %v7486_v25 = vadd.f32 %v7483_v15, %v7434_v23 }
0x1fba   :  { %v7491_v45 = vadd.f32 %v9421_v51, %v7486_v25 }
0x1fbc   :  { %9177 = vmatmul.msk.f32.vlgmr.msrb.gmra.mxu0 %vm7500_vm0, %v7491_v45 }
0x2039   :  { %v7521_v43 = vpop.f32.mrf.mxu0 }
0x203a   :  { %v7522_v40 = vadd.f32 %v9422_v61, %v7521_v43 }
0x203c   :  { %v7525_v50 = vsel %vm7524_vm1, %v7522_v40, -inf }
0x203d   :  { %7526 = vmax.xlane.f32.xlu0 %v7525_v50 }
0x20b0   :  { %v7527_v1 = vpop.xlane.xlu0 %7526 }
0x20b1   :  { %v7528_v48 = vsub.f32 %v7522_v40, %v7527_v1 }
0x20b3   :  { %v7529_v41 = vmul.f32 1.442695, %v7528_v48 }
0x20b5   :  { %9427 = vpow2.f32 %v7529_v41 }
0x20bb   :  { %v9428_v34 = vpop.eup %9427 }
0x20bc   :  { %v7531_v52 = vsel %vm7524_vm1, %v9428_v34, 0.0 }
0x20bd   :  { %7532 = vadd.xlane.f32.xlu0 %v7531_v52 }
0x2130   :  { %v7533_v58 = vpop.xlane.xlu0 %7532 }
0x2131   :  { %9429 = vlog2.f32 %v7533_v58 }
0x2137   :  { %v9430_v20 = vpop.eup %9429 }
0x2138   :  { %v7535_v32 = vmul.f32 0.6931472, %v9430_v20 }
0x213a   :  { %v7536_v9 = vadd.f32 %v7535_v32, %v7527_v1 }
0x213c   :  { %v7537_v5 = vsub.f32 %v7522_v40, %v7536_v9 }
0x213e   :  { %7538 = vst.msk [vmem:[#allocation2] sm:$0x3] %vm7524_vm1, %v7537_v5 }
0x213f   :  { %7549 = dma.vmem_to_hbm [thread:$0]  %s7545_s11, 32, %s7547_s29, [#allocation3]  }
0x2140   :  { %9457 = dma.done.wait [#allocation3], 32  }
0x2141   :  { %9458 = vsyncadd [#allocation3], 4294967264 }
0x2142   :  { %7554 = vsyncpa [#allocation3], 1 }

</bundles_post_ra>
